<compile_context>
chip_gen: v7x
topology: tpu7x:2x2x1
jax: 0.10.0
libtpu: 0.0.40
codegen_flags: <defaults>
</compile_context>

<pallas_src>
import functools

import jax
import jax.numpy as jnp
import numpy as np
from jax import lax
from jax.experimental import pallas as pl
from jax.experimental.pallas import tpu as pltpu

# Batch rows per grid step == lane width of every block. 128 keeps grid >= 2 (and even)
# for the small test shape so v7x can shard the "parallel" axis across both TensorCores;
# on single-TC v5e/v6e it can be raised (256-1024) to amortize per-step overhead.
NT = 128


# ----------------------------- Pallas kernel --------------------------------

def cnn_centralv_kernel(x_ref, mask_ref, w1_ref, b1_ref, w2_ref, b2_ref,
                        w3_ref, b3_ref, out_ref, *, H, W):
    """One grid step processes NT (bs*t) rows.

    x_ref   : (1, C, Hp*Wp*NT) bf16 -- zero-padded image, flat Wp-strided layout,
              column index = (y'*Wp + x')*NT + t.
    mask_ref: (1, NJ) f32 -- 1.0 on valid Wp-strided output columns, 0.0 on phantoms.
    w1_ref  : (c1, 9*C) bf16, columns ordered (dy, dx, c_in).   b1_ref: (c1, 1) f32.
    w2_ref  : (c2, 9*c1) bf16.                                  b2_ref: (c2, 1) f32.
    w3_ref  : (c2, 1) f32 (1x1 head).                           b3_ref: (1, 1) f32.
    out_ref : (1, NT) f32 -- lane-dense value row for this batch tile.
    """
    Wp = W + 2
    nt = out_ref.shape[1]
    nj = mask_ref.shape[1]                       # ((H-1)*Wp + W) * nt
    c1 = w1_ref.shape[0]

    xf = x_ref[0]                                # (C, Hp*Wp*nt) bf16, borders already zero
    mask = mask_ref[...]                         # (1, nj) f32

    def conv3x3(act_flat, w_ref, b_ref):
        # act_flat: (c_in, Hp*Wp*nt) bf16 padded-flat activation (zero borders).
        # Every 3x3 tap is a contiguous, lane-aligned slice; stack 9 of them along the
        # leading (sublane-major) axis -> single im2col matmul with K = 9*c_in and the
        # ~H*W*NT axis lane-dense on the MXU N side.
        taps = [act_flat[:, (dy * Wp + dx) * nt:(dy * Wp + dx) * nt + nj]
                for dy in range(3) for dx in range(3)]
        slab = jnp.concatenate(taps, axis=0)                      # (9*c_in, nj) bf16
        acc = lax.dot_general(w_ref[...], slab,
                              (((1,), (0,)), ((), ())),
                              preferred_element_type=jnp.float32)  # (c_out, nj) f32
        return jnp.maximum(acc + b_ref[...], 0.0)

    # conv1 + ReLU
    h1 = conv3x3(xf, w1_ref, b1_ref)                              # (c1, nj) f32
    # Zero the Wp-stride phantom columns; when h1 is placed back into the padded-flat
    # layout those columns land exactly on the zero-pad border cells of conv2's input.
    h1 = (h1 * mask).astype(jnp.bfloat16)
    zpad = jnp.zeros((c1, (Wp + 1) * nt), jnp.bfloat16)
    ph1 = jnp.concatenate([zpad, h1, zpad], axis=1)               # (c1, Hp*Wp*nt) bf16

    # conv2 + ReLU
    h2 = conv3x3(ph1, w2_ref, b2_ref)                             # (c2, nj) f32

    # 1x1 head + th.sum over (-1,-2,-3):
    #   per-channel scale by w3 (lane broadcast), mask phantoms, lane-aligned spatial
    #   chunk-sum (tree), then sublane reduce over c2 -> lane-dense (1, NT) row.
    g = h2 * w3_ref[...] * mask                                   # (c2, nj) f32
    chunks = [g[:, p * nt:(p + 1) * nt] for p in range(nj // nt)]
    while len(chunks) > 1:
        nxt = [chunks[i] + chunks[i + 1] for i in range(0, len(chunks) - 1, 2)]
        if len(chunks) % 2:
            nxt.append(chunks[-1])
        chunks = nxt
    spatial_sum = chunks[0]                                       # (c2, nt) f32
    v = jnp.sum(spatial_sum, axis=0, keepdims=True)               # (1, nt) f32
    out_ref[...] = v + b3_ref[...] * float(H * W)                 # 1x1 bias summed H*W times


# ------------------------------- Wrapper -------------------------------------

@functools.partial(jax.jit, static_argnames=("n_agents",))
def cnn_centralv_forward(state, params, n_agents):
    """state: (bs, max_t, C, H, W). Returns (bs, max_t, n_agents, 1)."""
    bs, max_t, C, H, W = state.shape
    Hp, Wp = H + 2, W + 2
    n = bs * max_t                                  # agents share the central state
    nt = NT
    n_pad = ((n + nt - 1) // nt) * nt
    n_chunks = n_pad // nt
    nj = ((H - 1) * Wp + W) * nt

    # inputs -= 0.5 on the real data, zero-pad spatially (PyTorch conv padding) and over
    # the batch tail, then lay out as (chunk, C, Hp*Wp*NT) with NT as the minor (lane)
    # dim and the padded spatial grid pre-flattened (pure XLA layout plumbing).
    x = state.reshape(n, C, H, W).astype(jnp.float32) - 0.5
    x = jnp.pad(x, ((0, n_pad - n), (0, 0), (1, 1), (1, 1)))      # (n_pad, C, Hp, Wp)
    x = x.reshape(n_chunks, nt, C, Hp * Wp)
    x = jnp.transpose(x, (0, 2, 3, 1)).reshape(n_chunks, C, Hp * Wp * nt)
    x = x.astype(jnp.bfloat16)

    c1 = params["w1"].shape[-1]
    c2 = params["w2"].shape[-1]
    # (c_out, 9*c_in) weights, columns ordered (dy, dx, c_in) to match the slab rows.
    w1 = jnp.transpose(params["w1"], (3, 0, 1, 2)).reshape(c1, 9 * C).astype(jnp.bfloat16)
    w2 = jnp.transpose(params["w2"], (3, 0, 1, 2)).reshape(c2, 9 * c1).astype(jnp.bfloat16)
    b1 = params["b1"].reshape(c1, 1).astype(jnp.float32)
    b2 = params["b2"].reshape(c2, 1).astype(jnp.float32)
    w3 = params["w3"].reshape(c2, 1).astype(jnp.float32)
    b3 = params["b3"].reshape(1, 1).astype(jnp.float32)

    # validity mask over Wp-strided output columns (compile-time constant).
    pmask = (np.arange(nj // nt) % Wp) < W
    mask = jnp.asarray(np.repeat(pmask.astype(np.float32), nt).reshape(1, nj))

    flops = 2 * n_pad * H * W * (9 * C * c1 + 9 * c1 * c2 + c2)
    bytes_accessed = (x.size * 2 + w1.size * 2 + w2.size * 2
                      + (b1.size + b2.size + w3.size + b3.size + mask.size + n_pad) * 4)

    kernel = functools.partial(cnn_centralv_kernel, H=H, W=W)

    out = pl.pallas_call(
        kernel,
        out_shape=jax.ShapeDtypeStruct((1, n_pad), jnp.float32),
        grid_spec=pltpu.PrefetchScalarGridSpec(
            num_scalar_prefetch=0,
            grid=(n_chunks,),
            in_specs=[
                pl.BlockSpec((1, C, Hp * Wp * nt), lambda i: (i, 0, 0)),   # batch-tiled input
                pl.BlockSpec((1, nj), lambda i: (0, 0)),                   # column mask
                pl.BlockSpec((c1, 9 * C), lambda i: (0, 0)),               # weights: constant
                pl.BlockSpec((c1, 1), lambda i: (0, 0)),                   # blocks, fetched once
                pl.BlockSpec((c2, 9 * c1), lambda i: (0, 0)),
                pl.BlockSpec((c2, 1), lambda i: (0, 0)),
                pl.BlockSpec((c2, 1), lambda i: (0, 0)),
                pl.BlockSpec((1, 1), lambda i: (0, 0)),
            ],
            out_specs=pl.BlockSpec((1, nt), lambda i: (0, i)),             # lane-dense out row
        ),
        compiler_params=pltpu.CompilerParams(
            dimension_semantics=("parallel",),     # no cross-step state -> safe on 2-TC v7x
            vmem_limit_bytes=48 * 1024 * 1024,     # headroom under v7x's 64 MiB
        ),
        cost_estimate=pl.CostEstimate(flops=flops, transcendentals=0,
                                      bytes_accessed=bytes_accessed),
    )(x, mask, w1, b1, w2, b2, w3, b3)

    v = out[0, :n].reshape(bs, max_t, 1, 1)
    # every agent gets the same repeated central state -> identical value; broadcast.
    # TODO(synk): if the real _build_inputs adds agent-specific features this broadcast
    # must be replaced by per-agent rows.
    return jnp.broadcast_to(v, (bs, max_t, n_agents, 1))


# --------------------------- Param init & reference --------------------------

def init_params(key, c_in, c1, c2):
    def uni(k, shape, fan_in):
        b = 1.0 / np.sqrt(fan_in)
        return jax.random.uniform(k, shape, jnp.float32, -b, b)
    ks = jax.random.split(key, 6)
    return {
        "w1": uni(ks[0], (3, 3, c_in, c1), 9 * c_in),   # HWIO
        "b1": uni(ks[1], (1, c1), 9 * c_in),
        "w2": uni(ks[2], (3, 3, c1, c2), 9 * c1),
        "b2": uni(ks[3], (1, c2), 9 * c1),
        "w3": uni(ks[4], (c2, 1), c2),
        "b3": uni(ks[5], (1, 1), c2),
    }


def reference_forward(state, params, n_agents):
    """Pure-JAX (XLA conv) mirror of the PyTorch forward, quantization-matched to the
    kernel's bf16-at-MXU points."""
    bs, max_t, C, H, W = state.shape
    f32, bf16 = jnp.float32, jnp.bfloat16
    x = (state.reshape(-1, C, H, W).astype(f32) - 0.5).astype(bf16).astype(f32)

    def conv(x, w_hwio, b):
        w = jnp.transpose(w_hwio.astype(bf16).astype(f32), (3, 2, 0, 1))   # OIHW
        y = lax.conv_general_dilated(
            x, w, (1, 1), [(1, 1), (1, 1)],
            dimension_numbers=("NCHW", "OIHW", "NCHW"),
            preferred_element_type=f32)
        return y + b.reshape(1, -1, 1, 1)

    h1 = jax.nn.relu(conv(x, params["w1"], params["b1"][0]))
    h1 = h1.astype(bf16).astype(f32)                     # kernel re-quantizes h1
    h2 = jax.nn.relu(conv(h1, params["w2"], params["b2"][0]))
    c2 = params["w2"].shape[-1]
    w3col = params["w3"][:, 0].reshape(1, c2, 1, 1)
    out = jnp.sum(h2 * w3col, axis=(-1, -2, -3)) + params["b3"][0, 0] * (H * W)
    out = out.reshape(bs, max_t, 1, 1)
    return jnp.broadcast_to(out, (bs, max_t, n_agents, 1))


# ---------------------------------- Main --------------------------------------

if __name__ == "__main__":
    bs, max_t, n_agents = 2, 100, 3      # bs*max_t = 200 -> padded to 256 -> grid=(2,)
    C_IN, H, W = 4, 8, 8                 # scheme['state']['vshape'] = (4, 8, 8)
    C1, C2 = 16, 32

    key = jax.random.PRNGKey(0)
    k_state, k_params = jax.random.split(key)
    state = jax.random.uniform(k_state, (bs, max_t, C_IN, H, W), jnp.float32)
    params = init_params(k_params, C_IN, C1, C2)

    out = cnn_centralv_forward(state, params, n_agents)
    out = jax.block_until_ready(out)

    assert out.shape == (bs, max_t, n_agents, 1)
    # NaN check from the PyTorch forward, done host-side.
    assert not bool(jnp.isnan(out).any()), "NaN in output"

    ref = jax.block_until_ready(reference_forward(state, params, n_agents))
    np.testing.assert_allclose(np.asarray(out), np.asarray(ref), rtol=5e-3, atol=5e-3)

    print("KERNEL_OK")
</pallas_src>

<mosaic_0001>
module attributes {stable_mosaic.version = 11 : i64} {
  func.func @cnn_centralv_kernel(%arg0: i32, %arg1: memref<1x4x12800xbf16, #tpu.memory_space<vmem>>, %arg2: memref<1x9984xf32, #tpu.memory_space<vmem>>, %arg3: memref<16x36xbf16, #tpu.memory_space<vmem>>, %arg4: memref<16x1xf32, #tpu.memory_space<vmem>>, %arg5: memref<32x144xbf16, #tpu.memory_space<vmem>>, %arg6: memref<32x1xf32, #tpu.memory_space<vmem>>, %arg7: memref<32x1xf32, #tpu.memory_space<vmem>>, %arg8: memref<1x1xf32, #tpu.memory_space<vmem>>, %arg9: memref<1x128xf32, #tpu.memory_space<vmem>>) attributes {dimension_semantics = [#tpu.dimension_semantics<parallel>], iteration_bounds = array<i64: 2>, scalar_prefetch = 0 : i64, scratch_operands = 0 : i64, tpu.core_type = #tpu.core_type<tc>, window_params = [{transform_indices = @transform_0, window_bounds = array<i64: 1, 4, 12800>}, {pipeline_mode = #tpu.pipeline_mode<synchronous>, transform_indices = @transform_1, window_bounds = array<i64: 1, 9984>}, {pipeline_mode = #tpu.pipeline_mode<synchronous>, transform_indices = @transform_2, window_bounds = array<i64: 16, 36>}, {pipeline_mode = #tpu.pipeline_mode<synchronous>, transform_indices = @transform_3, window_bounds = array<i64: 16, 1>}, {pipeline_mode = #tpu.pipeline_mode<synchronous>, transform_indices = @transform_4, window_bounds = array<i64: 32, 144>}, {pipeline_mode = #tpu.pipeline_mode<synchronous>, transform_indices = @transform_5, window_bounds = array<i64: 32, 1>}, {pipeline_mode = #tpu.pipeline_mode<synchronous>, transform_indices = @transform_6, window_bounds = array<i64: 32, 1>}, {pipeline_mode = #tpu.pipeline_mode<synchronous>, transform_indices = @transform_7, window_bounds = array<i64: 1, 1>}, {transform_indices = @transform_8, window_bounds = array<i64: 1, 128>}]} {
    %c0 = arith.constant 0 : index
    %c0_0 = arith.constant 0 : index
    %c0_1 = arith.constant 0 : index
    %0 = vector.load %arg1[%c0, %c0_0, %c0_1] : memref<1x4x12800xbf16, #tpu.memory_space<vmem>>, vector<1x4x12800xbf16>
    %1 = vector.shape_cast %0 : vector<1x4x12800xbf16> to vector<4x12800xbf16>
    %c0_2 = arith.constant 0 : index
    %c0_3 = arith.constant 0 : index
    %2 = vector.load %arg2[%c0_2, %c0_3] : memref<1x9984xf32, #tpu.memory_space<vmem>>, vector<1x9984xf32>
    %3 = vector.extract_strided_slice %1 {offsets = [0, 0], sizes = [4, 9984], strides = [1, 1]} : vector<4x12800xbf16> to vector<4x9984xbf16>
    %4 = vector.extract_strided_slice %1 {offsets = [0, 128], sizes = [4, 9984], strides = [1, 1]} : vector<4x12800xbf16> to vector<4x9984xbf16>
    %5 = vector.extract_strided_slice %1 {offsets = [0, 256], sizes = [4, 9984], strides = [1, 1]} : vector<4x12800xbf16> to vector<4x9984xbf16>
    %6 = vector.extract_strided_slice %1 {offsets = [0, 1280], sizes = [4, 9984], strides = [1, 1]} : vector<4x12800xbf16> to vector<4x9984xbf16>
    %7 = vector.extract_strided_slice %1 {offsets = [0, 1408], sizes = [4, 9984], strides = [1, 1]} : vector<4x12800xbf16> to vector<4x9984xbf16>
    %8 = vector.extract_strided_slice %1 {offsets = [0, 1536], sizes = [4, 9984], strides = [1, 1]} : vector<4x12800xbf16> to vector<4x9984xbf16>
    %9 = vector.extract_strided_slice %1 {offsets = [0, 2560], sizes = [4, 9984], strides = [1, 1]} : vector<4x12800xbf16> to vector<4x9984xbf16>
    %10 = vector.extract_strided_slice %1 {offsets = [0, 2688], sizes = [4, 9984], strides = [1, 1]} : vector<4x12800xbf16> to vector<4x9984xbf16>
    %11 = vector.extract_strided_slice %1 {offsets = [0, 2816], sizes = [4, 9984], strides = [1, 1]} : vector<4x12800xbf16> to vector<4x9984xbf16>
    %12 = tpu.concatenate %3, %4, %5, %6, %7, %8, %9, %10, %11 in 0 : vector<4x9984xbf16>, vector<4x9984xbf16>, vector<4x9984xbf16>, vector<4x9984xbf16>, vector<4x9984xbf16>, vector<4x9984xbf16>, vector<4x9984xbf16>, vector<4x9984xbf16>, vector<4x9984xbf16> -> vector<36x9984xbf16>
    %c0_4 = arith.constant 0 : index
    %c0_5 = arith.constant 0 : index
    %13 = vector.load %arg3[%c0_4, %c0_5] : memref<16x36xbf16, #tpu.memory_space<vmem>>, vector<16x36xbf16>
    %cst = arith.constant dense<0.000000e+00> : vector<16x9984xf32>
    %14 = tpu.matmul %13, %12, %cst {dimension_numbers = #tpu.dot_dimension_numbers<[1], [0], [0], [1], [0, 0, 1, 1], [], []>} : vector<16x36xbf16>, vector<36x9984xbf16>, vector<16x9984xf32> -> vector<16x9984xf32>
    %c0_6 = arith.constant 0 : index
    %c0_7 = arith.constant 0 : index
    %15 = vector.load %arg4[%c0_6, %c0_7] : memref<16x1xf32, #tpu.memory_space<vmem>>, vector<16x1xf32>
    %16 = vector.broadcast %15 : vector<16x1xf32> to vector<16x9984xf32>
    %17 = arith.addf %14, %16 : vector<16x9984xf32>
    %cst_8 = arith.constant 0.000000e+00 : f32
    %18 = vector.broadcast %cst_8 : f32 to vector<16x9984xf32>
    %19 = arith.maximumf %17, %18 : vector<16x9984xf32>
    %20 = vector.broadcast %2 : vector<1x9984xf32> to vector<16x9984xf32>
    %21 = arith.mulf %19, %20 : vector<16x9984xf32>
    %22 = arith.truncf %21 : vector<16x9984xf32> to vector<16x9984xbf16>
    %cst_9 = arith.constant 0.000000e+00 : bf16
    %23 = vector.broadcast %cst_9 : bf16 to vector<16x1408xbf16>
    %24 = tpu.concatenate %23, %22, %23 in 1 : vector<16x1408xbf16>, vector<16x9984xbf16>, vector<16x1408xbf16> -> vector<16x12800xbf16>
    %25 = vector.extract_strided_slice %24 {offsets = [0, 0], sizes = [16, 9984], strides = [1, 1]} : vector<16x12800xbf16> to vector<16x9984xbf16>
    %26 = vector.extract_strided_slice %24 {offsets = [0, 128], sizes = [16, 9984], strides = [1, 1]} : vector<16x12800xbf16> to vector<16x9984xbf16>
    %27 = vector.extract_strided_slice %24 {offsets = [0, 256], sizes = [16, 9984], strides = [1, 1]} : vector<16x12800xbf16> to vector<16x9984xbf16>
    %28 = vector.extract_strided_slice %24 {offsets = [0, 1280], sizes = [16, 9984], strides = [1, 1]} : vector<16x12800xbf16> to vector<16x9984xbf16>
    %29 = vector.extract_strided_slice %24 {offsets = [0, 1408], sizes = [16, 9984], strides = [1, 1]} : vector<16x12800xbf16> to vector<16x9984xbf16>
    %30 = vector.extract_strided_slice %24 {offsets = [0, 1536], sizes = [16, 9984], strides = [1, 1]} : vector<16x12800xbf16> to vector<16x9984xbf16>
    %31 = vector.extract_strided_slice %24 {offsets = [0, 2560], sizes = [16, 9984], strides = [1, 1]} : vector<16x12800xbf16> to vector<16x9984xbf16>
    %32 = vector.extract_strided_slice %24 {offsets = [0, 2688], sizes = [16, 9984], strides = [1, 1]} : vector<16x12800xbf16> to vector<16x9984xbf16>
    %33 = vector.extract_strided_slice %24 {offsets = [0, 2816], sizes = [16, 9984], strides = [1, 1]} : vector<16x12800xbf16> to vector<16x9984xbf16>
    %34 = tpu.concatenate %25, %26, %27, %28, %29, %30, %31, %32, %33 in 0 : vector<16x9984xbf16>, vector<16x9984xbf16>, vector<16x9984xbf16>, vector<16x9984xbf16>, vector<16x9984xbf16>, vector<16x9984xbf16>, vector<16x9984xbf16>, vector<16x9984xbf16>, vector<16x9984xbf16> -> vector<144x9984xbf16>
    %c0_10 = arith.constant 0 : index
    %c0_11 = arith.constant 0 : index
    %35 = vector.load %arg5[%c0_10, %c0_11] : memref<32x144xbf16, #tpu.memory_space<vmem>>, vector<32x144xbf16>
    %cst_12 = arith.constant dense<0.000000e+00> : vector<32x9984xf32>
    %36 = tpu.matmul %35, %34, %cst_12 {dimension_numbers = #tpu.dot_dimension_numbers<[1], [0], [0], [1], [0, 0, 1, 1], [], []>} : vector<32x144xbf16>, vector<144x9984xbf16>, vector<32x9984xf32> -> vector<32x9984xf32>
    %c0_13 = arith.constant 0 : index
    %c0_14 = arith.constant 0 : index
    %37 = vector.load %arg6[%c0_13, %c0_14] : memref<32x1xf32, #tpu.memory_space<vmem>>, vector<32x1xf32>
    %38 = vector.broadcast %37 : vector<32x1xf32> to vector<32x9984xf32>
    %39 = arith.addf %36, %38 : vector<32x9984xf32>
    %cst_15 = arith.constant 0.000000e+00 : f32
    %40 = vector.broadcast %cst_15 : f32 to vector<32x9984xf32>
    %41 = arith.maximumf %39, %40 : vector<32x9984xf32>
    %c0_16 = arith.constant 0 : index
    %c0_17 = arith.constant 0 : index
    %42 = vector.load %arg7[%c0_16, %c0_17] : memref<32x1xf32, #tpu.memory_space<vmem>>, vector<32x1xf32>
    %43 = vector.broadcast %42 : vector<32x1xf32> to vector<32x9984xf32>
    %44 = arith.mulf %41, %43 : vector<32x9984xf32>
    %45 = vector.broadcast %2 : vector<1x9984xf32> to vector<32x9984xf32>
    %46 = arith.mulf %44, %45 : vector<32x9984xf32>
    %47 = vector.extract_strided_slice %46 {offsets = [0, 0], sizes = [32, 128], strides = [1, 1]} : vector<32x9984xf32> to vector<32x128xf32>
    %48 = vector.extract_strided_slice %46 {offsets = [0, 128], sizes = [32, 128], strides = [1, 1]} : vector<32x9984xf32> to vector<32x128xf32>
    %49 = vector.extract_strided_slice %46 {offsets = [0, 256], sizes = [32, 128], strides = [1, 1]} : vector<32x9984xf32> to vector<32x128xf32>
    %50 = vector.extract_strided_slice %46 {offsets = [0, 384], sizes = [32, 128], strides = [1, 1]} : vector<32x9984xf32> to vector<32x128xf32>
    %51 = vector.extract_strided_slice %46 {offsets = [0, 512], sizes = [32, 128], strides = [1, 1]} : vector<32x9984xf32> to vector<32x128xf32>
    %52 = vector.extract_strided_slice %46 {offsets = [0, 640], sizes = [32, 128], strides = [1, 1]} : vector<32x9984xf32> to vector<32x128xf32>
    %53 = vector.extract_strided_slice %46 {offsets = [0, 768], sizes = [32, 128], strides = [1, 1]} : vector<32x9984xf32> to vector<32x128xf32>
    %54 = vector.extract_strided_slice %46 {offsets = [0, 896], sizes = [32, 128], strides = [1, 1]} : vector<32x9984xf32> to vector<32x128xf32>
    %55 = vector.extract_strided_slice %46 {offsets = [0, 1024], sizes = [32, 128], strides = [1, 1]} : vector<32x9984xf32> to vector<32x128xf32>
    %56 = vector.extract_strided_slice %46 {offsets = [0, 1152], sizes = [32, 128], strides = [1, 1]} : vector<32x9984xf32> to vector<32x128xf32>
    %57 = vector.extract_strided_slice %46 {offsets = [0, 1280], sizes = [32, 128], strides = [1, 1]} : vector<32x9984xf32> to vector<32x128xf32>
    %58 = vector.extract_strided_slice %46 {offsets = [0, 1408], sizes = [32, 128], strides = [1, 1]} : vector<32x9984xf32> to vector<32x128xf32>
    %59 = vector.extract_strided_slice %46 {offsets = [0, 1536], sizes = [32, 128], strides = [1, 1]} : vector<32x9984xf32> to vector<32x128xf32>
    %60 = vector.extract_strided_slice %46 {offsets = [0, 1664], sizes = [32, 128], strides = [1, 1]} : vector<32x9984xf32> to vector<32x128xf32>
    %61 = vector.extract_strided_slice %46 {offsets = [0, 1792], sizes = [32, 128], strides = [1, 1]} : vector<32x9984xf32> to vector<32x128xf32>
    %62 = vector.extract_strided_slice %46 {offsets = [0, 1920], sizes = [32, 128], strides = [1, 1]} : vector<32x9984xf32> to vector<32x128xf32>
    %63 = vector.extract_strided_slice %46 {offsets = [0, 2048], sizes = [32, 128], strides = [1, 1]} : vector<32x9984xf32> to vector<32x128xf32>
    %64 = vector.extract_strided_slice %46 {offsets = [0, 2176], sizes = [32, 128], strides = [1, 1]} : vector<32x9984xf32> to vector<32x128xf32>
    %65 = vector.extract_strided_slice %46 {offsets = [0, 2304], sizes = [32, 128], strides = [1, 1]} : vector<32x9984xf32> to vector<32x128xf32>
    %66 = vector.extract_strided_slice %46 {offsets = [0, 2432], sizes = [32, 128], strides = [1, 1]} : vector<32x9984xf32> to vector<32x128xf32>
    %67 = vector.extract_strided_slice %46 {offsets = [0, 2560], sizes = [32, 128], strides = [1, 1]} : vector<32x9984xf32> to vector<32x128xf32>
    %68 = vector.extract_strided_slice %46 {offsets = [0, 2688], sizes = [32, 128], strides = [1, 1]} : vector<32x9984xf32> to vector<32x128xf32>
    %69 = vector.extract_strided_slice %46 {offsets = [0, 2816], sizes = [32, 128], strides = [1, 1]} : vector<32x9984xf32> to vector<32x128xf32>
    %70 = vector.extract_strided_slice %46 {offsets = [0, 2944], sizes = [32, 128], strides = [1, 1]} : vector<32x9984xf32> to vector<32x128xf32>
    %71 = vector.extract_strided_slice %46 {offsets = [0, 3072], sizes = [32, 128], strides = [1, 1]} : vector<32x9984xf32> to vector<32x128xf32>
    %72 = vector.extract_strided_slice %46 {offsets = [0, 3200], sizes = [32, 128], strides = [1, 1]} : vector<32x9984xf32> to vector<32x128xf32>
    %73 = vector.extract_strided_slice %46 {offsets = [0, 3328], sizes = [32, 128], strides = [1, 1]} : vector<32x9984xf32> to vector<32x128xf32>
    %74 = vector.extract_strided_slice %46 {offsets = [0, 3456], sizes = [32, 128], strides = [1, 1]} : vector<32x9984xf32> to vector<32x128xf32>
    %75 = vector.extract_strided_slice %46 {offsets = [0, 3584], sizes = [32, 128], strides = [1, 1]} : vector<32x9984xf32> to vector<32x128xf32>
    %76 = vector.extract_strided_slice %46 {offsets = [0, 3712], sizes = [32, 128], strides = [1, 1]} : vector<32x9984xf32> to vector<32x128xf32>
    %77 = vector.extract_strided_slice %46 {offsets = [0, 3840], sizes = [32, 128], strides = [1, 1]} : vector<32x9984xf32> to vector<32x128xf32>
    %78 = vector.extract_strided_slice %46 {offsets = [0, 3968], sizes = [32, 128], strides = [1, 1]} : vector<32x9984xf32> to vector<32x128xf32>
    %79 = vector.extract_strided_slice %46 {offsets = [0, 4096], sizes = [32, 128], strides = [1, 1]} : vector<32x9984xf32> to vector<32x128xf32>
    %80 = vector.extract_strided_slice %46 {offsets = [0, 4224], sizes = [32, 128], strides = [1, 1]} : vector<32x9984xf32> to vector<32x128xf32>
    %81 = vector.extract_strided_slice %46 {offsets = [0, 4352], sizes = [32, 128], strides = [1, 1]} : vector<32x9984xf32> to vector<32x128xf32>
    %82 = vector.extract_strided_slice %46 {offsets = [0, 4480], sizes = [32, 128], strides = [1, 1]} : vector<32x9984xf32> to vector<32x128xf32>
    %83 = vector.extract_strided_slice %46 {offsets = [0, 4608], sizes = [32, 128], strides = [1, 1]} : vector<32x9984xf32> to vector<32x128xf32>
    %84 = vector.extract_strided_slice %46 {offsets = [0, 4736], sizes = [32, 128], strides = [1, 1]} : vector<32x9984xf32> to vector<32x128xf32>
    %85 = vector.extract_strided_slice %46 {offsets = [0, 4864], sizes = [32, 128], strides = [1, 1]} : vector<32x9984xf32> to vector<32x128xf32>
    %86 = vector.extract_strided_slice %46 {offsets = [0, 4992], sizes = [32, 128], strides = [1, 1]} : vector<32x9984xf32> to vector<32x128xf32>
    %87 = vector.extract_strided_slice %46 {offsets = [0, 5120], sizes = [32, 128], strides = [1, 1]} : vector<32x9984xf32> to vector<32x128xf32>
    %88 = vector.extract_strided_slice %46 {offsets = [0, 5248], sizes = [32, 128], strides = [1, 1]} : vector<32x9984xf32> to vector<32x128xf32>
    %89 = vector.extract_strided_slice %46 {offsets = [0, 5376], sizes = [32, 128], strides = [1, 1]} : vector<32x9984xf32> to vector<32x128xf32>
    %90 = vector.extract_strided_slice %46 {offsets = [0, 5504], sizes = [32, 128], strides = [1, 1]} : vector<32x9984xf32> to vector<32x128xf32>
    %91 = vector.extract_strided_slice %46 {offsets = [0, 5632], sizes = [32, 128], strides = [1, 1]} : vector<32x9984xf32> to vector<32x128xf32>
    %92 = vector.extract_strided_slice %46 {offsets = [0, 5760], sizes = [32, 128], strides = [1, 1]} : vector<32x9984xf32> to vector<32x128xf32>
    %93 = vector.extract_strided_slice %46 {offsets = [0, 5888], sizes = [32, 128], strides = [1, 1]} : vector<32x9984xf32> to vector<32x128xf32>
    %94 = vector.extract_strided_slice %46 {offsets = [0, 6016], sizes = [32, 128], strides = [1, 1]} : vector<32x9984xf32> to vector<32x128xf32>
    %95 = vector.extract_strided_slice %46 {offsets = [0, 6144], sizes = [32, 128], strides = [1, 1]} : vector<32x9984xf32> to vector<32x128xf32>
    %96 = vector.extract_strided_slice %46 {offsets = [0, 6272], sizes = [32, 128], strides = [1, 1]} : vector<32x9984xf32> to vector<32x128xf32>
    %97 = vector.extract_strided_slice %46 {offsets = [0, 6400], sizes = [32, 128], strides = [1, 1]} : vector<32x9984xf32> to vector<32x128xf32>
    %98 = vector.extract_strided_slice %46 {offsets = [0, 6528], sizes = [32, 128], strides = [1, 1]} : vector<32x9984xf32> to vector<32x128xf32>
    %99 = vector.extract_strided_slice %46 {offsets = [0, 6656], sizes = [32, 128], strides = [1, 1]} : vector<32x9984xf32> to vector<32x128xf32>
    %100 = vector.extract_strided_slice %46 {offsets = [0, 6784], sizes = [32, 128], strides = [1, 1]} : vector<32x9984xf32> to vector<32x128xf32>
    %101 = vector.extract_strided_slice %46 {offsets = [0, 6912], sizes = [32, 128], strides = [1, 1]} : vector<32x9984xf32> to vector<32x128xf32>
    %102 = vector.extract_strided_slice %46 {offsets = [0, 7040], sizes = [32, 128], strides = [1, 1]} : vector<32x9984xf32> to vector<32x128xf32>
    %103 = vector.extract_strided_slice %46 {offsets = [0, 7168], sizes = [32, 128], strides = [1, 1]} : vector<32x9984xf32> to vector<32x128xf32>
    %104 = vector.extract_strided_slice %46 {offsets = [0, 7296], sizes = [32, 128], strides = [1, 1]} : vector<32x9984xf32> to vector<32x128xf32>
    %105 = vector.extract_strided_slice %46 {offsets = [0, 7424], sizes = [32, 128], strides = [1, 1]} : vector<32x9984xf32> to vector<32x128xf32>
    %106 = vector.extract_strided_slice %46 {offsets = [0, 7552], sizes = [32, 128], strides = [1, 1]} : vector<32x9984xf32> to vector<32x128xf32>
    %107 = vector.extract_strided_slice %46 {offsets = [0, 7680], sizes = [32, 128], strides = [1, 1]} : vector<32x9984xf32> to vector<32x128xf32>
    %108 = vector.extract_strided_slice %46 {offsets = [0, 7808], sizes = [32, 128], strides = [1, 1]} : vector<32x9984xf32> to vector<32x128xf32>
    %109 = vector.extract_strided_slice %46 {offsets = [0, 7936], sizes = [32, 128], strides = [1, 1]} : vector<32x9984xf32> to vector<32x128xf32>
    %110 = vector.extract_strided_slice %46 {offsets = [0, 8064], sizes = [32, 128], strides = [1, 1]} : vector<32x9984xf32> to vector<32x128xf32>
    %111 = vector.extract_strided_slice %46 {offsets = [0, 8192], sizes = [32, 128], strides = [1, 1]} : vector<32x9984xf32> to vector<32x128xf32>
    %112 = vector.extract_strided_slice %46 {offsets = [0, 8320], sizes = [32, 128], strides = [1, 1]} : vector<32x9984xf32> to vector<32x128xf32>
    %113 = vector.extract_strided_slice %46 {offsets = [0, 8448], sizes = [32, 128], strides = [1, 1]} : vector<32x9984xf32> to vector<32x128xf32>
    %114 = vector.extract_strided_slice %46 {offsets = [0, 8576], sizes = [32, 128], strides = [1, 1]} : vector<32x9984xf32> to vector<32x128xf32>
    %115 = vector.extract_strided_slice %46 {offsets = [0, 8704], sizes = [32, 128], strides = [1, 1]} : vector<32x9984xf32> to vector<32x128xf32>
    %116 = vector.extract_strided_slice %46 {offsets = [0, 8832], sizes = [32, 128], strides = [1, 1]} : vector<32x9984xf32> to vector<32x128xf32>
    %117 = vector.extract_strided_slice %46 {offsets = [0, 8960], sizes = [32, 128], strides = [1, 1]} : vector<32x9984xf32> to vector<32x128xf32>
    %118 = vector.extract_strided_slice %46 {offsets = [0, 9088], sizes = [32, 128], strides = [1, 1]} : vector<32x9984xf32> to vector<32x128xf32>
    %119 = vector.extract_strided_slice %46 {offsets = [0, 9216], sizes = [32, 128], strides = [1, 1]} : vector<32x9984xf32> to vector<32x128xf32>
    %120 = vector.extract_strided_slice %46 {offsets = [0, 9344], sizes = [32, 128], strides = [1, 1]} : vector<32x9984xf32> to vector<32x128xf32>
    %121 = vector.extract_strided_slice %46 {offsets = [0, 9472], sizes = [32, 128], strides = [1, 1]} : vector<32x9984xf32> to vector<32x128xf32>
    %122 = vector.extract_strided_slice %46 {offsets = [0, 9600], sizes = [32, 128], strides = [1, 1]} : vector<32x9984xf32> to vector<32x128xf32>
    %123 = vector.extract_strided_slice %46 {offsets = [0, 9728], sizes = [32, 128], strides = [1, 1]} : vector<32x9984xf32> to vector<32x128xf32>
    %124 = vector.extract_strided_slice %46 {offsets = [0, 9856], sizes = [32, 128], strides = [1, 1]} : vector<32x9984xf32> to vector<32x128xf32>
    %125 = arith.addf %47, %48 : vector<32x128xf32>
    %126 = arith.addf %49, %50 : vector<32x128xf32>
    %127 = arith.addf %51, %52 : vector<32x128xf32>
    %128 = arith.addf %53, %54 : vector<32x128xf32>
    %129 = arith.addf %55, %56 : vector<32x128xf32>
    %130 = arith.addf %57, %58 : vector<32x128xf32>
    %131 = arith.addf %59, %60 : vector<32x128xf32>
    %132 = arith.addf %61, %62 : vector<32x128xf32>
    %133 = arith.addf %63, %64 : vector<32x128xf32>
    %134 = arith.addf %65, %66 : vector<32x128xf32>
    %135 = arith.addf %67, %68 : vector<32x128xf32>
    %136 = arith.addf %69, %70 : vector<32x128xf32>
    %137 = arith.addf %71, %72 : vector<32x128xf32>
    %138 = arith.addf %73, %74 : vector<32x128xf32>
    %139 = arith.addf %75, %76 : vector<32x128xf32>
    %140 = arith.addf %77, %78 : vector<32x128xf32>
    %141 = arith.addf %79, %80 : vector<32x128xf32>
    %142 = arith.addf %81, %82 : vector<32x128xf32>
    %143 = arith.addf %83, %84 : vector<32x128xf32>
    %144 = arith.addf %85, %86 : vector<32x128xf32>
    %145 = arith.addf %87, %88 : vector<32x128xf32>
    %146 = arith.addf %89, %90 : vector<32x128xf32>
    %147 = arith.addf %91, %92 : vector<32x128xf32>
    %148 = arith.addf %93, %94 : vector<32x128xf32>
    %149 = arith.addf %95, %96 : vector<32x128xf32>
    %150 = arith.addf %97, %98 : vector<32x128xf32>
    %151 = arith.addf %99, %100 : vector<32x128xf32>
    %152 = arith.addf %101, %102 : vector<32x128xf32>
    %153 = arith.addf %103, %104 : vector<32x128xf32>
    %154 = arith.addf %105, %106 : vector<32x128xf32>
    %155 = arith.addf %107, %108 : vector<32x128xf32>
    %156 = arith.addf %109, %110 : vector<32x128xf32>
    %157 = arith.addf %111, %112 : vector<32x128xf32>
    %158 = arith.addf %113, %114 : vector<32x128xf32>
    %159 = arith.addf %115, %116 : vector<32x128xf32>
    %160 = arith.addf %117, %118 : vector<32x128xf32>
    %161 = arith.addf %119, %120 : vector<32x128xf32>
    %162 = arith.addf %121, %122 : vector<32x128xf32>
    %163 = arith.addf %123, %124 : vector<32x128xf32>
    %164 = arith.addf %125, %126 : vector<32x128xf32>
    %165 = arith.addf %127, %128 : vector<32x128xf32>
    %166 = arith.addf %129, %130 : vector<32x128xf32>
    %167 = arith.addf %131, %132 : vector<32x128xf32>
    %168 = arith.addf %133, %134 : vector<32x128xf32>
    %169 = arith.addf %135, %136 : vector<32x128xf32>
    %170 = arith.addf %137, %138 : vector<32x128xf32>
    %171 = arith.addf %139, %140 : vector<32x128xf32>
    %172 = arith.addf %141, %142 : vector<32x128xf32>
    %173 = arith.addf %143, %144 : vector<32x128xf32>
    %174 = arith.addf %145, %146 : vector<32x128xf32>
    %175 = arith.addf %147, %148 : vector<32x128xf32>
    %176 = arith.addf %149, %150 : vector<32x128xf32>
    %177 = arith.addf %151, %152 : vector<32x128xf32>
    %178 = arith.addf %153, %154 : vector<32x128xf32>
    %179 = arith.addf %155, %156 : vector<32x128xf32>
    %180 = arith.addf %157, %158 : vector<32x128xf32>
    %181 = arith.addf %159, %160 : vector<32x128xf32>
    %182 = arith.addf %161, %162 : vector<32x128xf32>
    %183 = arith.addf %164, %165 : vector<32x128xf32>
    %184 = arith.addf %166, %167 : vector<32x128xf32>
    %185 = arith.addf %168, %169 : vector<32x128xf32>
    %186 = arith.addf %170, %171 : vector<32x128xf32>
    %187 = arith.addf %172, %173 : vector<32x128xf32>
    %188 = arith.addf %174, %175 : vector<32x128xf32>
    %189 = arith.addf %176, %177 : vector<32x128xf32>
    %190 = arith.addf %178, %179 : vector<32x128xf32>
    %191 = arith.addf %180, %181 : vector<32x128xf32>
    %192 = arith.addf %182, %163 : vector<32x128xf32>
    %193 = arith.addf %183, %184 : vector<32x128xf32>
    %194 = arith.addf %185, %186 : vector<32x128xf32>
    %195 = arith.addf %187, %188 : vector<32x128xf32>
    %196 = arith.addf %189, %190 : vector<32x128xf32>
    %197 = arith.addf %191, %192 : vector<32x128xf32>
    %198 = arith.addf %193, %194 : vector<32x128xf32>
    %199 = arith.addf %195, %196 : vector<32x128xf32>
    %200 = arith.addf %198, %199 : vector<32x128xf32>
    %201 = arith.addf %200, %197 : vector<32x128xf32>
    %cst_18 = arith.constant dense<0.000000e+00> : vector<128xf32>
    %202 = vector.multi_reduction <add>, %201, %cst_18 [0] : vector<32x128xf32> to vector<128xf32>
    %203 = vector.shape_cast %202 : vector<128xf32> to vector<1x128xf32>
    %c0_19 = arith.constant 0 : index
    %c0_20 = arith.constant 0 : index
    %204 = vector.load %arg8[%c0_19, %c0_20] : memref<1x1xf32, #tpu.memory_space<vmem>>, vector<1x1xf32>
    %cst_21 = arith.constant 6.400000e+01 : f32
    %205 = vector.broadcast %cst_21 : f32 to vector<1x1xf32>
    %206 = arith.mulf %204, %205 : vector<1x1xf32>
    %207 = vector.broadcast %206 : vector<1x1xf32> to vector<1x128xf32>
    %208 = arith.addf %203, %207 : vector<1x128xf32>
    %c0_22 = arith.constant 0 : index
    %c0_23 = arith.constant 0 : index
    %209 = vector.load %arg9[%c0_22, %c0_23] : memref<1x128xf32, #tpu.memory_space<vmem>>, vector<1x128xf32>
    tpu.vector_store %arg9[%c0_22, %c0_23], %208 {strides = array<i32>} : memref<1x128xf32, #tpu.memory_space<vmem>>, vector<1x128xf32>,
    return
  }
  func.func @transform_0(%arg0: i32) -> (i32, i32, i32) {
    %c0_i32 = arith.constant 0 : i32
    %c0_i32_0 = arith.constant 0 : i32
    %c0_i32_1 = arith.constant 0 : i32
    return %arg0, %c0_i32, %c0_i32_0 : i32, i32, i32
  }
  func.func @transform_1(%arg0: i32) -> (i32, i32) {
    %c0_i32 = arith.constant 0 : i32
    %c0_i32_0 = arith.constant 0 : i32
    %c0_i32_1 = arith.constant 0 : i32
    return %c0_i32, %c0_i32_0 : i32, i32
  }
  func.func @transform_2(%arg0: i32) -> (i32, i32) {
    %c0_i32 = arith.constant 0 : i32
    %c0_i32_0 = arith.constant 0 : i32
    %c0_i32_1 = arith.constant 0 : i32
    return %c0_i32, %c0_i32_0 : i32, i32
  }
  func.func @transform_3(%arg0: i32) -> (i32, i32) {
    %c0_i32 = arith.constant 0 : i32
    %c0_i32_0 = arith.constant 0 : i32
    %c0_i32_1 = arith.constant 0 : i32
    return %c0_i32, %c0_i32_0 : i32, i32
  }
  func.func @transform_4(%arg0: i32) -> (i32, i32) {
    %c0_i32 = arith.constant 0 : i32
    %c0_i32_0 = arith.constant 0 : i32
    %c0_i32_1 = arith.constant 0 : i32
    return %c0_i32, %c0_i32_0 : i32, i32
  }
  func.func @transform_5(%arg0: i32) -> (i32, i32) {
    %c0_i32 = arith.constant 0 : i32
    %c0_i32_0 = arith.constant 0 : i32
    %c0_i32_1 = arith.constant 0 : i32
    return %c0_i32, %c0_i32_0 : i32, i32
  }
  func.func @transform_6(%arg0: i32) -> (i32, i32) {
    %c0_i32 = arith.constant 0 : i32
    %c0_i32_0 = arith.constant 0 : i32
    %c0_i32_1 = arith.constant 0 : i32
    return %c0_i32, %c0_i32_0 : i32, i32
  }
  func.func @transform_7(%arg0: i32) -> (i32, i32) {
    %c0_i32 = arith.constant 0 : i32
    %c0_i32_0 = arith.constant 0 : i32
    %c0_i32_1 = arith.constant 0 : i32
    return %c0_i32, %c0_i32_0 : i32, i32
  }
  func.func @transform_8(%arg0: i32) -> (i32, i32) {
    %c0_i32 = arith.constant 0 : i32
    %c0_i32_0 = arith.constant 0 : i32
    return %c0_i32, %arg0 : i32, i32
  }
}

</mosaic_0001>

<bundles_post_ra>
// kernel: cnn_centralv_forward.1
= control target key start
LH: loop header
LB: loop body
LE: loop exit
PB: predicated region body
PF: predicated region fallthrough
CT: control target
= control target key end

     0   :  { %s8279_s29 = smov 0   ;;  %s13549_s0 = inlined_call_operand.vmem [shape: bf16[2,4,12800], index: 0, kind: input, shape index: {}]   ;;  %s13550_s1 = inlined_call_operand.vmem [shape: f32[1,9984], index: 1, kind: input, shape index: {}]   ;;  %s13551_s2 = inlined_call_operand.vmem [shape: bf16[16,36], index: 2, kind: input, shape index: {}]   ;;  %s13552_s3 = inlined_call_operand.vmem [shape: f32[16,1], index: 3, kind: input, shape index: {}]   ;;  %s13553_s4 = inlined_call_operand.vmem [shape: bf16[32,144], index: 4, kind: input, shape index: {}]   ;;  %s13554_s5 = inlined_call_operand.vmem [shape: f32[32,1], index: 5, kind: input, shape index: {}]   ;;  %s13555_s6 = inlined_call_operand.vmem [shape: f32[32,1], index: 6, kind: input, shape index: {}]   ;;  %s13556_s7 = inlined_call_operand.<no memory space> [shape: f32[1,1], index: 7, kind: input, shape index: {}]   ;;  %s13557_s8 = inlined_call_operand.vmem [shape: f32[1,256], index: 8, kind: output, shape index: {}]  }
   0x1   :  { %v13_v0 = vstv %s13556_s7 }
   0x2   :  { %14 = vst [vmem:[#allocation2] sm:$0x1] %v13_v0 }
   0x3 LB: > { %s7963_s30 = sadd.s32 4294967295, %s8227_s29   ;;  %p7967_p0 = scmp.ge.s32.totalorder %s8227_s29, 1  ;;  %s8227_s29 = sphi %s8279_s29, %s20_s29  }
   0x4   : > { %p264_p1 = scmp.lt.s32.totalorder %s8227_s29, 3 }
   0x6   : > { %p265_p2 = pnand %p7967_p0, %p264_p1 }
   0x8   : > { %268 = sbr.rel (%p265_p2) target bundleno = 1231 (0x4cf), region = 52 }
   0xf   : > { %p296_p3 = scmp.lt.s32.totalorder %s7963_s30, 1  ;;  %v364_v1 = vlaneseq  ;;  %v8229_v2 = vmov 1983009808   ;;  %v13558_v5 = vmov 0   ;;  %v1855_v6 = vld [vmem:[%s13552_s3] sm:$0xff]  ;;  %v1856_v9 = vld [vmem:[%s13552_s3 + $0x8] sm:$0xff] }
  0x10   : > { %v362_v3 = vunpack.c.l.s4 %v8229_v2  ;;  %2071 = vmatprep.mubr.bf16.mxu0 %v13558_v5  ;;  %2200 = vmatprep.mubr.bf16.mxu1 %v13558_v5  ;;  %vm1083_vm0 = vcmask 1041408   ;;  %vm1279_vm1 = vcmask 1043456   ;;  %vm1398_vm2 = vcmask 1045504   ;;  %v4512_v20 = vld [vmem:[%s13554_s5 + $0x10] sm:$0xff]  ;;  %v6938_v39 = vld [vmem:[%s13555_s6] sm:$0xff] }
  0x11   : > { %s14020_s30 = smov (!%p296_p3, %s7963_s30), 1  ;;  %v8289_v4 = vshrl.u32 %v364_v1, 7  ;;  %8143 = vset.pattern.permute.xlu0 %v13558_v5  ;;  %8144 = vset.pattern.permute.xlu1 %v13558_v5  ;;  %v6940_v58 = vld [vmem:[%s13555_s6 + $0x10] sm:$0xff]  ;;  %vm1872_vm3 = vcmask 293888   ;;  %vm4552_vm4 = vcmask 130048  }
  0x12   : > { %v363_v7 = vunpack.c.0.s8 %v362_v3  ;;  %s8132_s10 = smul.u32 200, %s14020_s30  ;;  %1859 = vperm.xlu0 %8143, %v1855_v6   ;;  %s303_s18 = scalar_lea.vmem %s13557_s8, %s14020_s30 }
  0x14   : > { %v8300_v8 = vsub.s32 %v363_v7, %v8289_v4  ;;  %s8308_s15 = scalar_lea.vmem %s13549_s0, %s8132_s10 }
  0x15   : > { %v305_v10 = vld [vmem:[%s8308_s15] sm:$0xff]  ;;  %v8312_v11 = vld [vmem:[%s8308_s15 + $0x10] sm:$0xff]  ;;  %v8315_v12 = vld [vmem:[%s8308_s15 + $0x8] sm:$0xff] }
  0x16   : > { %v360_v13 = vcombine.high %v305_v10, %v305_v10  ;;  %v367_v14 = vrot.slane %v305_v10, %v8300_v8  ;;  %v8320_v15 = vrot.slane %v8312_v11, %v8300_v8  ;;  %v691_v16 = vcombine.low %v305_v10, %v305_v10  ;;  %v309_v17 = vld [vmem:[%s8308_s15 + $0x20] sm:$0xff]  ;;  %1864 = vperm.xlu0 %8143, %v1856_v9   ;;  %v8347_v29 = vld [vmem:[%s8308_s15 + $0x28] sm:$0xff]  ;;  %v8356_v34 = vld [vmem:[%s8308_s15 + $0x18] sm:$0xff] }
  0x17   : > { %v377_v18 = vcombine.high %v8315_v12, %v8315_v12  ;;  %v709_v19 = vcombine.low %v8312_v11, %v8312_v11  ;;  %v428_v24 = vcombine.high %v309_v17, %v309_v17  ;;  %v727_v27 = vcombine.low %v309_v17, %v309_v17  ;;  %v8400_v52 = vld [vmem:[%s8308_s15 + $0x30] sm:$0xff]  ;;  %v8411_v57 = vld [vmem:[%s8308_s15 + $0x38] sm:$0xff] }
  0x18   : > { %v8331_v21 = vrot.slane %v360_v13, %v8300_v8  ;;  %v8333_v22 = vcombine.high %v367_v14, %v367_v14  ;;  %v698_v23 = vrot.slane %v691_v16, %v8300_v8  ;;  %v8344_v28 = vrot.slane %v8315_v12, %v8300_v8 }
  0x19   : > { %v8337_v25 = vrot.slane %v377_v18, %v8300_v8  ;;  %v8340_v26 = vrot.slane %v709_v19, %v8300_v8  ;;  %v874_v33 = vcombine.low %v8320_v15, %v8320_v15  ;;  %v8363_v37 = vrot.slane %v309_v17, %v8300_v8 }
  0x1a   : > { %v1088_v30 = vsel %vm1083_vm0, %v8333_v22, %v367_v14  ;;  %v699_v31 = vcombine.high %v698_v23, %v698_v23  ;;  %v871_v32 = vcombine.low %v8331_v21, %v8331_v21  ;;  %4526 = vperm.xlu0 %8143, %v4512_v20   ;;  %v8366_v38 = vrot.slane %v727_v27, %v8300_v8 }
  0x1b   : > { %v1282_v35 = vsel %vm1279_vm1, %v1088_v30, %v8331_v21  ;;  %v393_v36 = vcombine.high %v8337_v25, %v8337_v25  ;;  %v8376_v42 = vcombine.high %v8344_v28, %v8344_v28  ;;  %v8380_v43 = vrot.slane %v8347_v29, %v8300_v8 }
  0x1c   : > { %v1401_v40 = vsel %vm1398_vm2, %v1282_v35, %v8320_v15  ;;  %v1086_v41 = vsel %vm1083_vm0, %v367_v14, %v699_v31  ;;  %v921_v46 = vcombine.low %v8366_v38, %v8366_v38  ;;  %v718_v47 = vcombine.low %v8356_v34, %v8356_v34 }
  0x1d   : > { %2039 = vmatprep.subr.bf16.mxu0 %v1401_v40  ;;  %v1281_v44 = vsel %vm1279_vm1, %v1086_v41, %v871_v32  ;;  %v1103_v45 = vsel %vm1083_vm0, %v393_v36, %v8340_v26  ;;  %v1100_v50 = vsel %vm1083_vm0, %v8337_v25, %v8376_v42  ;;  %v8397_v51 = vrot.slane %v8356_v34, %v8300_v8 }
  0x1e   : > { %v1399_v48 = vsel %vm1398_vm2, %v1281_v44, %v874_v33  ;;  %v1291_v49 = vsel %vm1279_vm1, %v1103_v45, %v8320_v15  ;;  %6944 = vperm.xlu0 %8143, %v6938_v39   ;;  %v1290_v54 = vsel %vm1279_vm1, %v1100_v50, %v874_v33  ;;  %v8406_v55 = vrot.slane %v718_v47, %v8300_v8 }
  0x1f   : > { %2040 = vmatpush1.bf16.msra.mxu0 %v1399_v48  ;;  %v1415_v53 = vsel %vm1398_vm2, %v1291_v49, %v8366_v38  ;;  %v394_v56 = vcombine.high %v8312_v11, %v8312_v11  ;;  %v1413_v59 = vsel %vm1398_vm2, %v1290_v54, %v921_v46  ;;  %v736_v60 = vcombine.low %v8347_v29, %v8347_v29 }
  0x20   : > { %2168 = vmatprep.subr.bf16.mxu1 %v1415_v53  ;;  %v8420_v61 = vrot.slane %v428_v24, %v8300_v8  ;;  %v443_v62 = vcombine.high %v8363_v37, %v8363_v37  ;;  %v726_v63 = vcombine.high %v8406_v55, %v8406_v55  ;;  %v8428_v0 = vcombine.low %v8380_v43, %v8380_v43 }
  0x21   : > { %2169 = vmatpush1.bf16.msra.mxu1 %v1413_v59  ;;  %v8431_v1 = vrot.slane %v394_v56, %v8300_v8  ;;  %v462_v2 = vcombine.high %v8400_v52, %v8400_v52  ;;  %v8437_v3 = vrot.slane %v8400_v52, %v8300_v8  ;;  %v8441_v6 = vrot.slane %v8411_v57, %v8300_v8 }
  0x22   : > { %v754_v7 = vcombine.low %v8411_v57, %v8411_v57  ;;  %v8447_v9 = vsel %vm1083_vm0, %v8420_v61, %v443_v62  ;;  %6954 = vperm.xlu0 %8143, %v6940_v58   ;;  %v8451_v10 = vsel %vm1083_vm0, %v8397_v51, %v726_v63  ;;  %v8456_v13 = vrot.slane %v736_v60, %v8300_v8 }
  0x23   : > { %v410_v11 = vcombine.high %v8431_v1, %v8431_v1  ;;  %v8459_v14 = vrot.slane %v462_v2, %v8300_v8  ;;  %v1604_v16 = vsel %vm1279_vm1, %v8451_v10, %v8380_v43  ;;  %v8469_v18 = vsel %vm1083_vm0, %v443_v62, %v8363_v37 }
  0x24   : > { %v8465_v17 = vrot.slane %v754_v7, %v8300_v8  ;;  %v445_v19 = vcombine.high %v8347_v29, %v8347_v29  ;;  %v1694_v20 = vsel %vm1398_vm2, %v1604_v16, %v8428_v0  ;;  %v8495_v32 = vcombine.high %v8441_v6, %v8441_v6 }
  0x25   : > { %v1113_v23 = vsel %vm1083_vm0, %v410_v11, %v8406_v55  ;;  %v1610_v24 = vsel %vm1279_vm1, %v8447_v9, %v8459_v14  ;;  %v8482_v27 = vcombine.low %v8459_v14, %v8459_v14  ;;  %2041 = vmatprep.subr.bf16.mxu0 %v1694_v20  ;;  %v376_v36 = vcombine.high %v8331_v21, %v8331_v21 }
  0x26   : > { %v1603_v30 = vsel %vm1279_vm1, %v1113_v23, %v8428_v0  ;;  %v8488_v29 = vcombine.low %v8465_v17, %v8465_v17  ;;  %v8491_v31 = vrot.slane %v445_v19, %v8300_v8  ;;  %v700_v39 = vcombine.low %v8315_v12, %v8315_v12 }
  0x27   : > { %v1692_v33 = vsel %vm1398_vm2, %v1603_v30, %v8456_v13  ;;  %v1609_v35 = vsel %vm1279_vm1, %v8469_v18, %v8482_v27  ;;  %v872_v12 = vcombine.low %v8344_v28, %v8344_v28  ;;  %v920_v47 = vcombine.low %v8406_v55, %v8406_v55 }
  0x28   : > { %2042 = vmatpush1.bf16.msra.mxu0 %v1692_v33  ;;  %v1706_v40 = vsel %vm1398_vm2, %v1610_v24, %v8488_v29  ;;  %v1704_v41 = vsel %vm1398_vm2, %v1609_v35, %v8437_v3  ;;  %v8512_v44 = vcombine.high %v8491_v31, %v8491_v31  ;;  %v1876_v45 = vsel %vm1083_vm0, %v8491_v31, 0 }
  0x29   : > { %2170 = vmatprep.subr.bf16.mxu1 %v1706_v40  ;;  %v8517_v46 = vrot.slane %v700_v39, %v8300_v8  ;;  %v1090_v48 = vsel %vm1083_vm0, %v8331_v21, %v8333_v22  ;;  %v1888_v49 = vsel %vm1083_vm0, %v8441_v6, 0  ;;  %v1297_v50 = vsel %vm1279_vm1, %v1113_v23, %v8397_v51  ;;  %v8545_v21 = vld [vmem:[%s13551_s2] sm:$0xff]  }
  0x2a   : > { %2171 = vmatpush1.bf16.msra.mxu1 %v1704_v41  ;;  %7970 = vmatprep.subr.msk.bf16.mxu0 %vm1083_vm0, %v8512_v44  ;;  %v8534_v53 = vcombine.high %v8320_v15, %v8320_v15  ;;  %v8538_v54 = vcombine.low %v8397_v51, %v8397_v51  ;;  %v1284_v56 = vsel %vm1279_vm1, %v1090_v48, %v872_v12  ;;  %v1880_v33 = vsel %vm1083_vm0, %v8437_v3, 0  ;;  %v7903_v41 = vld [vmem:[#allocation2] sm:$0x1] }
  0x2b   : > { %7976 = vmatprep.subr.msk.bf16.mxu1 %vm1083_vm0, %v8495_v32  ;;  %v1093_v22 = vsel %vm1083_vm0, %v376_v36, %v8517_v46  ;;  %v1424_v58 = vsel %vm1398_vm2, %v1297_v50, %v8456_v13  ;;  %v922_v59 = vcombine.low %v8456_v13, %v8456_v13  ;;  %v1404_v62 = vsel %vm1398_vm2, %v1284_v56, %v920_v47 }
  0x2c   : > { %2044 = vmatpush1.bf16.msra.mxu0 %v1876_v45  ;;  %v1285_v60 = vsel %vm1279_vm1, %v1093_v22, %v8344_v28  ;;  %v1110_v63 = vsel %vm1083_vm0, %v8431_v1, %v8534_v53  ;;  %v411_v2 = vcombine.high %v8356_v34, %v8356_v34  ;;  %v426_v16 = vcombine.high %v8397_v51, %v8397_v51 }
  0x2d   : > { %v1406_v7 = vsel %vm1398_vm2, %v1285_v60, %v8406_v55  ;;  %v1296_v11 = vsel %vm1279_vm1, %v1110_v63, %v8538_v54  ;;  %v745_v19 = vcombine.low %v8400_v52, %v8400_v52  ;;  %v8576_v34 = vcombine.low %v8491_v31, %v8491_v31  ;;  %v8579_v55 = vld [vmem:[%s8308_s15 + $0x40] sm:$0xff] }
  0x2e   : > { %2173 = vmatpush1.bf16.msra.mxu1 %v1888_v49  ;;  %2082 = vmatprep.subr.bf16.mxu0 %v1406_v7  ;;  %v1422_v20 = vsel %vm1398_vm2, %v1296_v11, %v922_v59  ;;  %v8572_v23 = vrot.slane %v411_v2, %v8300_v8  ;;  %v8588_v52 = vsel %vm1083_vm0, %v426_v16, %v8397_v51  ;;  %v7904_v60 = vmul.f32 64.0, %v7903_v41 }
  0x2f   : > { %7971 = vmatmul.mubr.msk.bf16.vlgmr.msra.gmra.mrb[0].mxu0 %vm1872_vm3, %v8545_v21  ;;  %2254 = vmatprep.subr.bf16.mxu1 %v1424_v58  ;;  %v8584_v24 = vrot.slane %v745_v19, %v8300_v8  ;;  %v460_v30 = vcombine.high %v8380_v43, %v8380_v43  ;;  %v1605_v36 = vsel %vm1279_vm1, %v8588_v52, %v8576_v34 }
  0x30   : > { %2083 = vmatpush1.bf16.msra.mxu0 %v1404_v62  ;;  %v1120_v35 = vsel %vm1083_vm0, %v8572_v23, %v426_v16  ;;  %v479_v39 = vcombine.high %v8411_v57, %v8411_v57  ;;  %v8603_v40 = vrot.slane %v8579_v55, %v8300_v8  ;;  %v1696_v47 = vsel %vm1398_vm2, %v1605_v36, %v8380_v43 }
  0x31   : > { %7977 = vmatmul.mubr.msk.bf16.vlgmr.msra.gmra.mrb[0].mxu1 %vm1872_vm3, %v8545_v21  ;;  %v923_v45 = vcombine.low %v8584_v24, %v8584_v24  ;;  %v1606_v12 = vsel %vm1279_vm1, %v1120_v35, %v8491_v31  ;;  %v763_v57 = vcombine.low %v8579_v55, %v8579_v55  ;;  %v8620_v49 = vsel %vm1083_vm0, %v8491_v31, %v460_v30 }
  0x32   : > { %2255 = vmatpush1.bf16.msra.mxu1 %v1422_v20  ;;  %v8616_v48 = vrot.slane %v479_v39, %v8300_v8  ;;  %v8624_v50 = vsel %vm1083_vm0, %v460_v30, %v8380_v43  ;;  %v477_v22 = vcombine.high %v8437_v3, %v8437_v3  ;;  %v8634_v59 = vcombine.high %v8603_v40, %v8603_v40 }
  0x33   : > { %v1698_v56 = vsel %vm1398_vm2, %v1606_v12, %v923_v45  ;;  %v8630_v58 = vrot.slane %v763_v57, %v8300_v8  ;;  %2114 = vmatprep.mubr.bf16.mxu0 %v13558_v5  ;;  %2286 = vmatprep.mubr.bf16.mxu1 %v13558_v5  ;;  %v1098_v2 = vsel %vm1083_vm0, %v8376_v42, %v8344_v28 }
  0x34   : > { %2084 = vmatprep.subr.bf16.mxu0 %v1698_v56  ;;  %v1614_v62 = vsel %vm1279_vm1, %v8620_v49, %v8616_v48  ;;  %v8643_v63 = vcombine.low %v8616_v48, %v8616_v48  ;;  %v708_v7 = vcombine.high %v8517_v46, %v8517_v46  ;;  %v1288_v16 = vsel %vm1279_vm1, %v1098_v2, %v8337_v25  ;;  %v314_v56 = vld [vmem:[%s8308_s15 + $0x48] sm:$0xff] }
  0x35   : > { %2085 = vmatpush1.bf16.msra.mxu0 %v1696_v47  ;;  %v8652_v11 = vcombine.low %v8630_v58, %v8630_v58  ;;  %v873_v19 = vcombine.low %v8337_v25, %v8337_v25  ;;  %v427_v20 = vcombine.high %v8572_v23, %v8572_v23  ;;  %v1410_v46 = vsel %vm1398_vm2, %v1288_v16, %v8397_v51 }
  0x36   : > { %v1613_v42 = vsel %vm1279_vm1, %v8624_v50, %v8643_v63  ;;  %7972 = vmatprep.subr.msk.bf16.mxu0 %vm1083_vm0, %v477_v22  ;;  %v1096_v30 = vsel %vm1083_vm0, %v8344_v28, %v708_v7  ;;  %v8670_v36 = vcombine.low %v8363_v37, %v8363_v37  ;;  %7907 = vperm.xlu0 %8143, %v7904_v60  }
  0x37   : > { %v1714_v25 = vsel %vm1398_vm2, %v1614_v62, %v8652_v11  ;;  %v1712_v39 = vsel %vm1398_vm2, %v1613_v42, %v8441_v6  ;;  %v1287_v41 = vsel %vm1279_vm1, %v1096_v30, %v873_v19  ;;  %v1123_v12 = vsel %vm1083_vm0, %v427_v20, %v8366_v38 }
  0x38   : > { %v717_v51 = vcombine.high %v8340_v26, %v8340_v26  ;;  %2256 = vmatprep.subr.bf16.mxu1 %v1714_v25  ;;  %v1303_v28 = vsel %vm1279_vm1, %v1123_v12, %v8363_v37  ;;  %v1302_v47 = vsel %vm1279_vm1, %v1120_v35, %v8670_v36  ;;  %v735_v57 = vcombine.high %v8366_v38, %v8366_v38 }
  0x39   : > { %2257 = vmatpush1.bf16.msra.mxu1 %v1712_v39  ;;  %2087 = vmatpush1.bf16.msra.mxu0 %v1880_v33  ;;  %v1408_v62 = vsel %vm1398_vm2, %v1287_v41, %v8538_v54  ;;  %v1433_v60 = vsel %vm1398_vm2, %v1303_v28, %v8584_v24  ;;  %v8694_v26 = vcombine.low %v8437_v3, %v8437_v3  ;;  %v1896_v35 = vsel %vm1083_vm0, %v8603_v40, 0 }
  0x3a   : > { %7980 = vmatprep.subr.msk.bf16.mxu1 %vm1083_vm0, %v8634_v59  ;;  %2125 = vmatprep.subr.bf16.mxu0 %v1410_v46  ;;  %v1431_v38 = vsel %vm1398_vm2, %v1302_v47, %v923_v45  ;;  %v8703_v33 = vsel %vm1083_vm0, %v8363_v37, %v735_v57  ;;  %v496_v54 = vcombine.high %v8579_v55, %v8579_v55 }
  0x3b   : > { %v1608_v2 = vsel %vm1279_vm1, %v8703_v33, %v8437_v3  ;;  %v1607_v7 = vsel %vm1279_vm1, %v1123_v12, %v8694_v26  ;;  %v772_v16 = vcombine.low %v314_v56, %v314_v56  ;;  %v8714_v19 = vsel %vm1083_vm0, %v8459_v14, %v477_v22 }
  0x3c   : > { %7973 = vmatmul.mubr.msk.bf16.vlgmr.msra.gmra.mrb[4].mxu0 %vm1872_vm3, %v8545_v21  ;;  %v1702_v45 = vsel %vm1398_vm2, %v1608_v2, %v8694_v26  ;;  %v1700_v55 = vsel %vm1398_vm2, %v1607_v7, %v8584_v24  ;;  %v8723_v20 = vrot.slane %v496_v54, %v8300_v8  ;;  %v8726_v42 = vrot.slane %v314_v56, %v8300_v8 }
  0x3d   : > { %2259 = vmatpush1.bf16.msra.mxu1 %v1896_v35  ;;  %2126 = vmatpush1.bf16.msra.mxu0 %v1408_v62  ;;  %v8729_v46 = vrot.slane %v772_v16, %v8300_v8  ;;  %v8733_v30 = vsel %vm1083_vm0, %v477_v22, %v8437_v3  ;;  %v8737_v25 = vcombine.high %v8459_v14, %v8459_v14  ;;  %v8774_v35 = vld [vmem:[%s8308_s15 + $0x50] sm:$0xff] }
  0x3e   : > { %2340 = vmatprep.subr.bf16.mxu1 %v1433_v60  ;;  %2127 = vmatprep.subr.bf16.mxu0 %v1702_v45  ;;  %v1618_v39 = vsel %vm1279_vm1, %v8714_v19, %v8723_v20  ;;  %v8744_v41 = vcombine.low %v8723_v20, %v8723_v20  ;;  %v1108_v22 = vsel %vm1083_vm0, %v8534_v53, %v8320_v15 }
  0x3f   : > { %v8751_v12 = vcombine.low %v8729_v46, %v8729_v46  ;;  %2157 = vmatprep.mubr.bf16.mxu0 %v13558_v5  ;;  %v1294_v28 = vsel %vm1279_vm1, %v1108_v22, %v8431_v1  ;;  %v875_v47 = vcombine.low %v8431_v1, %v8431_v1  ;;  %v1106_v53 = vsel %vm1083_vm0, %v8320_v15, %v717_v51 }
  0x40   : > { %7981 = vmatmul.mubr.msk.bf16.vlgmr.msra.gmra.mrb[4].mxu1 %vm1872_vm3, %v8545_v21  ;;  %v1617_v57 = vsel %vm1279_vm1, %v8733_v30, %v8744_v41  ;;  %v444_v62 = vcombine.high %v8420_v61, %v8420_v61  ;;  %v8771_v1 = vcombine.high %v8726_v42, %v8726_v42  ;;  %v1884_v15 = vsel %vm1083_vm0, %v8459_v14, 0 }
  0x41   : > { %2341 = vmatpush1.bf16.msra.mxu1 %v1431_v38  ;;  %2128 = vmatpush1.bf16.msra.mxu0 %v1700_v55  ;;  %v1722_v60 = vsel %vm1398_vm2, %v1618_v39, %v8751_v12  ;;  %v1720_v54 = vsel %vm1398_vm2, %v1617_v57, %v8603_v40  ;;  %v1419_v51 = vsel %vm1398_vm2, %v1294_v28, %v8363_v37 }
  0x42   : > { %2342 = vmatprep.subr.bf16.mxu1 %v1722_v60  ;;  %7974 = vmatprep.subr.msk.bf16.mxu0 %vm1083_vm0, %v8737_v25  ;;  %v1133_v38 = vsel %vm1083_vm0, %v444_v62, %v8456_v13  ;;  %v1293_v2 = vsel %vm1279_vm1, %v1106_v53, %v875_v47  ;;  %v744_v7 = vcombine.high %v8456_v13, %v8456_v13 }
  0x43   : > { %2372 = vmatprep.mubr.bf16.mxu1 %v13558_v5  ;;  %v8792_v16 = vcombine.low %v8441_v6, %v8441_v6  ;;  %v513_v45 = vcombine.high %v314_v56, %v314_v56  ;;  %v1309_v55 = vsel %vm1279_vm1, %v1133_v38, %v8380_v43  ;;  %v1308_v37 = vsel %vm1279_vm1, %v8447_v9, %v8428_v0 }
  0x44   : > { %v781_v39 = vcombine.low %v8774_v35, %v8774_v35  ;;  %v8803_v13 = vsel %vm1083_vm0, %v8380_v43, %v744_v7  ;;  %v8811_v56 = vsel %vm1083_vm0, %v8616_v48, %v8495_v32  ;;  %v1904_v9 = vsel %vm1083_vm0, %v8726_v42, 0 }
  0x45   : > { %2343 = vmatpush1.bf16.msra.mxu1 %v1720_v54  ;;  %2130 = vmatpush1.bf16.msra.mxu0 %v1884_v15  ;;  %v8806_v22 = vrot.slane %v513_v45, %v8300_v8  ;;  %v1417_v28 = vsel %vm1398_vm2, %v1293_v2, %v8670_v36  ;;  %v1612_v47 = vsel %vm1279_vm1, %v8803_v13, %v8441_v6 }
  0x46   : > { %7984 = vmatprep.subr.msk.bf16.mxu1 %vm1083_vm0, %v8771_v1  ;;  %2211 = vmatprep.subr.bf16.mxu0 %v1419_v51  ;;  %v8823_v57 = vrot.slane %v781_v39, %v8300_v8  ;;  %v1442_v53 = vsel %vm1398_vm2, %v1309_v55, %v8465_v17  ;;  %v1710_v62 = vsel %vm1398_vm2, %v1612_v47, %v8792_v16  ;;  %v8872_v39 = vld [vmem:[%s8308_s15 + $0x58] sm:$0xff] }
  0x47   : > { %v1611_v60 = vsel %vm1279_vm1, %v1133_v38, %v8792_v16  ;;  %v8833_v54 = vcombine.low %v8806_v22, %v8806_v22  ;;  %v8839_v36 = vrot.slane %v8774_v35, %v8300_v8  ;;  %v1622_v51 = vsel %vm1279_vm1, %v8811_v56, %v8806_v22 }
  0x48   : > { %7975 = vmatmul.mubr.msk.bf16.vlgmr.msra.gmra.mrb[8].mxu0 %vm1872_vm3, %v8545_v21  ;;  %v8843_v15 = vcombine.low %v8823_v57, %v8823_v57  ;;  %v8851_v38 = vsel %vm1083_vm0, %v8495_v32, %v8441_v6  ;;  %v1440_v2 = vsel %vm1398_vm2, %v1308_v37, %v8488_v29  ;;  %v1708_v7 = vsel %vm1398_vm2, %v1611_v60, %v8465_v17 }
  0x49   : > { %2345 = vmatpush1.bf16.msra.mxu1 %v1904_v9  ;;  %2212 = vmatpush1.bf16.msra.mxu0 %v1417_v28  ;;  %v8859_v45 = vcombine.high %v8616_v48, %v8616_v48  ;;  %v1621_v32 = vsel %vm1279_vm1, %v8851_v38, %v8833_v54  ;;  %v877_v29 = vcombine.low %v8572_v23, %v8572_v23 }
  0x4a   : > { %2426 = vmatprep.subr.bf16.mxu1 %v1442_v53  ;;  %2213 = vmatprep.subr.bf16.mxu0 %v1710_v62  ;;  %v1730_v55 = vsel %vm1398_vm2, %v1622_v51, %v8843_v15  ;;  %v753_v37 = vcombine.high %v8584_v24, %v8584_v24  ;;  %v8878_v9 = vcombine.high %v8839_v36, %v8839_v36 }
  0x4b   : > { %2243 = vmatprep.mubr.bf16.mxu0 %v13558_v5  ;;  %v1300_v28 = vsel %vm1279_vm1, %v8588_v52, %v8572_v23  ;;  %v1143_v47 = vsel %vm1083_vm0, %v8512_v44, %v8584_v24  ;;  %v530_v62 = vcombine.high %v8774_v35, %v8774_v35  ;;  %v1728_v60 = vsel %vm1398_vm2, %v1621_v32, %v8726_v42 }
  0x4c   : > { %7985 = vmatmul.mubr.msk.bf16.vlgmr.msra.gmra.mrb[8].mxu1 %vm1872_vm3, %v8545_v21  ;;  %v8888_v53 = vsel %vm1083_vm0, %v8437_v3, %v753_v37  ;;  %v1892_v23 = vsel %vm1083_vm0, %v8616_v48, 0  ;;  %v8900_v44 = vcombine.low %v8603_v40, %v8603_v40  ;;  %v790_v24 = vcombine.low %v8872_v39, %v8872_v39 }
  0x4d   : > { %2427 = vmatpush1.bf16.msra.mxu1 %v1440_v2  ;;  %2214 = vmatpush1.bf16.msra.mxu0 %v1708_v7  ;;  %v1428_v52 = vsel %vm1398_vm2, %v1300_v28, %v8380_v43  ;;  %v1299_v35 = vsel %vm1279_vm1, %v8451_v10, %v877_v29  ;;  %v8910_v51 = vrot.slane %v530_v62, %v8300_v8  ;;  %v1912_v32 = vsel %vm1083_vm0, %v8839_v36, 0 }
  0x4e   : > { %2428 = vmatprep.subr.bf16.mxu1 %v1730_v55  ;;  %7978 = vmatprep.subr.msk.bf16.mxu0 %vm1083_vm0, %v8859_v45  ;;  %v1315_v2 = vsel %vm1279_vm1, %v1143_v47, %v8437_v3  ;;  %v1616_v7 = vsel %vm1279_vm1, %v8888_v53, %v8603_v40  ;;  %v8918_v55 = vrot.slane %v790_v24, %v8300_v8 }
  0x4f   : > { %2458 = vmatprep.mubr.bf16.mxu1 %v13558_v5  ;;  %v1314_v43 = vsel %vm1279_vm1, %v8620_v49, %v8694_v26  ;;  %v8926_v10 = vsel %vm1083_vm0, %v8723_v20, %v8634_v59  ;;  %v1426_v29 = vsel %vm1398_vm2, %v1299_v35, %v8428_v0  ;;  %v1615_v37 = vsel %vm1279_vm1, %v1143_v47, %v8900_v44 }
  0x50   : > { %v8938_v49 = vcombine.low %v8910_v51, %v8910_v51  ;;  %v1451_v28 = vsel %vm1398_vm2, %v1315_v2, %v8630_v58  ;;  %v1718_v62 = vsel %vm1398_vm2, %v1616_v7, %v8900_v44  ;;  %v8951_v0 = vsel %vm1083_vm0, %v8634_v59, %v8603_v40 }
  0x51   : > { %2429 = vmatpush1.bf16.msra.mxu1 %v1728_v60  ;;  %2216 = vmatpush1.bf16.msra.mxu0 %v1892_v23  ;;  %v8946_v60 = vcombine.low %v8918_v55, %v8918_v55  ;;  %v1449_v47 = vsel %vm1398_vm2, %v1314_v43, %v8652_v11  ;;  %v8959_v23 = vrot.slane %v8872_v39, %v8300_v8 }
  0x52   : > { %7988 = vmatprep.subr.msk.bf16.mxu1 %vm1083_vm0, %v8878_v9  ;;  %2297 = vmatprep.subr.bf16.mxu0 %v1428_v52  ;;  %v1626_v24 = vsel %vm1279_vm1, %v8926_v10, %v8910_v51  ;;  %v8965_v52 = vld [vmem:[%s8308_s15 + $0x60] sm:$0xff]  ;;  %v1716_v59 = vsel %vm1398_vm2, %v1615_v37, %v8630_v58  ;;  %v8971_v35 = vcombine.high %v8723_v20, %v8723_v20 }
  0x53   : > { %v762_v11 = vcombine.high %v8465_v17, %v8465_v17  ;;  %v1625_v2 = vsel %vm1279_vm1, %v8951_v0, %v8938_v49  ;;  %v1306_v7 = vsel %vm1279_vm1, %v8469_v18, %v8420_v61  ;;  %v879_v43 = vcombine.low %v8420_v61, %v8420_v61 }
  0x54   : > { %7979 = vmatmul.mubr.msk.bf16.vlgmr.msra.gmra.mrb[12].mxu0 %vm1872_vm3, %v8545_v21  ;;  %v547_v37 = vcombine.high %v8872_v39, %v8872_v39  ;;  %v8997_v61 = vcombine.high %v8959_v23, %v8959_v23  ;;  %v1437_v18 = vsel %vm1398_vm2, %v1306_v7, %v8437_v3  ;;  %v1900_v39 = vsel %vm1083_vm0, %v8723_v20, 0 }
  0x55   : > { %2431 = vmatpush1.bf16.msra.mxu1 %v1912_v32  ;;  %2298 = vmatpush1.bf16.msra.mxu0 %v1426_v29  ;;  %v1738_v32 = vsel %vm1398_vm2, %v1626_v24, %v8946_v60  ;;  %v1153_v29 = vsel %vm1083_vm0, %v8737_v25, %v8465_v17  ;;  %v9003_v17 = vsel %vm1083_vm0, %v8441_v6, %v762_v11 }
  0x56   : > { %2512 = vmatprep.subr.bf16.mxu1 %v1451_v28  ;;  %2299 = vmatprep.subr.bf16.mxu0 %v1718_v62  ;;  %v799_v28 = vcombine.low %v8965_v52, %v8965_v52  ;;  %v1736_v25 = vsel %vm1398_vm2, %v1625_v2, %v8839_v36  ;;  %v1305_v62 = vsel %vm1279_vm1, %v8703_v33, %v879_v43 }
  0x57   : > { %2329 = vmatprep.mubr.bf16.mxu0 %v13558_v5  ;;  %v1321_v3 = vsel %vm1279_vm1, %v1153_v29, %v8441_v6  ;;  %v9021_v24 = vrot.slane %v547_v37, %v8300_v8  ;;  %v1312_v11 = vsel %vm1279_vm1, %v8624_v50, %v8491_v31  ;;  %v1620_v33 = vsel %vm1279_vm1, %v9003_v17, %v8726_v42 }
  0x58   : > { %7989 = vmatmul.mubr.msk.bf16.vlgmr.msra.gmra.mrb[12].mxu1 %vm1872_vm3, %v8545_v21  ;;  %v1446_v2 = vsel %vm1398_vm2, %v1312_v11, %v8441_v6  ;;  %v9037_v7 = vsel %vm1083_vm0, %v8806_v22, %v8771_v1  ;;  %v1920_v31 = vsel %vm1083_vm0, %v8959_v23, 0  ;;  %v1435_v50 = vsel %vm1398_vm2, %v1305_v62, %v8694_v26 }
  0x59   : > { %2513 = vmatpush1.bf16.msra.mxu1 %v1449_v47  ;;  %2300 = vmatpush1.bf16.msra.mxu0 %v1716_v59  ;;  %v9018_v47 = vcombine.low %v8726_v42, %v8726_v42  ;;  %v9024_v59 = vrot.slane %v799_v28, %v8300_v8  ;;  %v1460_v6 = vsel %vm1398_vm2, %v1321_v3, %v8729_v46 }
  0x5a   : > { %2514 = vmatprep.subr.bf16.mxu1 %v1738_v32  ;;  %7982 = vmatprep.subr.msk.bf16.mxu0 %vm1083_vm0, %v8971_v35  ;;  %v1320_v43 = vsel %vm1279_vm1, %v8714_v19, %v8792_v16  ;;  %v9060_v26 = vcombine.low %v9021_v24, %v9021_v24  ;;  %v1630_v19 = vsel %vm1279_vm1, %v9037_v7, %v9021_v24 }
  0x5b   : > { %2544 = vmatprep.mubr.bf16.mxu1 %v13558_v5  ;;  %v1726_v32 = vsel %vm1398_vm2, %v1620_v33, %v9018_v47  ;;  %v1619_v37 = vsel %vm1279_vm1, %v1153_v29, %v9018_v47  ;;  %v9056_v28 = vcombine.low %v9024_v59, %v9024_v59  ;;  %v9073_v29 = vld [vmem:[%s8308_s15 + $0x68] sm:$0xff]  ;;  %v9083_v3 = vrot.slane %v8965_v52, %v8300_v8 }
  0x5c   : > { %v1724_v62 = vsel %vm1398_vm2, %v1619_v37, %v8729_v46  ;;  %v564_v33 = vcombine.high %v8965_v52, %v8965_v52  ;;  %v9126_v37 = vcombine.low %v8839_v36, %v8839_v36 }
  0x5d   : > { %2515 = vmatpush1.bf16.msra.mxu1 %v1736_v25  ;;  %2302 = vmatpush1.bf16.msra.mxu0 %v1900_v39  ;;  %v1458_v25 = vsel %vm1398_vm2, %v1320_v43, %v8751_v12  ;;  %v771_v39 = vcombine.high %v8630_v58, %v8630_v58  ;;  %v1746_v11 = vsel %vm1398_vm2, %v1630_v19, %v9056_v28  ;;  %v1908_v43 = vsel %vm1083_vm0, %v8806_v22, 0 }
  0x5e   : > { %7992 = vmatprep.subr.msk.bf16.mxu1 %vm1083_vm0, %v8997_v61  ;;  %2383 = vmatprep.subr.bf16.mxu0 %v1437_v18  ;;  %v9070_v18 = vsel %vm1083_vm0, %v8771_v1, %v8726_v42  ;;  %v9087_v1 = vcombine.high %v8806_v22, %v8806_v22  ;;  %v9129_v19 = vrot.slane %v564_v33, %v8300_v8 }
  0x5f   : > { %v1629_v12 = vsel %vm1279_vm1, %v9070_v18, %v9060_v26 }
  0x60   : > { %7983 = vmatmul.mubr.msk.bf16.vlgmr.msra.gmra.mrb[16].mxu0 %vm1872_vm3, %v8545_v21  ;;  %v1744_v52 = vsel %vm1398_vm2, %v1629_v12, %v8959_v23  ;;  %v1326_v12 = vsel %vm1279_vm1, %v8811_v56, %v8900_v44 }
  0x61   : > { %2517 = vmatpush1.bf16.msra.mxu1 %v1920_v31  ;;  %2384 = vmatpush1.bf16.msra.mxu0 %v1435_v50  ;;  %v808_v31 = vcombine.low %v9073_v29, %v9073_v29  ;;  %v1163_v50 = vsel %vm1083_vm0, %v8859_v45, %v8630_v58  ;;  %v1311_v58 = vsel %vm1279_vm1, %v8803_v13, %v8576_v34  ;;  %v1928_v13 = vsel %vm1083_vm0, %v9083_v3, 0 }
  0x62   : > { %2598 = vmatprep.subr.bf16.mxu1 %v1460_v6  ;;  %2385 = vmatprep.subr.bf16.mxu0 %v1726_v32  ;;  %v9106_v6 = vsel %vm1083_vm0, %v8603_v40, %v771_v39  ;;  %v9116_v32 = vcombine.high %v9083_v3, %v9083_v3  ;;  %v1327_v45 = vsel %vm1279_vm1, %v1163_v50, %v8603_v40 }
  0x63   : > { %2415 = vmatprep.mubr.bf16.mxu0 %v13558_v5  ;;  %v1624_v39 = vsel %vm1279_vm1, %v9106_v6, %v8839_v36  ;;  %v9140_v34 = vsel %vm1083_vm0, %v8910_v51, %v8878_v9 }
  0x64   : > { %7993 = vmatmul.mubr.msk.bf16.vlgmr.msra.gmra.mrb[16].mxu1 %vm1872_vm3, %v8545_v21  ;;  %v1734_v33 = vsel %vm1398_vm2, %v1624_v39, %v9126_v37  ;;  %v1634_v56 = vsel %vm1279_vm1, %v9140_v34, %v9129_v19  ;;  %v9190_v39 = vcombine.high %v8910_v51, %v8910_v51 }
  0x65   : > { %2599 = vmatpush1.bf16.msra.mxu1 %v1458_v25  ;;  %2386 = vmatpush1.bf16.msra.mxu0 %v1724_v62  ;;  %v9132_v25 = vrot.slane %v808_v31, %v8300_v8  ;;  %v1444_v62 = vsel %vm1398_vm2, %v1311_v58, %v8792_v16  ;;  %v1623_v31 = vsel %vm1279_vm1, %v1163_v50, %v9126_v37  ;;  %v9176_v50 = vld [vmem:[%s8308_s15 + $0x70] sm:$0xff] }
  0x66   : > { %2600 = vmatprep.subr.bf16.mxu1 %v1746_v11  ;;  %7986 = vmatprep.subr.msk.bf16.mxu0 %vm1083_vm0, %v9087_v1  ;;  %v1469_v11 = vsel %vm1398_vm2, %v1327_v45, %v8823_v57  ;;  %v9163_v16 = vcombine.low %v9129_v19, %v9129_v19  ;;  %v9182_v58 = vrot.slane %v9073_v29, %v8300_v8 }
  0x67   : > { %2630 = vmatprep.mubr.bf16.mxu1 %v13558_v5  ;;  %v780_v45 = vcombine.high %v8729_v46, %v8729_v46 }
  0x69   : > { %2601 = vmatpush1.bf16.msra.mxu1 %v1744_v52  ;;  %2388 = vmatpush1.bf16.msra.mxu0 %v1908_v43  ;;  %v9159_v52 = vcombine.low %v9132_v25, %v9132_v25  ;;  %v1467_v43 = vsel %vm1398_vm2, %v1326_v12, %v8843_v15  ;;  %v1318_v15 = vsel %vm1279_vm1, %v8733_v30, %v8459_v14 }
  0x6a   : > { %7996 = vmatprep.subr.msk.bf16.mxu1 %vm1083_vm0, %v9116_v32  ;;  %2469 = vmatprep.subr.bf16.mxu0 %v1446_v2  ;;  %v9173_v2 = vsel %vm1083_vm0, %v8878_v9, %v8839_v36  ;;  %v1732_v9 = vsel %vm1398_vm2, %v1623_v31, %v8823_v57  ;;  %v817_v12 = vcombine.low %v9176_v50, %v9176_v50 }
  0x6b   : > { %v1173_v14 = vsel %vm1083_vm0, %v8971_v35, %v8729_v46  ;;  %v9212_v30 = vcombine.high %v9182_v58, %v9182_v58  ;;  %v1916_v46 = vsel %vm1083_vm0, %v8910_v51, 0  ;;  %v1455_v35 = vsel %vm1398_vm2, %v1318_v15, %v8603_v40 }
  0x6c   : > { %7987 = vmatmul.mubr.msk.bf16.vlgmr.msra.gmra.mrb[20].mxu0 %vm1872_vm3, %v8545_v21  ;;  %v1317_v31 = vsel %vm1279_vm1, %v8888_v53, %v8482_v27  ;;  %v9248_v27 = vsel %vm1083_vm0, %v9021_v24, %v8997_v61  ;;  %v1936_v53 = vsel %vm1083_vm0, %v9182_v58, 0 }
  0x6d   : > { %2603 = vmatpush1.bf16.msra.mxu1 %v1928_v13  ;;  %2470 = vmatpush1.bf16.msra.mxu0 %v1444_v62  ;;  %v1754_v13 = vsel %vm1398_vm2, %v1634_v56, %v9159_v52  ;;  %v1633_v62 = vsel %vm1279_vm1, %v9173_v2, %v9163_v16  ;;  %v1333_v56 = vsel %vm1279_vm1, %v1173_v14, %v8726_v42 }
  0x6e   : > { %2684 = vmatprep.subr.bf16.mxu1 %v1469_v11  ;;  %2471 = vmatprep.subr.bf16.mxu0 %v1734_v33  ;;  %v581_v11 = vcombine.high %v9073_v29, %v9073_v29  ;;  %v9216_v33 = vsel %vm1083_vm0, %v8726_v42, %v780_v45  ;;  %v1752_v29 = vsel %vm1398_vm2, %v1633_v62, %v9083_v3 }
  0x6f   : > { %2501 = vmatprep.mubr.bf16.mxu0 %v13558_v5  ;;  %v1628_v40 = vsel %vm1279_vm1, %v9216_v33, %v8959_v23  ;;  %v1453_v15 = vsel %vm1398_vm2, %v1317_v31, %v8900_v44  ;;  %v1332_v62 = vsel %vm1279_vm1, %v8926_v10, %v9018_v47  ;;  %v9290_v31 = vrot.slane %v9176_v50, %v8300_v8 }
  0x70   : > { %7997 = vmatmul.mubr.msk.bf16.vlgmr.msra.gmra.mrb[20].mxu1 %vm1872_vm3, %v8545_v21  ;;  %v9237_v45 = vrot.slane %v581_v11, %v8300_v8 }
  0x71   : > { %2685 = vmatpush1.bf16.msra.mxu1 %v1467_v43  ;;  %2472 = vmatpush1.bf16.msra.mxu0 %v1732_v9  ;;  %v9234_v43 = vcombine.low %v8959_v23, %v8959_v23  ;;  %v9240_v9 = vrot.slane %v817_v12, %v8300_v8 }
  0x72   : > { %2686 = vmatprep.subr.bf16.mxu1 %v1754_v13  ;;  %7990 = vmatprep.subr.msk.bf16.mxu0 %vm1083_vm0, %v9190_v39  ;;  %v1478_v13 = vsel %vm1398_vm2, %v1333_v56, %v8918_v55  ;;  %v9271_v44 = vcombine.low %v9237_v45, %v9237_v45  ;;  %v1638_v10 = vsel %vm1279_vm1, %v9248_v27, %v9237_v45 }
  0x73   : > { %2716 = vmatprep.mubr.bf16.mxu1 %v13558_v5  ;;  %v1742_v11 = vsel %vm1398_vm2, %v1628_v40, %v9234_v43  ;;  %v1627_v12 = vsel %vm1279_vm1, %v1173_v14, %v9234_v43  ;;  %v9284_v14 = vld [vmem:[%s8308_s15 + $0x78] sm:$0xff]  ;;  %v789_v56 = vcombine.high %v8823_v57, %v8823_v57  ;;  %v9298_v40 = vcombine.high %v9021_v24, %v9021_v24 }
  0x75   : > { %2687 = vmatpush1.bf16.msra.mxu1 %v1752_v29  ;;  %2474 = vmatpush1.bf16.msra.mxu0 %v1916_v46  ;;  %v9267_v29 = vcombine.low %v9240_v9, %v9240_v9  ;;  %v9281_v46 = vsel %vm1083_vm0, %v8997_v61, %v8959_v23  ;;  %v1740_v61 = vsel %vm1398_vm2, %v1627_v12, %v8918_v55 }
  0x76   : > { %8000 = vmatprep.subr.msk.bf16.mxu1 %vm1083_vm0, %v9212_v30  ;;  %2555 = vmatprep.subr.bf16.mxu0 %v1455_v35  ;;  %v1476_v35 = vsel %vm1398_vm2, %v1332_v62, %v8946_v60  ;;  %v1324_v60 = vsel %vm1279_vm1, %v8851_v38, %v8616_v48  ;;  %v826_v62 = vcombine.low %v9284_v14, %v9284_v14 }
  0x77   : > { %v1183_v48 = vsel %vm1083_vm0, %v9087_v1, %v8823_v57  ;;  %v9320_v38 = vcombine.high %v9290_v31, %v9290_v31  ;;  %v1924_v57 = vsel %vm1083_vm0, %v9021_v24, 0  ;;  %v1464_v1 = vsel %vm1398_vm2, %v1324_v60, %v8726_v42 }
  0x78   : > { %7991 = vmatmul.mubr.msk.bf16.vlgmr.msra.gmra.mrb[24].mxu0 %vm1872_vm3, %v8545_v21  ;;  %v1323_v12 = vsel %vm1279_vm1, %v9003_v17, %v8643_v63  ;;  %v9356_v63 = vsel %vm1083_vm0, %v9129_v19, %v9116_v32  ;;  %v1944_v17 = vsel %vm1083_vm0, %v9290_v31, 0 }
  0x79   : > { %2689 = vmatpush1.bf16.msra.mxu1 %v1936_v53  ;;  %2556 = vmatpush1.bf16.msra.mxu0 %v1453_v15  ;;  %v1762_v53 = vsel %vm1398_vm2, %v1638_v10, %v9267_v29  ;;  %v1637_v15 = vsel %vm1279_vm1, %v9281_v46, %v9271_v44  ;;  %v1339_v10 = vsel %vm1279_vm1, %v1183_v48, %v8839_v36 }
  0x7a   : > { %2770 = vmatprep.subr.bf16.mxu1 %v1478_v13  ;;  %2557 = vmatprep.subr.bf16.mxu0 %v1742_v11  ;;  %v598_v13 = vcombine.high %v9176_v50, %v9176_v50  ;;  %v9324_v11 = vsel %vm1083_vm0, %v8839_v36, %v789_v56  ;;  %v1760_v50 = vsel %vm1398_vm2, %v1637_v15, %v9182_v58 }
  0x7b   : > { %2587 = vmatprep.mubr.bf16.mxu0 %v13558_v5  ;;  %v1632_v42 = vsel %vm1279_vm1, %v9324_v11, %v9083_v3  ;;  %v1462_v60 = vsel %vm1398_vm2, %v1323_v12, %v9018_v47  ;;  %v1338_v15 = vsel %vm1279_vm1, %v9037_v7, %v9126_v37  ;;  %v9398_v12 = vrot.slane %v9284_v14, %v8300_v8 }
  0x7c   : > { %8001 = vmatmul.mubr.msk.bf16.vlgmr.msra.gmra.mrb[24].mxu1 %vm1872_vm3, %v8545_v21  ;;  %v9345_v56 = vrot.slane %v598_v13, %v8300_v8 }
  0x7d   : > { %2771 = vmatpush1.bf16.msra.mxu1 %v1476_v35  ;;  %2558 = vmatpush1.bf16.msra.mxu0 %v1740_v61  ;;  %v9342_v35 = vcombine.low %v9083_v3, %v9083_v3  ;;  %v9348_v61 = vrot.slane %v826_v62, %v8300_v8 }
  0x7e   : > { %2772 = vmatprep.subr.bf16.mxu1 %v1762_v53  ;;  %7994 = vmatprep.subr.msk.bf16.mxu0 %vm1083_vm0, %v9298_v40  ;;  %v1487_v53 = vsel %vm1398_vm2, %v1339_v10, %v9024_v59  ;;  %v9379_v47 = vcombine.low %v9345_v56, %v9345_v56  ;;  %v1642_v7 = vsel %vm1279_vm1, %v9356_v63, %v9345_v56 }
  0x7f   : > { %2802 = vmatprep.mubr.bf16.mxu1 %v13558_v5  ;;  %v1750_v13 = vsel %vm1398_vm2, %v1632_v42, %v9342_v35  ;;  %v1631_v62 = vsel %vm1279_vm1, %v1183_v48, %v9342_v35  ;;  %v9392_v48 = vld [vmem:[%s8308_s15 + $0x80] sm:$0xff]  ;;  %v798_v10 = vcombine.high %v8918_v55, %v8918_v55  ;;  %v9406_v42 = vcombine.high %v9129_v19, %v9129_v19 }
  0x81   : > { %2773 = vmatpush1.bf16.msra.mxu1 %v1760_v50  ;;  %2560 = vmatpush1.bf16.msra.mxu0 %v1924_v57  ;;  %v9375_v50 = vcombine.low %v9348_v61, %v9348_v61  ;;  %v9389_v57 = vsel %vm1083_vm0, %v9116_v32, %v9083_v3  ;;  %v1748_v32 = vsel %vm1398_vm2, %v1631_v62, %v9024_v59 }
  0x82   : > { %8004 = vmatprep.subr.msk.bf16.mxu1 %vm1083_vm0, %v9320_v38  ;;  %2641 = vmatprep.subr.bf16.mxu0 %v1464_v1  ;;  %v1485_v1 = vsel %vm1398_vm2, %v1338_v15, %v9056_v28  ;;  %v1330_v28 = vsel %vm1279_vm1, %v8951_v0, %v8723_v20  ;;  %v835_v15 = vcombine.low %v9392_v48, %v9392_v48 }
  0x83   : > { %v1193_v20 = vsel %vm1083_vm0, %v9190_v39, %v8918_v55  ;;  %v9428_v0 = vcombine.high %v9398_v12, %v9398_v12  ;;  %v1932_v55 = vsel %vm1083_vm0, %v9129_v19, 0  ;;  %v1473_v39 = vsel %vm1398_vm2, %v1330_v28, %v8839_v36 }
  0x84   : > { %7995 = vmatmul.mubr.msk.bf16.vlgmr.msra.gmra.mrb[28].mxu0 %vm1872_vm3, %v8545_v21  ;;  %v1329_v62 = vsel %vm1279_vm1, %v9106_v6, %v8744_v41  ;;  %v9464_v41 = vsel %vm1083_vm0, %v9237_v45, %v9212_v30  ;;  %v1952_v6 = vsel %vm1083_vm0, %v9398_v12, 0 }
  0x85   : > { %2775 = vmatpush1.bf16.msra.mxu1 %v1944_v17  ;;  %2642 = vmatpush1.bf16.msra.mxu0 %v1462_v60  ;;  %v1770_v17 = vsel %vm1398_vm2, %v1642_v7, %v9375_v50  ;;  %v1641_v60 = vsel %vm1279_vm1, %v9389_v57, %v9379_v47  ;;  %v1345_v7 = vsel %vm1279_vm1, %v1193_v20, %v8959_v23 }
  0x86   : > { %2856 = vmatprep.subr.bf16.mxu1 %v1487_v53  ;;  %2643 = vmatprep.subr.bf16.mxu0 %v1750_v13  ;;  %v615_v53 = vcombine.high %v9284_v14, %v9284_v14  ;;  %v9432_v13 = vsel %vm1083_vm0, %v8959_v23, %v798_v10  ;;  %v1768_v14 = vsel %vm1398_vm2, %v1641_v60, %v9290_v31 }
  0x87   : > { %2673 = vmatprep.mubr.bf16.mxu0 %v13558_v5  ;;  %v1636_v36 = vsel %vm1279_vm1, %v9432_v13, %v9182_v58  ;;  %v1471_v28 = vsel %vm1398_vm2, %v1329_v62, %v9126_v37  ;;  %v1344_v60 = vsel %vm1279_vm1, %v9140_v34, %v9234_v43  ;;  %v9506_v62 = vrot.slane %v9392_v48, %v8300_v8 }
  0x88   : > { %8005 = vmatmul.mubr.msk.bf16.vlgmr.msra.gmra.mrb[28].mxu1 %vm1872_vm3, %v8545_v21  ;;  %v9453_v10 = vrot.slane %v615_v53, %v8300_v8 }
  0x89   : > { %2857 = vmatpush1.bf16.msra.mxu1 %v1485_v1  ;;  %2644 = vmatpush1.bf16.msra.mxu0 %v1748_v32  ;;  %v9450_v1 = vcombine.low %v9182_v58, %v9182_v58  ;;  %v9456_v32 = vrot.slane %v835_v15, %v8300_v8 }
  0x8a   : > { %2858 = vmatprep.subr.bf16.mxu1 %v1770_v17  ;;  %7998 = vmatprep.subr.msk.bf16.mxu0 %vm1083_vm0, %v9406_v42  ;;  %v1496_v17 = vsel %vm1398_vm2, %v1345_v7, %v9132_v25  ;;  %v9487_v37 = vcombine.low %v9453_v10, %v9453_v10  ;;  %v1646_v34 = vsel %vm1279_vm1, %v9464_v41, %v9453_v10 }
  0x8b   : > { %2888 = vmatprep.mubr.bf16.mxu1 %v13558_v5  ;;  %v1758_v53 = vsel %vm1398_vm2, %v1636_v36, %v9450_v1  ;;  %v1635_v15 = vsel %vm1279_vm1, %v1193_v20, %v9450_v1  ;;  %v9500_v20 = vld [vmem:[%s8308_s15 + $0x88] sm:$0xff]  ;;  %v807_v7 = vcombine.high %v9024_v59, %v9024_v59  ;;  %v9514_v36 = vcombine.high %v9237_v45, %v9237_v45 }
  0x8d   : > { %2859 = vmatpush1.bf16.msra.mxu1 %v1768_v14  ;;  %2646 = vmatpush1.bf16.msra.mxu0 %v1932_v55  ;;  %v9483_v14 = vcombine.low %v9456_v32, %v9456_v32  ;;  %v9497_v55 = vsel %vm1083_vm0, %v9212_v30, %v9182_v58  ;;  %v1756_v30 = vsel %vm1398_vm2, %v1635_v15, %v9132_v25 }
  0x8e   : > { %8008 = vmatprep.subr.msk.bf16.mxu1 %vm1083_vm0, %v9428_v0  ;;  %2727 = vmatprep.subr.bf16.mxu0 %v1473_v39  ;;  %v1494_v39 = vsel %vm1398_vm2, %v1344_v60, %v9159_v52  ;;  %v1336_v52 = vsel %vm1279_vm1, %v9070_v18, %v8806_v22  ;;  %v844_v60 = vcombine.low %v9500_v20, %v9500_v20 }
  0x8f   : > { %v1203_v22 = vsel %vm1083_vm0, %v9298_v40, %v9024_v59  ;;  %v9536_v18 = vcombine.high %v9506_v62, %v9506_v62  ;;  %v1940_v59 = vsel %vm1083_vm0, %v9237_v45, 0  ;;  %v1482_v40 = vsel %vm1398_vm2, %v1336_v52, %v8959_v23 }
  0x90   : > { %7999 = vmatmul.mubr.msk.bf16.vlgmr.msra.gmra.mrb[32].mxu0 %vm1872_vm3, %v8545_v21  ;;  %v1335_v15 = vsel %vm1279_vm1, %v9216_v33, %v8833_v54  ;;  %v9572_v54 = vsel %vm1083_vm0, %v9345_v56, %v9320_v38  ;;  %v1960_v33 = vsel %vm1083_vm0, %v9506_v62, 0 }
  0x91   : > { %2861 = vmatpush1.bf16.msra.mxu1 %v1952_v6  ;;  %2728 = vmatpush1.bf16.msra.mxu0 %v1471_v28  ;;  %v1778_v6 = vsel %vm1398_vm2, %v1646_v34, %v9483_v14  ;;  %v1645_v28 = vsel %vm1279_vm1, %v9497_v55, %v9487_v37  ;;  %v1351_v34 = vsel %vm1279_vm1, %v1203_v22, %v9083_v3 }
  0x92   : > { %2942 = vmatprep.subr.bf16.mxu1 %v1496_v17  ;;  %2729 = vmatprep.subr.bf16.mxu0 %v1758_v53  ;;  %v632_v17 = vcombine.high %v9392_v48, %v9392_v48  ;;  %v9540_v53 = vsel %vm1083_vm0, %v9083_v3, %v807_v7  ;;  %v1776_v48 = vsel %vm1398_vm2, %v1645_v28, %v9398_v12 }
  0x93   : > { %2759 = vmatprep.mubr.bf16.mxu0 %v13558_v5  ;;  %v1640_v23 = vsel %vm1279_vm1, %v9540_v53, %v9290_v31  ;;  %v1480_v52 = vsel %vm1398_vm2, %v1335_v15, %v9234_v43  ;;  %v1350_v28 = vsel %vm1279_vm1, %v9248_v27, %v9342_v35  ;;  %v9614_v15 = vrot.slane %v9500_v20, %v8300_v8 }
  0x94   : > { %8009 = vmatmul.mubr.msk.bf16.vlgmr.msra.gmra.mrb[32].mxu1 %vm1872_vm3, %v8545_v21  ;;  %v9561_v7 = vrot.slane %v632_v17, %v8300_v8 }
  0x95   : > { %2943 = vmatpush1.bf16.msra.mxu1 %v1494_v39  ;;  %2730 = vmatpush1.bf16.msra.mxu0 %v1756_v30  ;;  %v9558_v39 = vcombine.low %v9290_v31, %v9290_v31  ;;  %v9564_v30 = vrot.slane %v844_v60, %v8300_v8 }
  0x96   : > { %2944 = vmatprep.subr.bf16.mxu1 %v1778_v6  ;;  %8002 = vmatprep.subr.msk.bf16.mxu0 %vm1083_vm0, %v9514_v36  ;;  %v1505_v6 = vsel %vm1398_vm2, %v1351_v34, %v9240_v9  ;;  %v9595_v43 = vcombine.low %v9561_v7, %v9561_v7  ;;  %v1650_v27 = vsel %vm1279_vm1, %v9572_v54, %v9561_v7 }
  0x97   : > { %2974 = vmatprep.mubr.bf16.mxu1 %v13558_v5  ;;  %v1766_v17 = vsel %vm1398_vm2, %v1640_v23, %v9558_v39  ;;  %v1639_v60 = vsel %vm1279_vm1, %v1203_v22, %v9558_v39  ;;  %v9608_v22 = vld [vmem:[%s8308_s15 + $0x90] sm:$0xff]  ;;  %v9622_v34 = vcombine.high %v9345_v56, %v9345_v56 }
  0x99   : > { %2945 = vmatpush1.bf16.msra.mxu1 %v1776_v48  ;;  %2732 = vmatpush1.bf16.msra.mxu0 %v1940_v59  ;;  %v9591_v48 = vcombine.low %v9564_v30, %v9564_v30  ;;  %v9605_v59 = vsel %vm1083_vm0, %v9320_v38, %v9290_v31  ;;  %v1764_v38 = vsel %vm1398_vm2, %v1639_v60, %v9240_v9 }
  0x9a   : > { %8012 = vmatprep.subr.msk.bf16.mxu1 %vm1083_vm0, %v9536_v18  ;;  %2813 = vmatprep.subr.bf16.mxu0 %v1482_v40  ;;  %v1503_v40 = vsel %vm1398_vm2, %v1350_v28, %v9267_v29  ;;  %v1342_v29 = vsel %vm1279_vm1, %v9173_v2, %v8910_v51  ;;  %v9640_v28 = vld [vmem:[%s13551_s2] sm:$0xff]   ;;  %v1213_v51 = vsel %vm1083_vm0, %v9406_v42, %v9132_v25 }
  0x9b   : > { %v1786_v23 = vsel %vm1398_vm2, %v1650_v27, %v9591_v48  ;;  %v9649_v2 = vcombine.high %v9614_v15, %v9614_v15  ;;  %v1491_v42 = vsel %vm1398_vm2, %v1342_v29, %v9083_v3  ;;  %v1341_v60 = vsel %vm1279_vm1, %v9324_v11, %v8938_v49 }
  0x9c   : > { %8003 = vmatmul.mubr.msk.bf16.vlgmr.msra.gmra.mrb[36].mxu0 %vm1872_vm3, %v8545_v21  ;;  %v816_v21 = vcombine.high %v9132_v25, %v9132_v25  ;;  %v1948_v25 = vsel %vm1083_vm0, %v9345_v56, 0  ;;  %v1357_v27 = vsel %vm1279_vm1, %v1213_v51, %v9182_v58  ;;  %v9685_v49 = vsel %vm1083_vm0, %v9453_v10, %v9428_v0 }
  0x9d   : > { %2947 = vmatpush1.bf16.msra.mxu1 %v1960_v33  ;;  %2814 = vmatpush1.bf16.msra.mxu0 %v1480_v52  ;;  %v1649_v33 = vsel %vm1279_vm1, %v9605_v59, %v9595_v43  ;;  %v649_v52 = vcombine.high %v9500_v20, %v9500_v20  ;;  %v1968_v11 = vsel %vm1083_vm0, %v9614_v15, 0  ;;  %v1489_v29 = vsel %vm1398_vm2, %v1341_v60, %v9342_v35 }
  0x9e   : > { %3028 = vmatprep.subr.bf16.mxu1 %v1505_v6  ;;  %2815 = vmatprep.subr.bf16.mxu0 %v1766_v17  ;;  %v853_v6 = vcombine.low %v9608_v22, %v9608_v22  ;;  %v9653_v20 = vsel %vm1083_vm0, %v9182_v58, %v816_v21  ;;  %v1784_v17 = vsel %vm1398_vm2, %v1649_v33, %v9506_v62 }
  0x9f   : > { %2845 = vmatprep.mubr.bf16.mxu0 %v13558_v5  ;;  %v9674_v21 = vrot.slane %v649_v52, %v8300_v8  ;;  %v1644_v3 = vsel %vm1279_vm1, %v9653_v20, %v9398_v12  ;;  %v1356_v33 = vsel %vm1279_vm1, %v9356_v63, %v9450_v1  ;;  %v9727_v60 = vrot.slane %v9608_v22, %v8300_v8 }
  0xa0   : > { %8013 = vmatmul.mubr.msk.bf16.vlgmr.msra.gmra.mrb[36].mxu1 %vm1872_vm3, %v9640_v28 }
  0xa1   : > { %3029 = vmatpush1.bf16.msra.mxu1 %v1503_v40  ;;  %2816 = vmatpush1.bf16.msra.mxu0 %v1764_v38  ;;  %v9671_v40 = vcombine.low %v9398_v12, %v9398_v12  ;;  %v9677_v38 = vrot.slane %v853_v6, %v8300_v8  ;;  %v9708_v35 = vcombine.low %v9674_v21, %v9674_v21 }
  0xa2   : > { %3030 = vmatprep.subr.bf16.mxu1 %v1786_v23  ;;  %8006 = vmatprep.subr.msk.bf16.mxu0 %vm1083_vm0, %v9622_v34  ;;  %v1514_v23 = vsel %vm1398_vm2, %v1357_v27, %v9348_v61  ;;  %v1654_v63 = vsel %vm1279_vm1, %v9685_v49, %v9674_v21  ;;  %v825_v27 = vcombine.high %v9240_v9, %v9240_v9 }
  0xa3   : > { %3060 = vmatprep.mubr.bf16.mxu1 %v13558_v5  ;;  %v1774_v52 = vsel %vm1398_vm2, %v1644_v3, %v9671_v40  ;;  %v1643_v6 = vsel %vm1279_vm1, %v1213_v51, %v9671_v40  ;;  %v9721_v51 = vld [vmem:[%s8308_s15 + $0x98] sm:$0xff]  ;;  %v9735_v3 = vcombine.high %v9453_v10, %v9453_v10 }
  0xa5   : > { %3031 = vmatpush1.bf16.msra.mxu1 %v1784_v17  ;;  %2818 = vmatpush1.bf16.msra.mxu0 %v1948_v25  ;;  %v9704_v17 = vcombine.low %v9677_v38, %v9677_v38  ;;  %v9718_v25 = vsel %vm1083_vm0, %v9428_v0, %v9398_v12  ;;  %v1772_v0 = vsel %vm1398_vm2, %v1643_v6, %v9348_v61 }
  0xa6   : > { %8016 = vmatprep.subr.msk.bf16.mxu1 %vm1083_vm0, %v9649_v2  ;;  %2899 = vmatprep.subr.bf16.mxu0 %v1491_v42  ;;  %v1512_v42 = vsel %vm1398_vm2, %v1356_v33, %v9375_v50  ;;  %v1348_v50 = vsel %vm1279_vm1, %v9281_v46, %v9021_v24  ;;  %v862_v33 = vcombine.low %v9721_v51, %v9721_v51 }
  0xa7   : > { %v1223_v24 = vsel %vm1083_vm0, %v9514_v36, %v9240_v9  ;;  %v9757_v46 = vcombine.high %v9727_v60, %v9727_v60  ;;  %v1956_v9 = vsel %vm1083_vm0, %v9453_v10, 0  ;;  %v1500_v36 = vsel %vm1398_vm2, %v1348_v50, %v9182_v58 }
  0xa8   : > { %8007 = vmatmul.mubr.msk.bf16.vlgmr.msra.gmra.mrb[40].mxu0 %vm1872_vm3, %v9640_v28  ;;  %v1347_v6 = vsel %vm1279_vm1, %v9432_v13, %v9060_v26  ;;  %v9793_v26 = vsel %vm1083_vm0, %v9561_v7, %v9536_v18  ;;  %v1976_v13 = vsel %vm1083_vm0, %v9727_v60, 0 }
  0xa9   : > { %3033 = vmatpush1.bf16.msra.mxu1 %v1968_v11  ;;  %2900 = vmatpush1.bf16.msra.mxu0 %v1489_v29  ;;  %v1794_v11 = vsel %vm1398_vm2, %v1654_v63, %v9704_v17  ;;  %v1653_v29 = vsel %vm1279_vm1, %v9718_v25, %v9708_v35  ;;  %v1363_v63 = vsel %vm1279_vm1, %v1223_v24, %v9290_v31 }
  0xaa   : > { %3114 = vmatprep.subr.bf16.mxu1 %v1514_v23  ;;  %2901 = vmatprep.subr.bf16.mxu0 %v1774_v52  ;;  %v666_v23 = vcombine.high %v9608_v22, %v9608_v22  ;;  %v9761_v52 = vsel %vm1083_vm0, %v9290_v31, %v825_v27  ;;  %v1792_v22 = vsel %vm1398_vm2, %v1653_v29, %v9614_v15 }
  0xab   : > { %2931 = vmatprep.mubr.bf16.mxu0 %v13558_v5  ;;  %v1648_v58 = vsel %vm1279_vm1, %v9761_v52, %v9506_v62  ;;  %v1498_v50 = vsel %vm1398_vm2, %v1347_v6, %v9450_v1  ;;  %v1362_v29 = vsel %vm1279_vm1, %v9464_v41, %v9558_v39  ;;  %v9835_v6 = vrot.slane %v9721_v51, %v8300_v8 }
  0xac   : > { %8017 = vmatmul.mubr.msk.bf16.vlgmr.msra.gmra.mrb[40].mxu1 %vm1872_vm3, %v9640_v28  ;;  %v9782_v27 = vrot.slane %v666_v23, %v8300_v8 }
  0xad   : > { %3115 = vmatpush1.bf16.msra.mxu1 %v1512_v42  ;;  %2902 = vmatpush1.bf16.msra.mxu0 %v1772_v0  ;;  %v9779_v42 = vcombine.low %v9506_v62, %v9506_v62  ;;  %v9785_v0 = vrot.slane %v862_v33, %v8300_v8 }
  0xae   : > { %3116 = vmatprep.subr.bf16.mxu1 %v1794_v11  ;;  %8010 = vmatprep.subr.msk.bf16.mxu0 %vm1083_vm0, %v9735_v3  ;;  %v1523_v11 = vsel %vm1398_vm2, %v1363_v63, %v9456_v32  ;;  %v9816_v1 = vcombine.low %v9782_v27, %v9782_v27  ;;  %v1658_v41 = vsel %vm1279_vm1, %v9793_v26, %v9782_v27 }
  0xaf   : > { %3146 = vmatprep.mubr.bf16.mxu1 %v13558_v5  ;;  %v1782_v23 = vsel %vm1398_vm2, %v1648_v58, %v9779_v42  ;;  %v1647_v33 = vsel %vm1279_vm1, %v1223_v24, %v9779_v42  ;;  %v9829_v24 = vld [vmem:[%s8308_s15 + $0xa0] sm:$0xff]  ;;  %v834_v63 = vcombine.high %v9348_v61, %v9348_v61  ;;  %v9843_v58 = vcombine.high %v9561_v7, %v9561_v7 }
  0xb1   : > { %3117 = vmatpush1.bf16.msra.mxu1 %v1792_v22  ;;  %2904 = vmatpush1.bf16.msra.mxu0 %v1956_v9  ;;  %v9812_v22 = vcombine.low %v9785_v0, %v9785_v0  ;;  %v9826_v9 = vsel %vm1083_vm0, %v9536_v18, %v9506_v62  ;;  %v1780_v18 = vsel %vm1398_vm2, %v1647_v33, %v9456_v32 }
  0xb2   : > { %8020 = vmatprep.subr.msk.bf16.mxu1 %vm1083_vm0, %v9757_v46  ;;  %2985 = vmatprep.subr.bf16.mxu0 %v1500_v36  ;;  %v1521_v36 = vsel %vm1398_vm2, %v1362_v29, %v9483_v14  ;;  %v1354_v14 = vsel %vm1279_vm1, %v9389_v57, %v9129_v19  ;;  %v937_v29 = vcombine.low %v9829_v24, %v9829_v24 }
  0xb3   : > { %v1233_v19 = vsel %vm1083_vm0, %v9622_v34, %v9348_v61  ;;  %v9865_v57 = vcombine.high %v9835_v6, %v9835_v6  ;;  %v1964_v61 = vsel %vm1083_vm0, %v9561_v7, 0  ;;  %v1509_v34 = vsel %vm1398_vm2, %v1354_v14, %v9290_v31 }
  0xb4   : > { %8011 = vmatmul.mubr.msk.bf16.vlgmr.msra.gmra.mrb[44].mxu0 %vm1872_vm3, %v9640_v28  ;;  %v1353_v33 = vsel %vm1279_vm1, %v9540_v53, %v9163_v16  ;;  %v9901_v16 = vsel %vm1083_vm0, %v9674_v21, %v9649_v2  ;;  %v1984_v53 = vsel %vm1083_vm0, %v9835_v6, 0 }
  0xb5   : > { %3119 = vmatpush1.bf16.msra.mxu1 %v1976_v13  ;;  %2986 = vmatpush1.bf16.msra.mxu0 %v1498_v50  ;;  %v1802_v13 = vsel %vm1398_vm2, %v1658_v41, %v9812_v22  ;;  %v1657_v50 = vsel %vm1279_vm1, %v9826_v9, %v9816_v1  ;;  %v1369_v41 = vsel %vm1279_vm1, %v1233_v19, %v9398_v12 }
  0xb6   : > { %3200 = vmatprep.subr.bf16.mxu1 %v1523_v11  ;;  %2987 = vmatprep.subr.bf16.mxu0 %v1782_v23  ;;  %v908_v11 = vcombine.high %v9721_v51, %v9721_v51  ;;  %v9869_v23 = vsel %vm1083_vm0, %v9398_v12, %v834_v63  ;;  %v1800_v51 = vsel %vm1398_vm2, %v1657_v50, %v9727_v60 }
  0xb7   : > { %3017 = vmatprep.mubr.bf16.mxu0 %v13558_v5  ;;  %v1652_v31 = vsel %vm1279_vm1, %v9869_v23, %v9614_v15  ;;  %v1507_v14 = vsel %vm1398_vm2, %v1353_v33, %v9558_v39  ;;  %v1368_v50 = vsel %vm1279_vm1, %v9572_v54, %v9671_v40  ;;  %v9943_v33 = vrot.slane %v9829_v24, %v8300_v8 }
  0xb8   : > { %8021 = vmatmul.mubr.msk.bf16.vlgmr.msra.gmra.mrb[44].mxu1 %vm1872_vm3, %v9640_v28  ;;  %v9890_v63 = vrot.slane %v908_v11, %v8300_v8 }
  0xb9   : > { %3201 = vmatpush1.bf16.msra.mxu1 %v1521_v36  ;;  %2988 = vmatpush1.bf16.msra.mxu0 %v1780_v18  ;;  %v9887_v36 = vcombine.low %v9614_v15, %v9614_v15  ;;  %v9893_v18 = vrot.slane %v937_v29, %v8300_v8 }
  0xba   : > { %3202 = vmatprep.subr.bf16.mxu1 %v1802_v13  ;;  %8014 = vmatprep.subr.msk.bf16.mxu0 %vm1083_vm0, %v9843_v58  ;;  %v1532_v13 = vsel %vm1398_vm2, %v1369_v41, %v9564_v30  ;;  %v9924_v39 = vcombine.low %v9890_v63, %v9890_v63  ;;  %v1662_v54 = vsel %vm1279_vm1, %v9901_v16, %v9890_v63 }
  0xbb   : > { %3232 = vmatprep.mubr.bf16.mxu1 %v13558_v5  ;;  %v1790_v11 = vsel %vm1398_vm2, %v1652_v31, %v9887_v36  ;;  %v1651_v29 = vsel %vm1279_vm1, %v1233_v19, %v9887_v36  ;;  %v9937_v19 = vld [vmem:[%s8308_s15 + $0xa8] sm:$0xff]  ;;  %v843_v41 = vcombine.high %v9456_v32, %v9456_v32  ;;  %v9951_v31 = vcombine.high %v9674_v21, %v9674_v21 }
  0xbd   : > { %3203 = vmatpush1.bf16.msra.mxu1 %v1800_v51  ;;  %2990 = vmatpush1.bf16.msra.mxu0 %v1964_v61  ;;  %v9920_v51 = vcombine.low %v9893_v18, %v9893_v18  ;;  %v9934_v61 = vsel %vm1083_vm0, %v9649_v2, %v9614_v15  ;;  %v1788_v2 = vsel %vm1398_vm2, %v1651_v29, %v9564_v30 }
  0xbe   : > { %8024 = vmatprep.subr.msk.bf16.mxu1 %vm1083_vm0, %v9865_v57  ;;  %3071 = vmatprep.subr.bf16.mxu0 %v1509_v34  ;;  %v1530_v34 = vsel %vm1398_vm2, %v1368_v50, %v9591_v48  ;;  %v1360_v48 = vsel %vm1279_vm1, %v9497_v55, %v9237_v45  ;;  %v973_v50 = vcombine.high %v9829_v24, %v9829_v24 }
  0xbf   : > { %v1243_v45 = vsel %vm1083_vm0, %v9735_v3, %v9456_v32  ;;  %v9973_v55 = vcombine.high %v9943_v33, %v9943_v33  ;;  %v1972_v32 = vsel %vm1083_vm0, %v9674_v21, 0  ;;  %v1518_v3 = vsel %vm1398_vm2, %v1360_v48, %v9398_v12 }
  0xc0   : > { %8015 = vmatmul.mubr.msk.bf16.vlgmr.msra.gmra.mrb[48].mxu0 %vm1872_vm3, %v9640_v28  ;;  %v1359_v29 = vsel %vm1279_vm1, %v9653_v20, %v9271_v44  ;;  %v10009_v44 = vsel %vm1083_vm0, %v9782_v27, %v9757_v46  ;;  %v1992_v20 = vsel %vm1083_vm0, %v9943_v33, 0 }
  0xc1   : > { %3205 = vmatpush1.bf16.msra.mxu1 %v1984_v53  ;;  %3072 = vmatpush1.bf16.msra.mxu0 %v1507_v14  ;;  %v1810_v53 = vsel %vm1398_vm2, %v1662_v54, %v9920_v51  ;;  %v1661_v14 = vsel %vm1279_vm1, %v9934_v61, %v9924_v39  ;;  %v1375_v54 = vsel %vm1279_vm1, %v1243_v45, %v9506_v62 }
  0xc2   : > { %3286 = vmatprep.subr.bf16.mxu1 %v1532_v13  ;;  %3073 = vmatprep.subr.bf16.mxu0 %v1790_v11  ;;  %v954_v13 = vcombine.low %v9937_v19, %v9937_v19  ;;  %v9977_v11 = vsel %vm1083_vm0, %v9506_v62, %v843_v41  ;;  %v1808_v24 = vsel %vm1398_vm2, %v1661_v14, %v9835_v6 }
  0xc3   : > { %3103 = vmatprep.mubr.bf16.mxu0 %v13558_v5  ;;  %v1656_v12 = vsel %vm1279_vm1, %v9977_v11, %v9727_v60  ;;  %v1516_v48 = vsel %vm1398_vm2, %v1359_v29, %v9671_v40  ;;  %v1374_v14 = vsel %vm1279_vm1, %v9685_v49, %v9779_v42  ;;  %v10049_v29 = vrot.slane %v9937_v19, %v8300_v8 }
  0xc4   : > { %8025 = vmatmul.mubr.msk.bf16.vlgmr.msra.gmra.mrb[48].mxu1 %vm1872_vm3, %v9640_v28  ;;  %v9998_v41 = vrot.slane %v954_v13, %v8300_v8 }
  0xc5   : > { %3287 = vmatpush1.bf16.msra.mxu1 %v1530_v34  ;;  %3074 = vmatpush1.bf16.msra.mxu0 %v1788_v2  ;;  %v9995_v34 = vcombine.low %v9727_v60, %v9727_v60  ;;  %v10001_v2 = vrot.slane %v973_v50, %v8300_v8 }
  0xc6   : > { %3288 = vmatprep.subr.bf16.mxu1 %v1810_v53  ;;  %8018 = vmatprep.subr.msk.bf16.mxu0 %vm1083_vm0, %v9951_v31  ;;  %v1541_v53 = vsel %vm1398_vm2, %v1375_v54, %v9677_v38  ;;  %v852_v54 = vcombine.high %v9564_v30, %v9564_v30 }
  0xc7   : > { %3318 = vmatprep.mubr.bf16.mxu1 %v13558_v5  ;;  %v1798_v13 = vsel %vm1398_vm2, %v1656_v12, %v9995_v34  ;;  %v1655_v50 = vsel %vm1279_vm1, %v1243_v45, %v9995_v34  ;;  %v1013_v40 = vcombine.low %v10001_v2, %v10001_v2  ;;  %v1667_v49 = vsel %vm1279_vm1, %v10009_v44, %v10001_v2  ;;  %v10043_v45 = vld [vmem:[%s8308_s15 + $0xb0] sm:$0xff] }
  0xc8   : > { %v10057_v12 = vcombine.high %v9782_v27, %v9782_v27 }
  0xc9   : > { %3289 = vmatpush1.bf16.msra.mxu1 %v1808_v24  ;;  %3076 = vmatpush1.bf16.msra.mxu0 %v1972_v32  ;;  %v10028_v24 = vcombine.low %v9998_v41, %v9998_v41  ;;  %v10040_v32 = vsel %vm1083_vm0, %v9757_v46, %v9727_v60  ;;  %v1796_v46 = vsel %vm1398_vm2, %v1655_v50, %v9677_v38 }
  0xca   : > { %8028 = vmatprep.subr.msk.bf16.mxu1 %vm1083_vm0, %v9973_v55  ;;  %3157 = vmatprep.subr.bf16.mxu0 %v1518_v3  ;;  %v1539_v3 = vsel %vm1398_vm2, %v1374_v14, %v9704_v17  ;;  %v1366_v17 = vsel %vm1279_vm1, %v9605_v59, %v9345_v56  ;;  %v1002_v14 = vcombine.low %v10043_v45, %v10043_v45 }
  0xcb   : > { %v1253_v56 = vsel %vm1083_vm0, %v9843_v58, %v9564_v30  ;;  %v10078_v59 = vcombine.high %v10049_v29, %v10049_v29  ;;  %v1980_v30 = vsel %vm1083_vm0, %v9782_v27, 0  ;;  %v1527_v58 = vsel %vm1398_vm2, %v1366_v17, %v9506_v62 }
  0xcc   : > { %8019 = vmatmul.mubr.msk.bf16.vlgmr.msra.gmra.mrb[52].mxu0 %vm1872_vm3, %v9640_v28  ;;  %v1365_v50 = vsel %vm1279_vm1, %v9761_v52, %v9379_v47  ;;  %v1580_v47 = vsel %vm1083_vm0, %v9890_v63, %v9865_v57  ;;  %v2000_v52 = vsel %vm1083_vm0, %v10049_v29, 0 }
  0xcd   : > { %3291 = vmatpush1.bf16.msra.mxu1 %v1992_v20  ;;  %3158 = vmatpush1.bf16.msra.mxu0 %v1516_v48  ;;  %v1818_v20 = vsel %vm1398_vm2, %v1667_v49, %v10028_v24  ;;  %v1666_v48 = vsel %vm1279_vm1, %v10040_v32, %v1013_v40  ;;  %v1381_v40 = vsel %vm1279_vm1, %v1253_v56, %v9614_v15 }
  0xce   : > { %3372 = vmatprep.subr.bf16.mxu1 %v1541_v53  ;;  %3159 = vmatprep.subr.bf16.mxu0 %v1798_v13  ;;  %v983_v53 = vcombine.high %v9937_v19, %v9937_v19  ;;  %v10082_v13 = vsel %vm1083_vm0, %v9614_v15, %v852_v54  ;;  %v1816_v19 = vsel %vm1398_vm2, %v1666_v48, %v9943_v33 }
  0xcf   : > { %3189 = vmatprep.mubr.bf16.mxu0 %v13558_v5  ;;  %v10100_v49 = vcombine.low %v9835_v6, %v9835_v6  ;;  %v10106_v54 = vrot.slane %v1002_v14, %v8300_v8  ;;  %v1660_v62 = vsel %vm1279_vm1, %v10082_v13, %v9835_v6  ;;  %v1550_v17 = vsel %vm1398_vm2, %v1381_v40, %v9785_v0 }
  0xd0   : > { %8029 = vmatmul.mubr.msk.bf16.vlgmr.msra.gmra.mrb[52].mxu1 %vm1872_vm3, %v9640_v28  ;;  %v10157_v40 = vcombine.high %v9890_v63, %v9890_v63 }
  0xd1   : > { %3373 = vmatpush1.bf16.msra.mxu1 %v1539_v3  ;;  %3160 = vmatpush1.bf16.msra.mxu0 %v1796_v46  ;;  %v10103_v3 = vrot.slane %v983_v53, %v8300_v8  ;;  %v1525_v46 = vsel %vm1398_vm2, %v1365_v50, %v9779_v42  ;;  %v1806_v48 = vsel %vm1398_vm2, %v1660_v62, %v10100_v49 }
  0xd2   : > { %3374 = vmatprep.subr.bf16.mxu1 %v1818_v20  ;;  %8022 = vmatprep.subr.msk.bf16.mxu0 %vm1083_vm0, %v10057_v12  ;;  %v1380_v20 = vsel %vm1279_vm1, %v9793_v26, %v9887_v36  ;;  %v1659_v53 = vsel %vm1279_vm1, %v1253_v56, %v10100_v49  ;;  %v1050_v14 = vcombine.low %v10106_v54, %v10106_v54 }
  0xd3   : > { %3404 = vmatprep.mubr.bf16.mxu1 %v13558_v5  ;;  %v1672_v42 = vsel %vm1279_vm1, %v1580_v47, %v10103_v3  ;;  %v10140_v26 = vsel %vm1083_vm0, %v9865_v57, %v9835_v6  ;;  %v1548_v56 = vsel %vm1398_vm2, %v1380_v20, %v9812_v22  ;;  %v861_v50 = vcombine.high %v9677_v38, %v9677_v38 }
  0xd4   : > { %v1804_v57 = vsel %vm1398_vm2, %v1659_v53, %v9785_v0  ;;  %v1372_v22 = vsel %vm1279_vm1, %v9718_v25, %v9453_v10  ;;  %v1827_v62 = vsel %vm1398_vm2, %v1672_v42, %v1050_v14  ;;  %v1263_v10 = vsel %vm1083_vm0, %v9951_v31, %v9677_v38 }
  0xd5   : > { %3375 = vmatpush1.bf16.msra.mxu1 %v1816_v19  ;;  %3162 = vmatpush1.bf16.msra.mxu0 %v1980_v30  ;;  %v1014_v19 = vcombine.low %v10103_v3, %v10103_v3  ;;  %v10143_v30 = vld [vmem:[%s8308_s15 + $0xb8] sm:$0xff]  ;;  %v1988_v20 = vsel %vm1083_vm0, %v9890_v63, 0  ;;  %v1536_v38 = vsel %vm1398_vm2, %v1372_v22, %v9614_v15  ;;  %v1371_v31 = vsel %vm1279_vm1, %v9869_v23, %v9487_v37 }
  0xd6   : > { %8032 = vmatprep.subr.msk.bf16.mxu1 %vm1083_vm0, %v10078_v59  ;;  %3243 = vmatprep.subr.bf16.mxu0 %v1527_v58  ;;  %v10149_v58 = vrot.slane %v10043_v45, %v8300_v8  ;;  %v10197_v53 = vcombine.low %v9943_v33, %v9943_v33  ;;  %v1588_v37 = vsel %vm1083_vm0, %v10001_v2, %v9973_v55 }
  0xd7   : > { %v1671_v47 = vsel %vm1279_vm1, %v10140_v26, %v1014_v19  ;;  %v1534_v42 = vsel %vm1398_vm2, %v1371_v31, %v9887_v36  ;;  %v1025_v31 = vcombine.high %v10143_v30, %v10143_v30 }
  0xd8   : > { %8023 = vmatmul.mubr.msk.bf16.vlgmr.msra.gmra.mrb[56].mxu0 %vm1872_vm3, %v9640_v28  ;;  %v1069_v25 = vcombine.high %v10149_v58, %v10149_v58  ;;  %v2008_v23 = vsel %vm1083_vm0, %v10149_v58, 0  ;;  %v1663_v22 = vsel %vm1279_vm1, %v1263_v10, %v10197_v53 }
  0xd9   : > { %3377 = vmatpush1.bf16.msra.mxu1 %v2000_v52  ;;  %3244 = vmatpush1.bf16.msra.mxu0 %v1525_v46  ;;  %v1015_v52 = vcombine.high %v10043_v45, %v10043_v45  ;;  %v1051_v46 = vcombine.low %v10143_v30, %v10143_v30  ;;  %v1824_v45 = vsel %vm1398_vm2, %v1671_v47, %v10049_v29 }
  0xda   : > { %3458 = vmatprep.subr.bf16.mxu1 %v1550_v17  ;;  %3245 = vmatprep.subr.bf16.mxu0 %v1806_v48  ;;  %v10179_v17 = vsel %vm1083_vm0, %v9727_v60, %v861_v50  ;;  %v1387_v48 = vsel %vm1279_vm1, %v1263_v10, %v9727_v60  ;;  %v1386_v50 = vsel %vm1279_vm1, %v9901_v16, %v9995_v34 }
  0xdb   : > { %3275 = vmatprep.mubr.bf16.mxu0 %v13558_v5  ;;  %v10200_v14 = vrot.slane %v1015_v52, %v8300_v8  ;;  %v10203_v19 = vrot.slane %v1051_v46, %v8300_v8  ;;  %v1664_v15 = vsel %vm1279_vm1, %v10179_v17, %v9943_v33  ;;  %v1586_v16 = vsel %vm1083_vm0, %v9973_v55, %v9943_v33  ;;  %v10237_v52 = vld [vmem:[%s8308_s15 + $0xc0] sm:$0xff] }
  0xdc   : > { %8033 = vmatmul.mubr.msk.bf16.vlgmr.msra.gmra.mrb[56].mxu1 %vm1872_vm3, %v9640_v28  ;;  %v1557_v46 = vsel %vm1398_vm2, %v1386_v50, %v9920_v51  ;;  %v10243_v10 = vrot.slane %v10143_v30, %v8300_v8  ;;  %v10251_v55 = vcombine.high %v10001_v2, %v10001_v2  ;;  %v1378_v51 = vsel %vm1279_vm1, %v9826_v9, %v9561_v7 }
  0xdd   : > { %3459 = vmatpush1.bf16.msra.mxu1 %v1548_v56  ;;  %3246 = vmatpush1.bf16.msra.mxu0 %v1804_v57  ;;  %v1560_v56 = vsel %vm1398_vm2, %v1387_v48, %v9893_v18  ;;  %v1814_v57 = vsel %vm1398_vm2, %v1664_v15, %v10197_v53  ;;  %v1024_v47 = vcombine.low %v10200_v14, %v10200_v14 }
  0xde   : > { %3460 = vmatprep.subr.bf16.mxu1 %v1827_v62  ;;  %8026 = vmatprep.subr.msk.bf16.mxu0 %vm1083_vm0, %v10157_v40  ;;  %v1059_v62 = vcombine.low %v10203_v19, %v10203_v19  ;;  %v1679_v36 = vsel %vm1279_vm1, %v1588_v37, %v10200_v14  ;;  %v1060_v48 = vcombine.low %v10237_v52, %v10237_v52  ;;  %v1996_v37 = vsel %vm1083_vm0, %v10001_v2, 0 }
  0xdf   : > { %3490 = vmatprep.mubr.bf16.mxu1 %v13558_v5  ;;  %v1273_v15 = vsel %vm1083_vm0, %v10057_v12, %v9785_v0  ;;  %v1071_v7 = vcombine.high %v10243_v10, %v10243_v10  ;;  %v1377_v12 = vsel %vm1279_vm1, %v9977_v11, %v9595_v43  ;;  %v1596_v43 = vsel %vm1083_vm0, %v10103_v3, %v10078_v59 }
  0xe0   : > { %v10296_v2 = vrot.slane %v1060_v48, %v8300_v8  ;;  %v2018_v11 = vsel %vm1083_vm0, %v10243_v10, 0  ;;  %v1543_v50 = vsel %vm1398_vm2, %v1377_v12, %v9995_v34  ;;  %v1001_v12 = vcombine.high %v9998_v41, %v9998_v41 }
  0xe1   : > { %3461 = vmatpush1.bf16.msra.mxu1 %v1824_v45  ;;  %3248 = vmatpush1.bf16.msra.mxu0 %v1988_v20  ;;  %v1812_v45 = vsel %vm1398_vm2, %v1663_v22, %v9893_v18  ;;  %v1836_v20 = vsel %vm1398_vm2, %v1679_v36, %v1059_v62  ;;  %v1392_v22 = vsel %vm1279_vm1, %v10009_v44, %v10100_v49 }
  0xe2   : > { %8036 = vmatprep.subr.msk.bf16.mxu1 %vm1083_vm0, %v1069_v25  ;;  %3329 = vmatprep.subr.bf16.mxu0 %v1536_v38  ;;  %v870_v25 = vcombine.high %v9785_v0, %v9785_v0  ;;  %v1677_v38 = vsel %vm1279_vm1, %v1586_v16, %v1024_v47  ;;  %v1545_v0 = vsel %vm1398_vm2, %v1378_v51, %v9727_v60 }
  0xe3   : > { %v1833_v30 = vsel %vm1398_vm2, %v1677_v38, %v10149_v58  ;;  %v1068_v36 = vcombine.low %v10296_v2, %v10296_v2  ;;  %v1594_v44 = vsel %vm1083_vm0, %v10078_v59, %v10049_v29  ;;  %v10337_v51 = vrot.slane %v10237_v52, %v8300_v8 }
  0xe4   : > { %8027 = vmatmul.mubr.msk.bf16.vlgmr.msra.gmra.mrb[60].mxu0 %vm1872_vm3, %v9640_v28  ;;  %v10272_v9 = vsel %vm1083_vm0, %v9835_v6, %v870_v25  ;;  %v1000_v25 = vcombine.high %v9893_v18, %v9893_v18  ;;  %v10341_v59 = vcombine.high %v10103_v3, %v10103_v3  ;;  %v1384_v38 = vsel %vm1279_vm1, %v9934_v61, %v9674_v21 }
  0xe5   : > { %3463 = vmatpush1.bf16.msra.mxu1 %v2008_v23  ;;  %3330 = vmatpush1.bf16.msra.mxu0 %v1534_v42  ;;  %v1393_v23 = vsel %vm1279_vm1, %v1273_v15, %v9835_v6  ;;  %v10290_v42 = vcombine.low %v10049_v29, %v10049_v29  ;;  %v1669_v60 = vsel %vm1279_vm1, %v10272_v9, %v10049_v29 }
  0xe6   : > { %3544 = vmatprep.subr.bf16.mxu1 %v1560_v56  ;;  %3331 = vmatprep.subr.bf16.mxu0 %v1814_v57  ;;  %v10293_v56 = vrot.slane %v1025_v31, %v8300_v8  ;;  %v1572_v57 = vsel %vm1398_vm2, %v1393_v23, %v9998_v41  ;;  %v1584_v31 = vsel %vm1083_vm0, %v9943_v33, %v1000_v25 }
  0xe7   : > { %3361 = vmatprep.mubr.bf16.mxu0 %v13558_v5  ;;  %v1822_v62 = vsel %vm1398_vm2, %v1669_v60, %v10290_v42  ;;  %v1668_v47 = vsel %vm1279_vm1, %v1273_v15, %v10290_v42  ;;  %v2004_v15 = vsel %vm1083_vm0, %v10103_v3, 0  ;;  %v1554_v21 = vsel %vm1398_vm2, %v1384_v38, %v9835_v6  ;;  %v10398_v60 = vld [vmem:[%s13550_s1] sm:$0xff] }
  0xe8   : > { %8037 = vmatmul.mubr.msk.bf16.vlgmr.msra.gmra.mrb[60].mxu1 %vm1872_vm3, %v9640_v28  ;;  %v1041_v16 = vcombine.low %v10293_v56, %v10293_v56  ;;  %v1687_v34 = vsel %vm1279_vm1, %v1596_v43, %v10293_v56  ;;  %v1383_v61 = vsel %vm1279_vm1, %v10082_v13, %v9708_v35  ;;  %v1582_v3 = vsel %vm1083_vm0, %v10157_v40, %v9893_v18  ;;  %v10385_v18 = vpop.permute.xlu0 %1859 }
  0xe9   : > { %3545 = vmatpush1.bf16.msra.mxu1 %v1557_v46  ;;  %3332 = vmatpush1.bf16.msra.mxu0 %v1812_v45  ;;  %v1569_v46 = vsel %vm1398_vm2, %v1392_v22, %v10028_v24  ;;  %v1820_v45 = vsel %vm1398_vm2, %v1668_v47, %v9998_v41  ;;  %v2028_v6 = vsel %vm1083_vm0, %v10337_v51, 0  ;;  %v1552_v35 = vsel %vm1398_vm2, %v1383_v61, %v10100_v49 }
  0xea   : > { %3546 = vmatprep.subr.bf16.mxu1 %v1836_v20  ;;  %8030 = vmatprep.subr.msk.bf16.mxu0 %vm1083_vm0, %v10251_v55  ;;  %v1846_v20 = vsel %vm1398_vm2, %v1687_v34, %v1068_v36  ;;  %v1685_v24 = vsel %vm1279_vm1, %v1594_v44, %v1041_v16  ;;  %v10391_v49 = vsub.s32 0, %v8289_v4  ;;  %v1070_v23 = vcombine.high %v10200_v14, %v10200_v14 }
  0xeb   : > { %3576 = vmatprep.mubr.bf16.mxu1 %v13558_v5  ;;  %v1843_v48 = vsel %vm1398_vm2, %v1685_v24, %v10243_v10  ;;  %v10401_v43 = vsub.s32 1, %v8289_v4  ;;  %v1390_v22 = vsel %vm1279_vm1, %v10040_v32, %v9782_v27  ;;  %v1040_v47 = vcombine.low %v10243_v10, %v10243_v10 }
  0xec   : > { %13767 = vst [vmem:[#allocation3_spill] sm:$0xff] %v10391_v49  ;;  %v1590_v36 = vsel %vm1083_vm0, %v10251_v55, %v9998_v41  ;;  %v10430_v34 = vrot.slane %v10398_v60, %v10391_v49  ;;  %v10433_v27 = vpop.permute.xlu0 %1864 }
  0xed   : > { %3547 = vmatpush1.bf16.msra.mxu1 %v1833_v30  ;;  %3334 = vmatpush1.bf16.msra.mxu0 %v1996_v37  ;;  %v1023_v30 = vcombine.low %v10149_v58, %v10149_v58  ;;  %v1675_v37 = vsel %vm1279_vm1, %v1584_v31, %v10149_v58  ;;  %v10446_v44 = vrot.slane %v10398_v60, %v10401_v43 }
  0xee   : > { %8040 = vmatprep.subr.msk.bf16.mxu1 %vm1083_vm0, %v1071_v7  ;;  %3415 = vmatprep.subr.bf16.mxu0 %v1545_v0  ;;  %v1081_v7 = vcombine.high %v10337_v51, %v10337_v51  ;;  %13768 = vst [vmem:[#allocation4_spill] sm:$0xff] %v10430_v34 }
  0xef   : > { %v1831_v13 = vsel %vm1398_vm2, %v1675_v37, %v1023_v30  ;;  %v1674_v0 = vsel %vm1279_vm1, %v1582_v3, %v1023_v30  ;;  %13769 = vst [vmem:[#allocation5_spill] sm:$0xff] %v10446_v44 }
  0xf0   : > { %8031 = vmatmul.mubr.msk.bf16.vlgmr.msra.gmra.mrb[64].mxu0 %vm1872_vm3, %v9640_v28  ;;  %v1829_v40 = vsel %vm1398_vm2, %v1674_v0, %v10106_v54 }
  0xf1   : > { %3549 = vmatpush1.bf16.msra.mxu1 %v2018_v11  ;;  %3416 = vmatpush1.bf16.msra.mxu0 %v1543_v50  ;;  %v1592_v11 = vsel %vm1083_vm0, %v10049_v29, %v1001_v12  ;;  %v10407_v50 = vsub.s32 6, %v8289_v4 }
  0xf2   : > { %3630 = vmatprep.subr.bf16.mxu1 %v1572_v57  ;;  %3417 = vmatprep.subr.bf16.mxu0 %v1822_v62  ;;  %v10412_v57 = vld [vmem:[%s13553_s4 + $0x4] ss:$8 sps:$4 sm:$0xff]   ;;  %v1389_v62 = vsel %vm1279_vm1, %v10179_v17, %v9816_v1  ;;  %v2013_v1 = vsel %vm1083_vm0, %v10200_v14, 0  ;;  %v1683_v32 = vsel %vm1279_vm1, %v1592_v11, %v10243_v10  ;;  %v10441_v17 = vsub.s32 7, %v8289_v4 }
  0xf3   : > { %3447 = vmatprep.mubr.bf16.mxu0 %v13558_v5  ;;  %v1563_v14 = vsel %vm1398_vm2, %v1389_v62, %v10197_v53  ;;  %v10460_v38 = vrot.slane %v10398_v60, %v10407_v50 }
  0xf4   : > { %8041 = vmatmul.mubr.msk.bf16.vlgmr.msra.gmra.mrb[64].mxu1 %vm1872_vm3, %v9640_v28  ;;  %v10471_v37 = vrot.slane %v10398_v60, %v10441_v17 }
  0xf5   : > { %3631 = vmatpush1.bf16.msra.mxu1 %v1569_v46  ;;  %3418 = vmatpush1.bf16.msra.mxu0 %v1820_v45  ;;  %v1566_v46 = vsel %vm1398_vm2, %v1390_v22, %v9943_v33  ;;  %v1681_v45 = vsel %vm1279_vm1, %v1590_v36, %v1040_v47  ;;  %13770 = vst [vmem:[#allocation6_spill] sm:$0xff] %v10460_v38 }
  0xf6   : > { %3632 = vmatprep.subr.bf16.mxu1 %v1846_v20  ;;  %8034 = vmatprep.subr.msk.bf16.mxu0 %vm1083_vm0, %v10341_v59  ;;  %v1072_v20 = vcombine.high %v10293_v56, %v10293_v56  ;;  %13771 = vst [vmem:[#allocation7_spill] sm:$0xff] %v10471_v37 }
  0xf7   : > { %3662 = vmatprep.mubr.bf16.mxu1 %v13558_v5 }
  0xf9   : > { %3633 = vmatpush1.bf16.msra.mxu1 %v1843_v48  ;;  %3420 = vmatpush1.bf16.msra.mxu0 %v2004_v15  ;;  %v1841_v48 = vsel %vm1398_vm2, %v1683_v32, %v1040_v47 }
  0xfa   : > { %8044 = vmatprep.subr.msk.bf16.mxu1 %vm1083_vm0, %v1081_v7  ;;  %3501 = vmatprep.subr.bf16.mxu0 %v1554_v21 }
  0xfc   : > { %8035 = vmatmul.mubr.msk.bf16.vlgmr.msra.gmra.mrb[68].mxu0 %vm1872_vm3, %v9640_v28 }
  0xfd   : > { %3635 = vmatpush1.bf16.msra.mxu1 %v2028_v6  ;;  %3502 = vmatpush1.bf16.msra.mxu0 %v1552_v35 }
  0xfe   : > { %3503 = vmatprep.subr.bf16.mxu0 %v1831_v13  ;;  %4559 = vmatprep.subr.bf16.mxu1 %v13558_v5 }
  0xff   : > { %3533 = vmatprep.mubr.bf16.mxu0 %v13558_v5 }
 0x100   : > { %8045 = vmatmul.mubr.msk.bf16.vlgmr.msra.gmra.mrb[68].mxu1 %vm1872_vm3, %v9640_v28 }
 0x101   : > { %3504 = vmatpush1.bf16.msra.mxu0 %v1829_v40  ;;  %4560 = vmatpush1.bf16.msra.mxu1 %v13558_v5 }
 0x102   : > { %v2073_v16 = vpop.f32.mrb[0].mxu0  ;;  %8038 = vmatprep.subr.msk.bf16.mxu0 %vm1083_vm0, %v1070_v23  ;;  %4561 = vmatprep.subr.bf16.mxu1 %v13558_v5  ;;  %v1839_v23 = vsel %vm1398_vm2, %v1681_v45, %v10203_v19 }
 0x103   : > { %v2074_v41 = vadd.f32 %v2073_v16, %v10385_v18  ;;  %v2075_v55 = vpop.f32.mrb[1].mxu0  ;;  %8052 = vmatprep.mubr.msk.bf16.mxu1 %vm4552_vm4, %v10412_v57  ;;  %v1010_v16 = vcombine.high %v10106_v54, %v10106_v54 }
 0x104   : > { %v2076_v10 = vadd.f32 %v2075_v55, %v10385_v18  ;;  %v2077_v25 = vpop.f32.mrb[2].mxu0  ;;  %v2202_v24 = vpop.f32.mrb[0].mxu1 }
 0x105   : > { %v3716_v33 = vmax.f32 %v2074_v41, 0.0  ;;  %v2078_v31 = vadd.f32 %v2077_v25, %v10433_v27  ;;  %3506 = vmatpush1.bf16.msra.mxu0 %v2013_v1  ;;  %v2079_v53 = vpop.f32.mrb[3].mxu0  ;;  %4562 = vmatpush1.bf16.msra.mxu1 %v13558_v5  ;;  %v2203_v15 = vadd.f32 %v2202_v24, %v10385_v18  ;;  %v2204_v7 = vpop.f32.mrb[1].mxu1  ;;  %v1397_v25 = vsel %vm1279_vm1, %v10140_v26, %v9890_v63 }
 0x106   : > { %v3717_v21 = vmax.f32 %v2076_v10, 0.0  ;;  %v2080_v61 = vadd.f32 %v2079_v53, %v10433_v27  ;;  %3587 = vmatprep.subr.bf16.mxu0 %v1566_v46  ;;  %4563 = vmatprep.subr.bf16.mxu1 %v13558_v5  ;;  %v2205_v30 = vadd.f32 %v2204_v7, %v10385_v18  ;;  %v2206_v3 = vpop.f32.mrb[2].mxu1  ;;  %v10495_v10 = vsub.s32 2, %v8289_v4 }
 0x107   : > { %v4272_v6 = vmul.f32 %v10430_v34, %v3716_v33  ;;  %v3794_v35 = vmax.f32 %v2078_v31, 0.0  ;;  %v3722_v13 = vmax.f32 %v2203_v15, 0.0  ;;  %v2207_v0 = vadd.f32 %v2206_v3, %v10433_v27  ;;  %v2208_v12 = vpop.f32.mrb[3].mxu1 }
 0x108   : > { %v3795_v40 = vmax.f32 %v2080_v61, 0.0  ;;  %8039 = vmatmul.mubr.msk.bf16.vlgmr.msra.gmra.mrb[72].mxu0 %vm1872_vm3, %v9640_v28  ;;  %v3723_v11 = vmax.f32 %v2205_v30, 0.0  ;;  %v2209_v22 = vadd.f32 %v2208_v12, %v10433_v27  ;;  %v4273_v1 = vmul.f32 %v10446_v44, %v3717_v21 }
 0x109   : > { %v4350_v62 = vmul.f32 %v10430_v34, %v3794_v35  ;;  %3588 = vmatpush1.bf16.msra.mxu0 %v1563_v14  ;;  %4564 = vmatpush1.bf16.msra.mxu1 %v13558_v5  ;;  %v4278_v47 = vmul.f32 %v10460_v38, %v3722_v13  ;;  %v3800_v36 = vmax.f32 %v2207_v0, 0.0  ;;  %v1395_v24 = vsel %vm1279_vm1, %v10272_v9, %v9924_v39 }
 0x10a   : > { %v4351_v32 = vmul.f32 %v10446_v44, %v3795_v40  ;;  %3589 = vmatprep.subr.bf16.mxu0 %v1841_v48  ;;  %3619 = vmatprep.mubr.bf16.mxu0 %v13558_v5  ;;  %v4279_v19 = vmul.f32 %v10471_v37, %v3723_v11  ;;  %v3801_v41 = vmax.f32 %v2209_v22, 0.0  ;;  %v1602_v31 = vsel %vm1083_vm0, %v10149_v58, %v1010_v16 }
 0x10b   : > { %v10489_v55 = vpack.c.bf16 %v4350_v62, %v4272_v6  ;;  %v4356_v46 = vmul.f32 %v10460_v38, %v3800_v36  ;;  %v2023_v63 = vsel %vm1083_vm0, %v10293_v56, 0  ;;  %v1049_v53 = vcombine.low %v10337_v51, %v10337_v51 }
 0x10c   : > { %v10492_v14 = vpack.c.bf16 %v4351_v32, %v4273_v1  ;;  %v4357_v45 = vmul.f32 %v10471_v37, %v3801_v41  ;;  %v1073_v39 = vcombine.high %v10237_v52, %v10237_v52  ;;  %v10520_v48 = vsub.s32 3, %v8289_v4 }
 0x10d   : > { %3590 = vmatpush1.bf16.msra.mxu0 %v1839_v23  ;;  %4565 = vmatprep.subr.bf16.mxu1 %v10489_v55  ;;  %v10505_v33 = vpack.c.bf16 %v4356_v46, %v4278_v47  ;;  %v1578_v58 = vsel %vm1398_vm2, %v1397_v25, %v10049_v29  ;;  %v1599_v56 = vsel %vm1083_vm0, %v10341_v59, %v10106_v54  ;;  %v10541_v54 = vld [vmem:[%s13550_s1 + $0x8] sm:$0xff] }
 0x10e   : > { %4566 = vmatpush1.bf16.msra.mxu1 %v13558_v5  ;;  %8042 = vmatprep.subr.msk.bf16.mxu0 %vm1083_vm0, %v1072_v20  ;;  %v10513_v26 = vpack.c.bf16 %v4357_v45, %v4279_v19  ;;  %v10531_v15 = vrot.slane %v10398_v60, %v10495_v10  ;;  %v1691_v7 = vsel %vm1279_vm1, %v1602_v31, %v10337_v51  ;;  %v4511_v45 = vld [vmem:[%s13554_s5 + $0x8] sm:$0xff] }
 0x10f   : > { %v2116_v9 = vpop.f32.mrb[4].mxu0  ;;  %4567 = vmatprep.subr.bf16.mxu1 %v10492_v14  ;;  %v1575_v29 = vsel %vm1398_vm2, %v1395_v24, %v10290_v42  ;;  %v1689_v51 = vsel %vm1279_vm1, %v1599_v56, %v1049_v53  ;;  %v1080_v6 = vrot.slane %v1073_v39, %v8300_v8  ;;  %v4510_v42 = vld [vmem:[%s13554_s5] sm:$0xff]  ;;  %v10552_v13 = vrot.slane %v10398_v60, %v10520_v48 }
 0x110   : > { %v2117_v20 = vadd.f32 %v2116_v9, %v10385_v18  ;;  %13772 = vst [vmem:[#allocation8_spill] sm:$0xff] %v10531_v15  ;;  %v2118_v52 = vpop.f32.mrb[5].mxu0  ;;  %v1851_v40 = vsel %vm1398_vm2, %v1691_v7, %v1049_v53  ;;  %4516 = vperm.xlu1 %8144, %v4510_v42   ;;  %v10562_v22 = vrot.slane %v10541_v54, %v10495_v10 }
 0x111   : > { %v2119_v21 = vadd.f32 %v2118_v52, %v10385_v18  ;;  %v2120_v61 = vpop.f32.mrb[6].mxu0  ;;  %3592 = vmatpush1.bf16.msra.mxu0 %v2023_v63  ;;  %13773 = vst [vmem:[#allocation9_spill] sm:$0xff] %v10552_v13  ;;  %v10567_v16 = vrot.slane %v10541_v54, %v10520_v48  ;;  %v1849_v1 = vsel %vm1398_vm2, %v1689_v51, %v10296_v2 }
 0x112   : > { %v3718_v59 = vmax.f32 %v2117_v20, 0.0  ;;  %v2121_v30 = vadd.f32 %v2120_v61, %v10433_v27  ;;  %v2122_v3 = vpop.f32.mrb[7].mxu0  ;;  %4568 = vmatpush1.bf16.msra.mxu1 %v10489_v55  ;;  %3673 = vmatprep.subr.bf16.mxu0 %v1578_v58  ;;  %13774 = vst [vmem:[#allocation10_spill] sm:$0xff] %v10562_v22  ;;  %v1082_v25 = vcombine.high %v1080_v6, %v1080_v6  ;;  %v10584_v58 = vsub.s32 4, %v8289_v4  ;;  %v4513_v61 = vld [vmem:[%s13554_s5 + $0x18] sm:$0xff] }
 0x113   : > { %v3719_v35 = vmax.f32 %v2119_v21, 0.0  ;;  %v2123_v0 = vadd.f32 %v2122_v3, %v10433_v27  ;;  %v2288_v12 = vpop.f32.mrb[4].mxu1  ;;  %13775 = vst [vmem:[#allocation11_spill] sm:$0xff] %v10567_v16  ;;  %v2034_v21 = vsel %vm1083_vm0, %v1080_v6, 0 }
 0x114   : > { %v4274_v23 = vmul.f32 %v10531_v15, %v3718_v59  ;;  %v3796_v11 = vmax.f32 %v2121_v30, 0.0  ;;  %8043 = vmatmul.mubr.msk.bf16.vlgmr.msra.gmra.mrb[76].mxu0 %vm1872_vm3, %v9640_v28  ;;  %v2289_v8 = vadd.f32 %v2288_v12, %v10385_v18  ;;  %v2290_v62 = vpop.f32.mrb[5].mxu1  ;;  %4521 = vperm.xlu1 %8144, %v4511_v45   ;;  %v10599_v30 = vsub.s32 5, %v8289_v4 }
 0x115   : > { %v3797_v47 = vmax.f32 %v2123_v0, 0.0  ;;  %3674 = vmatpush1.bf16.msra.mxu0 %v1575_v29  ;;  %v2291_v36 = vadd.f32 %v2290_v62, %v10385_v18  ;;  %v2292_v32 = vpop.f32.mrb[6].mxu1  ;;  %3705 = vmatprep.mubr.bf16.mxu0 %v13558_v5  ;;  %v4275_v24 = vmul.f32 %v10552_v13, %v3719_v35  ;;  %v10606_v6 = vrot.slane %v10398_v60, %v10584_v58 }
 0x116   : > { %v4352_v28 = vmul.f32 %v10531_v15, %v3796_v11  ;;  %v3726_v19 = vmax.f32 %v2289_v8, 0.0  ;;  %3675 = vmatprep.subr.bf16.mxu0 %v1851_v40  ;;  %v2293_v41 = vadd.f32 %v2292_v32, %v10433_v27  ;;  %v2294_v46 = vpop.f32.mrb[7].mxu1  ;;  %v6939_v11 = vld [vmem:[%s13555_s6 + $0x8] sm:$0xff]  ;;  %v10619_v62 = vrot.slane %v10398_v60, %v10599_v30 }
 0x117   : > { %v4353_v31 = vmul.f32 %v10552_v13, %v3797_v47  ;;  %v3727_v2 = vmax.f32 %v2291_v36, 0.0  ;;  %v2295_v63 = vadd.f32 %v2294_v46, %v10433_v27  ;;  %13776 = vst [vmem:[#allocation12_spill] sm:$0xff] %v10606_v6  ;;  %v8203_v46 = vld [vmem:[%s13551_s2] sm:$0xff]  }
 0x118   : > { %v10580_v53 = vpack.c.bf16 %v4352_v28, %v4274_v23  ;;  %v4282_v39 = vmul.f32 %v10562_v22, %v3726_v19  ;;  %v3804_v9 = vmax.f32 %v2293_v41, 0.0  ;;  %4531 = vperm.xlu1 %8144, %v4513_v61   ;;  %13777 = vst [vmem:[#allocation13_spill] sm:$0xff] %v10619_v62  ;;  %v10626_v28 = vrot.slane %v10541_v54, %v10407_v50 }
 0x119   : > { %v10586_v56 = vpack.c.bf16 %v4353_v31, %v4275_v24  ;;  %v4283_v20 = vmul.f32 %v10567_v16, %v3727_v2  ;;  %3676 = vmatpush1.bf16.msra.mxu0 %v1849_v1  ;;  %v3805_v52 = vmax.f32 %v2295_v63, 0.0  ;;  %v10639_v2 = vrot.slane %v10541_v54, %v10441_v17 }
 0x11a   : > { %v4360_v7 = vmul.f32 %v10562_v22, %v3804_v9  ;;  %4569 = vmatprep.subr.bf16.mxu1 %v10580_v53  ;;  %8046 = vmatprep.subr.msk.bf16.mxu0 %vm1083_vm0, %v1082_v25  ;;  %13778 = vst [vmem:[#allocation14_spill] sm:$0xff] %v10626_v28 }
 0x11b   : > { %v2159_v29 = vpop.f32.mrb[8].mxu0  ;;  %v4361_v59 = vmul.f32 %v10567_v16, %v3805_v52  ;;  %4570 = vmatpush1.bf16.msra.mxu1 %v10492_v14  ;;  %13779 = vst [vmem:[#allocation15_spill] sm:$0xff] %v10639_v2 }
 0x11c   : > { %v10601_v3 = vpack.c.bf16 %v4360_v7, %v4282_v39  ;;  %v2160_v51 = vadd.f32 %v2159_v29, %v10385_v18  ;;  %v2161_v42 = vpop.f32.mrb[9].mxu0  ;;  %6949 = vperm.xlu1 %8144, %v6939_v11  }
 0x11d   : > { %v10608_v35 = vpack.c.bf16 %v4361_v59, %v4283_v20  ;;  %v2162_v0 = vadd.f32 %v2161_v42, %v10385_v18  ;;  %v2163_v12 = vpop.f32.mrb[10].mxu0  ;;  %3678 = vmatpush1.bf16.msra.mxu0 %v2034_v21 }
 0x11e   : > { %v3720_v40 = vmax.f32 %v2160_v51, 0.0  ;;  %v2164_v4 = vadd.f32 %v2163_v12, %v10433_v27  ;;  %v2165_v23 = vpop.f32.mrb[11].mxu0  ;;  %4612 = vmatprep.subr.bf16.mxu0 %v13558_v5  ;;  %4571 = vmatprep.subr.bf16.mxu1 %v10601_v3 }
 0x11f   : > { %v3721_v8 = vmax.f32 %v2162_v0, 0.0  ;;  %v2374_v47 = vpop.f32.mrb[8].mxu1  ;;  %v2166_v36 = vadd.f32 %v2165_v23, %v10433_v27 }
 0x120   : > { %v4276_v1 = vmul.f32 %v10606_v6, %v3720_v40  ;;  %v2375_v32 = vadd.f32 %v2374_v47, %v10385_v18  ;;  %v3798_v19 = vmax.f32 %v2164_v4, 0.0  ;;  %v2376_v41 = vpop.f32.mrb[9].mxu1  ;;  %8047 = vmatmul.mubr.msk.bf16.vlgmr.msra.gmra.mrb[80].mxu0 %vm1872_vm3, %v8203_v46 }
 0x121   : > { %v2377_v60 = vadd.f32 %v2376_v41, %v10385_v18  ;;  %v3799_v25 = vmax.f32 %v2166_v36, 0.0  ;;  %v2378_v45 = vpop.f32.mrb[10].mxu1  ;;  %4613 = vmatpush1.bf16.msra.mxu0 %v13558_v5  ;;  %8054 = vmatprep.mubr.msk.bf16.mxu0 %vm4552_vm4, %v10412_v57  ;;  %v4277_v9 = vmul.f32 %v10619_v62, %v3721_v8 }
 0x122   : > { %v3730_v24 = vmax.f32 %v2375_v32, 0.0  ;;  %v4354_v31 = vmul.f32 %v10606_v6, %v3798_v19  ;;  %v2379_v63 = vadd.f32 %v2378_v45, %v10433_v27  ;;  %v2380_v39 = vpop.f32.mrb[11].mxu1  ;;  %4614 = vmatprep.subr.bf16.mxu0 %v13558_v5  ;;  %v10665_v32 = vrot.slane %v10541_v54, %v10391_v49  ;;  %v10670_v19 = vld [vmem:[%s13550_s1 + $0x10] sm:$0xff] }
 0x123   : > { %v3731_v20 = vmax.f32 %v2377_v60, 0.0  ;;  %v4355_v52 = vmul.f32 %v10619_v62, %v3799_v25  ;;  %v2381_v7 = vadd.f32 %v2380_v39, %v10433_v27  ;;  %v10676_v25 = vrot.slane %v10541_v54, %v10401_v43 }
 0x124   : > { %v4286_v21 = vmul.f32 %v10626_v28, %v3730_v24  ;;  %v10647_v61 = vpack.c.bf16 %v4354_v31, %v4276_v1  ;;  %v3808_v29 = vmax.f32 %v2379_v63, 0.0  ;;  %13780 = vst [vmem:[#allocation16_spill] sm:$0xff] %v10665_v32 }
 0x125   : > { %v10649_v59 = vpack.c.bf16 %v4355_v52, %v4277_v9  ;;  %v3809_v51 = vmax.f32 %v2381_v7, 0.0  ;;  %4615 = vmatpush1.bf16.msra.mxu0 %v13558_v5  ;;  %v4287_v0 = vmul.f32 %v10639_v2, %v3731_v20  ;;  %13781 = vst [vmem:[#allocation17_spill] sm:$0xff] %v10676_v25  ;;  %v10682_v9 = vrot.slane %v10670_v19, %v10495_v10 }
 0x126   : > { %v4364_v42 = vmul.f32 %v10626_v28, %v3808_v29  ;;  %4616 = vmatprep.subr.bf16.mxu0 %v13558_v5  ;;  %v10687_v52 = vrot.slane %v10670_v19, %v10520_v48 }
 0x127   : > { %v4365_v12 = vmul.f32 %v10639_v2, %v3809_v51  ;;  %v2245_v40 = vpop.f32.mrb[12].mxu0  ;;  %13782 = vst [vmem:[#allocation18_spill] sm:$0xff] %v10682_v9 }
 0x128   : > { %v10656_v4 = vpack.c.bf16 %v4364_v42, %v4286_v21  ;;  %v2246_v23 = vadd.f32 %v2245_v40, %v10385_v18  ;;  %v2247_v11 = vpop.f32.mrb[13].mxu0  ;;  %13783 = vst [vmem:[#allocation19_spill] sm:$0xff] %v10687_v52 }
 0x129   : > { %v10659_v8 = vpack.c.bf16 %v4365_v12, %v4287_v0  ;;  %v2248_v47 = vadd.f32 %v2247_v11, %v10385_v18  ;;  %v2249_v36 = vpop.f32.mrb[14].mxu0  ;;  %4617 = vmatpush1.bf16.msra.mxu0 %v13558_v5 }
 0x12a   : > { %v3724_v1 = vmax.f32 %v2246_v23, 0.0  ;;  %v2250_v41 = vadd.f32 %v2249_v36, %v10433_v27  ;;  %v2251_v46 = vpop.f32.mrb[15].mxu0  ;;  %4618 = vmatprep.subr.bf16.mxu0 %v10580_v53 }
 0x12b   : > { %v3725_v60 = vmax.f32 %v2248_v47, 0.0  ;;  %v2460_v45 = vpop.f32.mrb[12].mxu1  ;;  %v2252_v24 = vadd.f32 %v2251_v46, %v10433_v27 }
 0x12c   : > { %v2461_v31 = vadd.f32 %v2460_v45, %v10385_v18  ;;  %v3802_v63 = vmax.f32 %v2250_v41, 0.0  ;;  %v2462_v39 = vpop.f32.mrb[13].mxu1  ;;  %v4280_v29 = vmul.f32 %v10665_v32, %v3724_v1 }
 0x12d   : > { %v2463_v20 = vadd.f32 %v2462_v39, %v10385_v18  ;;  %v3803_v7 = vmax.f32 %v2252_v24, 0.0  ;;  %v2464_v21 = vpop.f32.mrb[14].mxu1  ;;  %4619 = vmatpush1.bf16.msra.mxu0 %v10492_v14  ;;  %v4281_v40 = vmul.f32 %v10676_v25, %v3725_v60 }
 0x12e   : > { %v3734_v51 = vmax.f32 %v2461_v31, 0.0  ;;  %v4358_v42 = vmul.f32 %v10665_v32, %v3802_v63  ;;  %v2465_v0 = vadd.f32 %v2464_v21, %v10433_v27  ;;  %v2466_v12 = vpop.f32.mrb[15].mxu1  ;;  %4620 = vmatprep.subr.bf16.mxu0 %v10586_v56 }
 0x12f   : > { %v3735_v23 = vmax.f32 %v2463_v20, 0.0  ;;  %v4359_v11 = vmul.f32 %v10676_v25, %v3803_v7  ;;  %v2467_v47 = vadd.f32 %v2466_v12, %v10433_v27 }
 0x130   : > { %v10697_v36 = vpack.c.bf16 %v4358_v42, %v4280_v29  ;;  %v3812_v41 = vmax.f32 %v2465_v0, 0.0  ;;  %v4290_v45 = vmul.f32 %v10682_v9, %v3734_v51  ;;  %v10718_v0 = vrot.slane %v10541_v54, %v10584_v58 }
 0x131   : > { %v10699_v46 = vpack.c.bf16 %v4359_v11, %v4281_v40  ;;  %v3813_v1 = vmax.f32 %v2467_v47, 0.0  ;;  %4621 = vmatpush1.bf16.msra.mxu0 %v10580_v53  ;;  %v4291_v60 = vmul.f32 %v10687_v52, %v3735_v23  ;;  %v10723_v11 = vrot.slane %v10541_v54, %v10599_v30 }
 0x132   : > { %v4368_v24 = vmul.f32 %v10682_v9, %v3812_v41  ;;  %4622 = vmatprep.subr.bf16.mxu0 %v10647_v61  ;;  %13784 = vst [vmem:[#allocation20_spill] sm:$0xff] %v10718_v0 }
 0x133   : > { %v4369_v31 = vmul.f32 %v10687_v52, %v3813_v1  ;;  %v2331_v63 = vpop.f32.mrb[16].mxu0  ;;  %4572 = vmatpush1.bf16.msra.mxu1 %v10699_v46  ;;  %13785 = vst [vmem:[#allocation21_spill] sm:$0xff] %v10723_v11 }
 0x134   : > { %v10708_v39 = vpack.c.bf16 %v4368_v24, %v4290_v45  ;;  %v2332_v20 = vadd.f32 %v2331_v63, %v10385_v18  ;;  %v2333_v7 = vpop.f32.mrb[17].mxu0  ;;  %4573 = vmatprep.subr.bf16.mxu1 %v10608_v35  ;;  %v10735_v63 = vrot.slane %v10670_v19, %v10441_v17 }
 0x135   : > { %v10712_v21 = vpack.c.bf16 %v4369_v31, %v4291_v60  ;;  %v2334_v29 = vadd.f32 %v2333_v7, %v10385_v18  ;;  %v2335_v51 = vpop.f32.mrb[18].mxu0  ;;  %4623 = vmatpush1.bf16.msra.mxu0 %v10586_v56  ;;  %v10730_v60 = vrot.slane %v10670_v19, %v10407_v50  ;;  %v6941_v7 = vld [vmem:[%s13555_s6 + $0x18] sm:$0xff] }
 0x136   : > { %v3728_v42 = vmax.f32 %v2332_v20, 0.0  ;;  %v2336_v12 = vadd.f32 %v2335_v51, %v10433_v27  ;;  %v2337_v40 = vpop.f32.mrb[19].mxu0  ;;  %13787 = vst [vmem:[#allocation23_spill] sm:$0xff] %v10735_v63  ;;  %6959 = vperm.xlu1 %8144, %v6941_v7  }
 0x137   : > { %v3729_v23 = vmax.f32 %v2334_v29, 0.0  ;;  %v2546_v47 = vpop.f32.mrb[16].mxu1  ;;  %v2338_v41 = vadd.f32 %v2337_v40, %v10433_v27  ;;  %4574 = vmatpush1.bf16.msra.mxu1 %v10601_v3  ;;  %13786 = vst [vmem:[#allocation22_spill] sm:$0xff] %v10730_v60 }
 0x138   : > { %v2547_v1 = vadd.f32 %v2546_v47, %v10385_v18  ;;  %v3806_v45 = vmax.f32 %v2336_v12, 0.0  ;;  %v2548_v24 = vpop.f32.mrb[17].mxu1  ;;  %v4284_v29 = vmul.f32 %v10718_v0, %v3728_v42 }
 0x139   : > { %v2549_v31 = vadd.f32 %v2548_v24, %v10385_v18  ;;  %v3807_v54 = vmax.f32 %v2338_v41, 0.0  ;;  %v2550_v20 = vpop.f32.mrb[18].mxu1  ;;  %v4285_v24 = vmul.f32 %v10723_v11, %v3729_v23  ;;  %v10757_v23 = vld [vmem:[%s13553_s4] ss:$8 sps:$4 sm:$0xff]  }
 0x13a   : > { %v3738_v51 = vmax.f32 %v2547_v1, 0.0  ;;  %v4362_v12 = vmul.f32 %v10718_v0, %v3806_v45  ;;  %v2551_v40 = vadd.f32 %v2550_v20, %v10433_v27  ;;  %v2552_v47 = vpop.f32.mrb[19].mxu1 }
 0x13b   : > { %v3739_v5 = vmax.f32 %v2549_v31, 0.0  ;;  %v4363_v52 = vmul.f32 %v10723_v11, %v3807_v54  ;;  %v2553_v41 = vadd.f32 %v2552_v47, %v10433_v27 }
 0x13c   : > { %v10746_v9 = vpack.c.bf16 %v4362_v12, %v4284_v29  ;;  %v3816_v2 = vmax.f32 %v2551_v40, 0.0  ;;  %v4294_v1 = vmul.f32 %v10730_v60, %v3738_v51  ;;  %v13788_v29 = vmov 0   ;;  %v10774_v40 = vld [vmem:[%s13553_s4 + $0x14] ss:$8 sps:$4 sm:$0xff]  }
 0x13d   : > { %v10748_v28 = vpack.c.bf16 %v4363_v52, %v4285_v24  ;;  %v3817_v42 = vmax.f32 %v2553_v41, 0.0  ;;  %v4295_v31 = vmul.f32 %v10735_v63, %v3739_v5  ;;  %v10778_v24 = vrot.slane %v10670_v19, %v10391_v49  ;;  %v10783_v41 = vld [vmem:[%s13550_s1 + $0x18] sm:$0xff] }
 0x13e   : > { %v4372_v45 = vmul.f32 %v10730_v60, %v3816_v2  ;;  %4575 = vmatprep.subr.bf16.mxu1 %v10746_v9  ;;  %4624 = vmatprep.subr.bf16.mxu0 %v10746_v9 }
 0x13f   : > { %v4373_v54 = vmul.f32 %v10735_v63, %v3817_v42  ;;  %v2417_v52 = vpop.f32.mrb[20].mxu0  ;;  %4576 = vmatpush1.bf16.msra.mxu1 %v10608_v35  ;;  %4625 = vmatpush1.bf16.msra.mxu0 %v10608_v35  ;;  %13789 = vst [vmem:[#allocation24_spill] sm:$0xff] %v10778_v24 }
 0x140   : > { %v10763_v20 = vpack.c.bf16 %v4372_v45, %v4294_v1  ;;  %v2418_v2 = vadd.f32 %v2417_v52, %v10385_v18  ;;  %v2419_v7 = vpop.f32.mrb[21].mxu0  ;;  %4626 = vmatprep.subr.bf16.mxu0 %v10748_v28  ;;  %4665 = vmatprep.subr.bf16.mxu1 %v13788_v29 }
 0x141   : > { %v10768_v51 = vpack.c.bf16 %v4373_v54, %v4295_v31  ;;  %v2420_v5 = vadd.f32 %v2419_v7, %v10385_v18  ;;  %v2421_v12 = vpop.f32.mrb[22].mxu0  ;;  %v10789_v31 = vrot.slane %v10670_v19, %v10401_v43 }
 0x142   : > { %v3732_v47 = vmax.f32 %v2418_v2, 0.0  ;;  %v2422_v42 = vadd.f32 %v2421_v12, %v10433_v27  ;;  %v2423_v1 = vpop.f32.mrb[23].mxu0  ;;  %4592 = vmatmul.mubr.bf16.vlgmr.msra.gmra.mrb[72].mxu1 %v10757_v23 }
 0x143   : > { %v3733_v45 = vmax.f32 %v2420_v5, 0.0  ;;  %13790 = vst [vmem:[#allocation25_spill] sm:$0xff] %v10789_v31  ;;  %v2632_v54 = vpop.f32.mrb[20].mxu1  ;;  %v2424_v52 = vadd.f32 %v2423_v1, %v10433_v27  ;;  %4627 = vmatpush1.bf16.msra.mxu0 %v10746_v9  ;;  %4666 = vmatpush1.bf16.msra.mxu1 %v13788_v29  ;;  %v10799_v5 = vrot.slane %v10783_v41, %v10495_v10 }
 0x144   : > { %v2633_v2 = vadd.f32 %v2632_v54, %v10385_v18  ;;  %v3810_v7 = vmax.f32 %v2422_v42, 0.0  ;;  %v2634_v63 = vpop.f32.mrb[21].mxu1  ;;  %4628 = vmatprep.subr.bf16.mxu0 %v10656_v4  ;;  %4667 = vmatprep.subr.bf16.mxu1 %v13788_v29  ;;  %v10804_v1 = vrot.slane %v10783_v41, %v10520_v48  ;;  %v4288_v42 = vmul.f32 %v10778_v24, %v3732_v47 }
 0x145   : > { %13791 = vst [vmem:[#allocation26_spill] sm:$0xff] %v10799_v5  ;;  %v2635_v12 = vadd.f32 %v2634_v63, %v10385_v18  ;;  %v3811_v60 = vmax.f32 %v2424_v52, 0.0  ;;  %v2636_v11 = vpop.f32.mrb[22].mxu1  ;;  %8053 = vmatprep.mubr.msk.bf16.mxu1 %vm4552_vm4, %v10774_v40  ;;  %v10814_v63 = vld [vmem:[%s13553_s4 + $0x10] ss:$8 sps:$4 sm:$0xff]   ;;  %v4289_v25 = vmul.f32 %v10789_v31, %v3733_v45 }
 0x146   : > { %13792 = vst [vmem:[#allocation27_spill] sm:$0xff] %v10804_v1  ;;  %v3742_v54 = vmax.f32 %v2633_v2, 0.0  ;;  %v4366_v0 = vmul.f32 %v10778_v24, %v3810_v7  ;;  %v2637_v16 = vadd.f32 %v2636_v11, %v10433_v27  ;;  %v2638_v22 = vpop.f32.mrb[23].mxu1 }
 0x147   : > { %v3743_v52 = vmax.f32 %v2635_v12, 0.0  ;;  %v4367_v32 = vmul.f32 %v10789_v31, %v3811_v60  ;;  %v2639_v37 = vadd.f32 %v2638_v22, %v10433_v27  ;;  %4629 = vmatpush1.bf16.msra.mxu0 %v10748_v28  ;;  %4668 = vmatpush1.bf16.msra.mxu1 %v13788_v29 }
 0x148   : > { %v10821_v47 = vpack.c.bf16 %v4366_v0, %v4288_v42  ;;  %v3820_v11 = vmax.f32 %v2637_v16, 0.0  ;;  %4669 = vmatprep.subr.bf16.mxu1 %v13788_v29  ;;  %4718 = vmatprep.subr.bf16.mxu0 %v13788_v29  ;;  %v4298_v45 = vmul.f32 %v10799_v5, %v3742_v54 }
 0x149   : > { %v10825_v2 = vpack.c.bf16 %v4367_v32, %v4289_v25  ;;  %v3821_v7 = vmax.f32 %v2639_v37, 0.0  ;;  %v4299_v22 = vmul.f32 %v10804_v1, %v3743_v52 }
 0x14a   : > { %v4376_v60 = vmul.f32 %v10799_v5, %v3820_v11  ;;  %4602 = vmatmul.mubr.bf16.gmra.mrb[76].mxu1 %v10814_v63  ;;  %4645 = vmatmul.mubr.bf16.vlgmr.msra.gmra.mrb[84].mxu0 %v10757_v23  ;;  %v10849_v11 = vrot.slane %v10670_v19, %v10584_v58 }
 0x14b   : > { %v4377_v0 = vmul.f32 %v10804_v1, %v3821_v7  ;;  %v2503_v16 = vpop.f32.mrb[24].mxu0  ;;  %4670 = vmatpush1.bf16.msra.mxu1 %v13788_v29  ;;  %4719 = vmatpush1.bf16.msra.mxu0 %v13788_v29 }
 0x14c   : > { %v10835_v32 = vpack.c.bf16 %v4376_v60, %v4298_v45  ;;  %v2504_v37 = vadd.f32 %v2503_v16, %v10385_v18  ;;  %v2505_v25 = vpop.f32.mrb[25].mxu0  ;;  %4671 = vmatprep.subr.bf16.mxu1 %v10647_v61  ;;  %4720 = vmatprep.subr.bf16.mxu0 %v13788_v29  ;;  %13793 = vst [vmem:[#allocation28_spill] sm:$0xff] %v10849_v11 }
 0x14d   : > { %v10840_v12 = vpack.c.bf16 %v4377_v0, %v4299_v22  ;;  %v2506_v42 = vadd.f32 %v2505_v25, %v10385_v18  ;;  %v2507_v54 = vpop.f32.mrb[26].mxu0  ;;  %8055 = vmatprep.mubr.msk.bf16.mxu0 %vm4552_vm4, %v10774_v40  ;;  %8056 = vmatprep.mubr.msk.bf16.mxu1 %vm4552_vm4, %v10412_v57  ;;  %v10854_v22 = vrot.slane %v10670_v19, %v10599_v30 }
 0x14e   : > { %v3736_v52 = vmax.f32 %v2504_v37, 0.0  ;;  %v2508_v7 = vadd.f32 %v2507_v54, %v10433_v27  ;;  %v2509_v45 = vpop.f32.mrb[27].mxu0  ;;  %v10869_v54 = vrot.slane %v10783_v41, %v10441_v17 }
 0x14f   : > { %v3737_v60 = vmax.f32 %v2506_v42, 0.0  ;;  %13794 = vst [vmem:[#allocation29_spill] sm:$0xff] %v10854_v22  ;;  %v2718_v0 = vpop.f32.mrb[24].mxu1  ;;  %v2510_v16 = vadd.f32 %v2509_v45, %v10433_v27  ;;  %4672 = vmatpush1.bf16.msra.mxu1 %v10586_v56  ;;  %4721 = vmatpush1.bf16.msra.mxu0 %v13788_v29  ;;  %v10864_v42 = vrot.slane %v10783_v41, %v10407_v50 }
 0x150   : > { %v2719_v37 = vadd.f32 %v2718_v0, %v10385_v18  ;;  %v3814_v25 = vmax.f32 %v2508_v7, 0.0  ;;  %v2720_v1 = vpop.f32.mrb[25].mxu1  ;;  %4673 = vmatprep.subr.bf16.mxu1 %v10649_v59  ;;  %4722 = vmatprep.subr.bf16.mxu0 %v13788_v29  ;;  %13796 = vst [vmem:[#allocation31_spill] sm:$0xff] %v10869_v54  ;;  %v4292_v0 = vmul.f32 %v10849_v11, %v3736_v52 }
 0x151   : > { %13795 = vst [vmem:[#allocation30_spill] sm:$0xff] %v10864_v42  ;;  %v2721_v19 = vadd.f32 %v2720_v1, %v10385_v18  ;;  %v3815_v45 = vmax.f32 %v2510_v16, 0.0  ;;  %v2722_v5 = vpop.f32.mrb[26].mxu1  ;;  %v4293_v62 = vmul.f32 %v10854_v22, %v3737_v60 }
 0x152   : > { %v3746_v7 = vmax.f32 %v2719_v37, 0.0  ;;  %v4370_v31 = vmul.f32 %v10849_v11, %v3814_v25  ;;  %v2723_v24 = vadd.f32 %v2722_v5, %v10433_v27  ;;  %v2724_v38 = vpop.f32.mrb[27].mxu1  ;;  %4655 = vmatmul.mubr.bf16.gmra.mrb[88].mxu0 %v10814_v63 }
 0x153   : > { %v3747_v6 = vmax.f32 %v2721_v19, 0.0  ;;  %v4371_v1 = vmul.f32 %v10854_v22, %v3815_v45  ;;  %v2725_v13 = vadd.f32 %v2724_v38, %v10433_v27  ;;  %4674 = vmatpush1.bf16.msra.mxu1 %v10647_v61  ;;  %4723 = vmatpush1.bf16.msra.mxu0 %v13788_v29 }
 0x154   : > { %v10880_v52 = vpack.c.bf16 %v4370_v31, %v4292_v0  ;;  %v3824_v16 = vmax.f32 %v2723_v24, 0.0  ;;  %4675 = vmatprep.subr.bf16.mxu1 %v10505_v33  ;;  %4724 = vmatprep.subr.bf16.mxu0 %v10505_v33  ;;  %v4302_v60 = vmul.f32 %v10864_v42, %v3746_v7  ;;  %v10904_v7 = vrot.slane %v10783_v41, %v10391_v49 }
 0x155   : > { %v10884_v5 = vpack.c.bf16 %v4371_v1, %v4293_v62  ;;  %v3825_v37 = vmax.f32 %v2725_v13, 0.0  ;;  %8058 = vmatprep.mubr.msk.bf16.mxu0 %vm4552_vm4, %v10412_v57  ;;  %v4303_v25 = vmul.f32 %v10869_v54, %v3747_v6  ;;  %v10909_v1 = vld [vmem:[%s13550_s1 + $0x20] sm:$0xff] }
 0x156   : > { %v4380_v38 = vmul.f32 %v10864_v42, %v3824_v16  ;;  %13799 = vst [vmem:[#allocation34_spill] sm:$0xff] %v10904_v7 }
 0x157   : > { %v4381_v31 = vmul.f32 %v10869_v54, %v3825_v37  ;;  %v2589_v19 = vpop.f32.mrb[28].mxu0  ;;  %4676 = vmatpush1.bf16.msra.mxu1 %v10649_v59  ;;  %4725 = vmatpush1.bf16.msra.mxu0 %v10649_v59 }
 0x158   : > { %v10894_v24 = vpack.c.bf16 %v4380_v38, %v4302_v60  ;;  %v2590_v13 = vadd.f32 %v2589_v19, %v10385_v18  ;;  %v2591_v62 = vpop.f32.mrb[29].mxu0  ;;  %4677 = vmatprep.subr.bf16.mxu1 %v10656_v4  ;;  %4726 = vmatprep.subr.bf16.mxu0 %v10513_v26  ;;  %v10914_v38 = vrot.slane %v10783_v41, %v10401_v43 }
 0x159   : > { %v10899_v57 = vpack.c.bf16 %v4381_v31, %v4303_v25  ;;  %v2592_v6 = vadd.f32 %v2591_v62, %v10385_v18  ;;  %v2593_v45 = vpop.f32.mrb[30].mxu0 }
 0x15a   : > { %13797 = vst [vmem:[#allocation32_spill] sm:$0xff] %v10894_v24  ;;  %v3740_v0 = vmax.f32 %v2590_v13, 0.0  ;;  %v2594_v16 = vadd.f32 %v2593_v45, %v10433_v27  ;;  %v2595_v37 = vpop.f32.mrb[31].mxu0  ;;  %13800 = vst [vmem:[#allocation35_spill] sm:$0xff] %v10914_v38 }
 0x15b   : > { %13798 = vst [vmem:[#allocation33_spill] sm:$0xff] %v10899_v57  ;;  %v3741_v60 = vmax.f32 %v2592_v6, 0.0  ;;  %v2804_v25 = vpop.f32.mrb[28].mxu1  ;;  %v2596_v31 = vadd.f32 %v2595_v37, %v10433_v27  ;;  %4678 = vmatpush1.bf16.msra.mxu1 %v10748_v28  ;;  %4727 = vmatpush1.bf16.msra.mxu0 %v10505_v33  ;;  %v10924_v6 = vrot.slane %v10909_v1, %v10495_v10 }
 0x15c   : > { %v2805_v19 = vadd.f32 %v2804_v25, %v10385_v18  ;;  %v3818_v13 = vmax.f32 %v2594_v16, 0.0  ;;  %v2806_v62 = vpop.f32.mrb[29].mxu1  ;;  %4679 = vmatprep.subr.bf16.mxu1 %v10659_v8  ;;  %4728 = vmatprep.subr.bf16.mxu0 %v10697_v36  ;;  %v10929_v37 = vrot.slane %v10909_v1, %v10520_v48  ;;  %v4296_v25 = vmul.f32 %v10904_v7, %v3740_v0 }
 0x15d   : > { %13801 = vst [vmem:[#allocation36_spill] sm:$0xff] %v10924_v6  ;;  %v2807_v45 = vadd.f32 %v2806_v62, %v10385_v18  ;;  %v3819_v54 = vmax.f32 %v2596_v31, 0.0  ;;  %v2808_v42 = vpop.f32.mrb[30].mxu1  ;;  %v4297_v44 = vmul.f32 %v10914_v38, %v3741_v60 }
 0x15e   : > { %13802 = vst [vmem:[#allocation37_spill] sm:$0xff] %v10929_v37  ;;  %v3750_v16 = vmax.f32 %v2805_v19, 0.0  ;;  %v4374_v22 = vmul.f32 %v10904_v7, %v3818_v13  ;;  %v2809_v11 = vadd.f32 %v2808_v42, %v10433_v27  ;;  %v2810_v15 = vpop.f32.mrb[31].mxu1 }
 0x15f   : > { %v3751_v34 = vmax.f32 %v2807_v45, 0.0  ;;  %v4375_v57 = vmul.f32 %v10914_v38, %v3819_v54  ;;  %v2811_v62 = vadd.f32 %v2810_v15, %v10433_v27  ;;  %4680 = vmatpush1.bf16.msra.mxu1 %v10656_v4  ;;  %4729 = vmatpush1.bf16.msra.mxu0 %v10513_v26 }
 0x160   : > { %v10939_v31 = vpack.c.bf16 %v4374_v22, %v4296_v25  ;;  %v3828_v0 = vmax.f32 %v2809_v11, 0.0  ;;  %4681 = vmatprep.subr.bf16.mxu1 %v10821_v47  ;;  %4730 = vmatprep.subr.bf16.mxu0 %v10821_v47  ;;  %v4306_v60 = vmul.f32 %v10924_v6, %v3750_v16 }
 0x161   : > { %v10943_v42 = vpack.c.bf16 %v4375_v57, %v4297_v44  ;;  %v3829_v19 = vmax.f32 %v2811_v62, 0.0  ;;  %v4307_v15 = vmul.f32 %v10929_v37, %v3751_v34  ;;  %v10961_v62 = vrot.slane %v10783_v41, %v10584_v58 }
 0x162   : > { %v4384_v54 = vmul.f32 %v10924_v6, %v3828_v0 }
 0x163   : > { %v4385_v13 = vmul.f32 %v10929_v37, %v3829_v19  ;;  %v2675_v45 = vpop.f32.mrb[32].mxu0  ;;  %4682 = vmatpush1.bf16.msra.mxu1 %v10659_v8  ;;  %4731 = vmatpush1.bf16.msra.mxu0 %v10659_v8  ;;  %13805 = vst [vmem:[#allocation40_spill] sm:$0xff] %v10961_v62 }
 0x164   : > { %v10951_v11 = vpack.c.bf16 %v4384_v54, %v4306_v60  ;;  %v2676_v22 = vadd.f32 %v2675_v45, %v10385_v18  ;;  %v2677_v44 = vpop.f32.mrb[33].mxu0  ;;  %4732 = vmatprep.subr.bf16.mxu0 %v10825_v2  ;;  %4771 = vmatprep.subr.bf16.mxu1 %v13788_v29  ;;  %v10967_v54 = vrot.slane %v10783_v41, %v10599_v30 }
 0x165   : > { %v10956_v57 = vpack.c.bf16 %v4385_v13, %v4307_v15  ;;  %v2678_v34 = vadd.f32 %v2677_v44, %v10385_v18  ;;  %v2679_v25 = vpop.f32.mrb[34].mxu0 }
 0x166   : > { %13803 = vst [vmem:[#allocation38_spill] sm:$0xff] %v10951_v11  ;;  %v3744_v16 = vmax.f32 %v2676_v22, 0.0  ;;  %v2680_v0 = vadd.f32 %v2679_v25, %v10433_v27  ;;  %v2681_v19 = vpop.f32.mrb[35].mxu0  ;;  %4698 = vmatmul.mubr.bf16.vlgmr.msra.gmra.mrb[80].mxu1 %v10757_v23  ;;  %13806 = vst [vmem:[#allocation41_spill] sm:$0xff] %v10967_v54  ;;  %v10982_v25 = vrot.slane %v10909_v1, %v10441_v17 }
 0x167   : > { %13804 = vst [vmem:[#allocation39_spill] sm:$0xff] %v10956_v57  ;;  %v3745_v60 = vmax.f32 %v2678_v34, 0.0  ;;  %v2890_v15 = vpop.f32.mrb[32].mxu1  ;;  %v2682_v13 = vadd.f32 %v2681_v19, %v10433_v27  ;;  %4733 = vmatpush1.bf16.msra.mxu0 %v10821_v47  ;;  %4772 = vmatpush1.bf16.msra.mxu1 %v13788_v29  ;;  %v10977_v34 = vrot.slane %v10909_v1, %v10407_v50 }
 0x168   : > { %v2891_v45 = vadd.f32 %v2890_v15, %v10385_v18  ;;  %v3822_v22 = vmax.f32 %v2680_v0, 0.0  ;;  %v2892_v44 = vpop.f32.mrb[33].mxu1  ;;  %4734 = vmatprep.subr.bf16.mxu0 %v10708_v39  ;;  %4773 = vmatprep.subr.bf16.mxu1 %v13788_v29  ;;  %13808 = vst [vmem:[#allocation43_spill] sm:$0xff] %v10982_v25  ;;  %v4300_v0 = vmul.f32 %v10961_v62, %v3744_v16 }
 0x169   : > { %13807 = vst [vmem:[#allocation42_spill] sm:$0xff] %v10977_v34  ;;  %v2893_v41 = vadd.f32 %v2892_v44, %v10385_v18  ;;  %v3823_v19 = vmax.f32 %v2682_v13, 0.0  ;;  %v2894_v37 = vpop.f32.mrb[34].mxu1  ;;  %8057 = vmatprep.mubr.msk.bf16.mxu1 %vm4552_vm4, %v10774_v40  ;;  %v4301_v57 = vmul.f32 %v10967_v54, %v3745_v60 }
 0x16a   : > { %v3754_v15 = vmax.f32 %v2891_v45, 0.0  ;;  %v4378_v6 = vmul.f32 %v10961_v62, %v3822_v22  ;;  %v2895_v38 = vadd.f32 %v2894_v37, %v10433_v27  ;;  %v2896_v7 = vpop.f32.mrb[35].mxu1 }
 0x16b   : > { %v3755_v44 = vmax.f32 %v2893_v41, 0.0  ;;  %v4379_v11 = vmul.f32 %v10967_v54, %v3823_v19  ;;  %v2897_v24 = vadd.f32 %v2896_v7, %v10433_v27  ;;  %4735 = vmatpush1.bf16.msra.mxu0 %v10825_v2  ;;  %4774 = vmatpush1.bf16.msra.mxu1 %v13788_v29 }
 0x16c   : > { %v10994_v13 = vpack.c.bf16 %v4378_v6, %v4300_v0  ;;  %v3832_v16 = vmax.f32 %v2895_v38, 0.0  ;;  %4775 = vmatprep.subr.bf16.mxu1 %v10489_v55  ;;  %4824 = vmatprep.subr.bf16.mxu0 %v10489_v55  ;;  %v4310_v60 = vmul.f32 %v10977_v34, %v3754_v15  ;;  %v11021_v15 = vld [vmem:[%s13553_s4 + $0x4] ss:$8 sps:$4 sm:$0xff]  }
 0x16d   : > { %v10998_v37 = vpack.c.bf16 %v4379_v11, %v4301_v57  ;;  %v3833_v45 = vmax.f32 %v2897_v24, 0.0  ;;  %v4311_v7 = vmul.f32 %v10982_v25, %v3755_v44 }
 0x16e   : > { %13809 = vst [vmem:[#allocation44_spill] sm:$0xff] %v10994_v13  ;;  %v4388_v22 = vmul.f32 %v10977_v34, %v3832_v16  ;;  %4708 = vmatmul.mubr.bf16.gmra.mrb[84].mxu1 %v10814_v63  ;;  %4751 = vmatmul.mubr.bf16.vlgmr.msra.gmra.mrb[92].mxu0 %v10757_v23  ;;  %v11027_v16 = vrot.slane %v10909_v1, %v10391_v49 }
 0x16f   : > { %13810 = vst [vmem:[#allocation45_spill] sm:$0xff] %v10998_v37  ;;  %v4389_v6 = vmul.f32 %v10982_v25, %v3833_v45  ;;  %v2761_v38 = vpop.f32.mrb[36].mxu0  ;;  %4776 = vmatpush1.bf16.msra.mxu1 %v13788_v29  ;;  %4825 = vmatpush1.bf16.msra.mxu0 %v13788_v29  ;;  %v11032_v45 = vld [vmem:[%s13550_s1 + $0x28] sm:$0xff] }
 0x170   : > { %v11008_v11 = vpack.c.bf16 %v4388_v22, %v4310_v60  ;;  %v2762_v24 = vadd.f32 %v2761_v38, %v10385_v18  ;;  %v2763_v57 = vpop.f32.mrb[37].mxu0  ;;  %4777 = vmatprep.subr.bf16.mxu1 %v10697_v36  ;;  %4826 = vmatprep.subr.bf16.mxu0 %v10492_v14  ;;  %13813 = vst [vmem:[#allocation48_spill] sm:$0xff] %v11027_v16 }
 0x171   : > { %v11013_v41 = vpack.c.bf16 %v4389_v6, %v4311_v7  ;;  %v2764_v19 = vadd.f32 %v2763_v57, %v10385_v18  ;;  %v2765_v0 = vpop.f32.mrb[38].mxu0  ;;  %8059 = vmatprep.mubr.msk.bf16.mxu0 %vm4552_vm4, %v10774_v40  ;;  %8060 = vmatprep.mubr.msk.bf16.mxu1 %vm4552_vm4, %v11021_v15  ;;  %v11037_v6 = vrot.slane %v10909_v1, %v10401_v43 }
 0x172   : > { %13811 = vst [vmem:[#allocation46_spill] sm:$0xff] %v11008_v11  ;;  %v3748_v44 = vmax.f32 %v2762_v24, 0.0  ;;  %v2766_v60 = vadd.f32 %v2765_v0, %v10433_v27  ;;  %v2767_v22 = vpop.f32.mrb[39].mxu0 }
 0x173   : > { %13812 = vst [vmem:[#allocation47_spill] sm:$0xff] %v11013_v41  ;;  %v3749_v7 = vmax.f32 %v2764_v19, 0.0  ;;  %13814 = vst [vmem:[#allocation49_spill] sm:$0xff] %v11037_v6  ;;  %v2976_v38 = vpop.f32.mrb[36].mxu1  ;;  %v2768_v24 = vadd.f32 %v2767_v22, %v10433_v27  ;;  %4778 = vmatpush1.bf16.msra.mxu1 %v10513_v26  ;;  %4827 = vmatpush1.bf16.msra.mxu0 %v10489_v55  ;;  %v11047_v19 = vrot.slane %v11032_v45, %v10495_v10 }
 0x174   : > { %v2977_v57 = vadd.f32 %v2976_v38, %v10385_v18  ;;  %v3826_v29 = vmax.f32 %v2766_v60, 0.0  ;;  %v2978_v25 = vpop.f32.mrb[37].mxu1  ;;  %4779 = vmatprep.subr.bf16.mxu1 %v10699_v46  ;;  %4828 = vmatprep.subr.bf16.mxu0 %v10580_v53  ;;  %v11052_v22 = vrot.slane %v11032_v45, %v10520_v48  ;;  %v4304_v38 = vmul.f32 %v11027_v16, %v3748_v44 }
 0x175   : > { %13815 = vst [vmem:[#allocation50_spill] sm:$0xff] %v11047_v19  ;;  %v2979_v0 = vadd.f32 %v2978_v25, %v10385_v18  ;;  %v3827_v34 = vmax.f32 %v2768_v24, 0.0  ;;  %v2980_v55 = vpop.f32.mrb[38].mxu1  ;;  %v4305_v11 = vmul.f32 %v11037_v6, %v3749_v7 }
 0x176   : > { %13816 = vst [vmem:[#allocation51_spill] sm:$0xff] %v11052_v22  ;;  %v3758_v60 = vmax.f32 %v2977_v57, 0.0  ;;  %v4382_v54 = vmul.f32 %v11027_v16, %v3826_v29  ;;  %v2981_v62 = vadd.f32 %v2980_v55, %v10433_v27  ;;  %v2982_v41 = vpop.f32.mrb[39].mxu1  ;;  %4761 = vmatmul.mubr.bf16.gmra.mrb[96].mxu0 %v10814_v63 }
 0x177   : > { %v3759_v37 = vmax.f32 %v2979_v0, 0.0  ;;  %v4383_v25 = vmul.f32 %v11037_v6, %v3827_v34  ;;  %v2983_v13 = vadd.f32 %v2982_v41, %v10433_v27  ;;  %4780 = vmatpush1.bf16.msra.mxu1 %v10697_v36  ;;  %4829 = vmatpush1.bf16.msra.mxu0 %v10492_v14 }
 0x178   : > { %v11063_v44 = vpack.c.bf16 %v4382_v54, %v4304_v38  ;;  %v3836_v24 = vmax.f32 %v2981_v62, 0.0  ;;  %4781 = vmatprep.subr.bf16.mxu1 %v10601_v3  ;;  %4830 = vmatprep.subr.bf16.mxu0 %v10601_v3  ;;  %v4314_v34 = vmul.f32 %v11047_v19, %v3758_v60 }
 0x179   : > { %v11067_v29 = vpack.c.bf16 %v4383_v25, %v4305_v11  ;;  %v3837_v57 = vmax.f32 %v2983_v13, 0.0  ;;  %8062 = vmatprep.mubr.msk.bf16.mxu0 %vm4552_vm4, %v11021_v15  ;;  %v4315_v7 = vmul.f32 %v11052_v22, %v3759_v37  ;;  %v11087_v25 = vrot.slane %v10909_v1, %v10584_v58 }
 0x17a   : > { %v4392_v41 = vmul.f32 %v11047_v19, %v3836_v24 }
 0x17b   : > { %13817 = vst [vmem:[#allocation52_spill] sm:$0xff] %v11067_v29  ;;  %v4393_v54 = vmul.f32 %v11052_v22, %v3837_v57  ;;  %v2847_v0 = vpop.f32.mrb[40].mxu0  ;;  %4782 = vmatpush1.bf16.msra.mxu1 %v10699_v46  ;;  %4831 = vmatpush1.bf16.msra.mxu0 %v10699_v46  ;;  %13820 = vst [vmem:[#allocation55_spill] sm:$0xff] %v11087_v25 }
 0x17c   : > { %v11077_v62 = vpack.c.bf16 %v4392_v41, %v4314_v34  ;;  %v2848_v13 = vadd.f32 %v2847_v0, %v10385_v18  ;;  %v2849_v11 = vpop.f32.mrb[41].mxu0  ;;  %4783 = vmatprep.subr.bf16.mxu1 %v10708_v39  ;;  %4832 = vmatprep.subr.bf16.mxu0 %v10608_v35  ;;  %v11092_v41 = vrot.slane %v10909_v1, %v10599_v30 }
 0x17d   : > { %v11082_v55 = vpack.c.bf16 %v4393_v54, %v4315_v7  ;;  %v2850_v37 = vadd.f32 %v2849_v11, %v10385_v18  ;;  %v2851_v38 = vpop.f32.mrb[42].mxu0 }
 0x17e   : > { %13818 = vst [vmem:[#allocation53_spill] sm:$0xff] %v11077_v62  ;;  %v3752_v60 = vmax.f32 %v2848_v13, 0.0  ;;  %v2852_v24 = vadd.f32 %v2851_v38, %v10433_v27  ;;  %v2853_v57 = vpop.f32.mrb[43].mxu0  ;;  %13821 = vst [vmem:[#allocation56_spill] sm:$0xff] %v11092_v41  ;;  %v11107_v38 = vrot.slane %v11032_v45, %v10441_v17 }
 0x17f   : > { %13819 = vst [vmem:[#allocation54_spill] sm:$0xff] %v11082_v55  ;;  %v3753_v34 = vmax.f32 %v2850_v37, 0.0  ;;  %v3062_v0 = vpop.f32.mrb[40].mxu1  ;;  %v2854_v7 = vadd.f32 %v2853_v57, %v10433_v27  ;;  %4784 = vmatpush1.bf16.msra.mxu1 %v10825_v2  ;;  %4833 = vmatpush1.bf16.msra.mxu0 %v10601_v3  ;;  %v11102_v37 = vrot.slane %v11032_v45, %v10407_v50 }
 0x180   : > { %v3063_v54 = vadd.f32 %v3062_v0, %v10385_v18  ;;  %v3830_v13 = vmax.f32 %v2852_v24, 0.0  ;;  %v3064_v11 = vpop.f32.mrb[41].mxu1  ;;  %4785 = vmatprep.subr.bf16.mxu1 %v10712_v21  ;;  %4834 = vmatprep.subr.bf16.mxu0 %v10746_v9  ;;  %13823 = vst [vmem:[#allocation58_spill] sm:$0xff] %v11107_v38  ;;  %v4308_v0 = vmul.f32 %v11087_v25, %v3752_v60 }
 0x181   : > { %13822 = vst [vmem:[#allocation57_spill] sm:$0xff] %v11102_v37  ;;  %v3065_v1 = vadd.f32 %v3064_v11, %v10385_v18  ;;  %v3831_v57 = vmax.f32 %v2854_v7, 0.0  ;;  %v3066_v22 = vpop.f32.mrb[42].mxu1  ;;  %v4309_v55 = vmul.f32 %v11092_v41, %v3753_v34 }
 0x182   : > { %v3762_v24 = vmax.f32 %v3063_v54, 0.0  ;;  %v4386_v19 = vmul.f32 %v11087_v25, %v3830_v13  ;;  %v3067_v6 = vadd.f32 %v3066_v22, %v10433_v27  ;;  %v3068_v16 = vpop.f32.mrb[43].mxu1 }
 0x183   : > { %v3763_v62 = vmax.f32 %v3065_v1, 0.0  ;;  %v4387_v29 = vmul.f32 %v11092_v41, %v3831_v57  ;;  %v3069_v11 = vadd.f32 %v3068_v16, %v10433_v27  ;;  %4786 = vmatpush1.bf16.msra.mxu1 %v10708_v39  ;;  %4835 = vmatpush1.bf16.msra.mxu0 %v10608_v35 }
 0x184   : > { %v11117_v7 = vpack.c.bf16 %v4386_v19, %v4308_v0  ;;  %v3840_v60 = vmax.f32 %v3067_v6, 0.0  ;;  %4787 = vmatprep.subr.bf16.mxu1 %v10880_v52  ;;  %4836 = vmatprep.subr.bf16.mxu0 %v10880_v52  ;;  %v4318_v34 = vmul.f32 %v11102_v37, %v3762_v24 }
 0x185   : > { %v11121_v22 = vpack.c.bf16 %v4387_v29, %v4309_v55  ;;  %v3841_v54 = vmax.f32 %v3069_v11, 0.0  ;;  %v4319_v16 = vmul.f32 %v11107_v38, %v3763_v62  ;;  %v11139_v11 = vrot.slane %v11032_v45, %v10391_v49 }
 0x186   : > { %13824 = vst [vmem:[#allocation59_spill] sm:$0xff] %v11117_v7  ;;  %v4396_v13 = vmul.f32 %v11102_v37, %v3840_v60  ;;  %v11144_v60 = vld [vmem:[%s13550_s1 + $0x30] sm:$0xff] }
 0x187   : > { %13825 = vst [vmem:[#allocation60_spill] sm:$0xff] %v11121_v22  ;;  %v4397_v1 = vmul.f32 %v11107_v38, %v3841_v54  ;;  %v2933_v57 = vpop.f32.mrb[44].mxu0  ;;  %4788 = vmatpush1.bf16.msra.mxu1 %v10712_v21  ;;  %4837 = vmatpush1.bf16.msra.mxu0 %v10712_v21  ;;  %13828 = vst [vmem:[#allocation63_spill] sm:$0xff] %v11139_v11 }
 0x188   : > { %v11129_v6 = vpack.c.bf16 %v4396_v13, %v4318_v34  ;;  %v2934_v19 = vadd.f32 %v2933_v57, %v10385_v18  ;;  %v2935_v29 = vpop.f32.mrb[45].mxu0  ;;  %4838 = vmatprep.subr.bf16.mxu0 %v10884_v5  ;;  %4877 = vmatprep.subr.bf16.mxu1 %v10580_v53 }
 0x189   : > { %v11134_v55 = vpack.c.bf16 %v4397_v1, %v4319_v16  ;;  %v2936_v62 = vadd.f32 %v2935_v29, %v10385_v18  ;;  %v2937_v0 = vpop.f32.mrb[46].mxu0  ;;  %v11150_v16 = vrot.slane %v11032_v45, %v10401_v43 }
 0x18a   : > { %13826 = vst [vmem:[#allocation61_spill] sm:$0xff] %v11129_v6  ;;  %v3756_v24 = vmax.f32 %v2934_v19, 0.0  ;;  %v2938_v54 = vadd.f32 %v2937_v0, %v10433_v27  ;;  %v2939_v34 = vpop.f32.mrb[47].mxu0  ;;  %4804 = vmatmul.mubr.bf16.vlgmr.msra.gmra.mrb[88].mxu1 %v10757_v23 }
 0x18b   : > { %13827 = vst [vmem:[#allocation62_spill] sm:$0xff] %v11134_v55  ;;  %v3757_v13 = vmax.f32 %v2936_v62, 0.0  ;;  %13829 = vst [vmem:[#allocation64_spill] sm:$0xff] %v11150_v16  ;;  %v3148_v1 = vpop.f32.mrb[44].mxu1  ;;  %v2940_v57 = vadd.f32 %v2939_v34, %v10433_v27  ;;  %4839 = vmatpush1.bf16.msra.mxu0 %v10880_v52  ;;  %4878 = vmatpush1.bf16.msra.mxu1 %v10492_v14  ;;  %v11160_v62 = vrot.slane %v11144_v60, %v10495_v10 }
 0x18c   : > { %v3149_v19 = vadd.f32 %v3148_v1, %v10385_v18  ;;  %v3834_v29 = vmax.f32 %v2938_v54, 0.0  ;;  %v3150_v38 = vpop.f32.mrb[45].mxu1  ;;  %4840 = vmatprep.subr.bf16.mxu0 %v10763_v20  ;;  %4879 = vmatprep.subr.bf16.mxu1 %v10586_v56  ;;  %v11165_v34 = vrot.slane %v11144_v60, %v10520_v48  ;;  %v4312_v54 = vmul.f32 %v11139_v11, %v3756_v24 }
 0x18d   : > { %13830 = vst [vmem:[#allocation65_spill] sm:$0xff] %v11160_v62  ;;  %v3151_v0 = vadd.f32 %v3150_v38, %v10385_v18  ;;  %v3835_v37 = vmax.f32 %v2940_v57, 0.0  ;;  %v3152_v14 = vpop.f32.mrb[46].mxu1  ;;  %8061 = vmatprep.mubr.msk.bf16.mxu1 %vm4552_vm4, %v10774_v40  ;;  %v4313_v6 = vmul.f32 %v11150_v16, %v3757_v13 }
 0x18e   : > { %13831 = vst [vmem:[#allocation66_spill] sm:$0xff] %v11165_v34  ;;  %v3766_v1 = vmax.f32 %v3149_v19, 0.0  ;;  %v4390_v41 = vmul.f32 %v11139_v11, %v3834_v29  ;;  %v3153_v25 = vadd.f32 %v3152_v14, %v10433_v27  ;;  %v3154_v55 = vpop.f32.mrb[47].mxu1  ;;  %v11205_v14 = vrot.slane %v11032_v45, %v10584_v58 }
 0x18f   : > { %v3767_v38 = vmax.f32 %v3151_v0, 0.0  ;;  %v4391_v22 = vmul.f32 %v11150_v16, %v3835_v37  ;;  %v3155_v7 = vadd.f32 %v3154_v55, %v10433_v27  ;;  %4841 = vmatpush1.bf16.msra.mxu0 %v10884_v5  ;;  %4880 = vmatpush1.bf16.msra.mxu1 %v10580_v53 }
 0x190   : > { %v11177_v57 = vpack.c.bf16 %v4390_v41, %v4312_v54  ;;  %v3844_v24 = vmax.f32 %v3153_v25, 0.0  ;;  %4881 = vmatprep.subr.bf16.mxu1 %v10647_v61  ;;  %4930 = vmatprep.subr.bf16.mxu0 %v10647_v61  ;;  %v4322_v13 = vmul.f32 %v11160_v62, %v3766_v1  ;;  %13834 = vst [vmem:[#allocation69_spill] sm:$0xff] %v11205_v14 }
 0x191   : > { %v11181_v19 = vpack.c.bf16 %v4391_v22, %v4313_v6  ;;  %v3845_v29 = vmax.f32 %v3155_v7, 0.0  ;;  %v4323_v53 = vmul.f32 %v11165_v34, %v3767_v38 }
 0x192   : > { %v4400_v37 = vmul.f32 %v11160_v62, %v3844_v24  ;;  %4814 = vmatmul.mubr.bf16.gmra.mrb[92].mxu1 %v10814_v63  ;;  %4857 = vmatmul.mubr.bf16.vlgmr.msra.gmra.mrb[100].mxu0 %v10757_v23  ;;  %v11210_v24 = vrot.slane %v11032_v45, %v10599_v30 }
 0x193   : > { %v4401_v41 = vmul.f32 %v11165_v34, %v3845_v29  ;;  %v3019_v25 = vpop.f32.mrb[48].mxu0  ;;  %4882 = vmatpush1.bf16.msra.mxu1 %v10586_v56  ;;  %4931 = vmatpush1.bf16.msra.mxu0 %v10586_v56 }
 0x194   : > { %v11191_v22 = vpack.c.bf16 %v4400_v37, %v4322_v13  ;;  %v3020_v7 = vadd.f32 %v3019_v25, %v10385_v18  ;;  %v3021_v6 = vpop.f32.mrb[49].mxu0  ;;  %4883 = vmatprep.subr.bf16.mxu1 %v10746_v9  ;;  %4932 = vmatprep.subr.bf16.mxu0 %v10649_v59  ;;  %13835 = vst [vmem:[#allocation70_spill] sm:$0xff] %v11210_v24 }
 0x195   : > { %v11196_v55 = vpack.c.bf16 %v4401_v41, %v4323_v53  ;;  %v3022_v23 = vadd.f32 %v3021_v6, %v10385_v18  ;;  %v3023_v0 = vpop.f32.mrb[50].mxu0  ;;  %8063 = vmatprep.mubr.msk.bf16.mxu0 %vm4552_vm4, %v10774_v40  ;;  %8064 = vmatprep.mubr.msk.bf16.mxu1 %vm4552_vm4, %v11021_v15  ;;  %v11220_v41 = vrot.slane %v11144_v60, %v10407_v50 }
 0x196   : > { %13832 = vst [vmem:[#allocation67_spill] sm:$0xff] %v11191_v22  ;;  %v3760_v56 = vmax.f32 %v3020_v7, 0.0  ;;  %v3024_v54 = vadd.f32 %v3023_v0, %v10433_v27  ;;  %v3025_v1 = vpop.f32.mrb[51].mxu0  ;;  %v11225_v25 = vrot.slane %v11144_v60, %v10441_v17 }
 0x197   : > { %13833 = vst [vmem:[#allocation68_spill] sm:$0xff] %v11196_v55  ;;  %v3761_v38 = vmax.f32 %v3022_v23, 0.0  ;;  %v3234_v29 = vpop.f32.mrb[48].mxu1  ;;  %v3026_v13 = vadd.f32 %v3025_v1, %v10433_v27  ;;  %4884 = vmatpush1.bf16.msra.mxu1 %v10608_v35  ;;  %4933 = vmatpush1.bf16.msra.mxu0 %v10647_v61  ;;  %13836 = vst [vmem:[#allocation71_spill] sm:$0xff] %v11220_v41 }
 0x198   : > { %v3235_v40 = vadd.f32 %v3234_v29, %v10385_v18  ;;  %v3838_v37 = vmax.f32 %v3024_v54, 0.0  ;;  %v3236_v53 = vpop.f32.mrb[49].mxu1  ;;  %4885 = vmatprep.subr.bf16.mxu1 %v10748_v28  ;;  %4934 = vmatprep.subr.bf16.mxu0 %v10505_v33  ;;  %13837 = vst [vmem:[#allocation72_spill] sm:$0xff] %v11225_v25  ;;  %v4316_v6 = vmul.f32 %v11205_v14, %v3760_v56 }
 0x199   : > { %v3237_v45 = vadd.f32 %v3236_v53, %v10385_v18  ;;  %v3839_v7 = vmax.f32 %v3026_v13, 0.0  ;;  %v3238_v61 = vpop.f32.mrb[50].mxu1  ;;  %v4317_v29 = vmul.f32 %v11210_v24, %v3761_v38 }
 0x19a   : > { %v3770_v23 = vmax.f32 %v3235_v40, 0.0  ;;  %v4394_v0 = vmul.f32 %v11205_v14, %v3838_v37  ;;  %v3239_v54 = vadd.f32 %v3238_v61, %v10433_v27  ;;  %v3240_v1 = vpop.f32.mrb[51].mxu1  ;;  %4867 = vmatmul.mubr.bf16.gmra.mrb[104].mxu0 %v10814_v63 }
 0x19b   : > { %v3771_v34 = vmax.f32 %v3237_v45, 0.0  ;;  %v4395_v53 = vmul.f32 %v11210_v24, %v3839_v7  ;;  %v3241_v62 = vadd.f32 %v3240_v1, %v10433_v27  ;;  %4886 = vmatpush1.bf16.msra.mxu1 %v10746_v9  ;;  %4935 = vmatpush1.bf16.msra.mxu0 %v10649_v59 }
 0x19c   : > { %v11236_v56 = vpack.c.bf16 %v4394_v0, %v4316_v6  ;;  %v3848_v13 = vmax.f32 %v3239_v54, 0.0  ;;  %4887 = vmatprep.subr.bf16.mxu1 %v10656_v4  ;;  %4936 = vmatprep.subr.bf16.mxu0 %v10656_v4  ;;  %v4326_v38 = vmul.f32 %v11220_v41, %v3770_v23 }
 0x19d   : > { %v11240_v40 = vpack.c.bf16 %v4395_v53, %v4317_v29  ;;  %v3849_v37 = vmax.f32 %v3241_v62, 0.0  ;;  %8066 = vmatprep.mubr.msk.bf16.mxu0 %vm4552_vm4, %v11021_v15  ;;  %v4327_v7 = vmul.f32 %v11225_v25, %v3771_v34  ;;  %v11260_v53 = vrot.slane %v11144_v60, %v10391_v49 }
 0x19e   : > { %v4404_v45 = vmul.f32 %v11220_v41, %v3848_v13  ;;  %v11265_v13 = vld [vmem:[%s13550_s1 + $0x38] sm:$0xff] }
 0x19f   : > { %v4405_v61 = vmul.f32 %v11225_v25, %v3849_v37  ;;  %v3105_v6 = vpop.f32.mrb[52].mxu0  ;;  %4888 = vmatpush1.bf16.msra.mxu1 %v10748_v28  ;;  %4937 = vmatpush1.bf16.msra.mxu0 %v10748_v28  ;;  %13840 = vst [vmem:[#allocation75_spill] sm:$0xff] %v11260_v53 }
 0x1a0   : > { %v11250_v0 = vpack.c.bf16 %v4404_v45, %v4326_v38  ;;  %v3106_v62 = vadd.f32 %v3105_v6, %v10385_v18  ;;  %v3107_v54 = vpop.f32.mrb[53].mxu0  ;;  %4889 = vmatprep.subr.bf16.mxu1 %v10763_v20  ;;  %4938 = vmatprep.subr.bf16.mxu0 %v10659_v8 }
 0x1a1   : > { %v11255_v23 = vpack.c.bf16 %v4405_v61, %v4327_v7  ;;  %v3108_v34 = vadd.f32 %v3107_v54, %v10385_v18  ;;  %v3109_v1 = vpop.f32.mrb[54].mxu0  ;;  %v11270_v7 = vrot.slane %v11144_v60, %v10401_v43 }
 0x1a2   : > { %13838 = vst [vmem:[#allocation73_spill] sm:$0xff] %v11250_v0  ;;  %v3764_v29 = vmax.f32 %v3106_v62, 0.0  ;;  %v3110_v37 = vadd.f32 %v3109_v1, %v10433_v27  ;;  %v3111_v38 = vpop.f32.mrb[55].mxu0 }
 0x1a3   : > { %13839 = vst [vmem:[#allocation74_spill] sm:$0xff] %v11255_v23  ;;  %v3765_v45 = vmax.f32 %v3108_v34, 0.0  ;;  %13841 = vst [vmem:[#allocation76_spill] sm:$0xff] %v11270_v7  ;;  %v3320_v61 = vpop.f32.mrb[52].mxu1  ;;  %v3112_v6 = vadd.f32 %v3111_v38, %v10433_v27  ;;  %4890 = vmatpush1.bf16.msra.mxu1 %v10884_v5  ;;  %4939 = vmatpush1.bf16.msra.mxu0 %v10656_v4  ;;  %v11280_v34 = vrot.slane %v11265_v13, %v10495_v10 }
 0x1a4   : > { %v3321_v62 = vadd.f32 %v3320_v61, %v10385_v18  ;;  %v3842_v54 = vmax.f32 %v3110_v37, 0.0  ;;  %v3322_v25 = vpop.f32.mrb[53].mxu1  ;;  %4891 = vmatprep.subr.bf16.mxu1 %v10768_v51  ;;  %4940 = vmatprep.subr.bf16.mxu0 %v10821_v47  ;;  %v11285_v38 = vrot.slane %v11265_v13, %v10520_v48  ;;  %v4320_v61 = vmul.f32 %v11260_v53, %v3764_v29 }
 0x1a5   : > { %13842 = vst [vmem:[#allocation77_spill] sm:$0xff] %v11280_v34  ;;  %v3323_v1 = vadd.f32 %v3322_v25, %v10385_v18  ;;  %v3843_v41 = vmax.f32 %v3112_v6, 0.0  ;;  %v3324_v24 = vpop.f32.mrb[54].mxu1  ;;  %v4321_v23 = vmul.f32 %v11270_v7, %v3765_v45 }
 0x1a6   : > { %13843 = vst [vmem:[#allocation78_spill] sm:$0xff] %v11285_v38  ;;  %v3774_v37 = vmax.f32 %v3321_v62, 0.0  ;;  %v4398_v14 = vmul.f32 %v11260_v53, %v3842_v54  ;;  %v3325_v16 = vadd.f32 %v3324_v24, %v10433_v27  ;;  %v3326_v11 = vpop.f32.mrb[55].mxu1 }
 0x1a7   : > { %v3775_v0 = vmax.f32 %v3323_v1, 0.0  ;;  %v4399_v55 = vmul.f32 %v11270_v7, %v3843_v41  ;;  %v3327_v25 = vadd.f32 %v3326_v11, %v10433_v27  ;;  %4892 = vmatpush1.bf16.msra.mxu1 %v10763_v20  ;;  %4941 = vmatpush1.bf16.msra.mxu0 %v10659_v8 }
 0x1a8   : > { %v11295_v6 = vpack.c.bf16 %v4398_v14, %v4320_v61  ;;  %v3852_v29 = vmax.f32 %v3325_v16, 0.0  ;;  %4893 = vmatprep.subr.bf16.mxu1 %v10939_v31  ;;  %4942 = vmatprep.subr.bf16.mxu0 %v10939_v31  ;;  %v4330_v45 = vmul.f32 %v11280_v34, %v3774_v37 }
 0x1a9   : > { %v11299_v24 = vpack.c.bf16 %v4399_v55, %v4321_v23  ;;  %v3853_v62 = vmax.f32 %v3327_v25, 0.0  ;;  %v4331_v11 = vmul.f32 %v11285_v38, %v3775_v0  ;;  %v11317_v25 = vrot.slane %v11144_v60, %v10584_v58 }
 0x1aa   : > { %13844 = vst [vmem:[#allocation79_spill] sm:$0xff] %v11295_v6  ;;  %v4408_v41 = vmul.f32 %v11280_v34, %v3852_v29 }
 0x1ab   : > { %13845 = vst [vmem:[#allocation80_spill] sm:$0xff] %v11299_v24  ;;  %v4409_v54 = vmul.f32 %v11285_v38, %v3853_v62  ;;  %v3191_v1 = vpop.f32.mrb[56].mxu0  ;;  %4894 = vmatpush1.bf16.msra.mxu1 %v10768_v51  ;;  %4943 = vmatpush1.bf16.msra.mxu0 %v10768_v51  ;;  %13848 = vst [vmem:[#allocation83_spill] sm:$0xff] %v11317_v25 }
 0x1ac   : > { %v11307_v16 = vpack.c.bf16 %v4408_v41, %v4330_v45  ;;  %v3192_v14 = vadd.f32 %v3191_v1, %v10385_v18  ;;  %v3193_v55 = vpop.f32.mrb[57].mxu0  ;;  %4944 = vmatprep.subr.bf16.mxu0 %v10943_v42  ;;  %4983 = vmatprep.subr.bf16.mxu1 %v10505_v33  ;;  %v11323_v45 = vld [vmem:[%s13553_s4] ss:$8 sps:$4 sm:$0xff]  }
 0x1ad   : > { %v11312_v23 = vpack.c.bf16 %v4409_v54, %v4331_v11  ;;  %v3194_v0 = vadd.f32 %v3193_v55, %v10385_v18  ;;  %v3195_v61 = vpop.f32.mrb[58].mxu0  ;;  %v11328_v11 = vrot.slane %v11144_v60, %v10599_v30 }
 0x1ae   : > { %13846 = vst [vmem:[#allocation81_spill] sm:$0xff] %v11307_v16  ;;  %v3768_v37 = vmax.f32 %v3192_v14, 0.0  ;;  %v3196_v29 = vadd.f32 %v3195_v61, %v10433_v27  ;;  %v3197_v62 = vpop.f32.mrb[59].mxu0  ;;  %4910 = vmatmul.mubr.bf16.vlgmr.msra.gmra.mrb[96].mxu1 %v11323_v45 }
 0x1af   : > { %13847 = vst [vmem:[#allocation82_spill] sm:$0xff] %v11312_v23  ;;  %v3769_v41 = vmax.f32 %v3194_v0, 0.0  ;;  %13849 = vst [vmem:[#allocation84_spill] sm:$0xff] %v11328_v11  ;;  %v3406_v54 = vpop.f32.mrb[56].mxu1  ;;  %v3198_v1 = vadd.f32 %v3197_v62, %v10433_v27  ;;  %4945 = vmatpush1.bf16.msra.mxu0 %v10939_v31  ;;  %4984 = vmatpush1.bf16.msra.mxu1 %v10649_v59  ;;  %v11338_v0 = vrot.slane %v11265_v13, %v10407_v50 }
 0x1b0   : > { %v3407_v14 = vadd.f32 %v3406_v54, %v10385_v18  ;;  %v3846_v55 = vmax.f32 %v3196_v29, 0.0  ;;  %v3408_v61 = vpop.f32.mrb[57].mxu1  ;;  %4946 = vmatprep.subr.bf16.mxu0 %v10835_v32  ;;  %4985 = vmatprep.subr.bf16.mxu1 %v10513_v26  ;;  %v11343_v62 = vrot.slane %v11265_v13, %v10441_v17  ;;  %v11348_v29 = vld [vmem:[%s13553_s4 + $0x14] ss:$8 sps:$4 sm:$0xff]   ;;  %v4324_v54 = vmul.f32 %v11317_v25, %v3768_v37 }
 0x1b1   : > { %13850 = vst [vmem:[#allocation85_spill] sm:$0xff] %v11338_v0  ;;  %v3409_v60 = vadd.f32 %v3408_v61, %v10385_v18  ;;  %v3847_v38 = vmax.f32 %v3198_v1, 0.0  ;;  %v3410_v59 = vpop.f32.mrb[58].mxu1  ;;  %8065 = vmatprep.mubr.msk.bf16.mxu1 %vm4552_vm4, %v11348_v29  ;;  %v4325_v23 = vmul.f32 %v11328_v11, %v3769_v41 }
 0x1b2   : > { %13851 = vst [vmem:[#allocation86_spill] sm:$0xff] %v11343_v62  ;;  %v3778_v34 = vmax.f32 %v3407_v14, 0.0  ;;  %v4402_v7 = vmul.f32 %v11317_v25, %v3846_v55  ;;  %v3411_v61 = vadd.f32 %v3410_v59, %v10433_v27  ;;  %v3412_v53 = vpop.f32.mrb[59].mxu1  ;;  %v11388_v59 = vrot.slane %v11265_v13, %v10391_v49 }
 0x1b3   : > { %v3779_v1 = vmax.f32 %v3409_v60, 0.0  ;;  %v4403_v16 = vmul.f32 %v11328_v11, %v3847_v38  ;;  %v3413_v22 = vadd.f32 %v3412_v53, %v10433_v27  ;;  %4947 = vmatpush1.bf16.msra.mxu0 %v10943_v42  ;;  %4986 = vmatpush1.bf16.msra.mxu1 %v10505_v33  ;;  %v11421_v11 = vld [vmem:[%s13553_s4 + $0x10] ss:$8 sps:$4 sm:$0xff]  }
 0x1b4   : > { %v11360_v24 = vpack.c.bf16 %v4402_v7, %v4324_v54  ;;  %v3856_v37 = vmax.f32 %v3411_v61, 0.0  ;;  %4987 = vmatprep.subr.bf16.mxu1 %v10697_v36  ;;  %5036 = vmatprep.subr.bf16.mxu0 %v10697_v36  ;;  %v4334_v41 = vmul.f32 %v11338_v0, %v3778_v34  ;;  %13855 = vst [vmem:[#allocation90_spill] sm:$0xff] %v11388_v59  ;;  %v11393_v54 = vld [vmem:[%s13550_s1 + $0x40] sm:$0xff] }
 0x1b5   : > { %v11364_v14 = vpack.c.bf16 %v4403_v16, %v4325_v23  ;;  %v3857_v55 = vmax.f32 %v3413_v22, 0.0  ;;  %v4335_v33 = vmul.f32 %v11343_v62, %v3779_v1 }
 0x1b6   : > { %v4412_v38 = vmul.f32 %v11338_v0, %v3856_v37  ;;  %4920 = vmatmul.mubr.bf16.gmra.mrb[100].mxu1 %v10814_v63  ;;  %4963 = vmatmul.mubr.bf16.vlgmr.msra.gmra.mrb[108].mxu0 %v11323_v45 }
 0x1b7   : > { %13852 = vst [vmem:[#allocation87_spill] sm:$0xff] %v11364_v14  ;;  %v4413_v53 = vmul.f32 %v11343_v62, %v3857_v55  ;;  %v3277_v7 = vpop.f32.mrb[60].mxu0  ;;  %4988 = vmatpush1.bf16.msra.mxu1 %v10513_v26  ;;  %5037 = vmatpush1.bf16.msra.mxu0 %v10513_v26  ;;  %v11398_v55 = vrot.slane %v11265_v13, %v10401_v43 }
 0x1b8   : > { %v11374_v16 = vpack.c.bf16 %v4412_v38, %v4334_v41  ;;  %v3278_v22 = vadd.f32 %v3277_v7, %v10385_v18  ;;  %v3279_v34 = vpop.f32.mrb[61].mxu0  ;;  %4989 = vmatprep.subr.bf16.mxu1 %v10821_v47  ;;  %5038 = vmatprep.subr.bf16.mxu0 %v10699_v46 }
 0x1b9   : > { %v11379_v63 = vpack.c.bf16 %v4413_v53, %v4335_v33  ;;  %v3280_v23 = vadd.f32 %v3279_v34, %v10385_v18  ;;  %v3281_v60 = vpop.f32.mrb[62].mxu0  ;;  %8067 = vmatprep.mubr.msk.bf16.mxu0 %vm4552_vm4, %v11348_v29  ;;  %8068 = vmatprep.mubr.msk.bf16.mxu1 %vm4552_vm4, %v11021_v15  ;;  %13856 = vst [vmem:[#allocation91_spill] sm:$0xff] %v11398_v55 }
 0x1ba   : > { %13853 = vst [vmem:[#allocation88_spill] sm:$0xff] %v11374_v16  ;;  %v3772_v26 = vmax.f32 %v3278_v22, 0.0  ;;  %v3282_v61 = vadd.f32 %v3281_v60, %v10433_v27  ;;  %v3283_v1 = vpop.f32.mrb[63].mxu0  ;;  %v11408_v22 = vrot.slane %v11393_v54, %v10495_v10 }
 0x1bb   : > { %13854 = vst [vmem:[#allocation89_spill] sm:$0xff] %v11379_v63  ;;  %v3773_v37 = vmax.f32 %v3280_v23, 0.0  ;;  %v3492_v41 = vpop.f32.mrb[60].mxu1  ;;  %v3284_v38 = vadd.f32 %v3283_v1, %v10433_v27  ;;  %4990 = vmatpush1.bf16.msra.mxu1 %v10659_v8  ;;  %5039 = vmatpush1.bf16.msra.mxu0 %v10697_v36  ;;  %v11413_v23 = vrot.slane %v11393_v54, %v10520_v48 }
 0x1bc   : > { %v3493_v33 = vadd.f32 %v3492_v41, %v10385_v18  ;;  %v3850_v53 = vmax.f32 %v3282_v61, 0.0  ;;  %v3494_v7 = vpop.f32.mrb[61].mxu1  ;;  %4991 = vmatprep.subr.bf16.mxu1 %v10825_v2  ;;  %5040 = vmatprep.subr.bf16.mxu0 %v10601_v3  ;;  %13857 = vst [vmem:[#allocation92_spill] sm:$0xff] %v11408_v22  ;;  %v4328_v1 = vmul.f32 %v11388_v59, %v3772_v26 }
 0x1bd   : > { %v3495_v34 = vadd.f32 %v3494_v7, %v10385_v18  ;;  %13858 = vst [vmem:[#allocation93_spill] sm:$0xff] %v11413_v23  ;;  %v3851_v60 = vmax.f32 %v3284_v38, 0.0  ;;  %v3496_v36 = vpop.f32.mrb[62].mxu1  ;;  %v4329_v7 = vmul.f32 %v11398_v55, %v3773_v37 }
 0x1be   : > { %v3782_v61 = vmax.f32 %v3493_v33, 0.0  ;;  %v4406_v41 = vmul.f32 %v11388_v59, %v3850_v53  ;;  %v3497_v62 = vadd.f32 %v3496_v36, %v10433_v27  ;;  %v3498_v0 = vpop.f32.mrb[63].mxu1  ;;  %4973 = vmatmul.mubr.bf16.gmra.mrb[112].mxu0 %v11421_v11 }
 0x1bf   : > { %v3783_v25 = vmax.f32 %v3495_v34, 0.0  ;;  %v4407_v38 = vmul.f32 %v11398_v55, %v3851_v60  ;;  %v3499_v26 = vadd.f32 %v3498_v0, %v10433_v27  ;;  %4992 = vmatpush1.bf16.msra.mxu1 %v10821_v47  ;;  %5041 = vmatpush1.bf16.msra.mxu0 %v10699_v46 }
 0x1c0   : > { %v11429_v33 = vpack.c.bf16 %v4406_v41, %v4328_v1  ;;  %v3860_v53 = vmax.f32 %v3497_v62, 0.0  ;;  %4993 = vmatprep.subr.bf16.mxu1 %v10708_v39  ;;  %5042 = vmatprep.subr.bf16.mxu0 %v10708_v39  ;;  %v4338_v37 = vmul.f32 %v11408_v22, %v3782_v61 }
 0x1c1   : > { %v11433_v36 = vpack.c.bf16 %v4407_v38, %v4329_v7  ;;  %v3861_v59 = vmax.f32 %v3499_v26, 0.0  ;;  %8070 = vmatprep.mubr.msk.bf16.mxu0 %vm4552_vm4, %v11021_v15  ;;  %v4339_v34 = vmul.f32 %v11413_v23, %v3783_v25  ;;  %v11453_v26 = vrot.slane %v11265_v13, %v10584_v58 }
 0x1c2   : > { %13859 = vst [vmem:[#allocation94_spill] sm:$0xff] %v11429_v33  ;;  %v4416_v0 = vmul.f32 %v11408_v22, %v3860_v53 }
 0x1c3   : > { %13860 = vst [vmem:[#allocation95_spill] sm:$0xff] %v11433_v36  ;;  %v4417_v60 = vmul.f32 %v11413_v23, %v3861_v59  ;;  %v3363_v1 = vpop.f32.mrb[64].mxu0  ;;  %4994 = vmatpush1.bf16.msra.mxu1 %v10825_v2  ;;  %5043 = vmatpush1.bf16.msra.mxu0 %v10825_v2  ;;  %13863 = vst [vmem:[#allocation98_spill] sm:$0xff] %v11453_v26 }
 0x1c4   : > { %v11443_v62 = vpack.c.bf16 %v4416_v0, %v4338_v37  ;;  %v3364_v41 = vadd.f32 %v3363_v1, %v10385_v18  ;;  %v3365_v7 = vpop.f32.mrb[65].mxu0  ;;  %4995 = vmatprep.subr.bf16.mxu1 %v10835_v32  ;;  %5044 = vmatprep.subr.bf16.mxu0 %v10712_v21  ;;  %v11458_v1 = vrot.slane %v11265_v13, %v10599_v30 }
 0x1c5   : > { %v11448_v61 = vpack.c.bf16 %v4417_v60, %v4339_v34  ;;  %v3366_v25 = vadd.f32 %v3365_v7, %v10385_v18  ;;  %v3367_v38 = vpop.f32.mrb[66].mxu0 }
 0x1c6   : > { %13861 = vst [vmem:[#allocation96_spill] sm:$0xff] %v11443_v62  ;;  %v3776_v59 = vmax.f32 %v3364_v41, 0.0  ;;  %v3368_v53 = vadd.f32 %v3367_v38, %v10433_v27  ;;  %v3369_v37 = vpop.f32.mrb[67].mxu0  ;;  %13864 = vst [vmem:[#allocation99_spill] sm:$0xff] %v11458_v1  ;;  %v11473_v38 = vrot.slane %v11393_v54, %v10441_v17 }
 0x1c7   : > { %13862 = vst [vmem:[#allocation97_spill] sm:$0xff] %v11448_v61  ;;  %v3777_v0 = vmax.f32 %v3366_v25, 0.0  ;;  %v3578_v23 = vpop.f32.mrb[64].mxu1  ;;  %v3370_v34 = vadd.f32 %v3369_v37, %v10433_v27  ;;  %4996 = vmatpush1.bf16.msra.mxu1 %v10943_v42  ;;  %5045 = vmatpush1.bf16.msra.mxu0 %v10708_v39  ;;  %v11468_v25 = vrot.slane %v11393_v54, %v10407_v50 }
 0x1c8   : > { %v3579_v60 = vadd.f32 %v3578_v23, %v10385_v18  ;;  %v3854_v41 = vmax.f32 %v3368_v53, 0.0  ;;  %v3580_v7 = vpop.f32.mrb[65].mxu1  ;;  %4997 = vmatprep.subr.bf16.mxu1 %v10840_v12  ;;  %5046 = vmatprep.subr.bf16.mxu0 %v10880_v52  ;;  %13866 = vst [vmem:[#allocation101_spill] sm:$0xff] %v11473_v38  ;;  %v4332_v23 = vmul.f32 %v11453_v26, %v3776_v59 }
 0x1c9   : > { %13865 = vst [vmem:[#allocation100_spill] sm:$0xff] %v11468_v25  ;;  %v3581_v13 = vadd.f32 %v3580_v7, %v10385_v18  ;;  %v3855_v37 = vmax.f32 %v3370_v34, 0.0  ;;  %v3582_v22 = vpop.f32.mrb[66].mxu1  ;;  %v4333_v63 = vmul.f32 %v11458_v1, %v3777_v0  ;;  %v13868_v34 = vld [vmem:[#allocation44_spill] sm:$0xff] }
 0x1ca   : > { %v3786_v53 = vmax.f32 %v3579_v60, 0.0  ;;  %v4410_v55 = vmul.f32 %v11453_v26, %v3854_v41  ;;  %v3583_v61 = vadd.f32 %v3582_v22, %v10433_v27  ;;  %v3584_v62 = vpop.f32.mrb[67].mxu1 }
 0x1cb   : > { %v3787_v50 = vmax.f32 %v3581_v13, 0.0  ;;  %v4411_v16 = vmul.f32 %v11458_v1, %v3855_v37  ;;  %v3585_v7 = vadd.f32 %v3584_v62, %v10433_v27  ;;  %4998 = vmatpush1.bf16.msra.mxu1 %v10835_v32  ;;  %5047 = vmatpush1.bf16.msra.mxu0 %v10712_v21 }
 0x1cc   : > { %v11483_v17 = vpack.c.bf16 %v4410_v55, %v4332_v23  ;;  %v3864_v59 = vmax.f32 %v3583_v61, 0.0  ;;  %4999 = vmatprep.subr.bf16.mxu1 %v13868_v34  ;;  %5048 = vmatprep.subr.bf16.mxu0 %v13868_v34  ;;  %v4342_v0 = vmul.f32 %v11468_v25, %v3786_v53 }
 0x1cd   : > { %v11487_v22 = vpack.c.bf16 %v4411_v16, %v4333_v63  ;;  %v3865_v60 = vmax.f32 %v3585_v7, 0.0  ;;  %v4343_v62 = vmul.f32 %v11473_v38, %v3787_v50  ;;  %v13871_v63 = vld [vmem:[#allocation45_spill] sm:$0xff] }
 0x1ce   : > { %13867 = vst [vmem:[#allocation102_spill] sm:$0xff] %v11483_v17  ;;  %v4420_v41 = vmul.f32 %v11468_v25, %v3864_v59  ;;  %v11505_v59 = vrot.slane %v11393_v54, %v10391_v49 }
 0x1cf   : > { %13869 = vst [vmem:[#allocation44_spill] sm:$0xff] %v11487_v22  ;;  %v4421_v13 = vmul.f32 %v11473_v38, %v3865_v60  ;;  %v3449_v37 = vpop.f32.mrb[68].mxu0  ;;  %5000 = vmatpush1.bf16.msra.mxu1 %v10840_v12  ;;  %5049 = vmatpush1.bf16.msra.mxu0 %v10840_v12  ;;  %v11510_v60 = vld [vmem:[%s13550_s1 + $0x48] sm:$0x3f] }
 0x1d0   : > { %v11495_v55 = vpack.c.bf16 %v4420_v41, %v4342_v0  ;;  %v3450_v61 = vadd.f32 %v3449_v37, %v10385_v18  ;;  %v3451_v16 = vpop.f32.mrb[69].mxu0  ;;  %5050 = vmatprep.subr.bf16.mxu0 %v13871_v63  ;;  %5089 = vmatprep.subr.bf16.mxu1 %v10601_v3  ;;  %13873 = vst [vmem:[#allocation104_spill] sm:$0xff] %v11505_v59 }
 0x1d1   : > { %v11500_v23 = vpack.c.bf16 %v4421_v13, %v4343_v62  ;;  %v3452_v53 = vadd.f32 %v3451_v16, %v10385_v18  ;;  %v3453_v50 = vpop.f32.mrb[70].mxu0  ;;  %v11516_v13 = vrot.slane %v11393_v54, %v10401_v43 }
 0x1d2   : > { %13870 = vst [vmem:[#allocation103_spill] sm:$0xff] %v11495_v55  ;;  %v3780_v7 = vmax.f32 %v3450_v61, 0.0  ;;  %v3454_v0 = vadd.f32 %v3453_v50, %v10433_v27  ;;  %v3455_v41 = vpop.f32.mrb[71].mxu0  ;;  %5016 = vmatmul.mubr.bf16.vlgmr.msra.gmra.mrb[104].mxu1 %v11323_v45  ;;  %v13875_v50 = vld [vmem:[#allocation32_spill] sm:$0xff] }
 0x1d3   : > { %13872 = vst [vmem:[#allocation45_spill] sm:$0xff] %v11500_v23  ;;  %v3781_v62 = vmax.f32 %v3452_v53, 0.0  ;;  %13874 = vst [vmem:[#allocation105_spill] sm:$0xff] %v11516_v13  ;;  %v3664_v37 = vpop.f32.mrb[68].mxu1  ;;  %v3456_v61 = vadd.f32 %v3455_v41, %v10433_v27  ;;  %5051 = vmatpush1.bf16.msra.mxu0 %v13868_v34  ;;  %5090 = vmatpush1.bf16.msra.mxu1 %v10699_v46  ;;  %v11526_v53 = vrot.slane %v11510_v60, %v10495_v10 }
 0x1d4   : > { %v3665_v16 = vadd.f32 %v3664_v37, %v10385_v18  ;;  %v3858_v38 = vmax.f32 %v3454_v0, 0.0  ;;  %v3666_v25 = vpop.f32.mrb[69].mxu1  ;;  %5052 = vmatprep.subr.bf16.mxu0 %v13875_v50  ;;  %5091 = vmatprep.subr.bf16.mxu1 %v10608_v35  ;;  %v11531_v41 = vrot.slane %v11510_v60, %v10520_v48  ;;  %v4336_v0 = vmul.f32 %v11505_v59, %v3780_v7 }
 0x1d5   : > { %13876 = vst [vmem:[#allocation32_spill] sm:$0xff] %v11526_v53  ;;  %v3667_v1 = vadd.f32 %v3666_v25, %v10385_v18  ;;  %v3859_v26 = vmax.f32 %v3456_v61, 0.0  ;;  %v3668_v46 = vpop.f32.mrb[70].mxu1  ;;  %8069 = vmatprep.mubr.msk.bf16.mxu1 %vm4552_vm4, %v11348_v29  ;;  %v4337_v22 = vmul.f32 %v11516_v13, %v3781_v62 }
 0x1d6   : > { %13877 = vst [vmem:[#allocation106_spill] sm:$0xff] %v11531_v41  ;;  %v3790_v37 = vmax.f32 %v3665_v16, 0.0  ;;  %v4414_v23 = vmul.f32 %v11505_v59, %v3858_v38  ;;  %v3669_v55 = vadd.f32 %v3668_v46, %v10433_v27  ;;  %v3670_v10 = vpop.f32.mrb[71].mxu1 }
 0x1d7   : > { %v3791_v25 = vmax.f32 %v3667_v1, 0.0  ;;  %v4415_v17 = vmul.f32 %v11516_v13, %v3859_v26  ;;  %v3671_v48 = vadd.f32 %v3670_v10, %v10433_v27  ;;  %5053 = vmatpush1.bf16.msra.mxu0 %v13871_v63  ;;  %5092 = vmatpush1.bf16.msra.mxu1 %v10601_v3  ;;  %v11571_v10 = vrot.slane %v11393_v54, %v10584_v58  ;;  %v13901_v13 = vld [vmem:[#allocation46_spill] sm:$0xff] }
 0x1d8   : > { %v11543_v61 = vpack.c.bf16 %v4414_v23, %v4336_v0  ;;  %v3868_v7 = vmax.f32 %v3669_v55, 0.0  ;;  %5093 = vmatprep.subr.bf16.mxu1 %v10746_v9  ;;  %5142 = vmatprep.subr.bf16.mxu0 %v10746_v9  ;;  %v4346_v1 = vmul.f32 %v11526_v53, %v3790_v37 }
 0x1d9   : > { %v11547_v38 = vpack.c.bf16 %v4415_v17, %v4337_v22  ;;  %v3869_v16 = vmax.f32 %v3671_v48, 0.0  ;;  %v4347_v3 = vmul.f32 %v11531_v41, %v3791_v25  ;;  %13882 = vst [vmem:[#allocation111_spill] sm:$0xff] %v11571_v10 }
 0x1da   : > { %13878 = vst [vmem:[#allocation107_spill] sm:$0xff] %v11543_v61  ;;  %v4424_v26 = vmul.f32 %v11526_v53, %v3868_v7  ;;  %5026 = vmatmul.mubr.bf16.gmra.mrb[108].mxu1 %v11421_v11  ;;  %5069 = vmatmul.mubr.bf16.vlgmr.msra.gmra.mrb[116].mxu0 %v11323_v45 }
 0x1db   : > { %13879 = vst [vmem:[#allocation108_spill] sm:$0xff] %v11547_v38  ;;  %v4425_v23 = vmul.f32 %v11531_v41, %v3869_v16  ;;  %v3535_v55 = vpop.f32.mrb[72].mxu0  ;;  %5094 = vmatpush1.bf16.msra.mxu1 %v10608_v35  ;;  %5143 = vmatpush1.bf16.msra.mxu0 %v10608_v35  ;;  %v11576_v16 = vrot.slane %v11393_v54, %v10599_v30 }
 0x1dc   : > { %v11557_v17 = vpack.c.bf16 %v4424_v26, %v4346_v1  ;;  %v3536_v22 = vadd.f32 %v3535_v55, %v10385_v18  ;;  %v3537_v62 = vpop.f32.mrb[73].mxu0  ;;  %5095 = vmatprep.subr.bf16.mxu1 %v10880_v52  ;;  %5144 = vmatprep.subr.bf16.mxu0 %v10748_v28 }
 0x1dd   : > { %v11562_v46 = vpack.c.bf16 %v4425_v23, %v4347_v3  ;;  %v3538_v0 = vadd.f32 %v3537_v62, %v10385_v18  ;;  %v3539_v37 = vpop.f32.mrb[74].mxu0  ;;  %8071 = vmatprep.mubr.msk.bf16.mxu0 %vm4552_vm4, %v11348_v29  ;;  %8072 = vmatprep.mubr.msk.bf16.mxu1 %vm4552_vm4, %v11021_v15  ;;  %13883 = vst [vmem:[#allocation112_spill] sm:$0xff] %v11576_v16  ;;  %v11599_v62 = vld [vmem:[%s13553_s4 + $0x4] ss:$8 sps:$4 sm:$0xff]  }
 0x1de   : > { %13880 = vst [vmem:[#allocation109_spill] sm:$0xff] %v11557_v17  ;;  %v3784_v35 = vmax.f32 %v3536_v22, 0.0  ;;  %v3540_v25 = vadd.f32 %v3539_v37, %v10433_v27  ;;  %v3541_v48 = vpop.f32.mrb[75].mxu0 }
 0x1df   : > { %13881 = vst [vmem:[#allocation110_spill] sm:$0xff] %v11562_v46  ;;  %v3785_v7 = vmax.f32 %v3538_v0, 0.0  ;;  %v3542_v1 = vadd.f32 %v3541_v48, %v10433_v27  ;;  %5096 = vmatpush1.bf16.msra.mxu1 %v10712_v21  ;;  %5145 = vmatpush1.bf16.msra.mxu0 %v10746_v9 }
 0x1e0   : > { %v3862_v15 = vmax.f32 %v3540_v25, 0.0  ;;  %5097 = vmatprep.subr.bf16.mxu1 %v10884_v5  ;;  %5146 = vmatprep.subr.bf16.mxu0 %v10656_v4  ;;  %v4340_v3 = vmul.f32 %v11571_v10, %v3784_v35 }
 0x1e1   : > { %v3863_v26 = vmax.f32 %v3542_v1, 0.0  ;;  %v4341_v54 = vmul.f32 %v11576_v16, %v3785_v7  ;;  %v11611_v1 = vrot.slane %v11510_v60, %v10391_v49 }
 0x1e2   : > { %v4418_v23 = vmul.f32 %v11571_v10, %v3862_v15  ;;  %5079 = vmatmul.mubr.bf16.gmra.mrb[120].mxu0 %v11421_v11 }
 0x1e3   : > { %v4419_v55 = vmul.f32 %v11576_v16, %v3863_v26  ;;  %5098 = vmatpush1.bf16.msra.mxu1 %v10880_v52  ;;  %5147 = vmatpush1.bf16.msra.mxu0 %v10748_v28  ;;  %13886 = vst [vmem:[#allocation115_spill] sm:$0xff] %v11611_v1  ;;  %v13900_v16 = vld [vmem:[#allocation4_spill] sm:$0xff] }
 0x1e4   : > { %v11590_v9 = vpack.c.bf16 %v4418_v23, %v4340_v3  ;;  %5099 = vmatprep.subr.bf16.mxu1 %v10763_v20  ;;  %5148 = vmatprep.subr.bf16.mxu0 %v10763_v20  ;;  %v11616_v23 = vrot.slane %v11510_v60, %v10401_v43 }
 0x1e5   : > { %v11594_v22 = vpack.c.bf16 %v4419_v55, %v4341_v54  ;;  %8074 = vmatprep.mubr.msk.bf16.mxu0 %vm4552_vm4, %v11599_v62 }
 0x1e6   : > { %13884 = vst [vmem:[#allocation113_spill] sm:$0xff] %v11590_v9  ;;  %13887 = vst [vmem:[#allocation116_spill] sm:$0xff] %v11616_v23 }
 0x1e7   : > { %13885 = vst [vmem:[#allocation114_spill] sm:$0xff] %v11594_v22  ;;  %v3621_v0 = vpop.f32.mrb[76].mxu0  ;;  %5100 = vmatpush1.bf16.msra.mxu1 %v10884_v5  ;;  %5149 = vmatpush1.bf16.msra.mxu0 %v10884_v5 }
 0x1e8   : > { %v3622_v37 = vadd.f32 %v3621_v0, %v10385_v18  ;;  %v3623_v35 = vpop.f32.mrb[77].mxu0  ;;  %5101 = vmatprep.subr.bf16.mxu1 %v13875_v50  ;;  %5150 = vmatprep.subr.bf16.mxu0 %v10768_v51  ;;  %v13888_v0 = vld [vmem:[#allocation33_spill] sm:$0xff] }
 0x1e9   : > { %v3624_v25 = vadd.f32 %v3623_v35, %v10385_v18  ;;  %v3625_v48 = vpop.f32.mrb[78].mxu0 }
 0x1ea   : > { %v3788_v7 = vmax.f32 %v3622_v37, 0.0  ;;  %v3626_v15 = vadd.f32 %v3625_v48, %v10433_v27  ;;  %v3627_v26 = vpop.f32.mrb[79].mxu0 }
 0x1eb   : > { %v3789_v3 = vmax.f32 %v3624_v25, 0.0  ;;  %v3628_v54 = vadd.f32 %v3627_v26, %v10433_v27  ;;  %5102 = vmatpush1.bf16.msra.mxu1 %v13871_v63  ;;  %5151 = vmatpush1.bf16.msra.mxu0 %v10763_v20 }
 0x1ec   : > { %v3866_v55 = vmax.f32 %v3626_v15, 0.0  ;;  %5103 = vmatprep.subr.bf16.mxu1 %v13888_v0  ;;  %5152 = vmatprep.subr.bf16.mxu0 %v10939_v31  ;;  %v4344_v35 = vmul.f32 %v11611_v1, %v3788_v7 }
 0x1ed   : > { %v3867_v37 = vmax.f32 %v3628_v54, 0.0  ;;  %v4345_v48 = vmul.f32 %v11616_v23, %v3789_v3 }
 0x1ee   : > { %v4422_v25 = vmul.f32 %v11611_v1, %v3866_v55  ;;  %v13891_v55 = vld [vmem:[#allocation52_spill] sm:$0xff] }
 0x1ef   : > { %v4423_v43 = vmul.f32 %v11616_v23, %v3867_v37  ;;  %5104 = vmatpush1.bf16.msra.mxu1 %v13875_v50  ;;  %5153 = vmatpush1.bf16.msra.mxu0 %v10768_v51 }
 0x1f0   : > { %v11629_v26 = vpack.c.bf16 %v4422_v25, %v4344_v35  ;;  %5105 = vmatprep.subr.bf16.mxu1 %v11063_v44  ;;  %5154 = vmatprep.subr.bf16.mxu0 %v11063_v44 }
 0x1f1   : > { %v11633_v15 = vpack.c.bf16 %v4423_v43, %v4345_v48  ;;  %v11643_v48 = vrot.slane %v11510_v60, %v10584_v58 }
 0x1f2   : > { %13889 = vst [vmem:[#allocation33_spill] sm:$0xff] %v11629_v26 }
 0x1f3   : > { %13890 = vst [vmem:[#allocation117_spill] sm:$0xff] %v11633_v15  ;;  %v3707_v54 = vpop.f32.mrb[80].mxu0  ;;  %5106 = vmatpush1.bf16.msra.mxu1 %v13888_v0  ;;  %5155 = vmatpush1.bf16.msra.mxu0 %v13888_v0  ;;  %13892 = vst [vmem:[#allocation52_spill] sm:$0xff] %v11643_v48 }
 0x1f4   : > { %v3708_v7 = vadd.f32 %v3707_v54, %v10385_v18  ;;  %v3709_v3 = vpop.f32.mrb[81].mxu0  ;;  %5156 = vmatprep.subr.bf16.mxu0 %v13891_v55  ;;  %5195 = vmatprep.subr.bf16.mxu1 %v10656_v4  ;;  %v11649_v54 = vrot.slane %v11510_v60, %v10599_v30 }
 0x1f5   : > { %v3710_v37 = vadd.f32 %v3709_v3, %v10385_v18  ;;  %v3711_v35 = vpop.f32.mrb[82].mxu0 }
 0x1f6   : > { %v3792_v25 = vmax.f32 %v3708_v7, 0.0  ;;  %v3712_v43 = vadd.f32 %v3711_v35, %v10433_v27  ;;  %v3713_v49 = vpop.f32.mrb[83].mxu0  ;;  %5122 = vmatmul.mubr.bf16.vlgmr.msra.gmra.mrb[112].mxu1 %v11323_v45  ;;  %13893 = vst [vmem:[#allocation118_spill] sm:$0xff] %v11649_v54  ;;  %v13894_v7 = vld [vmem:[#allocation38_spill] sm:$0xff] }
 0x1f7   : > { %v3793_v41 = vmax.f32 %v3710_v37, 0.0  ;;  %v3714_v53 = vadd.f32 %v3713_v49, %v10433_v27  ;;  %5157 = vmatpush1.bf16.msra.mxu0 %v11063_v44  ;;  %5196 = vmatpush1.bf16.msra.mxu1 %v10748_v28  ;;  %v13898_v37 = vld [vmem:[#allocation59_spill] sm:$0xff] }
 0x1f8   : > { %v3870_v18 = vmax.f32 %v3712_v43, 0.0  ;;  %5158 = vmatprep.subr.bf16.mxu0 %v13894_v7  ;;  %5197 = vmatprep.subr.bf16.mxu1 %v10659_v8  ;;  %v4348_v3 = vmul.f32 %v11643_v48, %v3792_v25 }
 0x1f9   : > { %v3871_v58 = vmax.f32 %v3714_v53, 0.0  ;;  %8073 = vmatprep.mubr.msk.bf16.mxu1 %vm4552_vm4, %v11348_v29  ;;  %v4349_v60 = vmul.f32 %v11649_v54, %v3793_v41  ;;  %v11703_v53 = vpop.permute.xlu0 %4526 }
 0x1fa   : > { %v4426_v30 = vmul.f32 %v11643_v48, %v3870_v18 }
 0x1fb   : > { %v4427_v49 = vmul.f32 %v11649_v54, %v3871_v58  ;;  %5159 = vmatpush1.bf16.msra.mxu0 %v13891_v55  ;;  %5198 = vmatpush1.bf16.msra.mxu1 %v10656_v4  ;;  %v11687_v4 = vpop.permute.xlu1 %4516 }
 0x1fc   : > { %v11664_v27 = vpack.c.bf16 %v4426_v30, %v4348_v3  ;;  %5199 = vmatprep.subr.bf16.mxu1 %v10821_v47  ;;  %5248 = vmatprep.subr.bf16.mxu0 %v10821_v47 }
 0x1fd   : > { %v11668_v28 = vpack.c.bf16 %v4427_v49, %v4349_v60  ;;  %v13899_v49 = vld [vmem:[#allocation60_spill] sm:$0xff]  ;;  %v11718_v54 = vpop.permute.xlu0 %6944 }
 0x1fe   : > { %13895 = vst [vmem:[#allocation38_spill] sm:$0xff] %v11664_v27  ;;  %5132 = vmatmul.mubr.bf16.gmra.mrb[116].mxu1 %v11421_v11  ;;  %5175 = vmatmul.mubr.bf16.vlgmr.msra.gmra.mrb[124].mxu0 %v11323_v45 }
 0x1ff   : > { %13896 = vst [vmem:[#allocation119_spill] sm:$0xff] %v11668_v28  ;;  %5200 = vmatpush1.bf16.msra.mxu1 %v10659_v8  ;;  %5249 = vmatpush1.bf16.msra.mxu0 %v10659_v8  ;;  %v11697_v8 = vpop.permute.xlu1 %4521 }
 0x200   : > { %5201 = vmatprep.subr.bf16.mxu1 %v10939_v31  ;;  %5250 = vmatprep.subr.bf16.mxu0 %v10825_v2 }
 0x201   : > { %8075 = vmatprep.mubr.msk.bf16.mxu0 %vm4552_vm4, %v11348_v29  ;;  %8076 = vmatprep.mubr.msk.bf16.mxu1 %vm4552_vm4, %v11599_v62 }
 0x203   : > { %5202 = vmatpush1.bf16.msra.mxu1 %v10768_v51  ;;  %5251 = vmatpush1.bf16.msra.mxu0 %v10821_v47  ;;  %v13897_v47 = vld [vmem:[#allocation39_spill] sm:$0xff]  ;;  %v11707_v41 = vpop.permute.xlu1 %4531 }
 0x204   : > { %5203 = vmatprep.subr.bf16.mxu1 %v10943_v42  ;;  %5252 = vmatprep.subr.bf16.mxu0 %v10708_v39 }
 0x206   : > { %5185 = vmatmul.mubr.bf16.gmra.mrb[128].mxu0 %v11421_v11 }
 0x207   : > { %5204 = vmatpush1.bf16.msra.mxu1 %v10939_v31  ;;  %5253 = vmatpush1.bf16.msra.mxu0 %v10825_v2  ;;  %v11721_v23 = vpop.permute.xlu1 %6949 }
 0x208   : > { %5205 = vmatprep.subr.bf16.mxu1 %v10835_v32  ;;  %5254 = vmatprep.subr.bf16.mxu0 %v10835_v32 }
 0x209   : > { %8078 = vmatprep.mubr.msk.bf16.mxu0 %vm4552_vm4, %v11599_v62 }
 0x20b   : > { %5206 = vmatpush1.bf16.msra.mxu1 %v10943_v42  ;;  %5255 = vmatpush1.bf16.msra.mxu0 %v10943_v42 }
 0x20c   : > { %5207 = vmatprep.subr.bf16.mxu1 %v13894_v7  ;;  %5256 = vmatprep.subr.bf16.mxu0 %v10840_v12 }
 0x20f   : > { %5208 = vmatpush1.bf16.msra.mxu1 %v13891_v55  ;;  %5257 = vmatpush1.bf16.msra.mxu0 %v10835_v32 }
 0x210   : > { %5209 = vmatprep.subr.bf16.mxu1 %v13897_v47  ;;  %5258 = vmatprep.subr.bf16.mxu0 %v13868_v34 }
 0x213   : > { %5210 = vmatpush1.bf16.msra.mxu1 %v13894_v7  ;;  %5259 = vmatpush1.bf16.msra.mxu0 %v10840_v12 }
 0x214   : > { %5211 = vmatprep.subr.bf16.mxu1 %v13898_v37  ;;  %5260 = vmatprep.subr.bf16.mxu0 %v13898_v37 }
 0x215   : > { %v4593_v35 = vpop.f32.mrb[72].mxu1 }
 0x216   : > { %v4594_v25 = vadd.f32 %v4593_v35, %v11687_v4  ;;  %v4595_v43 = vpop.f32.mrb[73].mxu1 }
 0x217   : > { %v4596_v18 = vadd.f32 %v4595_v43, %v11687_v4  ;;  %v4597_v58 = vpop.f32.mrb[74].mxu1  ;;  %5212 = vmatpush1.bf16.msra.mxu1 %v13897_v47  ;;  %5261 = vmatpush1.bf16.msra.mxu0 %v13897_v47 }
 0x218   : > { %v6626_v3 = vmax.f32 %v4594_v25, 0.0  ;;  %v4598_v30 = vadd.f32 %v4597_v58, %v11697_v8  ;;  %v4599_v60 = vpop.f32.mrb[75].mxu1  ;;  %5262 = vmatprep.subr.bf16.mxu0 %v13899_v49  ;;  %5301 = vmatprep.subr.bf16.mxu1 %v10708_v39 }
 0x219   : > { %v6627_v48 = vmax.f32 %v4596_v18, 0.0  ;;  %v4600_v35 = vadd.f32 %v4599_v60, %v11697_v8  ;;  %v13902_v60 = vld [vmem:[#allocation5_spill] sm:$0xff] }
 0x21a   : > { %v6962_v43 = vmul.f32 %v11718_v54, %v6626_v3  ;;  %v6704_v1 = vmax.f32 %v4598_v30, 0.0  ;;  %5228 = vmatmul.mubr.bf16.vlgmr.msra.gmra.mrb[120].mxu1 %v11323_v45 }
 0x21b   : > { %v6963_v25 = vmul.f32 %v11718_v54, %v6627_v48  ;;  %v6705_v58 = vmax.f32 %v4600_v35, 0.0  ;;  %5263 = vmatpush1.bf16.msra.mxu0 %v13898_v37  ;;  %5302 = vmatpush1.bf16.msra.mxu1 %v10825_v2 }
 0x21c   : > { %v7274_v10 = vmul.f32 %v6962_v43, %v13900_v16  ;;  %5264 = vmatprep.subr.bf16.mxu0 %v13901_v13  ;;  %5303 = vmatprep.subr.bf16.mxu1 %v10712_v21  ;;  %v7040_v18 = vmul.f32 %v11721_v23, %v6704_v1 }
 0x21d   : > { %v7275_v3 = vmul.f32 %v6963_v25, %v13902_v60  ;;  %v4603_v30 = vpop.f32.mrb[76].mxu1  ;;  %v4646_v59 = vpop.f32.mrb[84].mxu0  ;;  %v7041_v28 = vmul.f32 %v11721_v23, %v6705_v58  ;;  %8077 = vmatprep.mubr.msk.bf16.mxu1 %vm4552_vm4, %v11348_v29 }
 0x21e   : > { %v4604_v48 = vadd.f32 %v4603_v30, %v11703_v53  ;;  %v4647_v2 = vadd.f32 %v4646_v59, %v11687_v4  ;;  %v4605_v35 = vpop.f32.mrb[77].mxu1  ;;  %v4648_v43 = vpop.f32.mrb[85].mxu0  ;;  %v7352_v27 = vmul.f32 %v7040_v18, %v13900_v16 }
 0x21f   : > { %v7586_v46 = vadd.f32 %v7275_v3, %v7274_v10  ;;  %v4606_v1 = vadd.f32 %v4605_v35, %v11703_v53  ;;  %v4649_v25 = vadd.f32 %v4648_v43, %v11687_v4  ;;  %v4650_v17 = vpop.f32.mrb[86].mxu0  ;;  %5265 = vmatpush1.bf16.msra.mxu0 %v13899_v49  ;;  %5304 = vmatpush1.bf16.msra.mxu1 %v10708_v39  ;;  %v4607_v58 = vpop.f32.mrb[78].mxu1 }
 0x220   : > { %v6782_v15 = vmax.f32 %v4604_v48, 0.0  ;;  %v6628_v26 = vmax.f32 %v4647_v2, 0.0  ;;  %v4651_v30 = vadd.f32 %v4650_v17, %v11697_v8  ;;  %v4652_v59 = vpop.f32.mrb[87].mxu0  ;;  %v7353_v22 = vmul.f32 %v7041_v28, %v13902_v60  ;;  %5305 = vmatprep.subr.bf16.mxu1 %v10880_v52  ;;  %5354 = vmatprep.subr.bf16.mxu0 %v10880_v52  ;;  %v4609_v10 = vpop.f32.mrb[79].mxu1 }
 0x221   : > { %v11747_v18 = vpop.permute.xlu0 %6954  ;;  %v6783_v3 = vmax.f32 %v4606_v1, 0.0  ;;  %v6629_v35 = vmax.f32 %v4649_v25, 0.0  ;;  %v4653_v43 = vadd.f32 %v4652_v59, %v11697_v8  ;;  %v4608_v39 = vadd.f32 %v4607_v58, %v11707_v41  ;;  %v11759_v58 = vpop.permute.xlu1 %6959  ;;  %v13904_v59 = vld [vmem:[#allocation9_spill] sm:$0xff] }
 0x222   : > { %v7118_v48 = vmul.f32 %v11747_v18, %v6782_v15  ;;  %v6964_v17 = vmul.f32 %v11718_v54, %v6628_v26  ;;  %v6706_v2 = vmax.f32 %v4651_v30, 0.0  ;;  %v7587_v9 = vadd.f32 %v7353_v22, %v7352_v27  ;;  %5238 = vmatmul.mubr.bf16.gmra.mrb[124].mxu1 %v11421_v11  ;;  %5281 = vmatmul.mubr.bf16.vlgmr.msra.gmra.mrb[132].mxu0 %v11323_v45  ;;  %v13903_v15 = vld [vmem:[#allocation8_spill] sm:$0xff] }
 0x223   : > { %v7119_v28 = vmul.f32 %v11747_v18, %v6783_v3  ;;  %v6965_v38 = vmul.f32 %v11718_v54, %v6629_v35  ;;  %v6707_v1 = vmax.f32 %v4653_v43, 0.0  ;;  %5306 = vmatpush1.bf16.msra.mxu1 %v10712_v21  ;;  %5355 = vmatpush1.bf16.msra.mxu0 %v10712_v21  ;;  %v6860_v25 = vmax.f32 %v4608_v39, 0.0 }
 0x224   : > { %v7430_v26 = vmul.f32 %v7118_v48, %v13900_v16  ;;  %v7276_v22 = vmul.f32 %v6964_v17, %v13903_v15  ;;  %v7042_v27 = vmul.f32 %v11721_v23, %v6706_v2  ;;  %5307 = vmatprep.subr.bf16.mxu1 %v13868_v34  ;;  %5356 = vmatprep.subr.bf16.mxu0 %v10884_v5 }
 0x225   : > { %v7431_v30 = vmul.f32 %v7119_v28, %v13902_v60  ;;  %v7277_v3 = vmul.f32 %v6965_v38, %v13904_v59  ;;  %v7043_v35 = vmul.f32 %v11721_v23, %v6707_v1  ;;  %v4656_v21 = vpop.f32.mrb[88].mxu0  ;;  %8079 = vmatprep.mubr.msk.bf16.mxu0 %vm4552_vm4, %v11348_v29  ;;  %v4610_v43 = vadd.f32 %v4609_v10, %v11707_v41 }
 0x226   : > { %v7354_v39 = vmul.f32 %v7042_v27, %v13903_v15  ;;  %v4657_v48 = vadd.f32 %v4656_v21, %v11703_v53  ;;  %v4658_v17 = vpop.f32.mrb[89].mxu0  ;;  %8080 = vmatprep.mubr.msk.bf16.mxu1 %vm4552_vm4, %v11599_v62  ;;  %v7196_v2 = vmul.f32 %v11759_v58, %v6860_v25 }
 0x227   : > { %v7588_v28 = vadd.f32 %v7431_v30, %v7430_v26  ;;  %v7590_v38 = vadd.f32 %v7277_v3, %v7276_v22  ;;  %v7355_v1 = vmul.f32 %v7043_v35, %v13904_v59  ;;  %v4659_v61 = vadd.f32 %v4658_v17, %v11703_v53  ;;  %5308 = vmatpush1.bf16.msra.mxu1 %v10840_v12  ;;  %v4660_v36 = vpop.f32.mrb[90].mxu0 }
 0x228   : > { %v6784_v10 = vmax.f32 %v4657_v48, 0.0  ;;  %5357 = vmatpush1.bf16.msra.mxu0 %v10880_v52  ;;  %5309 = vmatprep.subr.bf16.mxu1 %v13871_v63  ;;  %v4661_v27 = vadd.f32 %v4660_v36, %v11707_v41  ;;  %v6861_v21 = vmax.f32 %v4610_v43, 0.0  ;;  %v4662_v33 = vpop.f32.mrb[91].mxu0  ;;  %v7508_v35 = vmul.f32 %v7196_v2, %v13900_v16 }
 0x229   : > { %v11783_v14 = vadd.f32 %v7590_v38, %v7586_v46  ;;  %v7591_v25 = vadd.f32 %v7355_v1, %v7354_v39  ;;  %v6785_v26 = vmax.f32 %v4659_v61, 0.0  ;;  %5358 = vmatprep.subr.bf16.mxu0 %v10763_v20  ;;  %v4663_v22 = vadd.f32 %v4662_v33, %v11707_v41 }
 0x22a   : > { %v7120_v30 = vmul.f32 %v11747_v18, %v6784_v10  ;;  %5291 = vmatmul.mubr.bf16.gmra.mrb[136].mxu0 %v11421_v11  ;;  %v6862_v3 = vmax.f32 %v4661_v27, 0.0  ;;  %v7197_v52 = vmul.f32 %v11759_v58, %v6861_v21 }
 0x22b   : > { %v11791_v36 = vadd.f32 %v7591_v25, %v7587_v9  ;;  %v7121_v46 = vmul.f32 %v11747_v18, %v6785_v26  ;;  %5310 = vmatpush1.bf16.msra.mxu1 %v13868_v34  ;;  %v6863_v61 = vmax.f32 %v4663_v22, 0.0  ;;  %8082 = vmatprep.mubr.msk.bf16.mxu0 %vm4552_vm4, %v11599_v62 }
 0x22c   : > { %v7432_v33 = vmul.f32 %v7120_v30, %v13903_v15  ;;  %5359 = vmatpush1.bf16.msra.mxu0 %v10884_v5  ;;  %5311 = vmatprep.subr.bf16.mxu1 %v13875_v50  ;;  %v7198_v43 = vmul.f32 %v11759_v58, %v6862_v3  ;;  %v7509_v16 = vmul.f32 %v7197_v52, %v13902_v60 }
 0x22d   : > { %v7433_v9 = vmul.f32 %v7121_v46, %v13904_v59  ;;  %5360 = vmatprep.subr.bf16.mxu0 %v13875_v50  ;;  %v7199_v39 = vmul.f32 %v11759_v58, %v6863_v61 }
 0x22e   : > { %v7510_v48 = vmul.f32 %v7198_v43, %v13903_v15  ;;  %v7589_v17 = vadd.f32 %v7509_v16, %v7508_v35  ;;  %v13905_v15 = vld [vmem:[#allocation47_spill] sm:$0xff]  ;;  %v13906_v43 = vld [vmem:[#allocation12_spill] sm:$0xff] }
 0x22f   : > { %v7592_v2 = vadd.f32 %v7433_v9, %v7432_v33  ;;  %5312 = vmatpush1.bf16.msra.mxu1 %v13871_v63  ;;  %v7511_v38 = vmul.f32 %v7199_v39, %v13904_v59  ;;  %v13907_v39 = vld [vmem:[#allocation13_spill] sm:$0xff] }
 0x230   : > { %5361 = vmatpush1.bf16.msra.mxu0 %v13871_v63  ;;  %5313 = vmatprep.subr.bf16.mxu1 %v13901_v13 }
 0x231   : > { %v11810_v1 = vadd.f32 %v7592_v2, %v7588_v28  ;;  %5362 = vmatprep.subr.bf16.mxu0 %v13888_v0  ;;  %v7593_v60 = vadd.f32 %v7511_v38, %v7510_v48 }
 0x233   : > { %5314 = vmatpush1.bf16.msra.mxu1 %v13899_v49  ;;  %v11814_v10 = vadd.f32 %v7593_v60, %v7589_v17  ;;  %v13908_v17 = vld [vmem:[#allocation53_spill] sm:$0xff] }
 0x234   : > { %5363 = vmatpush1.bf16.msra.mxu0 %v13875_v50  ;;  %5315 = vmatprep.subr.bf16.mxu1 %v13905_v15 }
 0x235   : > { %5364 = vmatprep.subr.bf16.mxu0 %v11063_v44 }
 0x237   : > { %5316 = vmatpush1.bf16.msra.mxu1 %v13901_v13 }
 0x238   : > { %5365 = vmatpush1.bf16.msra.mxu0 %v13888_v0  ;;  %5317 = vmatprep.subr.bf16.mxu1 %v11177_v57 }
 0x239   : > { %5366 = vmatprep.subr.bf16.mxu0 %v11177_v57  ;;  %v4699_v59 = vpop.f32.mrb[80].mxu1 }
 0x23a   : > { %v4700_v28 = vadd.f32 %v4699_v59, %v11687_v4  ;;  %v4701_v27 = vpop.f32.mrb[81].mxu1 }
 0x23b   : > { %v4702_v21 = vadd.f32 %v4701_v27, %v11687_v4  ;;  %v4703_v25 = vpop.f32.mrb[82].mxu1  ;;  %5318 = vmatpush1.bf16.msra.mxu1 %v13905_v15 }
 0x23c   : > { %v6630_v26 = vmax.f32 %v4700_v28, 0.0  ;;  %v4704_v22 = vadd.f32 %v4703_v25, %v11697_v8  ;;  %5367 = vmatpush1.bf16.msra.mxu0 %v13905_v15  ;;  %v4705_v30 = vpop.f32.mrb[83].mxu1  ;;  %5407 = vmatprep.subr.bf16.mxu1 %v10763_v20 }
 0x23d   : > { %v6631_v3 = vmax.f32 %v4702_v21, 0.0  ;;  %v4706_v52 = vadd.f32 %v4705_v30, %v11697_v8  ;;  %5368 = vmatprep.subr.bf16.mxu0 %v11181_v19 }
 0x23e   : > { %v6966_v35 = vmul.f32 %v11718_v54, %v6630_v26  ;;  %v6708_v46 = vmax.f32 %v4704_v22, 0.0  ;;  %5334 = vmatmul.mubr.bf16.vlgmr.msra.gmra.mrb[128].mxu1 %v11323_v45 }
 0x23f   : > { %v6967_v61 = vmul.f32 %v11718_v54, %v6631_v3  ;;  %v6709_v33 = vmax.f32 %v4706_v52, 0.0  ;;  %5408 = vmatpush1.bf16.msra.mxu1 %v10884_v5  ;;  %8081 = vmatprep.mubr.msk.bf16.mxu1 %vm4552_vm4, %v11348_v29 }
 0x240   : > { %v7278_v16 = vmul.f32 %v6966_v35, %v13906_v43  ;;  %v7044_v9 = vmul.f32 %v11721_v23, %v6708_v46  ;;  %5369 = vmatpush1.bf16.msra.mxu0 %v11177_v57  ;;  %5409 = vmatprep.subr.bf16.mxu1 %v10768_v51 }
 0x241   : > { %v7279_v48 = vmul.f32 %v6967_v61, %v13907_v39  ;;  %v7045_v45 = vmul.f32 %v11721_v23, %v6709_v33  ;;  %5370 = vmatprep.subr.bf16.mxu0 %v13908_v17  ;;  %v4709_v2 = vpop.f32.mrb[84].mxu1  ;;  %v4752_v38 = vpop.f32.mrb[92].mxu0 }
 0x242   : > { %v7356_v5 = vmul.f32 %v7044_v9, %v13906_v43  ;;  %v4710_v29 = vadd.f32 %v4709_v2, %v11703_v53  ;;  %v4753_v60 = vadd.f32 %v4752_v38, %v11687_v4  ;;  %v4711_v59 = vpop.f32.mrb[85].mxu1  ;;  %v4754_v28 = vpop.f32.mrb[93].mxu0 }
 0x243   : > { %v11847_v27 = vadd.f32 %v7279_v48, %v7278_v16  ;;  %v7357_v21 = vmul.f32 %v7045_v45, %v13907_v39  ;;  %v4712_v25 = vadd.f32 %v4711_v59, %v11703_v53  ;;  %v4755_v26 = vadd.f32 %v4754_v28, %v11687_v4  ;;  %v4756_v22 = vpop.f32.mrb[94].mxu0  ;;  %5410 = vmatpush1.bf16.msra.mxu1 %v10763_v20  ;;  %v4713_v30 = vpop.f32.mrb[86].mxu1 }
 0x244   : > { %v6786_v3 = vmax.f32 %v4710_v29, 0.0  ;;  %v6632_v52 = vmax.f32 %v4753_v60, 0.0  ;;  %v4757_v35 = vadd.f32 %v4756_v22, %v11697_v8  ;;  %5371 = vmatpush1.bf16.msra.mxu0 %v11181_v19  ;;  %v4758_v46 = vpop.f32.mrb[95].mxu0  ;;  %5411 = vmatprep.subr.bf16.mxu1 %v10939_v31  ;;  %v4714_v61 = vadd.f32 %v4713_v30, %v11707_v41  ;;  %v4715_v33 = vpop.f32.mrb[87].mxu1 }
 0x245   : > { %v7595_v16 = vadd.f32 %v7357_v21, %v7356_v5  ;;  %v6787_v9 = vmax.f32 %v4712_v25, 0.0  ;;  %v6633_v48 = vmax.f32 %v4755_v26, 0.0  ;;  %v4759_v45 = vadd.f32 %v4758_v46, %v11697_v8  ;;  %5460 = vmatprep.subr.bf16.mxu0 %v10939_v31  ;;  %v11867_v5 = vld [vmem:[%s13553_s4] ss:$8 sps:$4 sm:$0xff]  }
 0x246   : > { %v7122_v20 = vmul.f32 %v11747_v18, %v6786_v3  ;;  %v6968_v2 = vmul.f32 %v11718_v54, %v6632_v52  ;;  %v6710_v38 = vmax.f32 %v4757_v35, 0.0  ;;  %5344 = vmatmul.mubr.bf16.gmra.mrb[132].mxu1 %v11421_v11  ;;  %v6864_v29 = vmax.f32 %v4714_v61, 0.0  ;;  %v13909_v11 = vld [vmem:[#allocation6_spill] sm:$0xff]  ;;  %v13910_v3 = vld [vmem:[#allocation7_spill] sm:$0xff] }
 0x247   : > { %v7123_v60 = vmul.f32 %v11747_v18, %v6787_v9  ;;  %v6969_v59 = vmul.f32 %v11718_v54, %v6633_v48  ;;  %v6711_v28 = vmax.f32 %v4759_v45, 0.0  ;;  %5387 = vmatmul.mubr.bf16.vlgmr.msra.gmra.mrb[140].mxu0 %v11867_v5  ;;  %5412 = vmatpush1.bf16.msra.mxu1 %v10768_v51  ;;  %v4716_v21 = vadd.f32 %v4715_v33, %v11707_v41 }
 0x248   : > { %v7434_v25 = vmul.f32 %v7122_v20, %v13906_v43  ;;  %v7280_v26 = vmul.f32 %v6968_v2, %v13909_v11  ;;  %v7046_v22 = vmul.f32 %v11721_v23, %v6710_v38  ;;  %5461 = vmatpush1.bf16.msra.mxu0 %v10768_v51  ;;  %5413 = vmatprep.subr.bf16.mxu1 %v11063_v44  ;;  %v11887_v51 = vld [vmem:[%s13553_s4 + $0x14] ss:$8 sps:$4 sm:$0xff]  }
 0x249   : > { %v7435_v30 = vmul.f32 %v7123_v60, %v13907_v39  ;;  %v7281_v52 = vmul.f32 %v6969_v59, %v13910_v3  ;;  %v7047_v35 = vmul.f32 %v11721_v23, %v6711_v28  ;;  %5462 = vmatprep.subr.bf16.mxu0 %v10943_v42  ;;  %v4762_v46 = vpop.f32.mrb[96].mxu0  ;;  %v7200_v61 = vmul.f32 %v11759_v58, %v6864_v29 }
 0x24a   : > { %v7358_v33 = vmul.f32 %v7046_v22, %v13909_v11  ;;  %v4763_v9 = vadd.f32 %v4762_v46, %v11703_v53  ;;  %v4764_v48 = vpop.f32.mrb[97].mxu0  ;;  %v6865_v45 = vmax.f32 %v4716_v21, 0.0  ;;  %8083 = vmatprep.mubr.msk.bf16.mxu0 %vm4552_vm4, %v11887_v51  ;;  %8084 = vmatprep.mubr.msk.bf16.mxu1 %vm4552_vm4, %v11599_v62 }
 0x24b   : > { %v7596_v20 = vadd.f32 %v7435_v30, %v7434_v25  ;;  %v7598_v2 = vadd.f32 %v7281_v52, %v7280_v26  ;;  %v7359_v38 = vmul.f32 %v7047_v35, %v13910_v3  ;;  %v4765_v29 = vadd.f32 %v4764_v48, %v11703_v53  ;;  %v4766_v60 = vpop.f32.mrb[98].mxu0  ;;  %5414 = vmatpush1.bf16.msra.mxu1 %v13888_v0 }
 0x24c   : > { %v6788_v59 = vmax.f32 %v4763_v9, 0.0  ;;  %v7512_v28 = vmul.f32 %v7200_v61, %v13906_v43  ;;  %v4767_v21 = vadd.f32 %v4766_v60, %v11707_v41  ;;  %5463 = vmatpush1.bf16.msra.mxu0 %v10939_v31  ;;  %v7201_v22 = vmul.f32 %v11759_v58, %v6865_v45  ;;  %v4768_v46 = vpop.f32.mrb[99].mxu0  ;;  %5415 = vmatprep.subr.bf16.mxu1 %v13891_v55 }
 0x24d   : > { %v7746_v25 = vadd.f32 %v7598_v2, %v11847_v27  ;;  %v7599_v26 = vadd.f32 %v7359_v38, %v7358_v33  ;;  %v6789_v30 = vmax.f32 %v4765_v29, 0.0  ;;  %v4769_v52 = vadd.f32 %v4768_v46, %v11707_v41  ;;  %5464 = vmatprep.subr.bf16.mxu0 %v10835_v32  ;;  %v11913_v27 = vld [vmem:[%s13553_s4 + $0x10] ss:$8 sps:$4 sm:$0xff]  }
 0x24e   : > { %v7124_v35 = vmul.f32 %v11747_v18, %v6788_v59  ;;  %v6866_v43 = vmax.f32 %v4767_v21, 0.0  ;;  %v7513_v61 = vmul.f32 %v7201_v22, %v13907_v39 }
 0x24f   : > { %v11907_v31 = vadd.f32 %v7746_v25, %v11783_v14  ;;  %v7747_v9 = vadd.f32 %v7599_v26, %v7595_v16  ;;  %v7125_v48 = vmul.f32 %v11747_v18, %v6789_v30  ;;  %v6867_v45 = vmax.f32 %v4769_v52, 0.0  ;;  %5397 = vmatmul.mubr.bf16.gmra.mrb[144].mxu0 %v11913_v27  ;;  %5416 = vmatpush1.bf16.msra.mxu1 %v11063_v44 }
 0x250   : > { %v7436_v33 = vmul.f32 %v7124_v35, %v13909_v11  ;;  %v7202_v39 = vmul.f32 %v11759_v58, %v6866_v43  ;;  %v7597_v2 = vadd.f32 %v7513_v61, %v7512_v28  ;;  %5465 = vmatpush1.bf16.msra.mxu0 %v10943_v42  ;;  %5417 = vmatprep.subr.bf16.mxu1 %v13894_v7 }
 0x251   : > { %v11922_v14 = vadd.f32 %v7747_v9, %v11791_v36  ;;  %v7437_v16 = vmul.f32 %v7125_v48, %v13910_v3  ;;  %v7203_v38 = vmul.f32 %v11759_v58, %v6867_v45  ;;  %5466 = vmatprep.subr.bf16.mxu0 %v13894_v7  ;;  %8086 = vmatprep.mubr.msk.bf16.mxu0 %vm4552_vm4, %v11599_v62 }
 0x252   : > { %v7514_v29 = vmul.f32 %v7202_v39, %v13909_v11  ;;  %v13911_v11 = vld [vmem:[#allocation54_spill] sm:$0xff] }
 0x253   : > { %v7600_v60 = vadd.f32 %v7437_v16, %v7436_v33  ;;  %v7515_v59 = vmul.f32 %v7203_v38, %v13910_v3  ;;  %5418 = vmatpush1.bf16.msra.mxu1 %v13891_v55  ;;  %v13912_v33 = vld [vmem:[#allocation16_spill] sm:$0xff]  ;;  %v13913_v16 = vld [vmem:[#allocation17_spill] sm:$0xff] }
 0x254   : > { %5467 = vmatpush1.bf16.msra.mxu0 %v13891_v55  ;;  %5419 = vmatprep.subr.bf16.mxu1 %v13908_v17 }
 0x255   : > { %v7748_v36 = vadd.f32 %v7600_v60, %v7596_v20  ;;  %v7601_v28 = vadd.f32 %v7515_v59, %v7514_v29  ;;  %5468 = vmatprep.subr.bf16.mxu0 %v13897_v47  ;;  %v13914_v60 = vld [vmem:[#allocation61_spill] sm:$0xff] }
 0x257   : > { %v11936_v21 = vadd.f32 %v7748_v36, %v11810_v1  ;;  %v7749_v22 = vadd.f32 %v7601_v28, %v7597_v2  ;;  %5420 = vmatpush1.bf16.msra.mxu1 %v11181_v19 }
 0x258   : > { %5469 = vmatpush1.bf16.msra.mxu0 %v13894_v7  ;;  %5421 = vmatprep.subr.bf16.mxu1 %v13911_v11 }
 0x259   : > { %v11942_v3 = vadd.f32 %v7749_v22, %v11814_v10  ;;  %5470 = vmatprep.subr.bf16.mxu0 %v13898_v37 }
 0x25b   : > { %5422 = vmatpush1.bf16.msra.mxu1 %v13908_v17 }
 0x25c   : > { %5471 = vmatpush1.bf16.msra.mxu0 %v13897_v47  ;;  %5423 = vmatprep.subr.bf16.mxu1 %v11236_v56 }
 0x25d   : > { %5472 = vmatprep.subr.bf16.mxu0 %v11236_v56  ;;  %v4805_v1 = vpop.f32.mrb[88].mxu1 }
 0x25e   : > { %v4806_v20 = vadd.f32 %v4805_v1, %v11687_v4  ;;  %v4807_v46 = vpop.f32.mrb[89].mxu1 }
 0x25f   : > { %v4808_v25 = vadd.f32 %v4807_v46, %v11687_v4  ;;  %v4809_v26 = vpop.f32.mrb[90].mxu1  ;;  %5424 = vmatpush1.bf16.msra.mxu1 %v13911_v11 }
 0x260   : > { %v6634_v10 = vmax.f32 %v4806_v20, 0.0  ;;  %v4810_v30 = vadd.f32 %v4809_v26, %v11697_v8  ;;  %5473 = vmatpush1.bf16.msra.mxu0 %v13911_v11  ;;  %v4811_v52 = vpop.f32.mrb[91].mxu1  ;;  %5513 = vmatprep.subr.bf16.mxu1 %v10835_v32 }
 0x261   : > { %v6635_v35 = vmax.f32 %v4808_v25, 0.0  ;;  %v4812_v43 = vadd.f32 %v4811_v52, %v11697_v8  ;;  %5474 = vmatprep.subr.bf16.mxu0 %v11240_v40 }
 0x262   : > { %v6970_v61 = vmul.f32 %v11718_v54, %v6634_v10  ;;  %v6712_v9 = vmax.f32 %v4810_v30, 0.0  ;;  %5440 = vmatmul.mubr.bf16.vlgmr.msra.gmra.mrb[136].mxu1 %v11867_v5 }
 0x263   : > { %v6971_v48 = vmul.f32 %v11718_v54, %v6635_v35  ;;  %v6713_v45 = vmax.f32 %v4812_v43, 0.0  ;;  %5514 = vmatpush1.bf16.msra.mxu1 %v10943_v42  ;;  %8085 = vmatprep.mubr.msk.bf16.mxu1 %vm4552_vm4, %v11887_v51 }
 0x264   : > { %v7282_v39 = vmul.f32 %v6970_v61, %v13912_v33  ;;  %v7048_v2 = vmul.f32 %v11721_v23, %v6712_v9  ;;  %5475 = vmatpush1.bf16.msra.mxu0 %v11236_v56  ;;  %5515 = vmatprep.subr.bf16.mxu1 %v10840_v12 }
 0x265   : > { %v7283_v38 = vmul.f32 %v6971_v48, %v13913_v16  ;;  %v7049_v29 = vmul.f32 %v11721_v23, %v6713_v45  ;;  %5476 = vmatprep.subr.bf16.mxu0 %v13914_v60  ;;  %v4815_v59 = vpop.f32.mrb[92].mxu1  ;;  %v4858_v36 = vpop.f32.mrb[100].mxu0 }
 0x266   : > { %v7360_v42 = vmul.f32 %v7048_v2, %v13912_v33  ;;  %v4816_v28 = vadd.f32 %v4815_v59, %v11703_v53  ;;  %v4859_v22 = vadd.f32 %v4858_v36, %v11687_v4  ;;  %v4817_v1 = vpop.f32.mrb[93].mxu1  ;;  %v4860_v20 = vpop.f32.mrb[101].mxu0 }
 0x267   : > { %v7602_v46 = vadd.f32 %v7283_v38, %v7282_v39  ;;  %v7361_v25 = vmul.f32 %v7049_v29, %v13913_v16  ;;  %v4818_v26 = vadd.f32 %v4817_v1, %v11703_v53  ;;  %v4861_v10 = vadd.f32 %v4860_v20, %v11687_v4  ;;  %v4862_v30 = vpop.f32.mrb[102].mxu0  ;;  %5516 = vmatpush1.bf16.msra.mxu1 %v10835_v32  ;;  %v4819_v52 = vpop.f32.mrb[94].mxu1 }
 0x268   : > { %v6790_v35 = vmax.f32 %v4816_v28, 0.0  ;;  %v6636_v43 = vmax.f32 %v4859_v22, 0.0  ;;  %v4863_v61 = vadd.f32 %v4862_v30, %v11697_v8  ;;  %5477 = vmatpush1.bf16.msra.mxu0 %v11240_v40  ;;  %v4864_v9 = vpop.f32.mrb[103].mxu0  ;;  %5517 = vmatprep.subr.bf16.mxu1 %v13868_v34  ;;  %v4820_v48 = vadd.f32 %v4819_v52, %v11707_v41  ;;  %v4821_v45 = vpop.f32.mrb[95].mxu1 }
 0x269   : > { %v7603_v39 = vadd.f32 %v7361_v25, %v7360_v42  ;;  %v6791_v2 = vmax.f32 %v4818_v26, 0.0  ;;  %v6637_v38 = vmax.f32 %v4861_v10, 0.0  ;;  %v4865_v29 = vadd.f32 %v4864_v9, %v11697_v8  ;;  %5566 = vmatprep.subr.bf16.mxu0 %v13868_v34  ;;  %v13915_v26 = vld [vmem:[#allocation10_spill] sm:$0xff] }
 0x26a   : > { %v7126_v32 = vmul.f32 %v11747_v18, %v6790_v35  ;;  %v6972_v59 = vmul.f32 %v11718_v54, %v6636_v43  ;;  %v6714_v36 = vmax.f32 %v4863_v61, 0.0  ;;  %5450 = vmatmul.mubr.bf16.gmra.mrb[140].mxu1 %v11913_v27  ;;  %v6868_v28 = vmax.f32 %v4820_v48, 0.0  ;;  %v13916_v35 = vld [vmem:[#allocation11_spill] sm:$0xff] }
 0x26b   : > { %v7127_v22 = vmul.f32 %v11747_v18, %v6791_v2  ;;  %v6973_v1 = vmul.f32 %v11718_v54, %v6637_v38  ;;  %v6715_v20 = vmax.f32 %v4865_v29, 0.0  ;;  %5493 = vmatmul.mubr.bf16.vlgmr.msra.gmra.mrb[148].mxu0 %v11867_v5  ;;  %5518 = vmatpush1.bf16.msra.mxu1 %v10840_v12  ;;  %v4822_v42 = vadd.f32 %v4821_v45, %v11707_v41 }
 0x26c   : > { %v7438_v25 = vmul.f32 %v7126_v32, %v13912_v33  ;;  %v7284_v10 = vmul.f32 %v6972_v59, %v13915_v26  ;;  %v7050_v30 = vmul.f32 %v11721_v23, %v6714_v36  ;;  %5567 = vmatpush1.bf16.msra.mxu0 %v10840_v12  ;;  %5519 = vmatprep.subr.bf16.mxu1 %v13898_v37 }
 0x26d   : > { %v7439_v52 = vmul.f32 %v7127_v22, %v13913_v16  ;;  %v7285_v43 = vmul.f32 %v6973_v1, %v13916_v35  ;;  %v7051_v61 = vmul.f32 %v11721_v23, %v6715_v20  ;;  %5568 = vmatprep.subr.bf16.mxu0 %v13871_v63  ;;  %v4868_v9 = vpop.f32.mrb[104].mxu0  ;;  %8087 = vmatprep.mubr.msk.bf16.mxu0 %vm4552_vm4, %v11887_v51  ;;  %v6869_v48 = vmax.f32 %v4822_v42, 0.0 }
 0x26e   : > { %v7362_v45 = vmul.f32 %v7050_v30, %v13915_v26  ;;  %v4869_v2 = vadd.f32 %v4868_v9, %v11703_v53  ;;  %v4870_v12 = vpop.f32.mrb[105].mxu0  ;;  %v7204_v38 = vmul.f32 %v11759_v58, %v6868_v28  ;;  %8088 = vmatprep.mubr.msk.bf16.mxu1 %vm4552_vm4, %v11599_v62 }
 0x26f   : > { %v7604_v29 = vadd.f32 %v7439_v52, %v7438_v25  ;;  %v7606_v32 = vadd.f32 %v7285_v43, %v7284_v10  ;;  %v7363_v59 = vmul.f32 %v7051_v61, %v13916_v35  ;;  %v4871_v36 = vadd.f32 %v4870_v12, %v11703_v53  ;;  %5520 = vmatpush1.bf16.msra.mxu1 %v13897_v47  ;;  %v4872_v22 = vpop.f32.mrb[106].mxu0 }
 0x270   : > { %v6792_v1 = vmax.f32 %v4869_v2, 0.0  ;;  %5569 = vmatpush1.bf16.msra.mxu0 %v13868_v34  ;;  %5521 = vmatprep.subr.bf16.mxu1 %v13899_v49  ;;  %v7516_v20 = vmul.f32 %v7204_v38, %v13912_v33  ;;  %v4873_v28 = vadd.f32 %v4872_v22, %v11707_v41  ;;  %v7205_v42 = vmul.f32 %v11759_v58, %v6869_v48  ;;  %v4874_v25 = vpop.f32.mrb[107].mxu0 }
 0x271   : > { %v12015_v10 = vadd.f32 %v7606_v32, %v7602_v46  ;;  %v7607_v30 = vadd.f32 %v7363_v59, %v7362_v45  ;;  %v6793_v52 = vmax.f32 %v4871_v36, 0.0  ;;  %5570 = vmatprep.subr.bf16.mxu0 %v13875_v50  ;;  %v4875_v43 = vadd.f32 %v4874_v25, %v11707_v41 }
 0x272   : > { %v7128_v61 = vmul.f32 %v11747_v18, %v6792_v1  ;;  %v6870_v34 = vmax.f32 %v4873_v28, 0.0  ;;  %v7517_v9 = vmul.f32 %v7205_v42, %v13913_v16 }
 0x273   : > { %v12021_v2 = vadd.f32 %v7607_v30, %v7603_v39  ;;  %v7129_v33 = vmul.f32 %v11747_v18, %v6793_v52  ;;  %5503 = vmatmul.mubr.bf16.gmra.mrb[152].mxu0 %v11913_v27  ;;  %5522 = vmatpush1.bf16.msra.mxu1 %v13898_v37  ;;  %v6871_v46 = vmax.f32 %v4875_v43, 0.0 }
 0x274   : > { %v7440_v48 = vmul.f32 %v7128_v61, %v13915_v26  ;;  %5571 = vmatpush1.bf16.msra.mxu0 %v13871_v63  ;;  %5523 = vmatprep.subr.bf16.mxu1 %v13901_v13  ;;  %v7206_v45 = vmul.f32 %v11759_v58, %v6870_v34  ;;  %v7605_v12 = vadd.f32 %v7517_v9, %v7516_v20  ;;  %v13918_v61 = vld [vmem:[#allocation80_spill] sm:$0xff] }
 0x275   : > { %v7441_v16 = vmul.f32 %v7129_v33, %v13916_v35  ;;  %5572 = vmatprep.subr.bf16.mxu0 %v13901_v13  ;;  %v7207_v39 = vmul.f32 %v11759_v58, %v6871_v46  ;;  %8090 = vmatprep.mubr.msk.bf16.mxu0 %vm4552_vm4, %v11599_v62  ;;  %v13917_v62 = vld [vmem:[#allocation62_spill] sm:$0xff] }
 0x276   : > { %v7518_v38 = vmul.f32 %v7206_v45, %v13915_v26 }
 0x277   : > { %v7608_v32 = vadd.f32 %v7441_v16, %v7440_v48  ;;  %5524 = vmatpush1.bf16.msra.mxu1 %v13899_v49  ;;  %v7519_v59 = vmul.f32 %v7207_v39, %v13916_v35  ;;  %v13919_v48 = vld [vmem:[#allocation20_spill] sm:$0xff]  ;;  %v13920_v16 = vld [vmem:[#allocation21_spill] sm:$0xff] }
 0x278   : > { %5573 = vmatpush1.bf16.msra.mxu0 %v13899_v49  ;;  %5525 = vmatprep.subr.bf16.mxu1 %v13914_v60 }
 0x279   : > { %v12040_v36 = vadd.f32 %v7608_v32, %v7604_v29  ;;  %5574 = vmatprep.subr.bf16.mxu0 %v13905_v15  ;;  %v7609_v22 = vadd.f32 %v7519_v59, %v7518_v38  ;;  %v13921_v32 = vld [vmem:[#allocation67_spill] sm:$0xff] }
 0x27b   : > { %v12043_v1 = vadd.f32 %v7609_v22, %v7605_v12  ;;  %5526 = vmatpush1.bf16.msra.mxu1 %v11240_v40 }
 0x27c   : > { %5575 = vmatpush1.bf16.msra.mxu0 %v13901_v13  ;;  %5527 = vmatprep.subr.bf16.mxu1 %v13917_v62 }
 0x27d   : > { %5576 = vmatprep.subr.bf16.mxu0 %v11177_v57 }
 0x27f   : > { %5528 = vmatpush1.bf16.msra.mxu1 %v13914_v60 }
 0x280   : > { %5577 = vmatpush1.bf16.msra.mxu0 %v13905_v15  ;;  %5529 = vmatprep.subr.bf16.mxu1 %v11295_v6 }
 0x281   : > { %5578 = vmatprep.subr.bf16.mxu0 %v11295_v6  ;;  %v4911_v26 = vpop.f32.mrb[96].mxu1 }
 0x282   : > { %v4912_v35 = vadd.f32 %v4911_v26, %v11687_v4  ;;  %v4913_v29 = vpop.f32.mrb[97].mxu1 }
 0x283   : > { %v4914_v20 = vadd.f32 %v4913_v29, %v11687_v4  ;;  %v4915_v28 = vpop.f32.mrb[98].mxu1  ;;  %5530 = vmatpush1.bf16.msra.mxu1 %v13917_v62 }
 0x284   : > { %v6638_v42 = vmax.f32 %v4912_v35, 0.0  ;;  %v4916_v25 = vadd.f32 %v4915_v28, %v11697_v8  ;;  %5579 = vmatpush1.bf16.msra.mxu0 %v13917_v62  ;;  %v4917_v30 = vpop.f32.mrb[99].mxu1  ;;  %5619 = vmatprep.subr.bf16.mxu1 %v13875_v50 }
 0x285   : > { %v6639_v52 = vmax.f32 %v4914_v20, 0.0  ;;  %v4918_v43 = vadd.f32 %v4917_v30, %v11697_v8  ;;  %5580 = vmatprep.subr.bf16.mxu0 %v13918_v61 }
 0x286   : > { %v6974_v34 = vmul.f32 %v11718_v54, %v6638_v42  ;;  %v6716_v9 = vmax.f32 %v4916_v25, 0.0  ;;  %5546 = vmatmul.mubr.bf16.vlgmr.msra.gmra.mrb[144].mxu1 %v11867_v5 }
 0x287   : > { %v6975_v33 = vmul.f32 %v11718_v54, %v6639_v52  ;;  %v6717_v46 = vmax.f32 %v4918_v43, 0.0  ;;  %5620 = vmatpush1.bf16.msra.mxu1 %v13871_v63  ;;  %8089 = vmatprep.mubr.msk.bf16.mxu1 %vm4552_vm4, %v11887_v51 }
 0x288   : > { %v7286_v45 = vmul.f32 %v6974_v34, %v13919_v48  ;;  %v7052_v12 = vmul.f32 %v11721_v23, %v6716_v9  ;;  %5581 = vmatpush1.bf16.msra.mxu0 %v11295_v6  ;;  %5621 = vmatprep.subr.bf16.mxu1 %v13888_v0 }
 0x289   : > { %v7287_v39 = vmul.f32 %v6975_v33, %v13920_v16  ;;  %v7053_v38 = vmul.f32 %v11721_v23, %v6717_v46  ;;  %5582 = vmatprep.subr.bf16.mxu0 %v13921_v32  ;;  %v4921_v59 = vpop.f32.mrb[100].mxu1  ;;  %v4964_v22 = vpop.f32.mrb[108].mxu0 }
 0x28a   : > { %v7364_v63 = vmul.f32 %v7052_v12, %v13919_v48  ;;  %v4922_v26 = vadd.f32 %v4921_v59, %v11703_v53  ;;  %v4965_v35 = vadd.f32 %v4964_v22, %v11687_v4  ;;  %v4923_v29 = vpop.f32.mrb[101].mxu1  ;;  %v4966_v20 = vpop.f32.mrb[109].mxu0 }
 0x28b   : > { %v7610_v28 = vadd.f32 %v7287_v39, %v7286_v45  ;;  %v7365_v42 = vmul.f32 %v7053_v38, %v13920_v16  ;;  %v4924_v25 = vadd.f32 %v4923_v29, %v11703_v53  ;;  %v4967_v30 = vadd.f32 %v4966_v20, %v11687_v4  ;;  %v4968_v52 = vpop.f32.mrb[110].mxu0  ;;  %5622 = vmatpush1.bf16.msra.mxu1 %v13875_v50  ;;  %v4925_v43 = vpop.f32.mrb[102].mxu1 }
 0x28c   : > { %v6794_v34 = vmax.f32 %v4922_v26, 0.0  ;;  %v6640_v9 = vmax.f32 %v4965_v35, 0.0  ;;  %v4969_v33 = vadd.f32 %v4968_v52, %v11697_v8  ;;  %5583 = vmatpush1.bf16.msra.mxu0 %v13918_v61  ;;  %v4970_v46 = vpop.f32.mrb[111].mxu0  ;;  %5623 = vmatprep.subr.bf16.mxu1 %v11063_v44  ;;  %v4926_v45 = vadd.f32 %v4925_v43, %v11707_v41  ;;  %v4927_v12 = vpop.f32.mrb[103].mxu1 }
 0x28d   : > { %v7611_v39 = vadd.f32 %v7365_v42, %v7364_v63  ;;  %v6795_v38 = vmax.f32 %v4924_v25, 0.0  ;;  %v6641_v59 = vmax.f32 %v4967_v30, 0.0  ;;  %v4971_v22 = vadd.f32 %v4970_v46, %v11697_v8  ;;  %5672 = vmatprep.subr.bf16.mxu0 %v11063_v44  ;;  %v13922_v25 = vld [vmem:[#allocation14_spill] sm:$0xff] }
 0x28e   : > { %v7130_v50 = vmul.f32 %v11747_v18, %v6794_v34  ;;  %v6976_v26 = vmul.f32 %v11718_v54, %v6640_v9  ;;  %v6718_v35 = vmax.f32 %v4969_v33, 0.0  ;;  %5556 = vmatmul.mubr.bf16.gmra.mrb[148].mxu1 %v11913_v27  ;;  %v6872_v29 = vmax.f32 %v4926_v45, 0.0  ;;  %v13923_v33 = vld [vmem:[#allocation15_spill] sm:$0xff] }
 0x28f   : > { %v7131_v20 = vmul.f32 %v11747_v18, %v6795_v38  ;;  %v6977_v52 = vmul.f32 %v11718_v54, %v6641_v59  ;;  %v6719_v43 = vmax.f32 %v4971_v22, 0.0  ;;  %5599 = vmatmul.mubr.bf16.vlgmr.msra.gmra.mrb[156].mxu0 %v11867_v5  ;;  %5624 = vmatpush1.bf16.msra.mxu1 %v13888_v0  ;;  %v4928_v63 = vadd.f32 %v4927_v12, %v11707_v41 }
 0x290   : > { %v7442_v42 = vmul.f32 %v7130_v50, %v13919_v48  ;;  %v7288_v30 = vmul.f32 %v6976_v26, %v13922_v25  ;;  %v7054_v34 = vmul.f32 %v11721_v23, %v6718_v35  ;;  %5673 = vmatpush1.bf16.msra.mxu0 %v13888_v0  ;;  %5625 = vmatprep.subr.bf16.mxu1 %v11177_v57  ;;  %v12112_v0 = vld [vmem:[%s13553_s4 + $0x4] ss:$8 sps:$4 sm:$0xff]  }
 0x291   : > { %v7443_v9 = vmul.f32 %v7131_v20, %v13920_v16  ;;  %v7289_v46 = vmul.f32 %v6977_v52, %v13923_v33  ;;  %v7055_v45 = vmul.f32 %v11721_v23, %v6719_v43  ;;  %5674 = vmatprep.subr.bf16.mxu0 %v13891_v55  ;;  %v4974_v38 = vpop.f32.mrb[112].mxu0  ;;  %v7208_v12 = vmul.f32 %v11759_v58, %v6872_v29 }
 0x292   : > { %v7366_v59 = vmul.f32 %v7054_v34, %v13922_v25  ;;  %v4975_v22 = vadd.f32 %v4974_v38, %v11703_v53  ;;  %v4976_v50 = vpop.f32.mrb[113].mxu0  ;;  %v6873_v26 = vmax.f32 %v4928_v63, 0.0  ;;  %8091 = vmatprep.mubr.msk.bf16.mxu0 %vm4552_vm4, %v11887_v51  ;;  %8092 = vmatprep.mubr.msk.bf16.mxu1 %vm4552_vm4, %v12112_v0 }
 0x293   : > { %v7612_v35 = vadd.f32 %v7443_v9, %v7442_v42  ;;  %v7614_v20 = vadd.f32 %v7289_v46, %v7288_v30  ;;  %v7367_v29 = vmul.f32 %v7055_v45, %v13923_v33  ;;  %v4977_v52 = vadd.f32 %v4976_v50, %v11703_v53  ;;  %v4978_v43 = vpop.f32.mrb[114].mxu0  ;;  %5626 = vmatpush1.bf16.msra.mxu1 %v13905_v15 }
 0x294   : > { %v6796_v63 = vmax.f32 %v4975_v22, 0.0  ;;  %v7520_v34 = vmul.f32 %v7208_v12, %v13919_v48  ;;  %v4979_v38 = vadd.f32 %v4978_v43, %v11707_v41  ;;  %5675 = vmatpush1.bf16.msra.mxu0 %v11063_v44  ;;  %v7209_v6 = vmul.f32 %v11759_v58, %v6873_v26  ;;  %v4980_v62 = vpop.f32.mrb[115].mxu0  ;;  %5627 = vmatprep.subr.bf16.mxu1 %v11181_v19 }
 0x295   : > { %v7754_v42 = vadd.f32 %v7614_v20, %v7610_v28  ;;  %v7615_v30 = vadd.f32 %v7367_v29, %v7366_v59  ;;  %v6797_v9 = vmax.f32 %v4977_v52, 0.0  ;;  %v4981_v46 = vadd.f32 %v4980_v62, %v11707_v41  ;;  %5676 = vmatprep.subr.bf16.mxu0 %v13894_v7 }
 0x296   : > { %v7132_v45 = vmul.f32 %v11747_v18, %v6796_v63  ;;  %v6874_v22 = vmax.f32 %v4979_v38, 0.0  ;;  %v7521_v48 = vmul.f32 %v7209_v6, %v13920_v16 }
 0x297   : > { %v7822_v12 = vadd.f32 %v7754_v42, %v12015_v10  ;;  %v7755_v44 = vadd.f32 %v7615_v30, %v7611_v39  ;;  %v7133_v50 = vmul.f32 %v11747_v18, %v6797_v9  ;;  %v6875_v26 = vmax.f32 %v4981_v46, 0.0  ;;  %5609 = vmatmul.mubr.bf16.gmra.mrb[160].mxu0 %v11913_v27  ;;  %5628 = vmatpush1.bf16.msra.mxu1 %v11177_v57 }
 0x298   : > { %v7444_v28 = vmul.f32 %v7132_v45, %v13922_v25  ;;  %v7210_v62 = vmul.f32 %v11759_v58, %v6874_v22  ;;  %v7613_v59 = vadd.f32 %v7521_v48, %v7520_v34  ;;  %5677 = vmatpush1.bf16.msra.mxu0 %v13891_v55  ;;  %5629 = vmatprep.subr.bf16.mxu1 %v13908_v17  ;;  %v13925_v22 = vld [vmem:[#allocation87_spill] sm:$0xff] }
 0x299   : > { %v12137_v6 = vadd.f32 %v7822_v12, %v11907_v31  ;;  %v7823_v10 = vadd.f32 %v7755_v44, %v12021_v2  ;;  %v7445_v16 = vmul.f32 %v7133_v50, %v13923_v33  ;;  %v7211_v39 = vmul.f32 %v11759_v58, %v6875_v26  ;;  %5678 = vmatprep.subr.bf16.mxu0 %v13908_v17  ;;  %v13926_v26 = vld [vmem:[#allocation24_spill] sm:$0xff] }
 0x29a   : > { %v7522_v20 = vmul.f32 %v7210_v62, %v13922_v25  ;;  %8094 = vmatprep.mubr.msk.bf16.mxu0 %vm4552_vm4, %v12112_v0 }
 0x29b   : > { %v12147_v29 = vadd.f32 %v7823_v10, %v11922_v14  ;;  %v7616_v52 = vadd.f32 %v7445_v16, %v7444_v28  ;;  %v7523_v31 = vmul.f32 %v7211_v39, %v13923_v33  ;;  %5630 = vmatpush1.bf16.msra.mxu1 %v11181_v19  ;;  %v13924_v14 = vld [vmem:[#allocation68_spill] sm:$0xff]  ;;  %v13928_v39 = vld [vmem:[#allocation73_spill] sm:$0xff] }
 0x29c   : > { %5679 = vmatpush1.bf16.msra.mxu0 %v11181_v19  ;;  %5631 = vmatprep.subr.bf16.mxu1 %v13921_v32 }
 0x29d   : > { %v7756_v2 = vadd.f32 %v7616_v52, %v7612_v35  ;;  %v7617_v43 = vadd.f32 %v7523_v31, %v7522_v20  ;;  %5680 = vmatprep.subr.bf16.mxu0 %v13911_v11 }
 0x29f   : > { %v7824_v25 = vadd.f32 %v7756_v2, %v12040_v36  ;;  %v7757_v63 = vadd.f32 %v7617_v43, %v7613_v59  ;;  %5632 = vmatpush1.bf16.msra.mxu1 %v13918_v61  ;;  %v13927_v59 = vld [vmem:[#allocation25_spill] sm:$0xff] }
 0x2a0   : > { %5681 = vmatpush1.bf16.msra.mxu0 %v13908_v17  ;;  %5633 = vmatprep.subr.bf16.mxu1 %v13924_v14 }
 0x2a1   : > { %v12159_v33 = vadd.f32 %v7824_v25, %v11936_v21  ;;  %v7825_v34 = vadd.f32 %v7757_v63, %v12043_v1  ;;  %5682 = vmatprep.subr.bf16.mxu0 %v11236_v56 }
 0x2a3   : > { %v12164_v35 = vadd.f32 %v7825_v34, %v11942_v3  ;;  %5634 = vmatpush1.bf16.msra.mxu1 %v13921_v32 }
 0x2a4   : > { %5683 = vmatpush1.bf16.msra.mxu0 %v13911_v11  ;;  %5635 = vmatprep.subr.bf16.mxu1 %v11360_v24 }
 0x2a5   : > { %5684 = vmatprep.subr.bf16.mxu0 %v11360_v24  ;;  %v5017_v36 = vpop.f32.mrb[104].mxu1 }
 0x2a6   : > { %v5018_v38 = vadd.f32 %v5017_v36, %v11687_v4  ;;  %v5019_v21 = vpop.f32.mrb[105].mxu1 }
 0x2a7   : > { %v5020_v42 = vadd.f32 %v5019_v21, %v11687_v4  ;;  %v5021_v1 = vpop.f32.mrb[106].mxu1  ;;  %5636 = vmatpush1.bf16.msra.mxu1 %v13924_v14 }
 0x2a8   : > { %v6642_v30 = vmax.f32 %v5018_v38, 0.0  ;;  %v5022_v3 = vadd.f32 %v5021_v1, %v11697_v8  ;;  %5685 = vmatpush1.bf16.msra.mxu0 %v13924_v14  ;;  %v5023_v9 = vpop.f32.mrb[107].mxu1  ;;  %5725 = vmatprep.subr.bf16.mxu1 %v13894_v7 }
 0x2a9   : > { %v6643_v46 = vmax.f32 %v5020_v42, 0.0  ;;  %v5024_v45 = vadd.f32 %v5023_v9, %v11697_v8  ;;  %5686 = vmatprep.subr.bf16.mxu0 %v13925_v22 }
 0x2aa   : > { %v6978_v48 = vmul.f32 %v11718_v54, %v6642_v30  ;;  %v6720_v12 = vmax.f32 %v5022_v3, 0.0  ;;  %5652 = vmatmul.mubr.bf16.vlgmr.msra.gmra.mrb[152].mxu1 %v11867_v5 }
 0x2ab   : > { %v6979_v44 = vmul.f32 %v11718_v54, %v6643_v46  ;;  %v6721_v50 = vmax.f32 %v5024_v45, 0.0  ;;  %5726 = vmatpush1.bf16.msra.mxu1 %v13891_v55  ;;  %8093 = vmatprep.mubr.msk.bf16.mxu1 %vm4552_vm4, %v11887_v51 }
 0x2ac   : > { %v7290_v28 = vmul.f32 %v6978_v48, %v13926_v26  ;;  %v7056_v62 = vmul.f32 %v11721_v23, %v6720_v12  ;;  %5687 = vmatpush1.bf16.msra.mxu0 %v11360_v24  ;;  %5727 = vmatprep.subr.bf16.mxu1 %v13897_v47 }
 0x2ad   : > { %v7291_v10 = vmul.f32 %v6979_v44, %v13927_v59  ;;  %v7057_v16 = vmul.f32 %v11721_v23, %v6721_v50  ;;  %5688 = vmatprep.subr.bf16.mxu0 %v13928_v39  ;;  %v5027_v20 = vpop.f32.mrb[108].mxu1  ;;  %v5070_v52 = vpop.f32.mrb[116].mxu0 }
 0x2ae   : > { %v7368_v55 = vmul.f32 %v7056_v62, %v13926_v26  ;;  %v5028_v31 = vadd.f32 %v5027_v20, %v11703_v53  ;;  %v5071_v2 = vadd.f32 %v5070_v52, %v11687_v4  ;;  %v5029_v43 = vpop.f32.mrb[109].mxu1  ;;  %v5072_v25 = vpop.f32.mrb[117].mxu0 }
 0x2af   : > { %v7618_v63 = vadd.f32 %v7291_v10, %v7290_v28  ;;  %v7369_v34 = vmul.f32 %v7057_v16, %v13927_v59  ;;  %v5030_v36 = vadd.f32 %v5029_v43, %v11703_v53  ;;  %v5073_v38 = vadd.f32 %v5072_v25, %v11687_v4  ;;  %v5074_v21 = vpop.f32.mrb[118].mxu0  ;;  %5728 = vmatpush1.bf16.msra.mxu1 %v13894_v7  ;;  %v5031_v42 = vpop.f32.mrb[110].mxu1 }
 0x2b0   : > { %v6798_v1 = vmax.f32 %v5028_v31, 0.0  ;;  %v6644_v30 = vmax.f32 %v5071_v2, 0.0  ;;  %v5075_v3 = vadd.f32 %v5074_v21, %v11697_v8  ;;  %5689 = vmatpush1.bf16.msra.mxu0 %v13925_v22  ;;  %v5076_v9 = vpop.f32.mrb[119].mxu0  ;;  %5729 = vmatprep.subr.bf16.mxu1 %v13898_v37  ;;  %v5032_v46 = vadd.f32 %v5031_v42, %v11707_v41  ;;  %v5033_v45 = vpop.f32.mrb[111].mxu1  ;;  %v13929_v2 = vld [vmem:[#allocation18_spill] sm:$0xff] }
 0x2b1   : > { %v7619_v48 = vadd.f32 %v7369_v34, %v7368_v55  ;;  %v6799_v12 = vmax.f32 %v5030_v36, 0.0  ;;  %v6645_v44 = vmax.f32 %v5073_v38, 0.0  ;;  %v5077_v50 = vadd.f32 %v5076_v9, %v11697_v8  ;;  %5778 = vmatprep.subr.bf16.mxu0 %v13898_v37  ;;  %v13930_v36 = vld [vmem:[#allocation19_spill] sm:$0xff] }
 0x2b2   : > { %v7134_v7 = vmul.f32 %v11747_v18, %v6798_v1  ;;  %v6980_v28 = vmul.f32 %v11718_v54, %v6644_v30  ;;  %v6722_v62 = vmax.f32 %v5075_v3, 0.0  ;;  %5662 = vmatmul.mubr.bf16.gmra.mrb[156].mxu1 %v11913_v27  ;;  %v6876_v10 = vmax.f32 %v5032_v46, 0.0 }
 0x2b3   : > { %v7135_v16 = vmul.f32 %v11747_v18, %v6799_v12  ;;  %v6981_v20 = vmul.f32 %v11718_v54, %v6645_v44  ;;  %v6723_v52 = vmax.f32 %v5077_v50, 0.0  ;;  %5705 = vmatmul.mubr.bf16.vlgmr.msra.gmra.mrb[164].mxu0 %v11867_v5  ;;  %5730 = vmatpush1.bf16.msra.mxu1 %v13897_v47  ;;  %v5034_v55 = vadd.f32 %v5033_v45, %v11707_v41 }
 0x2b4   : > { %v7446_v31 = vmul.f32 %v7134_v7, %v13926_v26  ;;  %v7292_v43 = vmul.f32 %v6980_v28, %v13929_v2  ;;  %v7058_v25 = vmul.f32 %v11721_v23, %v6722_v62  ;;  %5779 = vmatpush1.bf16.msra.mxu0 %v13897_v47  ;;  %5731 = vmatprep.subr.bf16.mxu1 %v11236_v56 }
 0x2b5   : > { %v7447_v34 = vmul.f32 %v7135_v16, %v13927_v59  ;;  %v7293_v38 = vmul.f32 %v6981_v20, %v13930_v36  ;;  %v7059_v21 = vmul.f32 %v11721_v23, %v6723_v52  ;;  %5780 = vmatprep.subr.bf16.mxu0 %v13899_v49  ;;  %v5080_v42 = vpop.f32.mrb[120].mxu0  ;;  %8095 = vmatprep.mubr.msk.bf16.mxu0 %vm4552_vm4, %v11887_v51  ;;  %v6877_v1 = vmax.f32 %v5034_v55, 0.0 }
 0x2b6   : > { %v7370_v30 = vmul.f32 %v7058_v25, %v13929_v2  ;;  %v5081_v3 = vadd.f32 %v5080_v42, %v11703_v53  ;;  %v5082_v47 = vpop.f32.mrb[121].mxu0  ;;  %v7212_v9 = vmul.f32 %v11759_v58, %v6876_v10  ;;  %8096 = vmatprep.mubr.msk.bf16.mxu1 %vm4552_vm4, %v12112_v0 }
 0x2b7   : > { %v7620_v46 = vadd.f32 %v7447_v34, %v7446_v31  ;;  %v7622_v45 = vadd.f32 %v7293_v38, %v7292_v43  ;;  %v7371_v12 = vmul.f32 %v7059_v21, %v13930_v36  ;;  %v5083_v44 = vadd.f32 %v5082_v47, %v11703_v53  ;;  %5732 = vmatpush1.bf16.msra.mxu1 %v13911_v11  ;;  %v5084_v50 = vpop.f32.mrb[122].mxu0 }
 0x2b8   : > { %v6800_v7 = vmax.f32 %v5081_v3, 0.0  ;;  %5781 = vmatpush1.bf16.msra.mxu0 %v13898_v37  ;;  %5733 = vmatprep.subr.bf16.mxu1 %v11240_v40  ;;  %v7524_v28 = vmul.f32 %v7212_v9, %v13926_v26  ;;  %v5085_v62 = vadd.f32 %v5084_v50, %v11707_v41  ;;  %v7213_v10 = vmul.f32 %v11759_v58, %v6877_v1  ;;  %v5086_v16 = vpop.f32.mrb[123].mxu0  ;;  %v13931_v9 = vld [vmem:[#allocation62_spill] sm:$0xff] }
 0x2b9   : > { %v12236_v20 = vadd.f32 %v7622_v45, %v7618_v63  ;;  %v7623_v52 = vadd.f32 %v7371_v12, %v7370_v30  ;;  %v6801_v55 = vmax.f32 %v5083_v44, 0.0  ;;  %5782 = vmatprep.subr.bf16.mxu0 %v13901_v13  ;;  %v5087_v31 = vadd.f32 %v5086_v16, %v11707_v41  ;;  %v13933_v44 = vld [vmem:[#allocation79_spill] sm:$0xff] }
 0x2ba   : > { %v7136_v43 = vmul.f32 %v11747_v18, %v6800_v7  ;;  %v6878_v37 = vmax.f32 %v5085_v62, 0.0  ;;  %v7525_v25 = vmul.f32 %v7213_v10, %v13927_v59 }
 0x2bb   : > { %v12242_v34 = vadd.f32 %v7623_v52, %v7619_v48  ;;  %v7137_v26 = vmul.f32 %v11747_v18, %v6801_v55  ;;  %5715 = vmatmul.mubr.bf16.gmra.mrb[168].mxu0 %v11913_v27  ;;  %5734 = vmatpush1.bf16.msra.mxu1 %v11236_v56  ;;  %v6879_v63 = vmax.f32 %v5087_v31, 0.0 }
 0x2bc   : > { %v7448_v38 = vmul.f32 %v7136_v43, %v13929_v2  ;;  %5783 = vmatpush1.bf16.msra.mxu0 %v13899_v49  ;;  %5735 = vmatprep.subr.bf16.mxu1 %v13914_v60  ;;  %v7214_v21 = vmul.f32 %v11759_v58, %v6878_v37  ;;  %v7621_v42 = vadd.f32 %v7525_v25, %v7524_v28  ;;  %v13935_v43 = vld [vmem:[#allocation95_spill] sm:$0xff] }
 0x2bd   : > { %v7449_v59 = vmul.f32 %v7137_v26, %v13930_v36  ;;  %5784 = vmatprep.subr.bf16.mxu0 %v13914_v60  ;;  %v7215_v48 = vmul.f32 %v11759_v58, %v6879_v63  ;;  %8098 = vmatprep.mubr.msk.bf16.mxu0 %vm4552_vm4, %v12112_v0 }
 0x2be   : > { %v7526_v1 = vmul.f32 %v7214_v21, %v13929_v2  ;;  %v13932_v2 = vld [vmem:[#allocation74_spill] sm:$0xff] }
 0x2bf   : > { %v7624_v30 = vadd.f32 %v7449_v59, %v7448_v38  ;;  %5736 = vmatpush1.bf16.msra.mxu1 %v11240_v40  ;;  %v7527_v3 = vmul.f32 %v7215_v48, %v13930_v36  ;;  %v13934_v36 = vld [vmem:[#allocation94_spill] sm:$0xff]  ;;  %v13936_v38 = vld [vmem:[#allocation28_spill] sm:$0xff]  ;;  %v13937_v59 = vld [vmem:[#allocation29_spill] sm:$0xff] }
 0x2c0   : > { %5785 = vmatpush1.bf16.msra.mxu0 %v11240_v40  ;;  %5737 = vmatprep.subr.bf16.mxu1 %v13928_v39 }
 0x2c1   : > { %v12261_v47 = vadd.f32 %v7624_v30, %v7620_v46  ;;  %5786 = vmatprep.subr.bf16.mxu0 %v13931_v9  ;;  %v7625_v45 = vadd.f32 %v7527_v3, %v7526_v1  ;;  %v13938_v1 = vld [vmem:[#allocation81_spill] sm:$0xff] }
 0x2c3   : > { %v12264_v12 = vadd.f32 %v7625_v45, %v7621_v42  ;;  %5738 = vmatpush1.bf16.msra.mxu1 %v13925_v22 }
 0x2c4   : > { %5787 = vmatpush1.bf16.msra.mxu0 %v13914_v60  ;;  %5739 = vmatprep.subr.bf16.mxu1 %v13932_v2 }
 0x2c5   : > { %5788 = vmatprep.subr.bf16.mxu0 %v13933_v44 }
 0x2c7   : > { %5740 = vmatpush1.bf16.msra.mxu1 %v13928_v39 }
 0x2c8   : > { %5789 = vmatpush1.bf16.msra.mxu0 %v13931_v9  ;;  %5741 = vmatprep.subr.bf16.mxu1 %v13934_v36 }
 0x2c9   : > { %5790 = vmatprep.subr.bf16.mxu0 %v13934_v36  ;;  %v5123_v46 = vpop.f32.mrb[112].mxu1 }
 0x2ca   : > { %v5124_v50 = vadd.f32 %v5123_v46, %v11687_v4  ;;  %v5125_v7 = vpop.f32.mrb[113].mxu1 }
 0x2cb   : > { %v5126_v28 = vadd.f32 %v5125_v7, %v11687_v4  ;;  %v5127_v62 = vpop.f32.mrb[114].mxu1  ;;  %5742 = vmatpush1.bf16.msra.mxu1 %v13932_v2 }
 0x2cc   : > { %v6646_v10 = vmax.f32 %v5124_v50, 0.0  ;;  %v5128_v16 = vadd.f32 %v5127_v62, %v11697_v8  ;;  %5791 = vmatpush1.bf16.msra.mxu0 %v13932_v2  ;;  %v5129_v52 = vpop.f32.mrb[115].mxu1  ;;  %5831 = vmatprep.subr.bf16.mxu1 %v13901_v13 }
 0x2cd   : > { %v6647_v55 = vmax.f32 %v5126_v28, 0.0  ;;  %v5130_v31 = vadd.f32 %v5129_v52, %v11697_v8  ;;  %5792 = vmatprep.subr.bf16.mxu0 %v13935_v43 }
 0x2ce   : > { %v6982_v37 = vmul.f32 %v11718_v54, %v6646_v10  ;;  %v6724_v25 = vmax.f32 %v5128_v16, 0.0  ;;  %5758 = vmatmul.mubr.bf16.vlgmr.msra.gmra.mrb[160].mxu1 %v11867_v5 }
 0x2cf   : > { %v6983_v26 = vmul.f32 %v11718_v54, %v6647_v55  ;;  %v6725_v63 = vmax.f32 %v5130_v31, 0.0  ;;  %5832 = vmatpush1.bf16.msra.mxu1 %v13899_v49  ;;  %8097 = vmatprep.mubr.msk.bf16.mxu1 %vm4552_vm4, %v11887_v51 }
 0x2d0   : > { %v7294_v21 = vmul.f32 %v6982_v37, %v13936_v38  ;;  %v7060_v42 = vmul.f32 %v11721_v23, %v6724_v25  ;;  %5793 = vmatpush1.bf16.msra.mxu0 %v13934_v36  ;;  %5833 = vmatprep.subr.bf16.mxu1 %v13905_v15 }
 0x2d1   : > { %v7295_v48 = vmul.f32 %v6983_v26, %v13937_v59  ;;  %v7061_v5 = vmul.f32 %v11721_v23, %v6725_v63  ;;  %5794 = vmatprep.subr.bf16.mxu0 %v13938_v1  ;;  %v5133_v30 = vpop.f32.mrb[116].mxu1  ;;  %v5176_v3 = vpop.f32.mrb[124].mxu0 }
 0x2d2   : > { %v7372_v49 = vmul.f32 %v7060_v42, %v13936_v38  ;;  %v5134_v51 = vadd.f32 %v5133_v30, %v11703_v53  ;;  %v5177_v45 = vadd.f32 %v5176_v3, %v11687_v4  ;;  %v5135_v46 = vpop.f32.mrb[117].mxu1  ;;  %v5178_v50 = vpop.f32.mrb[125].mxu0 }
 0x2d3   : > { %v12298_v7 = vadd.f32 %v7295_v48, %v7294_v21  ;;  %v7373_v28 = vmul.f32 %v7061_v5, %v13937_v59  ;;  %v5136_v62 = vadd.f32 %v5135_v46, %v11703_v53  ;;  %v5179_v10 = vadd.f32 %v5178_v50, %v11687_v4  ;;  %v5180_v16 = vpop.f32.mrb[126].mxu0  ;;  %5834 = vmatpush1.bf16.msra.mxu1 %v13901_v13  ;;  %v5137_v52 = vpop.f32.mrb[118].mxu1 }
 0x2d4   : > { %v6802_v55 = vmax.f32 %v5134_v51, 0.0  ;;  %v6648_v31 = vmax.f32 %v5177_v45, 0.0  ;;  %v5181_v37 = vadd.f32 %v5180_v16, %v11697_v8  ;;  %5795 = vmatpush1.bf16.msra.mxu0 %v13935_v43  ;;  %v5182_v25 = vpop.f32.mrb[127].mxu0  ;;  %5835 = vmatprep.subr.bf16.mxu1 %v11177_v57  ;;  %v5138_v26 = vadd.f32 %v5137_v52, %v11707_v41  ;;  %v5139_v63 = vpop.f32.mrb[119].mxu1 }
 0x2d5   : > { %v7627_v21 = vadd.f32 %v7373_v28, %v7372_v49  ;;  %v6803_v42 = vmax.f32 %v5136_v62, 0.0  ;;  %v6649_v48 = vmax.f32 %v5179_v10, 0.0  ;;  %v5183_v5 = vadd.f32 %v5182_v25, %v11697_v8  ;;  %5884 = vmatprep.subr.bf16.mxu0 %v11177_v57  ;;  %v12318_v49 = vld [vmem:[%s13553_s4] ss:$8 sps:$4 sm:$0xff]  }
 0x2d6   : > { %v7138_v13 = vmul.f32 %v11747_v18, %v6802_v55  ;;  %v6984_v30 = vmul.f32 %v11718_v54, %v6648_v31  ;;  %v6726_v3 = vmax.f32 %v5181_v37, 0.0  ;;  %5768 = vmatmul.mubr.bf16.gmra.mrb[164].mxu1 %v11913_v27  ;;  %v6880_v51 = vmax.f32 %v5138_v26, 0.0  ;;  %v13939_v27 = vld [vmem:[#allocation22_spill] sm:$0xff]  ;;  %v13940_v55 = vld [vmem:[#allocation23_spill] sm:$0xff] }
 0x2d7   : > { %v7139_v45 = vmul.f32 %v11747_v18, %v6803_v42  ;;  %v6985_v46 = vmul.f32 %v11718_v54, %v6649_v48  ;;  %v6727_v50 = vmax.f32 %v5183_v5, 0.0  ;;  %5811 = vmatmul.mubr.bf16.vlgmr.msra.gmra.mrb[172].mxu0 %v12318_v49  ;;  %5836 = vmatpush1.bf16.msra.mxu1 %v13905_v15  ;;  %v5140_v28 = vadd.f32 %v5139_v63, %v11707_v41 }
 0x2d8   : > { %v7450_v62 = vmul.f32 %v7138_v13, %v13936_v38  ;;  %v7296_v10 = vmul.f32 %v6984_v30, %v13939_v27  ;;  %v7062_v16 = vmul.f32 %v11721_v23, %v6726_v3  ;;  %5885 = vmatpush1.bf16.msra.mxu0 %v13905_v15  ;;  %5837 = vmatprep.subr.bf16.mxu1 %v13933_v44  ;;  %v12338_v15 = vld [vmem:[%s13553_s4 + $0x14] ss:$8 sps:$4 sm:$0xff]  }
 0x2d9   : > { %v7451_v52 = vmul.f32 %v7139_v45, %v13937_v59  ;;  %v7297_v31 = vmul.f32 %v6985_v46, %v13940_v55  ;;  %v7063_v37 = vmul.f32 %v11721_v23, %v6727_v50  ;;  %5886 = vmatprep.subr.bf16.mxu0 %v11181_v19  ;;  %v5186_v25 = vpop.f32.mrb[128].mxu0  ;;  %v7216_v26 = vmul.f32 %v11759_v58, %v6880_v51 }
 0x2da   : > { %v7374_v63 = vmul.f32 %v7062_v16, %v13939_v27  ;;  %v5187_v42 = vadd.f32 %v5186_v25, %v11703_v53  ;;  %v5188_v48 = vpop.f32.mrb[129].mxu0  ;;  %v6881_v5 = vmax.f32 %v5140_v28, 0.0  ;;  %8099 = vmatprep.mubr.msk.bf16.mxu0 %vm4552_vm4, %v12338_v15  ;;  %8100 = vmatprep.mubr.msk.bf16.mxu1 %vm4552_vm4, %v12112_v0 }
 0x2db   : > { %v7628_v13 = vadd.f32 %v7451_v52, %v7450_v62  ;;  %v7630_v30 = vadd.f32 %v7297_v31, %v7296_v10  ;;  %v7375_v3 = vmul.f32 %v7063_v37, %v13940_v55  ;;  %v5189_v51 = vadd.f32 %v5188_v48, %v11703_v53  ;;  %v5190_v45 = vpop.f32.mrb[130].mxu0  ;;  %5838 = vmatpush1.bf16.msra.mxu1 %v13931_v9 }
 0x2dc   : > { %v6804_v46 = vmax.f32 %v5187_v42, 0.0  ;;  %v7528_v50 = vmul.f32 %v7216_v26, %v13936_v38  ;;  %v5191_v28 = vadd.f32 %v5190_v45, %v11707_v41  ;;  %5887 = vmatpush1.bf16.msra.mxu0 %v11177_v57  ;;  %v7217_v16 = vmul.f32 %v11759_v58, %v6881_v5  ;;  %v5192_v25 = vpop.f32.mrb[131].mxu0  ;;  %5839 = vmatprep.subr.bf16.mxu1 %v13918_v61 }
 0x2dd   : > { %v7762_v62 = vadd.f32 %v7630_v30, %v12298_v7  ;;  %v7631_v10 = vadd.f32 %v7375_v3, %v7374_v63  ;;  %v6805_v52 = vmax.f32 %v5189_v51, 0.0  ;;  %v5193_v31 = vadd.f32 %v5192_v25, %v11707_v41  ;;  %5888 = vmatprep.subr.bf16.mxu0 %v13908_v17  ;;  %v12364_v7 = vld [vmem:[%s13553_s4 + $0x10] ss:$8 sps:$4 sm:$0xff]  }
 0x2de   : > { %v7140_v37 = vmul.f32 %v11747_v18, %v6804_v46  ;;  %v6882_v38 = vmax.f32 %v5191_v28, 0.0  ;;  %v7529_v26 = vmul.f32 %v7217_v16, %v13937_v59 }
 0x2df   : > { %v12358_v57 = vadd.f32 %v7762_v62, %v12236_v20  ;;  %v7763_v42 = vadd.f32 %v7631_v10, %v7627_v21  ;;  %v7141_v48 = vmul.f32 %v11747_v18, %v6805_v52  ;;  %v6883_v5 = vmax.f32 %v5193_v31, 0.0  ;;  %5821 = vmatmul.mubr.bf16.gmra.mrb[176].mxu0 %v12364_v7  ;;  %5840 = vmatpush1.bf16.msra.mxu1 %v13933_v44 }
 0x2e0   : > { %v7452_v63 = vmul.f32 %v7140_v37, %v13939_v27  ;;  %v7218_v59 = vmul.f32 %v11759_v58, %v6882_v38  ;;  %v7629_v30 = vadd.f32 %v7529_v26, %v7528_v50  ;;  %5889 = vmatpush1.bf16.msra.mxu0 %v11181_v19  ;;  %5841 = vmatprep.subr.bf16.mxu1 %v13921_v32 }
 0x2e1   : > { %v12373_v20 = vadd.f32 %v7763_v42, %v12242_v34  ;;  %v7453_v21 = vmul.f32 %v7141_v48, %v13940_v55  ;;  %v7219_v3 = vmul.f32 %v11759_v58, %v6883_v5  ;;  %5890 = vmatprep.subr.bf16.mxu0 %v13921_v32  ;;  %8102 = vmatprep.mubr.msk.bf16.mxu0 %vm4552_vm4, %v12112_v0  ;;  %v13943_v42 = vld [vmem:[#allocation44_spill] sm:$0xff] }
 0x2e2   : > { %v7530_v51 = vmul.f32 %v7218_v59, %v13939_v27  ;;  %v13941_v27 = vld [vmem:[#allocation82_spill] sm:$0xff] }
 0x2e3   : > { %v7632_v45 = vadd.f32 %v7453_v21, %v7452_v63  ;;  %v7531_v46 = vmul.f32 %v7219_v3, %v13940_v55  ;;  %5842 = vmatpush1.bf16.msra.mxu1 %v13918_v61 }
 0x2e4   : > { %5891 = vmatpush1.bf16.msra.mxu0 %v13918_v61  ;;  %5843 = vmatprep.subr.bf16.mxu1 %v13938_v1 }
 0x2e5   : > { %v7764_v34 = vadd.f32 %v7632_v45, %v7628_v13  ;;  %v7633_v50 = vadd.f32 %v7531_v46, %v7530_v51  ;;  %5892 = vmatprep.subr.bf16.mxu0 %v13924_v14  ;;  %v13942_v13 = vld [vmem:[#allocation102_spill] sm:$0xff]  ;;  %v13945_v51 = vld [vmem:[#allocation35_spill] sm:$0xff] }
 0x2e7   : > { %v12387_v28 = vadd.f32 %v7764_v34, %v12261_v47  ;;  %v7765_v16 = vadd.f32 %v7633_v50, %v7629_v30  ;;  %5844 = vmatpush1.bf16.msra.mxu1 %v13935_v43  ;;  %v13944_v30 = vld [vmem:[#allocation34_spill] sm:$0xff]  ;;  %v13946_v34 = vld [vmem:[#allocation88_spill] sm:$0xff] }
 0x2e8   : > { %5893 = vmatpush1.bf16.msra.mxu0 %v13921_v32  ;;  %5845 = vmatprep.subr.bf16.mxu1 %v13941_v27 }
 0x2e9   : > { %v12393_v55 = vadd.f32 %v7765_v16, %v12264_v12  ;;  %5894 = vmatprep.subr.bf16.mxu0 %v11360_v24 }
 0x2eb   : > { %5846 = vmatpush1.bf16.msra.mxu1 %v13938_v1 }
 0x2ec   : > { %5895 = vmatpush1.bf16.msra.mxu0 %v13924_v14  ;;  %5847 = vmatprep.subr.bf16.mxu1 %v13942_v13 }
 0x2ed   : > { %5896 = vmatprep.subr.bf16.mxu0 %v13942_v13  ;;  %v5229_v47 = vpop.f32.mrb[120].mxu1 }
 0x2ee   : > { %v5230_v25 = vadd.f32 %v5229_v47, %v11687_v4  ;;  %v5231_v62 = vpop.f32.mrb[121].mxu1 }
 0x2ef   : > { %v5232_v10 = vadd.f32 %v5231_v62, %v11687_v4  ;;  %v5233_v52 = vpop.f32.mrb[122].mxu1  ;;  %5848 = vmatpush1.bf16.msra.mxu1 %v13941_v27 }
 0x2f0   : > { %v6650_v12 = vmax.f32 %v5230_v25, 0.0  ;;  %v5234_v31 = vadd.f32 %v5233_v52, %v11697_v8  ;;  %5897 = vmatpush1.bf16.msra.mxu0 %v13941_v27  ;;  %v5235_v37 = vpop.f32.mrb[123].mxu1  ;;  %5937 = vmatprep.subr.bf16.mxu1 %v13908_v17 }
 0x2f1   : > { %v6651_v38 = vmax.f32 %v5232_v10, 0.0  ;;  %v5236_v26 = vadd.f32 %v5235_v37, %v11697_v8  ;;  %5898 = vmatprep.subr.bf16.mxu0 %v13943_v42 }
 0x2f2   : > { %v6986_v48 = vmul.f32 %v11718_v54, %v6650_v12  ;;  %v6728_v5 = vmax.f32 %v5234_v31, 0.0  ;;  %5864 = vmatmul.mubr.bf16.vlgmr.msra.gmra.mrb[168].mxu1 %v12318_v49 }
 0x2f3   : > { %v6987_v63 = vmul.f32 %v11718_v54, %v6651_v38  ;;  %v6729_v59 = vmax.f32 %v5236_v26, 0.0  ;;  %5938 = vmatpush1.bf16.msra.mxu1 %v11181_v19  ;;  %8101 = vmatprep.mubr.msk.bf16.mxu1 %vm4552_vm4, %v12338_v15 }
 0x2f4   : > { %v7298_v21 = vmul.f32 %v6986_v48, %v13944_v30  ;;  %v7064_v3 = vmul.f32 %v11721_v23, %v6728_v5  ;;  %5899 = vmatpush1.bf16.msra.mxu0 %v13942_v13  ;;  %5939 = vmatprep.subr.bf16.mxu1 %v13911_v11 }
 0x2f5   : > { %v7299_v45 = vmul.f32 %v6987_v63, %v13945_v51  ;;  %v7065_v46 = vmul.f32 %v11721_v23, %v6729_v59  ;;  %5900 = vmatprep.subr.bf16.mxu0 %v13946_v34  ;;  %v5239_v50 = vpop.f32.mrb[124].mxu1  ;;  %v5282_v16 = vpop.f32.mrb[132].mxu0 }
 0x2f6   : > { %v7376_v19 = vmul.f32 %v7064_v3, %v13944_v30  ;;  %v5240_v47 = vadd.f32 %v5239_v50, %v11703_v53  ;;  %v5283_v25 = vadd.f32 %v5282_v16, %v11687_v4  ;;  %v5241_v62 = vpop.f32.mrb[125].mxu1  ;;  %v5284_v10 = vpop.f32.mrb[133].mxu0 }
 0x2f7   : > { %v7634_v52 = vadd.f32 %v7299_v45, %v7298_v21  ;;  %v7377_v12 = vmul.f32 %v7065_v46, %v13945_v51  ;;  %v5242_v31 = vadd.f32 %v5241_v62, %v11703_v53  ;;  %v5285_v37 = vadd.f32 %v5284_v10, %v11687_v4  ;;  %v5286_v38 = vpop.f32.mrb[134].mxu0  ;;  %5940 = vmatpush1.bf16.msra.mxu1 %v13908_v17  ;;  %v5243_v26 = vpop.f32.mrb[126].mxu1 }
 0x2f8   : > { %v6806_v48 = vmax.f32 %v5240_v47, 0.0  ;;  %v6652_v5 = vmax.f32 %v5283_v25, 0.0  ;;  %v5287_v63 = vadd.f32 %v5286_v38, %v11697_v8  ;;  %5901 = vmatpush1.bf16.msra.mxu0 %v13943_v42  ;;  %v5288_v59 = vpop.f32.mrb[135].mxu0  ;;  %5941 = vmatprep.subr.bf16.mxu1 %v11236_v56  ;;  %v5244_v21 = vadd.f32 %v5243_v26, %v11707_v41  ;;  %v5245_v3 = vpop.f32.mrb[127].mxu1 }
 0x2f9   : > { %v7635_v45 = vadd.f32 %v7377_v12, %v7376_v19  ;;  %v6807_v46 = vmax.f32 %v5242_v31, 0.0  ;;  %v6653_v50 = vmax.f32 %v5285_v37, 0.0  ;;  %v5289_v16 = vadd.f32 %v5288_v59, %v11697_v8  ;;  %5990 = vmatprep.subr.bf16.mxu0 %v11236_v56  ;;  %v13947_v31 = vld [vmem:[#allocation26_spill] sm:$0xff] }
 0x2fa   : > { %v7142_v17 = vmul.f32 %v11747_v18, %v6806_v48  ;;  %v6988_v47 = vmul.f32 %v11718_v54, %v6652_v5  ;;  %v6730_v25 = vmax.f32 %v5287_v63, 0.0  ;;  %5874 = vmatmul.mubr.bf16.gmra.mrb[172].mxu1 %v12364_v7  ;;  %v6884_v62 = vmax.f32 %v5244_v21, 0.0  ;;  %v13948_v63 = vld [vmem:[#allocation27_spill] sm:$0xff] }
 0x2fb   : > { %v7143_v10 = vmul.f32 %v11747_v18, %v6807_v46  ;;  %v6989_v38 = vmul.f32 %v11718_v54, %v6653_v50  ;;  %v6731_v26 = vmax.f32 %v5289_v16, 0.0  ;;  %5917 = vmatmul.mubr.bf16.vlgmr.msra.gmra.mrb[180].mxu0 %v12318_v49  ;;  %5942 = vmatpush1.bf16.msra.mxu1 %v13911_v11  ;;  %v5246_v19 = vadd.f32 %v5245_v3, %v11707_v41 }
 0x2fc   : > { %v7454_v12 = vmul.f32 %v7142_v17, %v13944_v30  ;;  %v7300_v37 = vmul.f32 %v6988_v47, %v13947_v31  ;;  %v7066_v48 = vmul.f32 %v11721_v23, %v6730_v25  ;;  %5991 = vmatpush1.bf16.msra.mxu0 %v13911_v11  ;;  %5943 = vmatprep.subr.bf16.mxu1 %v11360_v24 }
 0x2fd   : > { %v7455_v5 = vmul.f32 %v7143_v10, %v13945_v51  ;;  %v7301_v59 = vmul.f32 %v6989_v38, %v13948_v63  ;;  %v7067_v21 = vmul.f32 %v11721_v23, %v6731_v26  ;;  %5992 = vmatprep.subr.bf16.mxu0 %v11240_v40  ;;  %v5292_v46 = vpop.f32.mrb[136].mxu0  ;;  %8103 = vmatprep.mubr.msk.bf16.mxu0 %vm4552_vm4, %v12338_v15  ;;  %v6885_v3 = vmax.f32 %v5246_v19, 0.0 }
 0x2fe   : > { %v7378_v50 = vmul.f32 %v7066_v48, %v13947_v31  ;;  %v5293_v16 = vadd.f32 %v5292_v46, %v11703_v53  ;;  %v5294_v11 = vpop.f32.mrb[137].mxu0  ;;  %v7220_v17 = vmul.f32 %v11759_v58, %v6884_v62  ;;  %8104 = vmatprep.mubr.msk.bf16.mxu1 %vm4552_vm4, %v12112_v0 }
 0x2ff   : > { %v7636_v47 = vadd.f32 %v7455_v5, %v7454_v12  ;;  %v7638_v25 = vadd.f32 %v7301_v59, %v7300_v37  ;;  %v7379_v10 = vmul.f32 %v7067_v21, %v13948_v63  ;;  %v5295_v38 = vadd.f32 %v5294_v11, %v11703_v53  ;;  %5944 = vmatpush1.bf16.msra.mxu1 %v13924_v14  ;;  %v5296_v26 = vpop.f32.mrb[138].mxu0 }
 0x300   : > { %v6808_v19 = vmax.f32 %v5293_v16, 0.0  ;;  %5993 = vmatpush1.bf16.msra.mxu0 %v11236_v56  ;;  %5945 = vmatprep.subr.bf16.mxu1 %v13925_v22  ;;  %v7532_v48 = vmul.f32 %v7220_v17, %v13944_v30  ;;  %v5297_v62 = vadd.f32 %v5296_v26, %v11707_v41  ;;  %v7221_v46 = vmul.f32 %v11759_v58, %v6885_v3  ;;  %v5298_v12 = vpop.f32.mrb[139].mxu0 }
 0x301   : > { %v12466_v37 = vadd.f32 %v7638_v25, %v7634_v52  ;;  %v7639_v5 = vadd.f32 %v7379_v10, %v7378_v50  ;;  %v6809_v59 = vmax.f32 %v5295_v38, 0.0  ;;  %5994 = vmatprep.subr.bf16.mxu0 %v13914_v60  ;;  %v5299_v21 = vadd.f32 %v5298_v12, %v11707_v41 }
 0x302   : > { %v7144_v16 = vmul.f32 %v11747_v18, %v6808_v19  ;;  %v6886_v56 = vmax.f32 %v5297_v62, 0.0  ;;  %v7533_v11 = vmul.f32 %v7221_v46, %v13945_v51 }
 0x303   : > { %v12472_v14 = vadd.f32 %v7639_v5, %v7635_v45  ;;  %v7145_v30 = vmul.f32 %v11747_v18, %v6809_v59  ;;  %5927 = vmatmul.mubr.bf16.gmra.mrb[184].mxu0 %v12364_v7  ;;  %5946 = vmatpush1.bf16.msra.mxu1 %v11360_v24  ;;  %v6887_v52 = vmax.f32 %v5299_v21, 0.0 }
 0x304   : > { %v7456_v3 = vmul.f32 %v7144_v16, %v13947_v31  ;;  %5995 = vmatpush1.bf16.msra.mxu0 %v11240_v40  ;;  %5947 = vmatprep.subr.bf16.mxu1 %v13928_v39  ;;  %v7222_v50 = vmul.f32 %v11759_v58, %v6886_v56  ;;  %v7637_v17 = vadd.f32 %v7533_v11, %v7532_v48  ;;  %v13951_v11 = vld [vmem:[#allocation108_spill] sm:$0xff] }
 0x305   : > { %v7457_v51 = vmul.f32 %v7145_v30, %v13948_v63  ;;  %5996 = vmatprep.subr.bf16.mxu0 %v13928_v39  ;;  %v7223_v45 = vmul.f32 %v11759_v58, %v6887_v52  ;;  %8106 = vmatprep.mubr.msk.bf16.mxu0 %vm4552_vm4, %v12112_v0  ;;  %v13949_v0 = vld [vmem:[#allocation89_spill] sm:$0xff] }
 0x306   : > { %v7534_v25 = vmul.f32 %v7222_v50, %v13947_v31  ;;  %v13950_v31 = vld [vmem:[#allocation107_spill] sm:$0xff] }
 0x307   : > { %v7640_v10 = vadd.f32 %v7457_v51, %v7456_v3  ;;  %5948 = vmatpush1.bf16.msra.mxu1 %v13925_v22  ;;  %v7535_v38 = vmul.f32 %v7223_v45, %v13948_v63 }
 0x308   : > { %5997 = vmatpush1.bf16.msra.mxu0 %v13925_v22  ;;  %5949 = vmatprep.subr.bf16.mxu1 %v13946_v34 }
 0x309   : > { %v12491_v26 = vadd.f32 %v7640_v10, %v7636_v47  ;;  %5998 = vmatprep.subr.bf16.mxu0 %v13932_v2  ;;  %v7641_v19 = vadd.f32 %v7535_v38, %v7534_v25  ;;  %v13953_v25 = vld [vmem:[#allocation41_spill] sm:$0xff] }
 0x30b   : > { %v12494_v48 = vadd.f32 %v7641_v19, %v7637_v17  ;;  %5950 = vmatpush1.bf16.msra.mxu1 %v13943_v42  ;;  %v13952_v17 = vld [vmem:[#allocation40_spill] sm:$0xff] }
 0x30c   : > { %5999 = vmatpush1.bf16.msra.mxu0 %v13928_v39  ;;  %5951 = vmatprep.subr.bf16.mxu1 %v13949_v0  ;;  %v13954_v19 = vld [vmem:[#allocation96_spill] sm:$0xff] }
 0x30d   : > { %6000 = vmatprep.subr.bf16.mxu0 %v13934_v36 }
 0x30f   : > { %5952 = vmatpush1.bf16.msra.mxu1 %v13946_v34 }
 0x310   : > { %6001 = vmatpush1.bf16.msra.mxu0 %v13932_v2  ;;  %5953 = vmatprep.subr.bf16.mxu1 %v13950_v31 }
 0x311   : > { %6002 = vmatprep.subr.bf16.mxu0 %v13950_v31  ;;  %v5335_v63 = vpop.f32.mrb[128].mxu1 }
 0x312   : > { %v5336_v47 = vadd.f32 %v5335_v63, %v11687_v4  ;;  %v5337_v62 = vpop.f32.mrb[129].mxu1 }
 0x313   : > { %v5338_v46 = vadd.f32 %v5337_v62, %v11687_v4  ;;  %v5339_v12 = vpop.f32.mrb[130].mxu1  ;;  %5954 = vmatpush1.bf16.msra.mxu1 %v13949_v0 }
 0x314   : > { %v6654_v5 = vmax.f32 %v5336_v47, 0.0  ;;  %v5340_v59 = vadd.f32 %v5339_v12, %v11697_v8  ;;  %6003 = vmatpush1.bf16.msra.mxu0 %v13949_v0  ;;  %v5341_v21 = vpop.f32.mrb[131].mxu1  ;;  %6043 = vmatprep.subr.bf16.mxu1 %v13914_v60 }
 0x315   : > { %v6655_v16 = vmax.f32 %v5338_v46, 0.0  ;;  %v5342_v56 = vadd.f32 %v5341_v21, %v11697_v8  ;;  %6004 = vmatprep.subr.bf16.mxu0 %v13951_v11 }
 0x316   : > { %v6990_v30 = vmul.f32 %v11718_v54, %v6654_v5  ;;  %v6732_v52 = vmax.f32 %v5340_v59, 0.0  ;;  %5970 = vmatmul.mubr.bf16.vlgmr.msra.gmra.mrb[176].mxu1 %v12318_v49 }
 0x317   : > { %v6991_v3 = vmul.f32 %v11718_v54, %v6655_v16  ;;  %v6733_v50 = vmax.f32 %v5342_v56, 0.0  ;;  %6044 = vmatpush1.bf16.msra.mxu1 %v11240_v40  ;;  %8105 = vmatprep.mubr.msk.bf16.mxu1 %vm4552_vm4, %v12338_v15 }
 0x318   : > { %v7302_v51 = vmul.f32 %v6990_v30, %v13952_v17  ;;  %v7068_v45 = vmul.f32 %v11721_v23, %v6732_v52  ;;  %6005 = vmatpush1.bf16.msra.mxu0 %v13950_v31  ;;  %6045 = vmatprep.subr.bf16.mxu1 %v13931_v9 }
 0x319   : > { %v7303_v10 = vmul.f32 %v6991_v3, %v13953_v25  ;;  %v7069_v38 = vmul.f32 %v11721_v23, %v6733_v50  ;;  %6006 = vmatprep.subr.bf16.mxu0 %v13954_v19  ;;  %v5345_v63 = vpop.f32.mrb[132].mxu1 }
 0x31a   : > { %v7380_v40 = vmul.f32 %v7068_v45, %v13952_v17  ;;  %v5346_v47 = vadd.f32 %v5345_v63, %v11703_v53  ;;  %v5388_v62 = vpop.f32.mrb[140].mxu0  ;;  %v5347_v46 = vpop.f32.mrb[133].mxu1 }
 0x31b   : > { %v12527_v12 = vadd.f32 %v7303_v10, %v7302_v51  ;;  %v7381_v5 = vmul.f32 %v7069_v38, %v13953_v25  ;;  %v5389_v59 = vadd.f32 %v5388_v62, %v11687_v4  ;;  %v5348_v21 = vadd.f32 %v5347_v46, %v11703_v53  ;;  %v5390_v16 = vpop.f32.mrb[141].mxu0  ;;  %6046 = vmatpush1.bf16.msra.mxu1 %v13914_v60  ;;  %v5349_v56 = vpop.f32.mrb[134].mxu1 }
 0x31c   : > { %v6810_v30 = vmax.f32 %v5346_v47, 0.0  ;;  %v5391_v52 = vadd.f32 %v5390_v16, %v11687_v4  ;;  %v5392_v3 = vpop.f32.mrb[142].mxu0  ;;  %6007 = vmatpush1.bf16.msra.mxu0 %v13951_v11  ;;  %6047 = vmatprep.subr.bf16.mxu1 %v13933_v44  ;;  %v5350_v50 = vadd.f32 %v5349_v56, %v11707_v41  ;;  %v5351_v51 = vpop.f32.mrb[135].mxu1 }
 0x31d   : > { %v7643_v45 = vadd.f32 %v7381_v5, %v7380_v40  ;;  %v6656_v10 = vmax.f32 %v5389_v59, 0.0  ;;  %v6811_v38 = vmax.f32 %v5348_v21, 0.0  ;;  %v5393_v63 = vadd.f32 %v5392_v3, %v11697_v8  ;;  %v5394_v62 = vpop.f32.mrb[143].mxu0  ;;  %6096 = vmatprep.subr.bf16.mxu0 %v13933_v44  ;;  %v13955_v3 = vld [vmem:[#allocation30_spill] sm:$0xff] }
 0x31e   : > { %v7146_v60 = vmul.f32 %v11747_v18, %v6810_v30  ;;  %v6657_v47 = vmax.f32 %v5391_v52, 0.0  ;;  %v5395_v46 = vadd.f32 %v5394_v62, %v11697_v8  ;;  %5980 = vmatmul.mubr.bf16.gmra.mrb[180].mxu1 %v12364_v7  ;;  %v6888_v16 = vmax.f32 %v5350_v50, 0.0 }
 0x31f   : > { %v6992_v31 = vmul.f32 %v11718_v54, %v6656_v10  ;;  %v7147_v56 = vmul.f32 %v11747_v18, %v6811_v38  ;;  %v6734_v40 = vmax.f32 %v5393_v63, 0.0  ;;  %6023 = vmatmul.mubr.bf16.vlgmr.msra.gmra.mrb[188].mxu0 %v12318_v49  ;;  %6048 = vmatpush1.bf16.msra.mxu1 %v13931_v9  ;;  %v5352_v5 = vadd.f32 %v5351_v51, %v11707_v41  ;;  %v13956_v63 = vld [vmem:[#allocation31_spill] sm:$0xff] }
 0x320   : > { %v7458_v59 = vmul.f32 %v7146_v60, %v13952_v17  ;;  %v6993_v21 = vmul.f32 %v11718_v54, %v6657_v47  ;;  %v6735_v30 = vmax.f32 %v5395_v46, 0.0  ;;  %6097 = vmatpush1.bf16.msra.mxu0 %v13931_v9  ;;  %6049 = vmatprep.subr.bf16.mxu1 %v13934_v36  ;;  %v7224_v52 = vmul.f32 %v11759_v58, %v6888_v16 }
 0x321   : > { %v7304_v50 = vmul.f32 %v6992_v31, %v13955_v3  ;;  %v7459_v10 = vmul.f32 %v7147_v56, %v13953_v25  ;;  %v7070_v38 = vmul.f32 %v11721_v23, %v6734_v40  ;;  %6098 = vmatprep.subr.bf16.mxu0 %v13918_v61  ;;  %v6889_v51 = vmax.f32 %v5352_v5, 0.0  ;;  %8107 = vmatprep.mubr.msk.bf16.mxu0 %vm4552_vm4, %v12338_v15  ;;  %v12564_v31 = vld [vmem:[%s13553_s4 + $0x4] ss:$8 sps:$4 sm:$0xff]  }
 0x322   : > { %v7305_v62 = vmul.f32 %v6993_v21, %v13956_v63  ;;  %v7071_v9 = vmul.f32 %v11721_v23, %v6735_v30  ;;  %v5398_v60 = vpop.f32.mrb[144].mxu0  ;;  %v7536_v47 = vmul.f32 %v7224_v52, %v13952_v17  ;;  %8108 = vmatprep.mubr.msk.bf16.mxu1 %vm4552_vm4, %v12564_v31 }
 0x323   : > { %v7644_v46 = vadd.f32 %v7459_v10, %v7458_v59  ;;  %v7382_v16 = vmul.f32 %v7070_v38, %v13955_v3  ;;  %v5399_v56 = vadd.f32 %v5398_v60, %v11703_v53  ;;  %v5400_v40 = vpop.f32.mrb[145].mxu0  ;;  %6050 = vmatpush1.bf16.msra.mxu1 %v13932_v2  ;;  %v7225_v5 = vmul.f32 %v11759_v58, %v6889_v51 }
 0x324   : > { %v7646_v21 = vadd.f32 %v7305_v62, %v7304_v50  ;;  %v7383_v17 = vmul.f32 %v7071_v9, %v13956_v63  ;;  %v5401_v30 = vadd.f32 %v5400_v40, %v11703_v53  ;;  %v5402_v52 = vpop.f32.mrb[146].mxu0  ;;  %6099 = vmatpush1.bf16.msra.mxu0 %v13933_v44  ;;  %6051 = vmatprep.subr.bf16.mxu1 %v13935_v43 }
 0x325   : > { %v6812_v59 = vmax.f32 %v5399_v56, 0.0  ;;  %v5403_v10 = vadd.f32 %v5402_v52, %v11707_v41  ;;  %v7537_v38 = vmul.f32 %v7225_v5, %v13953_v25  ;;  %v5404_v60 = vpop.f32.mrb[147].mxu0  ;;  %6100 = vmatprep.subr.bf16.mxu0 %v13921_v32 }
 0x326   : > { %v7770_v51 = vadd.f32 %v7646_v21, %v12527_v12  ;;  %v7647_v50 = vadd.f32 %v7383_v17, %v7382_v16  ;;  %v6813_v62 = vmax.f32 %v5401_v30, 0.0  ;;  %v5405_v9 = vadd.f32 %v5404_v60, %v11707_v41 }
 0x327   : > { %v7148_v40 = vmul.f32 %v11747_v18, %v6812_v59  ;;  %v6890_v2 = vmax.f32 %v5403_v10, 0.0  ;;  %v7645_v44 = vadd.f32 %v7537_v38, %v7536_v47  ;;  %6033 = vmatmul.mubr.bf16.gmra.mrb[192].mxu0 %v12364_v7  ;;  %6052 = vmatpush1.bf16.msra.mxu1 %v13934_v36 }
 0x328   : > { %v7830_v56 = vadd.f32 %v7770_v51, %v12466_v37  ;;  %v7771_v25 = vadd.f32 %v7647_v50, %v7643_v45  ;;  %v7149_v5 = vmul.f32 %v11747_v18, %v6813_v62  ;;  %v6891_v52 = vmax.f32 %v5405_v9, 0.0  ;;  %6101 = vmatpush1.bf16.msra.mxu0 %v13918_v61  ;;  %6053 = vmatprep.subr.bf16.mxu1 %v13938_v1 }
 0x329   : > { %v7460_v12 = vmul.f32 %v7148_v40, %v13955_v3  ;;  %v7226_v16 = vmul.f32 %v11759_v58, %v6890_v2  ;;  %6102 = vmatprep.subr.bf16.mxu0 %v13938_v1  ;;  %8110 = vmatprep.mubr.msk.bf16.mxu0 %vm4552_vm4, %v12564_v31 }
 0x32a   : > { %v7862_v47 = vadd.f32 %v7830_v56, %v12358_v57  ;;  %v7831_v37 = vadd.f32 %v7771_v25, %v12472_v14  ;;  %v7461_v45 = vmul.f32 %v7149_v5, %v13956_v63  ;;  %v7227_v21 = vmul.f32 %v11759_v58, %v6891_v52  ;;  %v13959_v56 = vld [vmem:[#allocation114_spill] sm:$0xff] }
 0x32b   : > { %v7538_v17 = vmul.f32 %v7226_v16, %v13955_v3  ;;  %6054 = vmatpush1.bf16.msra.mxu1 %v13935_v43  ;;  %v13960_v16 = vld [vmem:[#allocation48_spill] sm:$0xff] }
 0x32c   : > { %v12600_v30 = vadd.f32 %v7862_v47, %v12137_v6  ;;  %v7863_v2 = vadd.f32 %v7831_v37, %v12373_v20  ;;  %v7648_v59 = vadd.f32 %v7461_v45, %v7460_v12  ;;  %v7539_v10 = vmul.f32 %v7227_v21, %v13956_v63  ;;  %6103 = vmatpush1.bf16.msra.mxu0 %v13935_v43  ;;  %v13957_v20 = vld [vmem:[#allocation97_spill] sm:$0xff]  ;;  %v13961_v45 = vld [vmem:[#allocation68_spill] sm:$0xff] }
 0x32d   : > { %6055 = vmatprep.subr.bf16.mxu1 %v13954_v19  ;;  %6104 = vmatprep.subr.bf16.mxu0 %v13941_v27  ;;  %v13962_v21 = vld [vmem:[#allocation49_spill] sm:$0xff] }
 0x32e   : > { %v12608_v14 = vadd.f32 %v7863_v2, %v12147_v29  ;;  %v7772_v57 = vadd.f32 %v7648_v59, %v7644_v46  ;;  %v7649_v3 = vadd.f32 %v7539_v10, %v7538_v17  ;;  %v13963_v59 = vld [vmem:[#allocation103_spill] sm:$0xff] }
 0x32f   : > { %6056 = vmatpush1.bf16.msra.mxu1 %v13951_v11 }
 0x330   : > { %v7832_v6 = vadd.f32 %v7772_v57, %v12491_v26  ;;  %v7773_v38 = vadd.f32 %v7649_v3, %v7645_v44  ;;  %6105 = vmatpush1.bf16.msra.mxu0 %v13938_v1  ;;  %6057 = vmatprep.subr.bf16.mxu1 %v13957_v20  ;;  %v13958_v26 = vld [vmem:[#allocation113_spill] sm:$0xff] }
 0x331   : > { %6106 = vmatprep.subr.bf16.mxu0 %v13942_v13 }
 0x332   : > { %v7864_v63 = vadd.f32 %v7832_v6, %v12387_v28  ;;  %v7833_v60 = vadd.f32 %v7773_v38, %v12494_v48 }
 0x333   : > { %6058 = vmatpush1.bf16.msra.mxu1 %v13954_v19 }
 0x334   : > { %v12619_v29 = vadd.f32 %v7864_v63, %v12159_v33  ;;  %v7865_v46 = vadd.f32 %v7833_v60, %v12393_v55  ;;  %6107 = vmatpush1.bf16.msra.mxu0 %v13941_v27  ;;  %6059 = vmatprep.subr.bf16.mxu1 %v13958_v26 }
 0x335   : > { %6108 = vmatprep.subr.bf16.mxu0 %v13958_v26  ;;  %v5441_v51 = vpop.f32.mrb[136].mxu1 }
 0x336   : > { %v12626_v50 = vadd.f32 %v7865_v46, %v12164_v35  ;;  %v5442_v28 = vadd.f32 %v5441_v51, %v11687_v4  ;;  %v5443_v48 = vpop.f32.mrb[137].mxu1 }
 0x337   : > { %v5444_v62 = vadd.f32 %v5443_v48, %v11687_v4  ;;  %v5445_v9 = vpop.f32.mrb[138].mxu1  ;;  %6060 = vmatpush1.bf16.msra.mxu1 %v13957_v20 }
 0x338   : > { %v6658_v33 = vmax.f32 %v5442_v28, 0.0  ;;  %v5446_v55 = vadd.f32 %v5445_v9, %v11697_v8  ;;  %6109 = vmatpush1.bf16.msra.mxu0 %v13957_v20  ;;  %v5447_v40 = vpop.f32.mrb[139].mxu1  ;;  %6149 = vmatprep.subr.bf16.mxu1 %v13921_v32 }
 0x339   : > { %v6659_v44 = vmax.f32 %v5444_v62, 0.0  ;;  %v5448_v35 = vadd.f32 %v5447_v40, %v11697_v8  ;;  %6110 = vmatprep.subr.bf16.mxu0 %v13959_v56 }
 0x33a   : > { %v6994_v25 = vmul.f32 %v11718_v54, %v6658_v33  ;;  %v6736_v5 = vmax.f32 %v5446_v55, 0.0  ;;  %6076 = vmatmul.mubr.bf16.vlgmr.msra.gmra.mrb[184].mxu1 %v12318_v49 }
 0x33b   : > { %v6995_v52 = vmul.f32 %v11718_v54, %v6659_v44  ;;  %v6737_v12 = vmax.f32 %v5448_v35, 0.0  ;;  %6150 = vmatpush1.bf16.msra.mxu1 %v13918_v61  ;;  %8109 = vmatprep.mubr.msk.bf16.mxu1 %vm4552_vm4, %v12338_v15 }
 0x33c   : > { %v7306_v47 = vmul.f32 %v6994_v25, %v13960_v16  ;;  %v7072_v37 = vmul.f32 %v11721_v23, %v6736_v5  ;;  %6111 = vmatpush1.bf16.msra.mxu0 %v13958_v26  ;;  %6151 = vmatprep.subr.bf16.mxu1 %v13961_v45 }
 0x33d   : > { %v7307_v17 = vmul.f32 %v6995_v52, %v13962_v21  ;;  %v7073_v2 = vmul.f32 %v11721_v23, %v6737_v12  ;;  %6112 = vmatprep.subr.bf16.mxu0 %v13963_v59  ;;  %v5451_v10 = vpop.f32.mrb[140].mxu1 }
 0x33e   : > { %v7384_v61 = vmul.f32 %v7072_v37, %v13960_v16  ;;  %v5452_v57 = vadd.f32 %v5451_v10, %v11703_v53  ;;  %v5494_v3 = vpop.f32.mrb[148].mxu0  ;;  %v5453_v6 = vpop.f32.mrb[141].mxu1 }
 0x33f   : > { %v12651_v38 = vadd.f32 %v7307_v17, %v7306_v47  ;;  %v7385_v63 = vmul.f32 %v7073_v2, %v13962_v21  ;;  %v5495_v60 = vadd.f32 %v5494_v3, %v11687_v4  ;;  %v5454_v46 = vadd.f32 %v5453_v6, %v11703_v53  ;;  %v5496_v51 = vpop.f32.mrb[149].mxu0  ;;  %6152 = vmatpush1.bf16.msra.mxu1 %v13921_v32  ;;  %v5455_v28 = vpop.f32.mrb[142].mxu1 }
 0x340   : > { %v6814_v48 = vmax.f32 %v5452_v57, 0.0  ;;  %v5497_v62 = vadd.f32 %v5496_v51, %v11687_v4  ;;  %v5498_v9 = vpop.f32.mrb[150].mxu0  ;;  %6113 = vmatpush1.bf16.msra.mxu0 %v13959_v56  ;;  %6153 = vmatprep.subr.bf16.mxu1 %v11360_v24  ;;  %v5456_v33 = vadd.f32 %v5455_v28, %v11707_v41  ;;  %v5457_v55 = vpop.f32.mrb[143].mxu1  ;;  %v13965_v28 = vld [vmem:[#allocation37_spill] sm:$0xff] }
 0x341   : > { %v7651_v40 = vadd.f32 %v7385_v63, %v7384_v61  ;;  %v6660_v44 = vmax.f32 %v5495_v60, 0.0  ;;  %v6815_v35 = vmax.f32 %v5454_v46, 0.0  ;;  %v5499_v25 = vadd.f32 %v5498_v9, %v11697_v8  ;;  %v5500_v5 = vpop.f32.mrb[151].mxu0  ;;  %6202 = vmatprep.subr.bf16.mxu0 %v11360_v24  ;;  %v13964_v63 = vld [vmem:[#allocation36_spill] sm:$0xff] }
 0x342   : > { %v7150_v32 = vmul.f32 %v11747_v18, %v6814_v48  ;;  %v6661_v52 = vmax.f32 %v5497_v62, 0.0  ;;  %v5501_v12 = vadd.f32 %v5500_v5, %v11697_v8  ;;  %6086 = vmatmul.mubr.bf16.gmra.mrb[188].mxu1 %v12364_v7  ;;  %v6892_v47 = vmax.f32 %v5456_v33, 0.0 }
 0x343   : > { %v6996_v37 = vmul.f32 %v11718_v54, %v6660_v44  ;;  %v7151_v17 = vmul.f32 %v11747_v18, %v6815_v35  ;;  %v6738_v2 = vmax.f32 %v5499_v25, 0.0  ;;  %6129 = vmatmul.mubr.bf16.vlgmr.msra.gmra.mrb[196].mxu0 %v12318_v49  ;;  %6154 = vmatpush1.bf16.msra.mxu1 %v13961_v45  ;;  %v5458_v10 = vadd.f32 %v5457_v55, %v11707_v41 }
 0x344   : > { %v7462_v61 = vmul.f32 %v7150_v32, %v13960_v16  ;;  %v6997_v57 = vmul.f32 %v11718_v54, %v6661_v52  ;;  %v6739_v3 = vmax.f32 %v5501_v12, 0.0  ;;  %6203 = vmatpush1.bf16.msra.mxu0 %v13961_v45  ;;  %6155 = vmatprep.subr.bf16.mxu1 %v13942_v13  ;;  %v7228_v6 = vmul.f32 %v11759_v58, %v6892_v47 }
 0x345   : > { %v7308_v60 = vmul.f32 %v6996_v37, %v13964_v63  ;;  %v7463_v46 = vmul.f32 %v7151_v17, %v13962_v21  ;;  %v7074_v49 = vmul.f32 %v11721_v23, %v6738_v2  ;;  %6204 = vmatprep.subr.bf16.mxu0 %v13925_v22  ;;  %8111 = vmatprep.mubr.msk.bf16.mxu0 %vm4552_vm4, %v12338_v15  ;;  %v6893_v51 = vmax.f32 %v5458_v10, 0.0 }
 0x346   : > { %v7309_v48 = vmul.f32 %v6997_v57, %v13965_v28  ;;  %v7075_v45 = vmul.f32 %v11721_v23, %v6739_v3  ;;  %v5504_v62 = vpop.f32.mrb[152].mxu0  ;;  %v7540_v9 = vmul.f32 %v7228_v6, %v13960_v16  ;;  %8112 = vmatprep.mubr.msk.bf16.mxu1 %vm4552_vm4, %v12564_v31 }
 0x347   : > { %v7652_v33 = vadd.f32 %v7463_v46, %v7462_v61  ;;  %v7386_v55 = vmul.f32 %v7074_v49, %v13964_v63  ;;  %v5505_v44 = vadd.f32 %v5504_v62, %v11703_v53  ;;  %v5506_v35 = vpop.f32.mrb[153].mxu0  ;;  %6156 = vmatpush1.bf16.msra.mxu1 %v13941_v27  ;;  %v7229_v25 = vmul.f32 %v11759_v58, %v6893_v51 }
 0x348   : > { %v7654_v5 = vadd.f32 %v7309_v48, %v7308_v60  ;;  %v7387_v32 = vmul.f32 %v7075_v45, %v13965_v28  ;;  %v5507_v52 = vadd.f32 %v5506_v35, %v11703_v53  ;;  %6205 = vmatpush1.bf16.msra.mxu0 %v11360_v24  ;;  %6157 = vmatprep.subr.bf16.mxu1 %v13943_v42  ;;  %v5508_v16 = vpop.f32.mrb[154].mxu0  ;;  %v13966_v35 = vld [vmem:[#allocation45_spill] sm:$0xff] }
 0x349   : > { %v6816_v12 = vmax.f32 %v5505_v44, 0.0  ;;  %6206 = vmatprep.subr.bf16.mxu0 %v13928_v39  ;;  %v5509_v47 = vadd.f32 %v5508_v16, %v11707_v41  ;;  %v7541_v37 = vmul.f32 %v7229_v25, %v13962_v21  ;;  %v5510_v17 = vpop.f32.mrb[155].mxu0 }
 0x34a   : > { %v12699_v2 = vadd.f32 %v7654_v5, %v12651_v38  ;;  %v7655_v10 = vadd.f32 %v7387_v32, %v7386_v55  ;;  %v6817_v61 = vmax.f32 %v5507_v52, 0.0  ;;  %v5511_v57 = vadd.f32 %v5510_v17, %v11707_v41 }
 0x34b   : > { %v7152_v24 = vmul.f32 %v11747_v18, %v6816_v12  ;;  %6139 = vmatmul.mubr.bf16.gmra.mrb[200].mxu0 %v12364_v7  ;;  %6158 = vmatpush1.bf16.msra.mxu1 %v13942_v13  ;;  %v6894_v3 = vmax.f32 %v5509_v47, 0.0  ;;  %v7653_v6 = vadd.f32 %v7541_v37, %v7540_v9 }
 0x34c   : > { %v12705_v60 = vadd.f32 %v7655_v10, %v7651_v40  ;;  %v7153_v21 = vmul.f32 %v11747_v18, %v6817_v61  ;;  %6207 = vmatpush1.bf16.msra.mxu0 %v13925_v22  ;;  %6159 = vmatprep.subr.bf16.mxu1 %v13946_v34  ;;  %v6895_v38 = vmax.f32 %v5511_v57, 0.0  ;;  %v13969_v10 = vld [vmem:[#allocation117_spill] sm:$0xff] }
 0x34d   : > { %v7464_v46 = vmul.f32 %v7152_v24, %v13964_v63  ;;  %6208 = vmatprep.subr.bf16.mxu0 %v13946_v34  ;;  %v7230_v49 = vmul.f32 %v11759_v58, %v6894_v3  ;;  %8114 = vmatprep.mubr.msk.bf16.mxu0 %vm4552_vm4, %v12564_v31  ;;  %v12747_v24 = vld [vmem:[%s13553_s4] ss:$8 sps:$4 sm:$0xff]  }
 0x34e   : > { %v7465_v51 = vmul.f32 %v7153_v21, %v13965_v28  ;;  %v7231_v40 = vmul.f32 %v11759_v58, %v6895_v38  ;;  %v13970_v21 = vld [vmem:[#allocation55_spill] sm:$0xff] }
 0x34f   : > { %6160 = vmatpush1.bf16.msra.mxu1 %v13943_v42  ;;  %v7542_v48 = vmul.f32 %v7230_v49, %v13964_v63  ;;  %v13967_v63 = vld [vmem:[#allocation107_spill] sm:$0xff]  ;;  %v13971_v49 = vld [vmem:[#allocation74_spill] sm:$0xff] }
 0x350   : > { %v7656_v45 = vadd.f32 %v7465_v51, %v7464_v46  ;;  %6209 = vmatpush1.bf16.msra.mxu0 %v13943_v42  ;;  %6161 = vmatprep.subr.bf16.mxu1 %v13963_v59  ;;  %v7543_v62 = vmul.f32 %v7231_v40, %v13965_v28  ;;  %v13968_v28 = vld [vmem:[#allocation33_spill] sm:$0xff]  ;;  %v13972_v51 = vld [vmem:[#allocation56_spill] sm:$0xff] }
 0x351   : > { %6210 = vmatprep.subr.bf16.mxu0 %v13949_v0 }
 0x352   : > { %v12723_v9 = vadd.f32 %v7656_v45, %v7652_v33  ;;  %v7657_v55 = vadd.f32 %v7543_v62, %v7542_v48  ;;  %v13973_v45 = vld [vmem:[#allocation109_spill] sm:$0xff] }
 0x353   : > { %6162 = vmatpush1.bf16.msra.mxu1 %v13959_v56 }
 0x354   : > { %v12726_v44 = vadd.f32 %v7657_v55, %v7653_v6  ;;  %6211 = vmatpush1.bf16.msra.mxu0 %v13946_v34  ;;  %6163 = vmatprep.subr.bf16.mxu1 %v13966_v35 }
 0x355   : > { %6212 = vmatprep.subr.bf16.mxu0 %v13967_v63 }
 0x357   : > { %6164 = vmatpush1.bf16.msra.mxu1 %v13963_v59 }
 0x358   : > { %6213 = vmatpush1.bf16.msra.mxu0 %v13949_v0  ;;  %6165 = vmatprep.subr.bf16.mxu1 %v13968_v28 }
 0x359   : > { %6214 = vmatprep.subr.bf16.mxu0 %v13968_v28  ;;  %v5547_v33 = vpop.f32.mrb[144].mxu1 }
 0x35a   : > { %v5548_v25 = vadd.f32 %v5547_v33, %v11687_v4  ;;  %v5549_v5 = vpop.f32.mrb[145].mxu1 }
 0x35b   : > { %v5550_v32 = vadd.f32 %v5549_v5, %v11687_v4  ;;  %v5551_v52 = vpop.f32.mrb[146].mxu1  ;;  %6166 = vmatpush1.bf16.msra.mxu1 %v13966_v35 }
 0x35c   : > { %v6662_v16 = vmax.f32 %v5548_v25, 0.0  ;;  %v5552_v12 = vadd.f32 %v5551_v52, %v11697_v8  ;;  %6215 = vmatpush1.bf16.msra.mxu0 %v13966_v35  ;;  %v5553_v47 = vpop.f32.mrb[147].mxu1  ;;  %6255 = vmatprep.subr.bf16.mxu1 %v13928_v39 }
 0x35d   : > { %v6663_v37 = vmax.f32 %v5550_v32, 0.0  ;;  %v5554_v17 = vadd.f32 %v5553_v47, %v11697_v8  ;;  %6216 = vmatprep.subr.bf16.mxu0 %v13969_v10 }
 0x35e   : > { %v6998_v61 = vmul.f32 %v11718_v54, %v6662_v16  ;;  %v6740_v57 = vmax.f32 %v5552_v12, 0.0  ;;  %6182 = vmatmul.mubr.bf16.vlgmr.msra.gmra.mrb[192].mxu1 %v12747_v24 }
 0x35f   : > { %v6999_v3 = vmul.f32 %v11718_v54, %v6663_v37  ;;  %v6741_v6 = vmax.f32 %v5554_v17, 0.0  ;;  %6256 = vmatpush1.bf16.msra.mxu1 %v13925_v22  ;;  %8113 = vmatprep.mubr.msk.bf16.mxu1 %vm4552_vm4, %v12338_v15 }
 0x360   : > { %v7310_v38 = vmul.f32 %v6998_v61, %v13970_v21  ;;  %v7076_v46 = vmul.f32 %v11721_v23, %v6740_v57  ;;  %6217 = vmatpush1.bf16.msra.mxu0 %v13968_v28  ;;  %6257 = vmatprep.subr.bf16.mxu1 %v13971_v49 }
 0x361   : > { %v7311_v40 = vmul.f32 %v6999_v3, %v13972_v51  ;;  %v7077_v48 = vmul.f32 %v11721_v23, %v6741_v6  ;;  %6218 = vmatprep.subr.bf16.mxu0 %v13973_v45  ;;  %v5557_v62 = vpop.f32.mrb[148].mxu1 }
 0x362   : > { %v7388_v22 = vmul.f32 %v7076_v46, %v13970_v21  ;;  %v5558_v55 = vadd.f32 %v5557_v62, %v11703_v53  ;;  %v5600_v15 = vpop.f32.mrb[156].mxu0  ;;  %v5559_v33 = vpop.f32.mrb[149].mxu1 }
 0x363   : > { %v12763_v25 = vadd.f32 %v7311_v40, %v7310_v38  ;;  %v7389_v5 = vmul.f32 %v7077_v48, %v13972_v51  ;;  %v5601_v32 = vadd.f32 %v5600_v15, %v11687_v4  ;;  %v5560_v52 = vadd.f32 %v5559_v33, %v11703_v53  ;;  %v5602_v16 = vpop.f32.mrb[157].mxu0  ;;  %6258 = vmatpush1.bf16.msra.mxu1 %v13928_v39  ;;  %v5561_v12 = vpop.f32.mrb[150].mxu1 }
 0x364   : > { %v6818_v47 = vmax.f32 %v5558_v55, 0.0  ;;  %v5603_v37 = vadd.f32 %v5602_v16, %v11687_v4  ;;  %v5604_v17 = vpop.f32.mrb[158].mxu0  ;;  %6219 = vmatpush1.bf16.msra.mxu0 %v13969_v10  ;;  %6259 = vmatprep.subr.bf16.mxu1 %v13934_v36  ;;  %v5562_v61 = vadd.f32 %v5561_v12, %v11707_v41  ;;  %v5563_v57 = vpop.f32.mrb[151].mxu1  ;;  %v13974_v12 = vld [vmem:[#allocation42_spill] sm:$0xff] }
 0x365   : > { %v12773_v3 = vadd.f32 %v7389_v5, %v7388_v22  ;;  %v6664_v6 = vmax.f32 %v5601_v32, 0.0  ;;  %v6819_v38 = vmax.f32 %v5560_v52, 0.0  ;;  %v5605_v46 = vadd.f32 %v5604_v17, %v11697_v8  ;;  %v5606_v40 = vpop.f32.mrb[159].mxu0  ;;  %6308 = vmatprep.subr.bf16.mxu0 %v13934_v36 }
 0x366   : > { %v7154_v39 = vmul.f32 %v11747_v18, %v6818_v47  ;;  %v6665_v48 = vmax.f32 %v5603_v37, 0.0  ;;  %v5607_v62 = vadd.f32 %v5606_v40, %v11697_v8  ;;  %6192 = vmatmul.mubr.bf16.gmra.mrb[196].mxu1 %v12364_v7  ;;  %v6896_v55 = vmax.f32 %v5562_v61, 0.0 }
 0x367   : > { %v7000_v15 = vmul.f32 %v11718_v54, %v6664_v6  ;;  %v7155_v22 = vmul.f32 %v11747_v18, %v6819_v38  ;;  %v6742_v33 = vmax.f32 %v5605_v46, 0.0  ;;  %6235 = vmatmul.mubr.bf16.vlgmr.msra.gmra.mrb[204].mxu0 %v12747_v24  ;;  %6260 = vmatpush1.bf16.msra.mxu1 %v13971_v49  ;;  %v5564_v5 = vadd.f32 %v5563_v57, %v11707_v41  ;;  %v12797_v57 = vld [vmem:[%s13553_s4 + $0x14] ss:$8 sps:$4 sm:$0xff]  }
 0x368   : > { %v7466_v32 = vmul.f32 %v7154_v39, %v13970_v21  ;;  %v7001_v52 = vmul.f32 %v11718_v54, %v6665_v48  ;;  %v6743_v16 = vmax.f32 %v5607_v62, 0.0  ;;  %6309 = vmatpush1.bf16.msra.mxu0 %v13971_v49  ;;  %6261 = vmatprep.subr.bf16.mxu1 %v13967_v63  ;;  %v7232_v7 = vmul.f32 %v11759_v58, %v6896_v55  ;;  %v13975_v49 = vld [vmem:[#allocation43_spill] sm:$0xff] }
 0x369   : > { %v7312_v47 = vmul.f32 %v7000_v15, %v13974_v12  ;;  %v7467_v37 = vmul.f32 %v7155_v22, %v13972_v51  ;;  %v7078_v17 = vmul.f32 %v11721_v23, %v6742_v33  ;;  %6310 = vmatprep.subr.bf16.mxu0 %v13935_v43  ;;  %v6897_v61 = vmax.f32 %v5564_v5, 0.0  ;;  %8115 = vmatprep.mubr.msk.bf16.mxu0 %vm4552_vm4, %v12797_v57 }
 0x36a   : > { %v7313_v6 = vmul.f32 %v7001_v52, %v13975_v49  ;;  %v7079_v38 = vmul.f32 %v11721_v23, %v6743_v16  ;;  %v5610_v46 = vpop.f32.mrb[160].mxu0  ;;  %v7544_v40 = vmul.f32 %v7232_v7, %v13970_v21  ;;  %8116 = vmatprep.mubr.msk.bf16.mxu1 %vm4552_vm4, %v12564_v31 }
 0x36b   : > { %v7660_v39 = vadd.f32 %v7467_v37, %v7466_v32  ;;  %v7390_v48 = vmul.f32 %v7078_v17, %v13974_v12  ;;  %v5611_v62 = vadd.f32 %v5610_v46, %v11703_v53  ;;  %v5612_v55 = vpop.f32.mrb[161].mxu0  ;;  %6262 = vmatpush1.bf16.msra.mxu1 %v13949_v0  ;;  %v7233_v15 = vmul.f32 %v11759_v58, %v6897_v61  ;;  %v12823_v46 = vld [vmem:[%s13553_s4 + $0x10] ss:$8 sps:$4 sm:$0xff]  }
 0x36c   : > { %v7662_v22 = vadd.f32 %v7313_v6, %v7312_v47  ;;  %v7391_v33 = vmul.f32 %v7079_v38, %v13975_v49  ;;  %v5613_v5 = vadd.f32 %v5612_v55, %v11703_v53  ;;  %v5614_v52 = vpop.f32.mrb[162].mxu0  ;;  %6311 = vmatpush1.bf16.msra.mxu0 %v13934_v36  ;;  %6263 = vmatprep.subr.bf16.mxu1 %v13951_v11 }
 0x36d   : > { %v6820_v21 = vmax.f32 %v5611_v62, 0.0  ;;  %v5615_v32 = vadd.f32 %v5614_v52, %v11707_v41  ;;  %v7545_v16 = vmul.f32 %v7233_v15, %v13972_v51  ;;  %v5616_v7 = vpop.f32.mrb[163].mxu0  ;;  %6312 = vmatprep.subr.bf16.mxu0 %v13938_v1 }
 0x36e   : > { %v7778_v37 = vadd.f32 %v7662_v22, %v12763_v25  ;;  %v7663_v47 = vadd.f32 %v7391_v33, %v7390_v48  ;;  %v6821_v17 = vmax.f32 %v5613_v5, 0.0  ;;  %v5617_v61 = vadd.f32 %v5616_v7, %v11707_v41 }
 0x36f   : > { %v7156_v6 = vmul.f32 %v11747_v18, %v6820_v21  ;;  %v6898_v38 = vmax.f32 %v5615_v32, 0.0  ;;  %v7661_v36 = vadd.f32 %v7545_v16, %v7544_v40  ;;  %6245 = vmatmul.mubr.bf16.gmra.mrb[208].mxu0 %v12823_v46  ;;  %6264 = vmatpush1.bf16.msra.mxu1 %v13967_v63 }
 0x370   : > { %v12828_v51 = vadd.f32 %v7778_v37, %v12699_v2  ;;  %v7779_v25 = vadd.f32 %v7663_v47, %v12773_v3  ;;  %v7157_v48 = vmul.f32 %v11747_v18, %v6821_v17  ;;  %v6899_v62 = vmax.f32 %v5617_v61, 0.0  ;;  %6313 = vmatpush1.bf16.msra.mxu0 %v13935_v43  ;;  %6265 = vmatprep.subr.bf16.mxu1 %v13954_v19 }
 0x371   : > { %v7468_v40 = vmul.f32 %v7156_v6, %v13974_v12  ;;  %v7234_v55 = vmul.f32 %v11759_v58, %v6898_v38  ;;  %6314 = vmatprep.subr.bf16.mxu0 %v13954_v19  ;;  %8118 = vmatprep.mubr.msk.bf16.mxu0 %vm4552_vm4, %v12564_v31 }
 0x372   : > { %v12840_v2 = vadd.f32 %v7779_v25, %v12705_v60  ;;  %v7469_v3 = vmul.f32 %v7157_v48, %v13975_v49  ;;  %v7235_v15 = vmul.f32 %v11759_v58, %v6899_v62 }
 0x373   : > { %v7546_v22 = vmul.f32 %v7234_v55, %v13974_v12  ;;  %6266 = vmatpush1.bf16.msra.mxu1 %v13951_v11  ;;  %v13976_v12 = vld [vmem:[#allocation110_spill] sm:$0xff]  ;;  %v13979_v55 = vld [vmem:[#allocation63_spill] sm:$0xff] }
 0x374   : > { %v7664_v33 = vadd.f32 %v7469_v3, %v7468_v40  ;;  %v7547_v5 = vmul.f32 %v7235_v15, %v13975_v49  ;;  %6315 = vmatpush1.bf16.msra.mxu0 %v13951_v11  ;;  %6267 = vmatprep.subr.bf16.mxu1 %v13973_v45 }
 0x375   : > { %6316 = vmatprep.subr.bf16.mxu0 %v13957_v20 }
 0x376   : > { %v7780_v52 = vadd.f32 %v7664_v33, %v7660_v39  ;;  %v7665_v60 = vadd.f32 %v7547_v5, %v7546_v22  ;;  %v13977_v39 = vld [vmem:[#allocation38_spill] sm:$0xff]  ;;  %v13980_v22 = vld [vmem:[#allocation64_spill] sm:$0xff] }
 0x377   : > { %6268 = vmatpush1.bf16.msra.mxu1 %v13969_v10 }
 0x378   : > { %v12852_v21 = vadd.f32 %v7780_v52, %v12723_v9  ;;  %v7781_v32 = vadd.f32 %v7665_v60, %v7661_v36  ;;  %6317 = vmatpush1.bf16.msra.mxu0 %v13954_v19  ;;  %6269 = vmatprep.subr.bf16.mxu1 %v13976_v12  ;;  %v13978_v36 = vld [vmem:[#allocation119_spill] sm:$0xff]  ;;  %v13981_v60 = vmov 0  }
 0x379   : > { %6318 = vmatprep.subr.bf16.mxu0 %v13958_v26 }
 0x37a   : > { %v12858_v49 = vadd.f32 %v7781_v32, %v12726_v44 }
 0x37b   : > { %6270 = vmatpush1.bf16.msra.mxu1 %v13973_v45 }
 0x37c   : > { %6319 = vmatpush1.bf16.msra.mxu0 %v13957_v20  ;;  %6271 = vmatprep.subr.bf16.mxu1 %v13977_v39 }
 0x37d   : > { %6320 = vmatprep.subr.bf16.mxu0 %v13977_v39  ;;  %v5653_v9 = vpop.f32.mrb[152].mxu1 }
 0x37e   : > { %v5654_v16 = vadd.f32 %v5653_v9, %v11687_v4  ;;  %v5655_v7 = vpop.f32.mrb[153].mxu1 }
 0x37f   : > { %v5656_v37 = vadd.f32 %v5655_v7, %v11687_v4  ;;  %v5657_v47 = vpop.f32.mrb[154].mxu1  ;;  %6272 = vmatpush1.bf16.msra.mxu1 %v13976_v12 }
 0x380   : > { %v6666_v17 = vmax.f32 %v5654_v16, 0.0  ;;  %v5658_v44 = vadd.f32 %v5657_v47, %v11697_v8  ;;  %6321 = vmatpush1.bf16.msra.mxu0 %v13976_v12  ;;  %v5659_v61 = vpop.f32.mrb[155].mxu1  ;;  %6361 = vmatprep.subr.bf16.mxu1 %v13938_v1 }
 0x381   : > { %v6667_v6 = vmax.f32 %v5656_v37, 0.0  ;;  %v5660_v38 = vadd.f32 %v5659_v61, %v11697_v8  ;;  %6322 = vmatprep.subr.bf16.mxu0 %v13978_v36 }
 0x382   : > { %v7002_v25 = vmul.f32 %v11718_v54, %v6666_v17  ;;  %v6744_v48 = vmax.f32 %v5658_v44, 0.0  ;;  %6288 = vmatmul.mubr.bf16.vlgmr.msra.gmra.mrb[200].mxu1 %v12747_v24 }
 0x383   : > { %v7003_v62 = vmul.f32 %v11718_v54, %v6667_v6  ;;  %v6745_v40 = vmax.f32 %v5660_v38, 0.0  ;;  %6362 = vmatpush1.bf16.msra.mxu1 %v13935_v43  ;;  %8117 = vmatprep.mubr.msk.bf16.mxu1 %vm4552_vm4, %v12797_v57 }
 0x384   : > { %v7314_v3 = vmul.f32 %v7002_v25, %v13979_v55  ;;  %v7080_v15 = vmul.f32 %v11721_v23, %v6744_v48  ;;  %6323 = vmatpush1.bf16.msra.mxu0 %v13977_v39  ;;  %6363 = vmatprep.subr.bf16.mxu1 %v13941_v27 }
 0x385   : > { %v7315_v33 = vmul.f32 %v7003_v62, %v13980_v22  ;;  %v7081_v5 = vmul.f32 %v11721_v23, %v6745_v40  ;;  %v5663_v52 = vpop.f32.mrb[156].mxu1  ;;  %6324 = vmatprep.subr.bf16.mxu0 %v13981_v60 }
 0x386   : > { %v7392_v43 = vmul.f32 %v7080_v15, %v13979_v55  ;;  %v5664_v32 = vadd.f32 %v5663_v52, %v11703_v53  ;;  %v5706_v9 = vpop.f32.mrb[164].mxu0  ;;  %v5665_v16 = vpop.f32.mrb[157].mxu1 }
 0x387   : > { %v12887_v7 = vadd.f32 %v7315_v33, %v7314_v3  ;;  %v7393_v37 = vmul.f32 %v7081_v5, %v13980_v22  ;;  %v5707_v47 = vadd.f32 %v5706_v9, %v11687_v4  ;;  %v5666_v17 = vadd.f32 %v5665_v16, %v11703_v53  ;;  %v5708_v44 = vpop.f32.mrb[165].mxu0  ;;  %6364 = vmatpush1.bf16.msra.mxu1 %v13938_v1  ;;  %v5667_v61 = vpop.f32.mrb[158].mxu1 }
 0x388   : > { %v6822_v6 = vmax.f32 %v5664_v32, 0.0  ;;  %v5709_v38 = vadd.f32 %v5708_v44, %v11687_v4  ;;  %v5710_v25 = vpop.f32.mrb[166].mxu0  ;;  %6325 = vmatpush1.bf16.msra.mxu0 %v13978_v36  ;;  %6365 = vmatprep.subr.bf16.mxu1 %v13942_v13  ;;  %v5668_v48 = vadd.f32 %v5667_v61, %v11707_v41  ;;  %v5669_v62 = vpop.f32.mrb[159].mxu1 }
 0x389   : > { %v7667_v40 = vadd.f32 %v7393_v37, %v7392_v43  ;;  %v6668_v3 = vmax.f32 %v5707_v47, 0.0  ;;  %v6823_v15 = vmax.f32 %v5666_v17, 0.0  ;;  %v5711_v33 = vadd.f32 %v5710_v25, %v11697_v8  ;;  %v5712_v5 = vpop.f32.mrb[167].mxu0  ;;  %6414 = vmatprep.subr.bf16.mxu0 %v13942_v13 }
 0x38a   : > { %v7158_v1 = vmul.f32 %v11747_v18, %v6822_v6  ;;  %v6669_v52 = vmax.f32 %v5709_v38, 0.0  ;;  %v5713_v32 = vadd.f32 %v5712_v5, %v11697_v8  ;;  %6298 = vmatmul.mubr.bf16.gmra.mrb[204].mxu1 %v12823_v46  ;;  %v6900_v9 = vmax.f32 %v5668_v48, 0.0  ;;  %v13982_v38 = vld [vmem:[#allocation50_spill] sm:$0xff] }
 0x38b   : > { %v7004_v16 = vmul.f32 %v11718_v54, %v6668_v3  ;;  %v7159_v44 = vmul.f32 %v11747_v18, %v6823_v15  ;;  %v6746_v43 = vmax.f32 %v5711_v33, 0.0  ;;  %6341 = vmatmul.mubr.bf16.vlgmr.msra.gmra.mrb[212].mxu0 %v12747_v24  ;;  %6366 = vmatpush1.bf16.msra.mxu1 %v13941_v27  ;;  %v5670_v37 = vadd.f32 %v5669_v62, %v11707_v41  ;;  %v13983_v15 = vld [vmem:[#allocation51_spill] sm:$0xff] }
 0x38c   : > { %v7470_v47 = vmul.f32 %v7158_v1, %v13979_v55  ;;  %v7005_v17 = vmul.f32 %v11718_v54, %v6669_v52  ;;  %v6747_v61 = vmax.f32 %v5713_v32, 0.0  ;;  %6415 = vmatpush1.bf16.msra.mxu0 %v13941_v27  ;;  %6367 = vmatprep.subr.bf16.mxu1 %v13958_v26  ;;  %v7236_v6 = vmul.f32 %v11759_v58, %v6900_v9 }
 0x38d   : > { %v7316_v25 = vmul.f32 %v7004_v16, %v13982_v38  ;;  %v7471_v48 = vmul.f32 %v7159_v44, %v13980_v22  ;;  %v7082_v3 = vmul.f32 %v11721_v23, %v6746_v43  ;;  %6416 = vmatprep.subr.bf16.mxu0 %v13943_v42  ;;  %8119 = vmatprep.mubr.msk.bf16.mxu0 %vm4552_vm4, %v12797_v57  ;;  %v6901_v62 = vmax.f32 %v5670_v37, 0.0 }
 0x38e   : > { %v7317_v33 = vmul.f32 %v7005_v17, %v13983_v15  ;;  %v7083_v27 = vmul.f32 %v11721_v23, %v6747_v61  ;;  %v5716_v5 = vpop.f32.mrb[168].mxu0  ;;  %v7548_v1 = vmul.f32 %v7236_v6, %v13979_v55  ;;  %8120 = vmatprep.mubr.msk.bf16.mxu1 %vm4552_vm4, %v12564_v31 }
 0x38f   : > { %v7668_v52 = vadd.f32 %v7471_v48, %v7470_v47  ;;  %v7394_v32 = vmul.f32 %v7082_v3, %v13982_v38  ;;  %v5717_v9 = vadd.f32 %v5716_v5, %v11703_v53  ;;  %v5718_v16 = vpop.f32.mrb[169].mxu0  ;;  %6368 = vmatpush1.bf16.msra.mxu1 %v13957_v20  ;;  %v7237_v44 = vmul.f32 %v11759_v58, %v6901_v62 }
 0x390   : > { %v7670_v43 = vadd.f32 %v7317_v33, %v7316_v25  ;;  %v7395_v37 = vmul.f32 %v7083_v27, %v13983_v15  ;;  %v5719_v17 = vadd.f32 %v5718_v16, %v11703_v53  ;;  %6417 = vmatpush1.bf16.msra.mxu0 %v13942_v13  ;;  %6369 = vmatprep.subr.bf16.mxu1 %v13959_v56  ;;  %v5720_v55 = vpop.f32.mrb[170].mxu0 }
 0x391   : > { %v6824_v47 = vmax.f32 %v5717_v9, 0.0  ;;  %6418 = vmatprep.subr.bf16.mxu0 %v13946_v34  ;;  %v5721_v61 = vadd.f32 %v5720_v55, %v11707_v41  ;;  %v7549_v6 = vmul.f32 %v7237_v44, %v13980_v22  ;;  %v5722_v48 = vpop.f32.mrb[171].mxu0 }
 0x392   : > { %v12935_v3 = vadd.f32 %v7670_v43, %v12887_v7  ;;  %v7671_v25 = vadd.f32 %v7395_v37, %v7394_v32  ;;  %v6825_v62 = vmax.f32 %v5719_v17, 0.0  ;;  %v5723_v33 = vadd.f32 %v5722_v48, %v11707_v41 }
 0x393   : > { %v7160_v13 = vmul.f32 %v11747_v18, %v6824_v47  ;;  %6351 = vmatmul.mubr.bf16.gmra.mrb[216].mxu0 %v12823_v46  ;;  %6370 = vmatpush1.bf16.msra.mxu1 %v13958_v26  ;;  %v6902_v27 = vmax.f32 %v5721_v61, 0.0  ;;  %v7669_v5 = vadd.f32 %v7549_v6, %v7548_v1 }
 0x394   : > { %v12941_v9 = vadd.f32 %v7671_v25, %v7667_v40  ;;  %v7161_v22 = vmul.f32 %v11747_v18, %v6825_v62  ;;  %6419 = vmatpush1.bf16.msra.mxu0 %v13943_v42  ;;  %6371 = vmatprep.subr.bf16.mxu1 %v13963_v59  ;;  %v6903_v7 = vmax.f32 %v5723_v33, 0.0 }
 0x395   : > { %v7472_v32 = vmul.f32 %v7160_v13, %v13982_v38  ;;  %6420 = vmatprep.subr.bf16.mxu0 %v13963_v59  ;;  %v7238_v16 = vmul.f32 %v11759_v58, %v6902_v27  ;;  %8122 = vmatprep.mubr.msk.bf16.mxu0 %vm4552_vm4, %v12564_v31  ;;  %v13984_v27 = vld [vmem:[#allocation69_spill] sm:$0xff] }
 0x396   : > { %v7473_v1 = vmul.f32 %v7161_v22, %v13983_v15  ;;  %v7239_v40 = vmul.f32 %v11759_v58, %v6903_v7  ;;  %v13985_v7 = vld [vmem:[#allocation70_spill] sm:$0xff] }
 0x397   : > { %6372 = vmatpush1.bf16.msra.mxu1 %v13959_v56  ;;  %v7550_v44 = vmul.f32 %v7238_v16, %v13982_v38 }
 0x398   : > { %v7672_v43 = vadd.f32 %v7473_v1, %v7472_v32  ;;  %6421 = vmatpush1.bf16.msra.mxu0 %v13959_v56  ;;  %v7551_v37 = vmul.f32 %v7239_v40, %v13983_v15  ;;  %6373 = vmatprep.subr.bf16.mxu1 %v13981_v60 }
 0x399   : > { %6422 = vmatprep.subr.bf16.mxu0 %v13966_v35 }
 0x39a   : > { %v12959_v17 = vadd.f32 %v7672_v43, %v7668_v52  ;;  %v7673_v55 = vadd.f32 %v7551_v37, %v7550_v44 }
 0x39b   : > { %6374 = vmatpush1.bf16.msra.mxu1 %v13978_v36 }
 0x39c   : > { %v12962_v47 = vadd.f32 %v7673_v55, %v7669_v5  ;;  %6423 = vmatpush1.bf16.msra.mxu0 %v13963_v59  ;;  %6467 = vmatprep.subr.bf16.mxu1 %v13946_v34 }
 0x39d   : > { %6424 = vmatprep.subr.bf16.mxu0 %v13968_v28 }
 0x39e   : > { %6394 = vmatmul.mubr.bf16.vlgmr.msra.gmra.mrb[208].mxu1 %v12747_v24 }
 0x39f   : > { %6468 = vmatpush1.bf16.msra.mxu1 %v13943_v42  ;;  %8121 = vmatprep.mubr.msk.bf16.mxu1 %vm4552_vm4, %v12797_v57 }
 0x3a0   : > { %6425 = vmatpush1.bf16.msra.mxu0 %v13966_v35  ;;  %6469 = vmatprep.subr.bf16.mxu1 %v13949_v0 }
 0x3a1   : > { %6520 = vmatprep.subr.bf16.mxu0 %v13967_v63  ;;  %v5759_v56 = vpop.f32.mrb[160].mxu1 }
 0x3a2   : > { %v5760_v59 = vadd.f32 %v5759_v56, %v11687_v4  ;;  %v5761_v38 = vpop.f32.mrb[161].mxu1 }
 0x3a3   : > { %v5762_v15 = vadd.f32 %v5761_v38, %v11687_v4  ;;  %6447 = vmatmul.mubr.bf16.vlgmr.msra.gmra.mrb[220].mxu0 %v12747_v24  ;;  %v5763_v52 = vpop.f32.mrb[162].mxu1  ;;  %6470 = vmatpush1.bf16.msra.mxu1 %v13946_v34 }
 0x3a4   : > { %v6670_v42 = vmax.f32 %v5760_v59, 0.0  ;;  %v5764_v61 = vadd.f32 %v5763_v52, %v11697_v8  ;;  %6521 = vmatpush1.bf16.msra.mxu0 %v13949_v0  ;;  %v5765_v6 = vpop.f32.mrb[163].mxu1  ;;  %6471 = vmatprep.subr.bf16.mxu1 %v13967_v63 }
 0x3a5   : > { %v6671_v48 = vmax.f32 %v5762_v15, 0.0  ;;  %v5766_v25 = vadd.f32 %v5765_v6, %v11697_v8  ;;  %6522 = vmatprep.subr.bf16.mxu0 %v13951_v11  ;;  %8123 = vmatprep.mubr.msk.bf16.mxu0 %vm4552_vm4, %v12797_v57 }
 0x3a6   : > { %v7006_v62 = vmul.f32 %v11718_v54, %v6670_v42  ;;  %v6748_v33 = vmax.f32 %v5764_v61, 0.0  ;;  %6404 = vmatmul.mubr.bf16.gmra.mrb[212].mxu1 %v12823_v46 }
 0x3a7   : > { %v7007_v34 = vmul.f32 %v11718_v54, %v6671_v48  ;;  %v6749_v13 = vmax.f32 %v5766_v25, 0.0  ;;  %6472 = vmatpush1.bf16.msra.mxu1 %v13949_v0  ;;  %8124 = vmatprep.mubr.msk.bf16.mxu1 %vm4552_vm4, %v12564_v31 }
 0x3a8   : > { %v7318_v5 = vmul.f32 %v7006_v62, %v13984_v27  ;;  %v7084_v22 = vmul.f32 %v11721_v23, %v6748_v33  ;;  %6523 = vmatpush1.bf16.msra.mxu0 %v13967_v63  ;;  %6473 = vmatprep.subr.bf16.mxu1 %v13968_v28 }
 0x3a9   : > { %v7319_v32 = vmul.f32 %v7007_v34, %v13985_v7  ;;  %v7085_v16 = vmul.f32 %v11721_v23, %v6749_v13  ;;  %6524 = vmatprep.subr.bf16.mxu0 %v13954_v19  ;;  %v5769_v1 = vpop.f32.mrb[164].mxu1 }
 0x3aa   : > { %v7396_v0 = vmul.f32 %v7084_v22, %v13984_v27  ;;  %v5770_v40 = vadd.f32 %v5769_v1, %v11703_v53  ;;  %v5812_v31 = vpop.f32.mrb[172].mxu0  ;;  %v5771_v44 = vpop.f32.mrb[165].mxu1  ;;  %v13018_v22 = vld [vmem:[%s13553_s4 + $0x4] ss:$8 sps:$4 sm:$0xff]  }
 0x3ab   : > { %v13000_v43 = vadd.f32 %v7319_v32, %v7318_v5  ;;  %v7397_v37 = vmul.f32 %v7085_v16, %v13985_v7  ;;  %v5813_v63 = vadd.f32 %v5812_v31, %v11687_v4  ;;  %v5772_v55 = vadd.f32 %v5771_v44, %v11703_v53  ;;  %v5814_v56 = vpop.f32.mrb[173].mxu0  ;;  %6457 = vmatmul.mubr.bf16.gmra.mrb[224].mxu0 %v12823_v46  ;;  %v5773_v59 = vpop.f32.mrb[166].mxu1 }
 0x3ac   : > { %v6826_v38 = vmax.f32 %v5770_v40, 0.0  ;;  %v5815_v15 = vadd.f32 %v5814_v56, %v11687_v4  ;;  %v5816_v52 = vpop.f32.mrb[174].mxu0  ;;  %6474 = vmatpush1.bf16.msra.mxu1 %v13966_v35  ;;  %6525 = vmatpush1.bf16.msra.mxu0 %v13951_v11  ;;  %v5774_v42 = vadd.f32 %v5773_v59, %v11707_v41  ;;  %v5775_v61 = vpop.f32.mrb[167].mxu1 }
 0x3ad   : > { %v7675_v6 = vadd.f32 %v7397_v37, %v7396_v0  ;;  %v6672_v48 = vmax.f32 %v5813_v63, 0.0  ;;  %v6827_v25 = vmax.f32 %v5772_v55, 0.0  ;;  %v5817_v62 = vadd.f32 %v5816_v52, %v11697_v8  ;;  %v5818_v33 = vpop.f32.mrb[175].mxu0  ;;  %6475 = vmatprep.subr.bf16.mxu1 %v13969_v10  ;;  %6526 = vmatprep.subr.bf16.mxu0 %v13973_v45  ;;  %v13986_v63 = vld [vmem:[#allocation57_spill] sm:$0xff] }
 0x3ae   : > { %v7162_v34 = vmul.f32 %v11747_v18, %v6826_v38  ;;  %v6673_v13 = vmax.f32 %v5815_v15, 0.0  ;;  %v5819_v35 = vadd.f32 %v5818_v33, %v11697_v8  ;;  %v6904_v5 = vmax.f32 %v5774_v42, 0.0  ;;  %8126 = vmatprep.mubr.msk.bf16.mxu0 %vm4552_vm4, %v13018_v22  ;;  %v13987_v15 = vld [vmem:[#allocation58_spill] sm:$0xff] }
 0x3af   : > { %v7008_v32 = vmul.f32 %v11718_v54, %v6672_v48  ;;  %v7163_v16 = vmul.f32 %v11747_v18, %v6827_v25  ;;  %v6750_v1 = vmax.f32 %v5817_v62, 0.0  ;;  %v5776_v0 = vadd.f32 %v5775_v61, %v11707_v41 }
 0x3b0   : > { %v7474_v40 = vmul.f32 %v7162_v34, %v13984_v27  ;;  %v7009_v31 = vmul.f32 %v11718_v54, %v6673_v13  ;;  %v6751_v44 = vmax.f32 %v5819_v35, 0.0  ;;  %6476 = vmatpush1.bf16.msra.mxu1 %v13968_v28  ;;  %6527 = vmatpush1.bf16.msra.mxu0 %v13969_v10  ;;  %v7240_v37 = vmul.f32 %v11759_v58, %v6904_v5 }
 0x3b1   : > { %v7320_v55 = vmul.f32 %v7008_v32, %v13986_v63  ;;  %v7475_v56 = vmul.f32 %v7163_v16, %v13985_v7  ;;  %v7086_v59 = vmul.f32 %v11721_v23, %v6750_v1  ;;  %6477 = vmatprep.subr.bf16.mxu1 %v13973_v45  ;;  %6528 = vmatprep.subr.bf16.mxu0 %v13976_v12  ;;  %v6905_v38 = vmax.f32 %v5776_v0, 0.0 }
 0x3b2   : > { %v7321_v52 = vmul.f32 %v7009_v31, %v13987_v15  ;;  %v7087_v42 = vmul.f32 %v11721_v23, %v6751_v44  ;;  %v5822_v28 = vpop.f32.mrb[176].mxu0  ;;  %v7552_v61 = vmul.f32 %v7240_v37, %v13984_v27 }
 0x3b3   : > { %v7676_v48 = vadd.f32 %v7475_v56, %v7474_v40  ;;  %v7398_v25 = vmul.f32 %v7086_v59, %v13986_v63  ;;  %v5823_v62 = vadd.f32 %v5822_v28, %v11703_v53  ;;  %v5824_v33 = vpop.f32.mrb[177].mxu0  ;;  %v7241_v34 = vmul.f32 %v11759_v58, %v6905_v38 }
 0x3b4   : > { %v7678_v13 = vadd.f32 %v7321_v52, %v7320_v55  ;;  %v7399_v35 = vmul.f32 %v7087_v42, %v13987_v15  ;;  %v5825_v5 = vadd.f32 %v5824_v33, %v11703_v53  ;;  %v5826_v32 = vpop.f32.mrb[178].mxu0  ;;  %6478 = vmatpush1.bf16.msra.mxu1 %v13969_v10  ;;  %6529 = vmatpush1.bf16.msra.mxu0 %v13973_v45 }
 0x3b5   : > { %v6828_v16 = vmax.f32 %v5823_v62, 0.0  ;;  %v5827_v27 = vadd.f32 %v5826_v32, %v11707_v41  ;;  %v7553_v1 = vmul.f32 %v7241_v34, %v13985_v7  ;;  %v5828_v0 = vpop.f32.mrb[179].mxu0  ;;  %6530 = vmatprep.subr.bf16.mxu0 %v13977_v39  ;;  %6573 = vmatprep.subr.bf16.mxu1 %v13954_v19 }
 0x3b6   : > { %v7786_v40 = vadd.f32 %v7678_v13, %v13000_v43  ;;  %v7679_v31 = vadd.f32 %v7399_v35, %v7398_v25  ;;  %v6829_v44 = vmax.f32 %v5825_v5, 0.0  ;;  %v5829_v37 = vadd.f32 %v5828_v0, %v11707_v41  ;;  %v13989_v0 = vld [vmem:[#allocation76_spill] sm:$0xff] }
 0x3b7   : > { %v7164_v10 = vmul.f32 %v11747_v18, %v6828_v16  ;;  %v6906_v55 = vmax.f32 %v5827_v27, 0.0  ;;  %v7677_v45 = vadd.f32 %v7553_v1, %v7552_v61  ;;  %6500 = vmatmul.mubr.bf16.vlgmr.msra.gmra.mrb[216].mxu1 %v12747_v24  ;;  %v13988_v16 = vld [vmem:[#allocation75_spill] sm:$0xff] }
 0x3b8   : > { %v7838_v56 = vadd.f32 %v7786_v40, %v12935_v3  ;;  %v7787_v7 = vadd.f32 %v7679_v31, %v7675_v6  ;;  %v7165_v59 = vmul.f32 %v11747_v18, %v6829_v44  ;;  %v6907_v38 = vmax.f32 %v5829_v37, 0.0  ;;  %6531 = vmatpush1.bf16.msra.mxu0 %v13976_v12  ;;  %6574 = vmatpush1.bf16.msra.mxu1 %v13951_v11 }
 0x3b9   : > { %v7476_v43 = vmul.f32 %v7164_v10, %v13986_v63  ;;  %v7242_v52 = vmul.f32 %v11759_v58, %v6906_v55  ;;  %6575 = vmatprep.subr.bf16.mxu1 %v13957_v20  ;;  %8125 = vmatprep.mubr.msk.bf16.mxu1 %vm4552_vm4, %v12797_v57 }
 0x3ba   : > { %v13063_v42 = vadd.f32 %v7838_v56, %v12828_v51  ;;  %v7839_v3 = vadd.f32 %v7787_v7, %v12941_v9  ;;  %v7477_v6 = vmul.f32 %v7165_v59, %v13987_v15  ;;  %v7243_v28 = vmul.f32 %v11759_v58, %v6907_v38 }
 0x3bb   : > { %v7554_v11 = vmul.f32 %v7242_v52, %v13986_v63  ;;  %6553 = vmatmul.mubr.bf16.vlgmr.msra.gmra.mrb[228].mxu0 %v12747_v24 }
 0x3bc   : > { %v13071_v61 = vadd.f32 %v7839_v3, %v12840_v2  ;;  %v7680_v25 = vadd.f32 %v7477_v6, %v7476_v43  ;;  %v7555_v62 = vmul.f32 %v7243_v28, %v13987_v15  ;;  %6576 = vmatpush1.bf16.msra.mxu1 %v13954_v19  ;;  %8127 = vmatprep.mubr.msk.bf16.mxu0 %vm4552_vm4, %v12797_v57 }
 0x3bd   : > { %6577 = vmatprep.subr.bf16.mxu1 %v13958_v26 }
 0x3be   : > { %v7788_v51 = vadd.f32 %v7680_v25, %v7676_v48  ;;  %v7681_v9 = vadd.f32 %v7555_v62, %v7554_v11 }
 0x3bf   : > { %6510 = vmatmul.mubr.bf16.gmra.mrb[220].mxu1 %v12823_v46 }
 0x3c0   : > { %v7840_v63 = vadd.f32 %v7788_v51, %v12959_v17  ;;  %v7789_v33 = vadd.f32 %v7681_v9, %v7677_v45  ;;  %6578 = vmatpush1.bf16.msra.mxu1 %v13957_v20  ;;  %8128 = vmatprep.mubr.msk.bf16.mxu1 %vm4552_vm4, %v13018_v22 }
 0x3c1   : > { %6579 = vmatprep.subr.bf16.mxu1 %v13977_v39 }
 0x3c2   : > { %v13085_v19 = vadd.f32 %v7840_v63, %v12852_v21  ;;  %v7841_v2 = vadd.f32 %v7789_v33, %v12962_v47 }
 0x3c3   : > { %6563 = vmatmul.mubr.bf16.gmra.mrb[232].mxu0 %v12823_v46 }
 0x3c4   : > { %v13090_v26 = vadd.f32 %v7841_v2, %v12858_v49  ;;  %6580 = vmatpush1.bf16.msra.mxu1 %v13976_v12 }
 0x3c5   : > { %6581 = vmatprep.subr.bf16.mxu1 %v13978_v36  ;;  %v5865_v20 = vpop.f32.mrb[168].mxu1 }
 0x3c6   : > { %v5866_v17 = vadd.f32 %v5865_v20, %v11687_v4  ;;  %v5867_v22 = vpop.f32.mrb[169].mxu1 }
 0x3c7   : > { %v5868_v15 = vadd.f32 %v5867_v22, %v11687_v4  ;;  %v5869_v48 = vpop.f32.mrb[170].mxu1 }
 0x3c8   : > { %v6674_v21 = vmax.f32 %v5866_v17, 0.0  ;;  %v5870_v34 = vadd.f32 %v5869_v48, %v11697_v8  ;;  %6582 = vmatpush1.bf16.msra.mxu1 %v13977_v39  ;;  %v5871_v47 = vpop.f32.mrb[171].mxu1 }
 0x3c9   : > { %v6675_v13 = vmax.f32 %v5868_v15, 0.0  ;;  %v5872_v49 = vadd.f32 %v5871_v47, %v11697_v8  ;;  %6583 = vmatprep.subr.bf16.mxu1 %v13981_v60 }
 0x3ca   : > { %v7010_v12 = vmul.f32 %v11718_v54, %v6674_v21  ;;  %v6752_v35 = vmax.f32 %v5870_v34, 0.0  ;;  %v13990_v34 = vld [vmem:[#allocation65_spill] sm:$0xff] }
 0x3cb   : > { %v7011_v5 = vmul.f32 %v11718_v54, %v6675_v13  ;;  %v6753_v32 = vmax.f32 %v5872_v49, 0.0 }
 0x3cc   : > { %v7322_v27 = vmul.f32 %v7010_v12, %v13988_v16  ;;  %v7088_v1 = vmul.f32 %v11721_v23, %v6752_v35  ;;  %6584 = vmatpush1.bf16.msra.mxu1 %v13978_v36  ;;  %v13991_v35 = vld [vmem:[#allocation66_spill] sm:$0xff] }
 0x3cd   : > { %v7323_v39 = vmul.f32 %v7011_v5, %v13989_v0  ;;  %v7089_v40 = vmul.f32 %v11721_v23, %v6753_v32  ;;  %v5875_v31 = vpop.f32.mrb[172].mxu1 }
 0x3ce   : > { %v7400_v44 = vmul.f32 %v7088_v1, %v13988_v16  ;;  %v5876_v60 = vadd.f32 %v5875_v31, %v11703_v53  ;;  %v5918_v37 = vpop.f32.mrb[180].mxu0  ;;  %v5877_v10 = vpop.f32.mrb[173].mxu1 }
 0x3cf   : > { %v7682_v55 = vadd.f32 %v7323_v39, %v7322_v27  ;;  %v7401_v45 = vmul.f32 %v7089_v40, %v13989_v0  ;;  %v5919_v56 = vadd.f32 %v5918_v37, %v11687_v4  ;;  %v5878_v7 = vadd.f32 %v5877_v10, %v11703_v53  ;;  %v5920_v59 = vpop.f32.mrb[181].mxu0  ;;  %6606 = vmatmul.mubr.bf16.vlgmr.msra.gmra.mrb[224].mxu1 %v12747_v24  ;;  %v5879_v36 = vpop.f32.mrb[174].mxu1 }
 0x3d0   : > { %v6830_v38 = vmax.f32 %v5876_v60, 0.0  ;;  %v5921_v43 = vadd.f32 %v5920_v59, %v11687_v4  ;;  %v5922_v52 = vpop.f32.mrb[182].mxu0  ;;  %8129 = vmatprep.mubr.msk.bf16.mxu1 %vm4552_vm4, %v12797_v57  ;;  %v5880_v3 = vadd.f32 %v5879_v36, %v11707_v41  ;;  %v5881_v6 = vpop.f32.mrb[175].mxu1 }
 0x3d1   : > { %v7683_v28 = vadd.f32 %v7401_v45, %v7400_v44  ;;  %v6676_v11 = vmax.f32 %v5919_v56, 0.0  ;;  %v6831_v25 = vmax.f32 %v5878_v7, 0.0  ;;  %v5923_v62 = vadd.f32 %v5922_v52, %v11697_v8  ;;  %v5924_v51 = vpop.f32.mrb[183].mxu0 }
 0x3d2   : > { %v7166_v9 = vmul.f32 %v11747_v18, %v6830_v38  ;;  %v6677_v24 = vmax.f32 %v5921_v43, 0.0  ;;  %v5925_v63 = vadd.f32 %v5924_v51, %v11697_v8  ;;  %v6908_v33 = vmax.f32 %v5880_v3, 0.0 }
 0x3d3   : > { %v7012_v2 = vmul.f32 %v11718_v54, %v6676_v11  ;;  %v7167_v20 = vmul.f32 %v11747_v18, %v6831_v25  ;;  %v6754_v57 = vmax.f32 %v5923_v62, 0.0  ;;  %v5882_v17 = vadd.f32 %v5881_v6, %v11707_v41 }
 0x3d4   : > { %v7478_v22 = vmul.f32 %v7166_v9, %v13988_v16  ;;  %v7013_v15 = vmul.f32 %v11718_v54, %v6677_v24  ;;  %v6755_v48 = vmax.f32 %v5925_v63, 0.0  ;;  %v7244_v21 = vmul.f32 %v11759_v58, %v6908_v33 }
 0x3d5   : > { %v7324_v47 = vmul.f32 %v7012_v2, %v13990_v34  ;;  %v7479_v13 = vmul.f32 %v7167_v20, %v13989_v0  ;;  %v7090_v49 = vmul.f32 %v11721_v23, %v6754_v57  ;;  %v6909_v12 = vmax.f32 %v5882_v17, 0.0 }
 0x3d6   : > { %v7325_v5 = vmul.f32 %v7013_v15, %v13991_v35  ;;  %v7091_v32 = vmul.f32 %v11721_v23, %v6755_v48  ;;  %v5928_v27 = vpop.f32.mrb[184].mxu0  ;;  %v7556_v1 = vmul.f32 %v7244_v21, %v13988_v16 }
 0x3d7   : > { %v7684_v39 = vadd.f32 %v7479_v13, %v7478_v22  ;;  %v7402_v40 = vmul.f32 %v7090_v49, %v13990_v34  ;;  %v5929_v31 = vadd.f32 %v5928_v27, %v11703_v53  ;;  %v5930_v44 = vpop.f32.mrb[185].mxu0  ;;  %6616 = vmatmul.mubr.bf16.gmra.mrb[228].mxu1 %v12823_v46  ;;  %v7245_v60 = vmul.f32 %v11759_v58, %v6909_v12 }
 0x3d8   : > { %v7686_v37 = vadd.f32 %v7325_v5, %v7324_v47  ;;  %v7403_v10 = vmul.f32 %v7091_v32, %v13991_v35  ;;  %v5931_v45 = vadd.f32 %v5930_v44, %v11703_v53  ;;  %v5932_v56 = vpop.f32.mrb[186].mxu0 }
 0x3d9   : > { %v6832_v7 = vmax.f32 %v5929_v31, 0.0  ;;  %v5933_v59 = vadd.f32 %v5932_v56, %v11707_v41  ;;  %v7557_v16 = vmul.f32 %v7245_v60, %v13989_v0  ;;  %v5934_v36 = vpop.f32.mrb[187].mxu0  ;;  %v13993_v31 = vld [vmem:[#allocation84_spill] sm:$0xff] }
 0x3da   : > { %v13140_v38 = vadd.f32 %v7686_v37, %v7682_v55  ;;  %v7687_v43 = vadd.f32 %v7403_v10, %v7402_v40  ;;  %v6833_v52 = vmax.f32 %v5931_v45, 0.0  ;;  %v5935_v46 = vadd.f32 %v5934_v36, %v11707_v41 }
 0x3db   : > { %v7168_v3 = vmul.f32 %v11747_v18, %v6832_v7  ;;  %v6910_v6 = vmax.f32 %v5933_v59, 0.0  ;;  %v7685_v11 = vadd.f32 %v7557_v16, %v7556_v1  ;;  %v13992_v1 = vld [vmem:[#allocation83_spill] sm:$0xff] }
 0x3dc   : > { %v13144_v25 = vadd.f32 %v7687_v43, %v7683_v28  ;;  %v7169_v62 = vmul.f32 %v11747_v18, %v6833_v52  ;;  %v6911_v51 = vmax.f32 %v5935_v46, 0.0 }
 0x3dd   : > { %v7480_v9 = vmul.f32 %v7168_v3, %v13990_v34  ;;  %v7246_v0 = vmul.f32 %v11759_v58, %v6910_v6 }
 0x3de   : > { %v7481_v55 = vmul.f32 %v7169_v62, %v13991_v35  ;;  %v7247_v24 = vmul.f32 %v11759_v58, %v6911_v51 }
 0x3df   : > { %v7558_v63 = vmul.f32 %v7246_v0, %v13990_v34 }
 0x3e0   : > { %v7688_v33 = vadd.f32 %v7481_v55, %v7480_v9  ;;  %v7559_v2 = vmul.f32 %v7247_v24, %v13991_v35 }
 0x3e2   : > { %v13153_v20 = vadd.f32 %v7688_v33, %v7684_v39  ;;  %v7689_v28 = vadd.f32 %v7559_v2, %v7558_v63 }
 0x3e4   : > { %v13155_v57 = vadd.f32 %v7689_v28, %v7685_v11 }
 0x3e9   : > { %v5971_v17 = vpop.f32.mrb[176].mxu1 }
 0x3ea   : > { %v5972_v22 = vadd.f32 %v5971_v17, %v11687_v4  ;;  %v5973_v15 = vpop.f32.mrb[177].mxu1 }
 0x3eb   : > { %v5974_v48 = vadd.f32 %v5973_v15, %v11687_v4  ;;  %v5975_v21 = vpop.f32.mrb[178].mxu1 }
 0x3ec   : > { %v6678_v47 = vmax.f32 %v5972_v22, 0.0  ;;  %v5976_v13 = vadd.f32 %v5975_v21, %v11697_v8  ;;  %v5977_v49 = vpop.f32.mrb[179].mxu1 }
 0x3ed   : > { %v6679_v34 = vmax.f32 %v5974_v48, 0.0  ;;  %v5978_v12 = vadd.f32 %v5977_v49, %v11697_v8 }
 0x3ee   : > { %v7014_v35 = vmul.f32 %v11718_v54, %v6678_v47  ;;  %v6756_v5 = vmax.f32 %v5976_v13, 0.0 }
 0x3ef   : > { %v7015_v32 = vmul.f32 %v11718_v54, %v6679_v34  ;;  %v6757_v27 = vmax.f32 %v5978_v12, 0.0  ;;  %v13994_v12 = vld [vmem:[#allocation71_spill] sm:$0xff] }
 0x3f0   : > { %v7326_v39 = vmul.f32 %v7014_v35, %v13992_v1  ;;  %v7092_v40 = vmul.f32 %v11721_v23, %v6756_v5 }
 0x3f1   : > { %v7327_v44 = vmul.f32 %v7015_v32, %v13993_v31  ;;  %v7093_v60 = vmul.f32 %v11721_v23, %v6757_v27  ;;  %v5981_v37 = vpop.f32.mrb[180].mxu1 }
 0x3f2   : > { %v7404_v10 = vmul.f32 %v7092_v40, %v13992_v1  ;;  %v5982_v45 = vadd.f32 %v5981_v37, %v11703_v53  ;;  %v6024_v56 = vpop.f32.mrb[188].mxu0  ;;  %v5983_v7 = vpop.f32.mrb[181].mxu1 }
 0x3f3   : > { %v7690_v59 = vadd.f32 %v7327_v44, %v7326_v39  ;;  %v7405_v16 = vmul.f32 %v7093_v60, %v13993_v31  ;;  %v6025_v36 = vadd.f32 %v6024_v56, %v11687_v4  ;;  %v5984_v43 = vadd.f32 %v5983_v7, %v11703_v53  ;;  %v6026_v52 = vpop.f32.mrb[189].mxu0  ;;  %v5985_v46 = vpop.f32.mrb[182].mxu1  ;;  %v13995_v39 = vld [vmem:[#allocation72_spill] sm:$0xff] }
 0x3f4   : > { %v6834_v3 = vmax.f32 %v5982_v45, 0.0  ;;  %v6027_v6 = vadd.f32 %v6026_v52, %v11687_v4  ;;  %v6028_v11 = vpop.f32.mrb[190].mxu0  ;;  %v5986_v62 = vadd.f32 %v5985_v46, %v11707_v41  ;;  %v5987_v51 = vpop.f32.mrb[183].mxu1 }
 0x3f5   : > { %v7691_v9 = vadd.f32 %v7405_v16, %v7404_v10  ;;  %v6680_v0 = vmax.f32 %v6025_v36, 0.0  ;;  %v6835_v55 = vmax.f32 %v5984_v43, 0.0  ;;  %v6029_v24 = vadd.f32 %v6028_v11, %v11697_v8  ;;  %v6030_v63 = vpop.f32.mrb[191].mxu0 }
 0x3f6   : > { %v7170_v33 = vmul.f32 %v11747_v18, %v6834_v3  ;;  %v6681_v2 = vmax.f32 %v6027_v6, 0.0  ;;  %v6031_v28 = vadd.f32 %v6030_v63, %v11697_v8  ;;  %v6912_v17 = vmax.f32 %v5986_v62, 0.0 }
 0x3f7   : > { %v7016_v22 = vmul.f32 %v11718_v54, %v6680_v0  ;;  %v7171_v15 = vmul.f32 %v11747_v18, %v6835_v55  ;;  %v6758_v48 = vmax.f32 %v6029_v24, 0.0  ;;  %v5988_v21 = vadd.f32 %v5987_v51, %v11707_v41 }
 0x3f8   : > { %v7482_v47 = vmul.f32 %v7170_v33, %v13992_v1  ;;  %v7017_v13 = vmul.f32 %v11718_v54, %v6681_v2  ;;  %v6759_v49 = vmax.f32 %v6031_v28, 0.0  ;;  %v7248_v34 = vmul.f32 %v11759_v58, %v6912_v17 }
 0x3f9   : > { %v7328_v35 = vmul.f32 %v7016_v22, %v13994_v12  ;;  %v7483_v5 = vmul.f32 %v7171_v15, %v13993_v31  ;;  %v7094_v32 = vmul.f32 %v11721_v23, %v6758_v48  ;;  %v6913_v27 = vmax.f32 %v5988_v21, 0.0 }
 0x3fa   : > { %v7329_v40 = vmul.f32 %v7017_v13, %v13995_v39  ;;  %v7095_v44 = vmul.f32 %v11721_v23, %v6759_v49  ;;  %v6034_v60 = vpop.f32.mrb[192].mxu0  ;;  %v7560_v37 = vmul.f32 %v7248_v34, %v13992_v1 }
 0x3fb   : > { %v7692_v10 = vadd.f32 %v7483_v5, %v7482_v47  ;;  %v7406_v45 = vmul.f32 %v7094_v32, %v13994_v12  ;;  %v6035_v56 = vadd.f32 %v6034_v60, %v11703_v53  ;;  %v6036_v7 = vpop.f32.mrb[193].mxu0  ;;  %v7249_v16 = vmul.f32 %v11759_v58, %v6913_v27 }
 0x3fc   : > { %v7694_v36 = vadd.f32 %v7329_v40, %v7328_v35  ;;  %v7407_v43 = vmul.f32 %v7095_v44, %v13995_v39  ;;  %v6037_v52 = vadd.f32 %v6036_v7, %v11703_v53  ;;  %v6038_v46 = vpop.f32.mrb[194].mxu0  ;;  %v13996_v7 = vld [vmem:[#allocation90_spill] sm:$0xff] }
 0x3fd   : > { %v6836_v3 = vmax.f32 %v6035_v56, 0.0  ;;  %v6039_v6 = vadd.f32 %v6038_v46, %v11707_v41  ;;  %v7561_v11 = vmul.f32 %v7249_v16, %v13993_v31  ;;  %v6040_v1 = vpop.f32.mrb[195].mxu0 }
 0x3fe   : > { %v7794_v62 = vadd.f32 %v7694_v36, %v7690_v59  ;;  %v7695_v51 = vadd.f32 %v7407_v43, %v7406_v45  ;;  %v6837_v0 = vmax.f32 %v6037_v52, 0.0  ;;  %v6041_v55 = vadd.f32 %v6040_v1, %v11707_v41  ;;  %v13997_v43 = vld [vmem:[#allocation91_spill] sm:$0xff] }
 0x3ff   : > { %v7172_v24 = vmul.f32 %v11747_v18, %v6836_v3  ;;  %v6914_v63 = vmax.f32 %v6039_v6, 0.0  ;;  %v7693_v33 = vadd.f32 %v7561_v11, %v7560_v37 }
 0x400   : > { %v13199_v2 = vadd.f32 %v7794_v62, %v13140_v38  ;;  %v7795_v28 = vadd.f32 %v7695_v51, %v7691_v9  ;;  %v7173_v17 = vmul.f32 %v11747_v18, %v6837_v0  ;;  %v6915_v22 = vmax.f32 %v6041_v55, 0.0 }
 0x401   : > { %v7484_v15 = vmul.f32 %v7172_v24, %v13994_v12  ;;  %v7250_v31 = vmul.f32 %v11759_v58, %v6914_v63 }
 0x402   : > { %v13205_v59 = vadd.f32 %v7795_v28, %v13144_v25  ;;  %v7485_v48 = vmul.f32 %v7173_v17, %v13995_v39  ;;  %v7251_v21 = vmul.f32 %v11759_v58, %v6915_v22 }
 0x403   : > { %v7562_v47 = vmul.f32 %v7250_v31, %v13994_v12 }
 0x404   : > { %v7696_v13 = vadd.f32 %v7485_v48, %v7484_v15  ;;  %v7563_v38 = vmul.f32 %v7251_v21, %v13995_v39 }
 0x406   : > { %v7796_v9 = vadd.f32 %v7696_v13, %v7692_v10  ;;  %v7697_v49 = vadd.f32 %v7563_v38, %v7562_v47 }
 0x408   : > { %v13212_v34 = vadd.f32 %v7796_v9, %v13153_v20  ;;  %v7797_v35 = vadd.f32 %v7697_v49, %v7693_v33 }
 0x40a   : > { %v13215_v5 = vadd.f32 %v7797_v35, %v13155_v57 }
 0x40d   : > { %v6077_v25 = vpop.f32.mrb[184].mxu1 }
 0x40e   : > { %v6078_v32 = vadd.f32 %v6077_v25, %v11687_v4  ;;  %v6079_v27 = vpop.f32.mrb[185].mxu1 }
 0x40f   : > { %v6080_v40 = vadd.f32 %v6079_v27, %v11687_v4  ;;  %v6081_v44 = vpop.f32.mrb[186].mxu1 }
 0x410   : > { %v6682_v12 = vmax.f32 %v6078_v32, 0.0  ;;  %v6082_v60 = vadd.f32 %v6081_v44, %v11697_v8  ;;  %v6083_v39 = vpop.f32.mrb[187].mxu1 }
 0x411   : > { %v6683_v37 = vmax.f32 %v6080_v40, 0.0  ;;  %v6084_v10 = vadd.f32 %v6083_v39, %v11697_v8 }
 0x412   : > { %v7018_v20 = vmul.f32 %v11718_v54, %v6682_v12  ;;  %v6760_v45 = vmax.f32 %v6082_v60, 0.0 }
 0x413   : > { %v7019_v57 = vmul.f32 %v11718_v54, %v6683_v37  ;;  %v6761_v56 = vmax.f32 %v6084_v10, 0.0  ;;  %v13998_v10 = vld [vmem:[#allocation77_spill] sm:$0xff] }
 0x414   : > { %v7330_v16 = vmul.f32 %v7018_v20, %v13996_v7  ;;  %v7096_v36 = vmul.f32 %v11721_v23, %v6760_v45 }
 0x415   : > { %v7331_v52 = vmul.f32 %v7019_v57, %v13997_v43  ;;  %v7097_v46 = vmul.f32 %v11721_v23, %v6761_v56  ;;  %v6087_v3 = vpop.f32.mrb[188].mxu1 }
 0x416   : > { %v7408_v6 = vmul.f32 %v7096_v36, %v13996_v7  ;;  %v6088_v11 = vadd.f32 %v6087_v3, %v11703_v53  ;;  %v6130_v1 = vpop.f32.mrb[196].mxu0  ;;  %v6089_v62 = vpop.f32.mrb[189].mxu1 }
 0x417   : > { %v7698_v51 = vadd.f32 %v7331_v52, %v7330_v16  ;;  %v7409_v0 = vmul.f32 %v7097_v46, %v13997_v43  ;;  %v6131_v55 = vadd.f32 %v6130_v1, %v11687_v4  ;;  %v6090_v24 = vadd.f32 %v6089_v62, %v11703_v53  ;;  %v6132_v63 = vpop.f32.mrb[197].mxu0  ;;  %v6091_v33 = vpop.f32.mrb[190].mxu1  ;;  %v13999_v16 = vld [vmem:[#allocation78_spill] sm:$0xff] }
 0x418   : > { %v6838_v28 = vmax.f32 %v6088_v11, 0.0  ;;  %v6133_v17 = vadd.f32 %v6132_v63, %v11687_v4  ;;  %v6134_v22 = vpop.f32.mrb[198].mxu0  ;;  %v6092_v15 = vadd.f32 %v6091_v33, %v11707_v41  ;;  %v6093_v31 = vpop.f32.mrb[191].mxu1 }
 0x419   : > { %v7699_v48 = vadd.f32 %v7409_v0, %v7408_v6  ;;  %v6684_v21 = vmax.f32 %v6131_v55, 0.0  ;;  %v6839_v47 = vmax.f32 %v6090_v24, 0.0  ;;  %v6135_v13 = vadd.f32 %v6134_v22, %v11697_v8  ;;  %v6136_v38 = vpop.f32.mrb[199].mxu0 }
 0x41a   : > { %v7174_v9 = vmul.f32 %v11747_v18, %v6838_v28  ;;  %v6685_v49 = vmax.f32 %v6133_v17, 0.0  ;;  %v6137_v35 = vadd.f32 %v6136_v38, %v11697_v8  ;;  %v6916_v25 = vmax.f32 %v6092_v15, 0.0 }
 0x41b   : > { %v7020_v32 = vmul.f32 %v11718_v54, %v6684_v21  ;;  %v7175_v27 = vmul.f32 %v11747_v18, %v6839_v47  ;;  %v6762_v40 = vmax.f32 %v6135_v13, 0.0  ;;  %v6094_v44 = vadd.f32 %v6093_v31, %v11707_v41 }
 0x41c   : > { %v7486_v12 = vmul.f32 %v7174_v9, %v13996_v7  ;;  %v7021_v60 = vmul.f32 %v11718_v54, %v6685_v49  ;;  %v6763_v39 = vmax.f32 %v6137_v35, 0.0  ;;  %v7252_v37 = vmul.f32 %v11759_v58, %v6916_v25 }
 0x41d   : > { %v7332_v20 = vmul.f32 %v7020_v32, %v13998_v10  ;;  %v7487_v45 = vmul.f32 %v7175_v27, %v13997_v43  ;;  %v7098_v57 = vmul.f32 %v11721_v23, %v6762_v40  ;;  %v6917_v56 = vmax.f32 %v6094_v44, 0.0 }
 0x41e   : > { %v7333_v36 = vmul.f32 %v7021_v60, %v13999_v16  ;;  %v7099_v52 = vmul.f32 %v11721_v23, %v6763_v39  ;;  %v6140_v46 = vpop.f32.mrb[200].mxu0  ;;  %v7564_v3 = vmul.f32 %v7252_v37, %v13996_v7 }
 0x41f   : > { %v7700_v6 = vadd.f32 %v7487_v45, %v7486_v12  ;;  %v7410_v11 = vmul.f32 %v7098_v57, %v13998_v10  ;;  %v6141_v1 = vadd.f32 %v6140_v46, %v11703_v53  ;;  %v6142_v62 = vpop.f32.mrb[201].mxu0  ;;  %v7253_v0 = vmul.f32 %v11759_v58, %v6917_v56 }
 0x420   : > { %v7702_v55 = vadd.f32 %v7333_v36, %v7332_v20  ;;  %v7411_v24 = vmul.f32 %v7099_v52, %v13999_v16  ;;  %v6143_v63 = vadd.f32 %v6142_v62, %v11703_v53  ;;  %v6144_v33 = vpop.f32.mrb[202].mxu0  ;;  %v14000_v62 = vld [vmem:[#allocation98_spill] sm:$0xff] }
 0x421   : > { %v6840_v28 = vmax.f32 %v6141_v1, 0.0  ;;  %v6145_v17 = vadd.f32 %v6144_v33, %v11707_v41  ;;  %v7565_v22 = vmul.f32 %v7253_v0, %v13997_v43  ;;  %v6146_v7 = vpop.f32.mrb[203].mxu0 }
 0x422   : > { %v13256_v15 = vadd.f32 %v7702_v55, %v7698_v51  ;;  %v7703_v31 = vadd.f32 %v7411_v24, %v7410_v11  ;;  %v6841_v21 = vmax.f32 %v6143_v63, 0.0  ;;  %v6147_v47 = vadd.f32 %v6146_v7, %v11707_v41  ;;  %v14001_v24 = vld [vmem:[#allocation99_spill] sm:$0xff] }
 0x423   : > { %v7176_v13 = vmul.f32 %v11747_v18, %v6840_v28  ;;  %v6918_v38 = vmax.f32 %v6145_v17, 0.0  ;;  %v7701_v9 = vadd.f32 %v7565_v22, %v7564_v3 }
 0x424   : > { %v13260_v49 = vadd.f32 %v7703_v31, %v7699_v48  ;;  %v7177_v35 = vmul.f32 %v11747_v18, %v6841_v21  ;;  %v6919_v25 = vmax.f32 %v6147_v47, 0.0 }
 0x425   : > { %v7488_v32 = vmul.f32 %v7176_v13, %v13998_v10  ;;  %v7254_v43 = vmul.f32 %v11759_v58, %v6918_v38 }
 0x426   : > { %v7489_v51 = vmul.f32 %v7177_v35, %v13999_v16  ;;  %v7255_v27 = vmul.f32 %v11759_v58, %v6919_v25 }
 0x427   : > { %v7566_v40 = vmul.f32 %v7254_v43, %v13998_v10 }
 0x428   : > { %v7704_v44 = vadd.f32 %v7489_v51, %v7488_v32  ;;  %v7567_v12 = vmul.f32 %v7255_v27, %v13999_v16 }
 0x42a   : > { %v13269_v60 = vadd.f32 %v7704_v44, %v7700_v6  ;;  %v7705_v48 = vadd.f32 %v7567_v12, %v7566_v40 }
 0x42c   : > { %v13271_v39 = vadd.f32 %v7705_v48, %v7701_v9 }
 0x431   : > { %v6183_v37 = vpop.f32.mrb[192].mxu1 }
 0x432   : > { %v6184_v20 = vadd.f32 %v6183_v37, %v11687_v4  ;;  %v6185_v45 = vpop.f32.mrb[193].mxu1 }
 0x433   : > { %v6186_v57 = vadd.f32 %v6185_v45, %v11687_v4  ;;  %v6187_v56 = vpop.f32.mrb[194].mxu1 }
 0x434   : > { %v6686_v36 = vmax.f32 %v6184_v20, 0.0  ;;  %v6188_v52 = vadd.f32 %v6187_v56, %v11697_v8  ;;  %v6189_v46 = vpop.f32.mrb[195].mxu1 }
 0x435   : > { %v6687_v10 = vmax.f32 %v6186_v57, 0.0  ;;  %v6190_v3 = vadd.f32 %v6189_v46, %v11697_v8 }
 0x436   : > { %v7022_v16 = vmul.f32 %v11718_v54, %v6686_v36  ;;  %v6764_v6 = vmax.f32 %v6188_v52, 0.0 }
 0x437   : > { %v7023_v11 = vmul.f32 %v11718_v54, %v6687_v10  ;;  %v6765_v1 = vmax.f32 %v6190_v3, 0.0 }
 0x438   : > { %v7334_v0 = vmul.f32 %v7022_v16, %v14000_v62  ;;  %v7100_v55 = vmul.f32 %v11721_v23, %v6764_v6 }
 0x439   : > { %v7335_v63 = vmul.f32 %v7023_v11, %v14001_v24  ;;  %v7101_v33 = vmul.f32 %v11721_v23, %v6765_v1  ;;  %v6193_v28 = vpop.f32.mrb[196].mxu1  ;;  %v14002_v1 = vld [vmem:[#allocation85_spill] sm:$0xff] }
 0x43a   : > { %v7412_v17 = vmul.f32 %v7100_v55, %v14000_v62  ;;  %v6194_v22 = vadd.f32 %v6193_v28, %v11703_v53  ;;  %v6236_v7 = vpop.f32.mrb[204].mxu0  ;;  %v6195_v31 = vpop.f32.mrb[197].mxu1  ;;  %v14003_v28 = vld [vmem:[#allocation86_spill] sm:$0xff] }
 0x43b   : > { %v7706_v21 = vadd.f32 %v7335_v63, %v7334_v0  ;;  %v7413_v47 = vmul.f32 %v7101_v33, %v14001_v24  ;;  %v6237_v13 = vadd.f32 %v6236_v7, %v11687_v4  ;;  %v6196_v38 = vadd.f32 %v6195_v31, %v11703_v53  ;;  %v6238_v9 = vpop.f32.mrb[205].mxu0  ;;  %v6197_v35 = vpop.f32.mrb[198].mxu1 }
 0x43c   : > { %v6842_v25 = vmax.f32 %v6194_v22, 0.0  ;;  %v6239_v32 = vadd.f32 %v6238_v9, %v11687_v4  ;;  %v6240_v43 = vpop.f32.mrb[206].mxu0  ;;  %v6198_v51 = vadd.f32 %v6197_v35, %v11707_v41  ;;  %v6199_v27 = vpop.f32.mrb[199].mxu1 }
 0x43d   : > { %v7707_v40 = vadd.f32 %v7413_v47, %v7412_v17  ;;  %v6688_v44 = vmax.f32 %v6237_v13, 0.0  ;;  %v6843_v12 = vmax.f32 %v6196_v38, 0.0  ;;  %v6241_v48 = vadd.f32 %v6240_v43, %v11697_v8  ;;  %v6242_v37 = vpop.f32.mrb[207].mxu0 }
 0x43e   : > { %v7178_v20 = vmul.f32 %v11747_v18, %v6842_v25  ;;  %v6689_v45 = vmax.f32 %v6239_v32, 0.0  ;;  %v6243_v57 = vadd.f32 %v6242_v37, %v11697_v8  ;;  %v6920_v56 = vmax.f32 %v6198_v51, 0.0 }
 0x43f   : > { %v7024_v36 = vmul.f32 %v11718_v54, %v6688_v44  ;;  %v7179_v52 = vmul.f32 %v11747_v18, %v6843_v12  ;;  %v6766_v46 = vmax.f32 %v6241_v48, 0.0  ;;  %v6200_v10 = vadd.f32 %v6199_v27, %v11707_v41 }
 0x440   : > { %v7490_v3 = vmul.f32 %v7178_v20, %v14000_v62  ;;  %v7025_v16 = vmul.f32 %v11718_v54, %v6689_v45  ;;  %v6767_v6 = vmax.f32 %v6243_v57, 0.0  ;;  %v7256_v11 = vmul.f32 %v11759_v58, %v6920_v56 }
 0x441   : > { %v7336_v0 = vmul.f32 %v7024_v36, %v14002_v1  ;;  %v7491_v55 = vmul.f32 %v7179_v52, %v14001_v24  ;;  %v7102_v63 = vmul.f32 %v11721_v23, %v6766_v46  ;;  %v6921_v33 = vmax.f32 %v6200_v10, 0.0 }
 0x442   : > { %v7337_v17 = vmul.f32 %v7025_v16, %v14003_v28  ;;  %v7103_v22 = vmul.f32 %v11721_v23, %v6767_v6  ;;  %v6246_v7 = vpop.f32.mrb[208].mxu0  ;;  %v7568_v31 = vmul.f32 %v7256_v11, %v14000_v62 }
 0x443   : > { %v7708_v47 = vadd.f32 %v7491_v55, %v7490_v3  ;;  %v7414_v13 = vmul.f32 %v7102_v63, %v14002_v1  ;;  %v6247_v38 = vadd.f32 %v6246_v7, %v11703_v53  ;;  %v6248_v9 = vpop.f32.mrb[209].mxu0  ;;  %v7257_v35 = vmul.f32 %v11759_v58, %v6921_v33 }
 0x444   : > { %v7710_v25 = vadd.f32 %v7337_v17, %v7336_v0  ;;  %v7415_v32 = vmul.f32 %v7103_v22, %v14003_v28  ;;  %v6249_v43 = vadd.f32 %v6248_v9, %v11703_v53  ;;  %v6250_v51 = vpop.f32.mrb[210].mxu0 }
 0x445   : > { %v6844_v27 = vmax.f32 %v6247_v38, 0.0  ;;  %v6251_v44 = vadd.f32 %v6250_v51, %v11707_v41  ;;  %v7569_v12 = vmul.f32 %v7257_v35, %v14001_v24  ;;  %v6252_v62 = vpop.f32.mrb[211].mxu0  ;;  %v14004_v51 = vld [vmem:[#allocation104_spill] sm:$0xff] }
 0x446   : > { %v7802_v48 = vadd.f32 %v7710_v25, %v7706_v21  ;;  %v7711_v37 = vadd.f32 %v7415_v32, %v7414_v13  ;;  %v6845_v20 = vmax.f32 %v6249_v43, 0.0  ;;  %v6253_v45 = vadd.f32 %v6252_v62, %v11707_v41 }
 0x447   : > { %v7180_v57 = vmul.f32 %v11747_v18, %v6844_v27  ;;  %v6922_v56 = vmax.f32 %v6251_v44, 0.0  ;;  %v7709_v36 = vadd.f32 %v7569_v12, %v7568_v31  ;;  %v14005_v12 = vld [vmem:[#allocation105_spill] sm:$0xff] }
 0x448   : > { %v7846_v52 = vadd.f32 %v7802_v48, %v13256_v15  ;;  %v7803_v46 = vadd.f32 %v7711_v37, %v7707_v40  ;;  %v7181_v10 = vmul.f32 %v11747_v18, %v6845_v20  ;;  %v6923_v3 = vmax.f32 %v6253_v45, 0.0 }
 0x449   : > { %v7492_v16 = vmul.f32 %v7180_v57, %v14002_v1  ;;  %v7258_v24 = vmul.f32 %v11759_v58, %v6922_v56 }
 0x44a   : > { %v7870_v21 = vadd.f32 %v7846_v52, %v13199_v2  ;;  %v7847_v6 = vadd.f32 %v7803_v46, %v13260_v49  ;;  %v7493_v11 = vmul.f32 %v7181_v10, %v14003_v28  ;;  %v7259_v0 = vmul.f32 %v11759_v58, %v6923_v3 }
 0x44b   : > { %v7570_v55 = vmul.f32 %v7258_v24, %v14002_v1 }
 0x44c   : > { %v7882_v15 = vadd.f32 %v7870_v21, %v13063_v42  ;;  %v7871_v40 = vadd.f32 %v7847_v6, %v13205_v59  ;;  %v7712_v63 = vadd.f32 %v7493_v11, %v7492_v16  ;;  %v7571_v33 = vmul.f32 %v7259_v0, %v14003_v28 }
 0x44e   : > { %v7883_v17 = vadd.f32 %v7871_v40, %v13071_v61  ;;  %v7804_v22 = vadd.f32 %v7712_v63, %v7708_v47  ;;  %v7713_v7 = vadd.f32 %v7571_v33, %v7570_v55  ;;  %v13328_v2 = vadd.f32 %v7882_v15, %v12600_v30 }
 0x450   : > { %v7848_v49 = vadd.f32 %v7804_v22, %v13269_v60  ;;  %v7805_v31 = vadd.f32 %v7713_v7, %v7709_v36  ;;  %v13332_v13 = vadd.f32 %v7883_v17, %v12608_v14 }
 0x452   : > { %v7872_v42 = vadd.f32 %v7848_v49, %v13212_v34  ;;  %v7849_v59 = vadd.f32 %v7805_v31, %v13271_v39 }
 0x454   : > { %v7884_v1 = vadd.f32 %v7872_v42, %v13085_v19  ;;  %v7873_v28 = vadd.f32 %v7849_v59, %v13215_v5 }
 0x455   : > { %v6289_v61 = vpop.f32.mrb[200].mxu1 }
 0x456   : > { %v7885_v47 = vadd.f32 %v7873_v28, %v13090_v26  ;;  %v6290_v30 = vadd.f32 %v6289_v61, %v11687_v4  ;;  %v6291_v38 = vpop.f32.mrb[201].mxu1  ;;  %v13341_v60 = vadd.f32 %v7884_v1, %v12619_v29 }
 0x457   : > { %v6292_v14 = vadd.f32 %v6291_v38, %v11687_v4  ;;  %v6293_v9 = vpop.f32.mrb[202].mxu1 }
 0x458   : > { %v6690_v35 = vmax.f32 %v6290_v30, 0.0  ;;  %v6294_v34 = vadd.f32 %v6293_v9, %v11697_v8  ;;  %v6295_v39 = vpop.f32.mrb[203].mxu1  ;;  %v13346_v19 = vadd.f32 %v7885_v47, %v12626_v50  ;;  %v14006_v30 = vld [vmem:[#allocation92_spill] sm:$0xff] }
 0x459   : > { %v6691_v5 = vmax.f32 %v6292_v14, 0.0  ;;  %v6296_v25 = vadd.f32 %v6295_v39, %v11697_v8 }
 0x45a   : > { %v7026_v26 = vmul.f32 %v11718_v54, %v6690_v35  ;;  %v6768_v32 = vmax.f32 %v6294_v34, 0.0  ;;  %v14007_v34 = vld [vmem:[#allocation93_spill] sm:$0xff] }
 0x45b   : > { %v7027_v43 = vmul.f32 %v11718_v54, %v6691_v5  ;;  %v6769_v29 = vmax.f32 %v6296_v25, 0.0 }
 0x45c   : > { %v7338_v27 = vmul.f32 %v7026_v26, %v14004_v51  ;;  %v7104_v44 = vmul.f32 %v11721_v23, %v6768_v32 }
 0x45d   : > { %v7339_v62 = vmul.f32 %v7027_v43, %v14005_v12  ;;  %v7105_v48 = vmul.f32 %v11721_v23, %v6769_v29  ;;  %v6299_v37 = vpop.f32.mrb[204].mxu1 }
 0x45e   : > { %v7416_v50 = vmul.f32 %v7104_v44, %v14004_v51  ;;  %v6300_v20 = vadd.f32 %v6299_v37, %v11703_v53  ;;  %v6342_v45 = vpop.f32.mrb[212].mxu0  ;;  %v6301_v57 = vpop.f32.mrb[205].mxu1 }
 0x45f   : > { %v7714_v56 = vadd.f32 %v7339_v62, %v7338_v27  ;;  %v7417_v36 = vmul.f32 %v7105_v48, %v14005_v12  ;;  %v6343_v52 = vadd.f32 %v6342_v45, %v11687_v4  ;;  %v6302_v46 = vadd.f32 %v6301_v57, %v11703_v53  ;;  %v6344_v10 = vpop.f32.mrb[213].mxu0  ;;  %v6303_v3 = vpop.f32.mrb[206].mxu1 }
 0x460   : > { %v6846_v16 = vmax.f32 %v6300_v20, 0.0  ;;  %v6345_v24 = vadd.f32 %v6344_v10, %v11687_v4  ;;  %v6346_v21 = vpop.f32.mrb[214].mxu0  ;;  %v6304_v6 = vadd.f32 %v6303_v3, %v11707_v41  ;;  %v6305_v11 = vpop.f32.mrb[207].mxu1 }
 0x461   : > { %v7715_v0 = vadd.f32 %v7417_v36, %v7416_v50  ;;  %v6692_v55 = vmax.f32 %v6343_v52, 0.0  ;;  %v6847_v15 = vmax.f32 %v6302_v46, 0.0  ;;  %v6347_v40 = vadd.f32 %v6346_v21, %v11697_v8  ;;  %v6348_v63 = vpop.f32.mrb[215].mxu0 }
 0x462   : > { %v7182_v33 = vmul.f32 %v11747_v18, %v6846_v16  ;;  %v6693_v17 = vmax.f32 %v6345_v24, 0.0  ;;  %v6349_v22 = vadd.f32 %v6348_v63, %v11697_v8  ;;  %v6924_v7 = vmax.f32 %v6304_v6, 0.0 }
 0x463   : > { %v7028_v49 = vmul.f32 %v11718_v54, %v6692_v55  ;;  %v7183_v31 = vmul.f32 %v11747_v18, %v6847_v15  ;;  %v6770_v42 = vmax.f32 %v6347_v40, 0.0  ;;  %v6306_v59 = vadd.f32 %v6305_v11, %v11707_v41 }
 0x464   : > { %v7494_v1 = vmul.f32 %v7182_v33, %v14004_v51  ;;  %v7029_v28 = vmul.f32 %v11718_v54, %v6693_v17  ;;  %v6771_v61 = vmax.f32 %v6349_v22, 0.0  ;;  %v7260_v47 = vmul.f32 %v11759_v58, %v6924_v7 }
 0x465   : > { %v7340_v38 = vmul.f32 %v7028_v49, %v14006_v30  ;;  %v7495_v14 = vmul.f32 %v7183_v31, %v14005_v12  ;;  %v7106_v9 = vmul.f32 %v11721_v23, %v6770_v42  ;;  %v6925_v35 = vmax.f32 %v6306_v59, 0.0 }
 0x466   : > { %v7341_v39 = vmul.f32 %v7029_v28, %v14007_v34  ;;  %v7107_v5 = vmul.f32 %v11721_v23, %v6771_v61  ;;  %v6352_v25 = vpop.f32.mrb[216].mxu0  ;;  %v7572_v26 = vmul.f32 %v7260_v47, %v14004_v51 }
 0x467   : > { %v7716_v32 = vadd.f32 %v7495_v14, %v7494_v1  ;;  %v7418_v43 = vmul.f32 %v7106_v9, %v14006_v30  ;;  %v6353_v29 = vadd.f32 %v6352_v25, %v11703_v53  ;;  %v6354_v27 = vpop.f32.mrb[217].mxu0  ;;  %v7261_v44 = vmul.f32 %v11759_v58, %v6925_v35  ;;  %v14008_v25 = vld [vmem:[#allocation111_spill] sm:$0xff] }
 0x468   : > { %v7718_v62 = vadd.f32 %v7341_v39, %v7340_v38  ;;  %v7419_v48 = vmul.f32 %v7107_v5, %v14007_v34  ;;  %v6355_v37 = vadd.f32 %v6354_v27, %v11703_v53  ;;  %v6356_v50 = vpop.f32.mrb[218].mxu0  ;;  %v14009_v27 = vld [vmem:[#allocation112_spill] sm:$0xff] }
 0x469   : > { %v6848_v20 = vmax.f32 %v6353_v29, 0.0  ;;  %v6357_v45 = vadd.f32 %v6356_v50, %v11707_v41  ;;  %v7573_v57 = vmul.f32 %v7261_v44, %v14005_v12  ;;  %v6358_v51 = vpop.f32.mrb[219].mxu0 }
 0x46a   : > { %v13384_v36 = vadd.f32 %v7718_v62, %v7714_v56  ;;  %v7719_v52 = vadd.f32 %v7419_v48, %v7418_v43  ;;  %v6849_v46 = vmax.f32 %v6355_v37, 0.0  ;;  %v6359_v10 = vadd.f32 %v6358_v51, %v11707_v41 }
 0x46b   : > { %v7184_v3 = vmul.f32 %v11747_v18, %v6848_v20  ;;  %v6926_v16 = vmax.f32 %v6357_v45, 0.0  ;;  %v7717_v24 = vadd.f32 %v7573_v57, %v7572_v26 }
 0x46c   : > { %v13388_v21 = vadd.f32 %v7719_v52, %v7715_v0  ;;  %v7185_v6 = vmul.f32 %v11747_v18, %v6849_v46  ;;  %v6927_v11 = vmax.f32 %v6359_v10, 0.0 }
 0x46d   : > { %v7496_v55 = vmul.f32 %v7184_v3, %v14006_v30  ;;  %v7262_v12 = vmul.f32 %v11759_v58, %v6926_v16 }
 0x46e   : > { %v7497_v56 = vmul.f32 %v7185_v6, %v14007_v34  ;;  %v7263_v15 = vmul.f32 %v11759_v58, %v6927_v11 }
 0x46f   : > { %v7574_v40 = vmul.f32 %v7262_v12, %v14006_v30 }
 0x470   : > { %v7720_v63 = vadd.f32 %v7497_v56, %v7496_v55  ;;  %v7575_v33 = vmul.f32 %v7263_v15, %v14007_v34 }
 0x471   : > { %v6395_v17 = vpop.f32.mrb[208].mxu1 }
 0x472   : > { %v13397_v22 = vadd.f32 %v7720_v63, %v7716_v32  ;;  %v7721_v0 = vadd.f32 %v7575_v33, %v7574_v40  ;;  %v6396_v7 = vadd.f32 %v6395_v17, %v11687_v4  ;;  %v6397_v49 = vpop.f32.mrb[209].mxu1  ;;  %v14010_v63 = vld [vmem:[#allocation100_spill] sm:$0xff] }
 0x473   : > { %v6398_v31 = vadd.f32 %v6397_v49, %v11687_v4  ;;  %v6399_v42 = vpop.f32.mrb[210].mxu1 }
 0x474   : > { %v13401_v59 = vadd.f32 %v7721_v0, %v7717_v24  ;;  %v6694_v1 = vmax.f32 %v6396_v7, 0.0  ;;  %v6400_v28 = vadd.f32 %v6399_v42, %v11697_v8  ;;  %v6401_v61 = vpop.f32.mrb[211].mxu1  ;;  %v14011_v7 = vld [vmem:[#allocation101_spill] sm:$0xff] }
 0x475   : > { %v6695_v47 = vmax.f32 %v6398_v31, 0.0  ;;  %v6402_v30 = vadd.f32 %v6401_v61, %v11697_v8 }
 0x476   : > { %v7030_v38 = vmul.f32 %v11718_v54, %v6694_v1  ;;  %v6772_v14 = vmax.f32 %v6400_v28, 0.0  ;;  %v6448_v9 = vpop.f32.mrb[220].mxu0 }
 0x477   : > { %v7031_v35 = vmul.f32 %v11718_v54, %v6695_v47  ;;  %v6773_v34 = vmax.f32 %v6402_v30, 0.0  ;;  %v6449_v39 = vadd.f32 %v6448_v9, %v11687_v4  ;;  %v6450_v5 = vpop.f32.mrb[221].mxu0 }
 0x478   : > { %v7342_v26 = vmul.f32 %v7030_v38, %v14008_v25  ;;  %v7108_v32 = vmul.f32 %v11721_v23, %v6772_v14  ;;  %v6451_v43 = vadd.f32 %v6450_v5, %v11687_v4  ;;  %v6452_v29 = vpop.f32.mrb[222].mxu0 }
 0x479   : > { %v7343_v44 = vmul.f32 %v7031_v35, %v14009_v27  ;;  %v7109_v62 = vmul.f32 %v11721_v23, %v6773_v34  ;;  %v6696_v48 = vmax.f32 %v6449_v39, 0.0  ;;  %v6453_v37 = vadd.f32 %v6452_v29, %v11697_v8  ;;  %v6454_v50 = vpop.f32.mrb[223].mxu0  ;;  %v6405_v20 = vpop.f32.mrb[212].mxu1 }
 0x47a   : > { %v7420_v45 = vmul.f32 %v7108_v32, %v14008_v25  ;;  %v6697_v57 = vmax.f32 %v6451_v43, 0.0  ;;  %v6455_v51 = vadd.f32 %v6454_v50, %v11697_v8  ;;  %v6406_v52 = vadd.f32 %v6405_v20, %v11703_v53  ;;  %v6407_v46 = vpop.f32.mrb[213].mxu1 }
 0x47b   : > { %v7722_v10 = vadd.f32 %v7343_v44, %v7342_v26  ;;  %v7421_v3 = vmul.f32 %v7109_v62, %v14009_v27  ;;  %v7032_v16 = vmul.f32 %v11718_v54, %v6696_v48  ;;  %v6774_v24 = vmax.f32 %v6453_v37, 0.0  ;;  %v6409_v6 = vpop.f32.mrb[214].mxu1 }
 0x47c   : > { %v7033_v11 = vmul.f32 %v11718_v54, %v6697_v57  ;;  %v6775_v55 = vmax.f32 %v6455_v51, 0.0  ;;  %v6850_v12 = vmax.f32 %v6406_v52, 0.0  ;;  %v6408_v56 = vadd.f32 %v6407_v46, %v11703_v53  ;;  %v6411_v15 = vpop.f32.mrb[215].mxu1 }
 0x47d   : > { %v7723_v40 = vadd.f32 %v7421_v3, %v7420_v45  ;;  %v7344_v33 = vmul.f32 %v7032_v16, %v14010_v63  ;;  %v7110_v17 = vmul.f32 %v11721_v23, %v6774_v24  ;;  %v6410_v0 = vadd.f32 %v6409_v6, %v11707_v41 }
 0x47e   : > { %v7345_v49 = vmul.f32 %v7033_v11, %v14011_v7  ;;  %v7111_v31 = vmul.f32 %v11721_v23, %v6775_v55  ;;  %v7186_v42 = vmul.f32 %v11747_v18, %v6850_v12  ;;  %v6851_v1 = vmax.f32 %v6408_v56, 0.0  ;;  %v6458_v28 = vpop.f32.mrb[224].mxu0 }
 0x47f   : > { %v7422_v61 = vmul.f32 %v7110_v17, %v14010_v63  ;;  %v6459_v47 = vadd.f32 %v6458_v28, %v11703_v53  ;;  %v6460_v30 = vpop.f32.mrb[225].mxu0  ;;  %v6928_v38 = vmax.f32 %v6410_v0, 0.0  ;;  %v6412_v14 = vadd.f32 %v6411_v15, %v11707_v41 }
 0x480   : > { %v7726_v9 = vadd.f32 %v7345_v49, %v7344_v33  ;;  %v7423_v35 = vmul.f32 %v7111_v31, %v14011_v7  ;;  %v7498_v34 = vmul.f32 %v7186_v42, %v14008_v25  ;;  %v7187_v39 = vmul.f32 %v11747_v18, %v6851_v1  ;;  %v6462_v5 = vpop.f32.mrb[226].mxu0 }
 0x481   : > { %v6852_v26 = vmax.f32 %v6459_v47, 0.0  ;;  %v6461_v32 = vadd.f32 %v6460_v30, %v11703_v53  ;;  %v7264_v43 = vmul.f32 %v11759_v58, %v6928_v38  ;;  %v6463_v29 = vadd.f32 %v6462_v5, %v11707_v41  ;;  %v6464_v44 = vpop.f32.mrb[227].mxu0 }
 0x482   : > { %v7810_v62 = vadd.f32 %v7726_v9, %v7722_v10  ;;  %v7727_v48 = vadd.f32 %v7423_v35, %v7422_v61  ;;  %v7499_v37 = vmul.f32 %v7187_v39, %v14009_v27  ;;  %v6929_v50 = vmax.f32 %v6412_v14, 0.0 }
 0x483   : > { %v7188_v20 = vmul.f32 %v11747_v18, %v6852_v26  ;;  %v6853_v45 = vmax.f32 %v6461_v32, 0.0  ;;  %v7576_v57 = vmul.f32 %v7264_v43, %v14008_v25  ;;  %v6930_v51 = vmax.f32 %v6463_v29, 0.0  ;;  %v14012_v29 = vld [vmem:[#allocation115_spill] sm:$0xff] }
 0x484   : > { %v13440_v52 = vadd.f32 %v7810_v62, %v13384_v36  ;;  %v7811_v46 = vadd.f32 %v7727_v48, %v7723_v40  ;;  %v7724_v3 = vadd.f32 %v7499_v37, %v7498_v34  ;;  %v7265_v16 = vmul.f32 %v11759_v58, %v6929_v50  ;;  %v14013_v50 = vld [vmem:[#allocation116_spill] sm:$0xff] }
 0x485   : > { %v7500_v24 = vmul.f32 %v7188_v20, %v14010_v63  ;;  %v7189_v10 = vmul.f32 %v11747_v18, %v6853_v45  ;;  %v7266_v6 = vmul.f32 %v11759_v58, %v6930_v51  ;;  %v6465_v11 = vadd.f32 %v6464_v44, %v11707_v41 }
 0x486   : > { %v13448_v55 = vadd.f32 %v7811_v46, %v13388_v21  ;;  %v7577_v25 = vmul.f32 %v7265_v16, %v14009_v27 }
 0x487   : > { %v7501_v36 = vmul.f32 %v7189_v10, %v14011_v7  ;;  %v6931_v12 = vmax.f32 %v6465_v11, 0.0  ;;  %v7578_v40 = vmul.f32 %v7266_v6, %v14010_v63 }
 0x488   : > { %v7725_v56 = vadd.f32 %v7577_v25, %v7576_v57 }
 0x489   : > { %v7728_v15 = vadd.f32 %v7501_v36, %v7500_v24  ;;  %v7267_v33 = vmul.f32 %v11759_v58, %v6931_v12 }
 0x48a   : > { %v6501_v17 = vpop.f32.mrb[216].mxu1 }
 0x48b   : > { %v7812_v0 = vadd.f32 %v7728_v15, %v7724_v3  ;;  %v7579_v49 = vmul.f32 %v7267_v33, %v14011_v7  ;;  %v6502_v31 = vadd.f32 %v6501_v17, %v11687_v4  ;;  %v6503_v42 = vpop.f32.mrb[217].mxu1 }
 0x48c   : > { %v6504_v21 = vadd.f32 %v6503_v42, %v11687_v4  ;;  %v6505_v1 = vpop.f32.mrb[218].mxu1 }
 0x48d   : > { %v13458_v27 = vadd.f32 %v7812_v0, %v13397_v22  ;;  %v7729_v28 = vadd.f32 %v7579_v49, %v7578_v40  ;;  %v6698_v61 = vmax.f32 %v6502_v31, 0.0  ;;  %v6506_v47 = vadd.f32 %v6505_v1, %v11697_v8  ;;  %v6507_v63 = vpop.f32.mrb[219].mxu1  ;;  %v14015_v31 = vld [vmem:[#allocation106_spill] sm:$0xff] }
 0x48e   : > { %v6699_v30 = vmax.f32 %v6504_v21, 0.0  ;;  %v6508_v38 = vadd.f32 %v6507_v63, %v11697_v8  ;;  %v6554_v14 = vpop.f32.mrb[228].mxu0 }
 0x48f   : > { %v7813_v9 = vadd.f32 %v7729_v28, %v7725_v56  ;;  %v7034_v7 = vmul.f32 %v11718_v54, %v6698_v61  ;;  %v6776_v35 = vmax.f32 %v6506_v47, 0.0  ;;  %v6555_v34 = vadd.f32 %v6554_v14, %v11687_v4  ;;  %v6556_v39 = vpop.f32.mrb[229].mxu0  ;;  %v14014_v56 = vld [vmem:[#allocation32_spill] sm:$0xff] }
 0x490   : > { %v7035_v5 = vmul.f32 %v11718_v54, %v6699_v30  ;;  %v6777_v22 = vmax.f32 %v6508_v38, 0.0  ;;  %v6557_v26 = vadd.f32 %v6556_v39, %v11687_v4  ;;  %v6558_v32 = vpop.f32.mrb[230].mxu0 }
 0x491   : > { %v13467_v43 = vadd.f32 %v7813_v9, %v13401_v59  ;;  %v7346_v44 = vmul.f32 %v7034_v7, %v14012_v29  ;;  %v7112_v62 = vmul.f32 %v11721_v23, %v6776_v35  ;;  %v6700_v48 = vmax.f32 %v6555_v34, 0.0  ;;  %v6560_v37 = vpop.f32.mrb[231].mxu0 }
 0x492   : > { %v7347_v20 = vmul.f32 %v7035_v5, %v14013_v50  ;;  %v7113_v45 = vmul.f32 %v11721_v23, %v6777_v22  ;;  %v6701_v57 = vmax.f32 %v6557_v26, 0.0  ;;  %v6559_v51 = vadd.f32 %v6558_v32, %v11697_v8  ;;  %v6511_v46 = vpop.f32.mrb[220].mxu1 }
 0x493   : > { %v7424_v3 = vmul.f32 %v7112_v62, %v14012_v29  ;;  %v7036_v16 = vmul.f32 %v11718_v54, %v6700_v48  ;;  %v6561_v59 = vadd.f32 %v6560_v37, %v11697_v8  ;;  %v6512_v24 = vadd.f32 %v6511_v46, %v11703_v53  ;;  %v6513_v10 = vpop.f32.mrb[221].mxu1 }
 0x494   : > { %v7730_v6 = vadd.f32 %v7347_v20, %v7346_v44  ;;  %v7425_v11 = vmul.f32 %v7113_v45, %v14013_v50  ;;  %v7037_v25 = vmul.f32 %v11718_v54, %v6701_v57  ;;  %v6778_v36 = vmax.f32 %v6559_v51, 0.0  ;;  %v6515_v12 = vpop.f32.mrb[222].mxu1 }
 0x495   : > { %v7348_v15 = vmul.f32 %v7036_v16, %v14014_v56  ;;  %v6779_v40 = vmax.f32 %v6561_v59, 0.0  ;;  %v6854_v33 = vmax.f32 %v6512_v24, 0.0  ;;  %v6514_v17 = vadd.f32 %v6513_v10, %v11703_v53  ;;  %v6517_v0 = vpop.f32.mrb[223].mxu1 }
 0x496   : > { %v7731_v49 = vadd.f32 %v7425_v11, %v7424_v3  ;;  %v7349_v42 = vmul.f32 %v7037_v25, %v14015_v31  ;;  %v7114_v21 = vmul.f32 %v11721_v23, %v6778_v36  ;;  %v6516_v1 = vadd.f32 %v6515_v12, %v11707_v41  ;;  %v6564_v28 = vpop.f32.mrb[232].mxu0 }
 0x497   : > { %v7115_v61 = vmul.f32 %v11721_v23, %v6779_v40  ;;  %v7190_v47 = vmul.f32 %v11747_v18, %v6854_v33  ;;  %v6855_v63 = vmax.f32 %v6514_v17, 0.0  ;;  %v6565_v30 = vadd.f32 %v6564_v28, %v11703_v53  ;;  %v6566_v38 = vpop.f32.mrb[233].mxu0 }
 0x498   : > { %v7734_v14 = vadd.f32 %v7349_v42, %v7348_v15  ;;  %v7426_v9 = vmul.f32 %v7114_v21, %v14014_v56  ;;  %v6932_v7 = vmax.f32 %v6516_v1, 0.0  ;;  %v6518_v35 = vadd.f32 %v6517_v0, %v11707_v41  ;;  %v6568_v34 = vpop.f32.mrb[234].mxu0 }
 0x499   : > { %v7427_v39 = vmul.f32 %v7115_v61, %v14015_v31  ;;  %v7502_v5 = vmul.f32 %v7190_v47, %v14012_v29  ;;  %v7191_v22 = vmul.f32 %v11747_v18, %v6855_v63  ;;  %v6856_v26 = vmax.f32 %v6565_v30, 0.0  ;;  %v6570_v32 = vpop.f32.mrb[235].mxu0 }
 0x49a   : > { %v7814_v44 = vadd.f32 %v7734_v14, %v7730_v6  ;;  %v7268_v62 = vmul.f32 %v11759_v58, %v6932_v7  ;;  %v6933_v48 = vmax.f32 %v6518_v35, 0.0  ;;  %v6567_v37 = vadd.f32 %v6566_v38, %v11703_v53 }
 0x49b   : > { %v7735_v20 = vadd.f32 %v7427_v39, %v7426_v9  ;;  %v7503_v45 = vmul.f32 %v7191_v22, %v14013_v50  ;;  %v7192_v57 = vmul.f32 %v11747_v18, %v6856_v26  ;;  %v6569_v51 = vadd.f32 %v6568_v34, %v11707_v41  ;;  %v14016_v39 = vld [vmem:[#allocation52_spill] sm:$0xff] }
 0x49c   : > { %v7580_v46 = vmul.f32 %v7268_v62, %v14012_v29  ;;  %v7269_v3 = vmul.f32 %v11759_v58, %v6933_v48  ;;  %v6857_v16 = vmax.f32 %v6567_v37, 0.0  ;;  %v6571_v59 = vadd.f32 %v6570_v32, %v11707_v41 }
 0x49d   : > { %v7815_v24 = vadd.f32 %v7735_v20, %v7731_v49  ;;  %v7732_v10 = vadd.f32 %v7503_v45, %v7502_v5  ;;  %v6934_v6 = vmax.f32 %v6569_v51, 0.0  ;;  %v7504_v11 = vmul.f32 %v7192_v57, %v14014_v56 }
 0x49e   : > { %v7581_v25 = vmul.f32 %v7269_v3, %v14013_v50  ;;  %v7193_v36 = vmul.f32 %v11747_v18, %v6857_v16  ;;  %v6935_v12 = vmax.f32 %v6571_v59, 0.0 }
 0x49f   : > { %v7270_v15 = vmul.f32 %v11759_v58, %v6934_v6 }
 0x4a0   : > { %v7733_v40 = vadd.f32 %v7581_v25, %v7580_v46  ;;  %v7505_v29 = vmul.f32 %v7193_v36, %v14015_v31  ;;  %v7271_v33 = vmul.f32 %v11759_v58, %v6935_v12 }
 0x4a1   : > { %v7582_v17 = vmul.f32 %v7270_v15, %v14014_v56 }
 0x4a2   : > { %v7736_v0 = vadd.f32 %v7505_v29, %v7504_v11  ;;  %v7583_v49 = vmul.f32 %v7271_v33, %v14015_v31  ;;  %v6607_v42 = vpop.f32.mrb[224].mxu1 }
 0x4a3   : > { %v6608_v21 = vadd.f32 %v6607_v42, %v11687_v4  ;;  %v6609_v1 = vpop.f32.mrb[225].mxu1 }
 0x4a4   : > { %v7816_v50 = vadd.f32 %v7736_v0, %v7732_v10  ;;  %v7737_v28 = vadd.f32 %v7583_v49, %v7582_v17  ;;  %v6610_v61 = vadd.f32 %v6609_v1, %v11687_v4  ;;  %v6611_v47 = vpop.f32.mrb[226].mxu1  ;;  %v14017_v4 = vld [vmem:[#allocation118_spill] sm:$0xff] }
 0x4a5   : > { %v6702_v63 = vmax.f32 %v6608_v21, 0.0  ;;  %v6612_v30 = vadd.f32 %v6611_v47, %v11697_v8  ;;  %v6613_v38 = vpop.f32.mrb[227].mxu1 }
 0x4a6   : > { %v7817_v14 = vadd.f32 %v7737_v28, %v7733_v40  ;;  %v6703_v9 = vmax.f32 %v6610_v61, 0.0  ;;  %v6614_v56 = vadd.f32 %v6613_v38, %v11697_v8  ;;  %v7908_v38 = vpop.permute.xlu0 %7907 }
 0x4a7   : > { %v7038_v7 = vmul.f32 %v11718_v54, %v6702_v63  ;;  %v6780_v31 = vmax.f32 %v6612_v30, 0.0 }
 0x4a8   : > { %v7039_v35 = vmul.f32 %v11718_v54, %v6703_v9  ;;  %v6781_v34 = vmax.f32 %v6614_v56, 0.0 }
 0x4a9   : > { %v7350_v5 = vmul.f32 %v7038_v7, %v14016_v39  ;;  %v7116_v22 = vmul.f32 %v11721_v23, %v6780_v31 }
 0x4aa   : > { %v7351_v26 = vmul.f32 %v7039_v35, %v14017_v4  ;;  %v7117_v32 = vmul.f32 %v11721_v23, %v6781_v34  ;;  %v6617_v62 = vpop.f32.mrb[228].mxu1 }
 0x4ab   : > { %v7428_v48 = vmul.f32 %v7116_v22, %v14016_v39  ;;  %v6618_v37 = vadd.f32 %v6617_v62, %v11703_v53  ;;  %v6619_v8 = vpop.f32.mrb[229].mxu1 }
 0x4ac   : > { %v7738_v20 = vadd.f32 %v7351_v26, %v7350_v5  ;;  %v7429_v45 = vmul.f32 %v7117_v32, %v14017_v4  ;;  %v6620_v54 = vadd.f32 %v6619_v8, %v11703_v53  ;;  %v6621_v57 = vpop.f32.mrb[230].mxu1 }
 0x4ad   : > { %v6858_v51 = vmax.f32 %v6618_v37, 0.0  ;;  %v6622_v46 = vadd.f32 %v6621_v57, %v11707_v41  ;;  %v6623_v3 = vpop.f32.mrb[231].mxu1 }
 0x4ae   : > { %v7854_v16 = vadd.f32 %v7814_v44, %v7738_v20  ;;  %v7739_v59 = vadd.f32 %v7429_v45, %v7428_v48  ;;  %v6859_v10 = vmax.f32 %v6620_v54, 0.0  ;;  %v6624_v23 = vadd.f32 %v6623_v3, %v11707_v41 }
 0x4af   : > { %v7194_v6 = vmul.f32 %v11747_v18, %v6858_v51  ;;  %v6936_v11 = vmax.f32 %v6622_v46, 0.0 }
 0x4b0   : > { %v7874_v25 = vadd.f32 %v7854_v16, %v13440_v52  ;;  %v7855_v36 = vadd.f32 %v7815_v24, %v7739_v59  ;;  %v7195_v12 = vmul.f32 %v11747_v18, %v6859_v10  ;;  %v6937_v15 = vmax.f32 %v6624_v23, 0.0 }
 0x4b1   : > { %v7506_v53 = vmul.f32 %v7194_v6, %v14016_v39  ;;  %v7272_v40 = vmul.f32 %v11759_v58, %v6936_v11 }
 0x4b2   : > { %v7890_v29 = vadd.f32 %v13328_v2, %v7874_v25  ;;  %v7875_v44 = vadd.f32 %v7855_v36, %v13448_v55  ;;  %v7507_v33 = vmul.f32 %v7195_v12, %v14017_v4  ;;  %v7273_v41 = vmul.f32 %v11759_v58, %v6937_v15 }
 0x4b3   : > { %v7584_v17 = vmul.f32 %v7272_v40, %v14016_v39 }
 0x4b4   : > { %v7891_v52 = vadd.f32 %v13332_v13, %v7875_v44  ;;  %v7740_v24 = vadd.f32 %v7507_v33, %v7506_v53  ;;  %v7585_v18 = vmul.f32 %v7273_v41, %v14017_v4 }
 0x4b6   : > { %v7894_v0 = vadd.f32 %v7891_v52, %v7890_v29  ;;  %v7856_v49 = vadd.f32 %v7816_v50, %v7740_v24  ;;  %v7741_v42 = vadd.f32 %v7585_v18, %v7584_v17  ;;  %v14018_v50 = vld [vmem:[#allocation3_spill] sm:$0xff] }
 0x4b7   : > { %v7913_v56 = vrot.slane %v7908_v38, %v14018_v50 }
 0x4b8   : > { %v7876_v21 = vadd.f32 %v7856_v49, %v13458_v27  ;;  %v7857_v2 = vadd.f32 %v7817_v14, %v7741_v42 }
 0x4ba   : > { %v7892_v55 = vadd.f32 %v13341_v60, %v7876_v21  ;;  %v7877_v1 = vadd.f32 %v7857_v2, %v13467_v43 }
 0x4bc   : > { %v7895_v28 = vadd.f32 %v7894_v0, %v7892_v55  ;;  %v7893_v58 = vadd.f32 %v13346_v19, %v7877_v1 }
 0x4be   : > { %v7896_v61 = vadd.f32 %v7895_v28, %v7893_v58 }
 0x4c0   : > { %v7897_v47 = vrot.slane %v7896_v61, 4 }
 0x4c2   : > { %v7898_v13 = vadd.f32 %v7897_v47, %v7896_v61 }
 0x4c4   : > { %v7899_v63 = vrot.slane %v7898_v13, 2 }
 0x4c6   : > { %v7900_v30 = vadd.f32 %v7899_v63, %v7898_v13 }
 0x4c8   : > { %v7901_v9 = vrot.slane %v7900_v30, 1 }
 0x4ca   : > { %v7902_v7 = vadd.f32 %v7901_v9, %v7900_v30 }
 0x4cc   : > { %v7914_v60 = vadd.f32 %v7913_v56, %v7902_v7 }
 0x4ce   : > { %7915 = vst [vmem:[%s303_s18] sm:$0x1] %v7914_v60 }
 0x4cf PF: > { %s20_s29 = sadd.s32 1, %s8227_s29  }
 0x4d0   : > { %p17_p4 = scmp.ge.s32.totalorder %s20_s29, 4  }
 0x4d2   :  { %19 = sbr.rel (!%p17_p4) target bundleno = 3 (0x3), region = 82 }

</bundles_post_ra>
